<compile_context>
chip_gen: v6e
topology: v6e:2x2x1
jax: 0.10.0
libtpu: 0.0.40
codegen_flags: <defaults>
</compile_context>

<pallas_src>
import functools

import jax
import jax.numpy as jnp
from jax.experimental import pallas as pl
from jax.experimental.pallas import tpu as pltpu

_PAD = 8  # aligned guard width on each side of the padded VMEM scratch image


# ----------------------------------------------------------------------------
# Kernel 1: ConvTranspose2d, kernel_size=2, stride=2, padding=0.
# One matmul: (H*W, Cin) @ (Cin, 4*Cout); tap layout (kh, kw, cout) on lanes.
# The 2x2 interleave into (N, 2H, 2W, Cout) is done by a reshape/transpose in
# the wrapper (cheap at these sizes; avoids cross sublane/lane relayout in-kernel).
# ----------------------------------------------------------------------------
def _convT_kernel(x_ref, w_ref, b_ref, o_ref):
    # x_ref: (1, H, W, Cin), w_ref: (Cin, 4*Cout), b_ref: (1, 4*Cout)
    # o_ref: (1, H, W, 4*Cout)
    _, H, W, Cin = x_ref.shape
    C4 = w_ref.shape[1]
    x = x_ref[0].reshape(H * W, Cin)
    y = jnp.dot(x, w_ref[...], preferred_element_type=jnp.float32) + b_ref[0]
    o_ref[0] = y.reshape(H, W, C4).astype(o_ref.dtype)


def conv_transpose_2x2(x_nhwc, wt, bias):
    """x_nhwc: (N,H,W,Cin). wt: torch layout (Cin, Cout, 2, 2). bias: (Cout,)."""
    N, H, W, Cin = x_nhwc.shape
    Cout = wt.shape[1]
    # column index (kh*2 + kw)*Cout + co  ->  wt[ci, co, kh, kw]
    w_up = jnp.transpose(wt, (0, 2, 3, 1)).reshape(Cin, 4 * Cout)
    b_up = jnp.tile(bias, 4).reshape(1, 4 * Cout)

    out = pl.pallas_call(
        _convT_kernel,
        out_shape=jax.ShapeDtypeStruct((N, H, W, 4 * Cout), x_nhwc.dtype),
        grid=(N,),
        in_specs=[
            pl.BlockSpec((1, H, W, Cin), lambda n: (n, 0, 0, 0)),
            pl.BlockSpec((Cin, 4 * Cout), lambda n: (0, 0)),
            pl.BlockSpec((1, 4 * Cout), lambda n: (0, 0)),
        ],
        out_specs=pl.BlockSpec((1, H, W, 4 * Cout), lambda n: (n, 0, 0, 0)),
        compiler_params=pltpu.CompilerParams(dimension_semantics=("parallel",)),
    )(x_nhwc, w_up, b_up)

    # pixel-shuffle: out[n, 2i+kh, 2j+kw, c]
    out = out.reshape(N, H, W, 2, 2, Cout)
    out = out.transpose(0, 1, 3, 2, 4, 5).reshape(N, 2 * H, 2 * W, Cout)
    return out


# ----------------------------------------------------------------------------
# Kernel 2: fused conv_block over (up, skip):
#   conv1(concat) + ReLU + conv2 + ReLU, replicate 'same' padding, all in VMEM.
# ----------------------------------------------------------------------------
def _store_replicate_padded(pad_ref, img):
    """Write `img` (Hi,Wi,C) into pad_ref (Hi+2, 2*_PAD+Wi, C) with replicate
    padding.  The image interior starts at column _PAD (sublane-aligned); the
    replicated left/right edges are written as aligned 8-wide broadcast blocks
    whose columns _PAD-1 / _PAD+Wi carry the edge values."""
    Hi, Wi, C = img.shape
    pad_ref[1:Hi + 1, _PAD:_PAD + Wi, :] = img                      # interior
    pad_ref[0:1, _PAD:_PAD + Wi, :] = img[0:1]                      # top row
    pad_ref[Hi + 1:Hi + 2, _PAD:_PAD + Wi, :] = img[Hi - 1:Hi]      # bottom row
    # left / right edge columns (corners come for free from the rows above)
    left = pad_ref[:, _PAD:_PAD + 1, :]                             # (Hi+2,1,C)
    pad_ref[:, 0:_PAD, :] = jnp.broadcast_to(left, (Hi + 2, _PAD, C))
    right = pad_ref[:, _PAD + Wi - 1:_PAD + Wi, :]
    pad_ref[:, _PAD + Wi:_PAD + Wi + _PAD, :] = jnp.broadcast_to(
        right, (Hi + 2, _PAD, C))


def _im2col_3x3(pad_ref, Ho, Wo, C):
    """Build (Ho*Wo, 9*C) patches from a replicate-padded scratch image.
    Column order is (kh, kw, c), matching the packed conv weights."""
    cols = []
    for kh in range(3):
        for kw in range(3):
            c0 = _PAD - 1 + kw
            block = pad_ref[kh:kh + Ho, c0:c0 + Wo, :]
            cols.append(block.reshape(Ho * Wo, C))
    return jnp.concatenate(cols, axis=-1)


def _conv_block_kernel(up_ref, skip_ref, w1a_ref, w1b_ref, b1_ref, w2_ref,
                       b2_ref, o_ref, up_pad, skip_pad, h1_pad, *, Ho, Wo, C):
    # up_ref/skip_ref: (1, Ho, Wo, C); w*: (9*C, C); b*: (1, C)
    # o_ref: (1, Ho, Wo, C); scratch: (Ho+2, 2*_PAD+Wo, C) f32
    _store_replicate_padded(up_pad, up_ref[0].astype(jnp.float32))
    _store_replicate_padded(skip_pad, skip_ref[0].astype(jnp.float32))

    # conv1 over concat([up, skip], channels) == dot(up_patches, W1a)
    #                                          + dot(skip_patches, W1b)
    p_up = _im2col_3x3(up_pad, Ho, Wo, C)         # (Ho*Wo, 9C)
    p_sk = _im2col_3x3(skip_pad, Ho, Wo, C)       # (Ho*Wo, 9C)
    h1 = jnp.dot(p_up, w1a_ref[...], preferred_element_type=jnp.float32)
    h1 = h1 + jnp.dot(p_sk, w1b_ref[...], preferred_element_type=jnp.float32)
    h1 = jnp.maximum(h1 + b1_ref[0], 0.0)         # conv1 + ReLU

    # conv2 + ReLU (dropout is identity in eval mode)
    _store_replicate_padded(h1_pad, h1.reshape(Ho, Wo, C))
    p1 = _im2col_3x3(h1_pad, Ho, Wo, C)
    h2 = jnp.dot(p1, w2_ref[...], preferred_element_type=jnp.float32) + b2_ref[0]
    h2 = jnp.maximum(h2, 0.0)

    o_ref[0] = h2.reshape(Ho, Wo, C).astype(o_ref.dtype)


def conv_block(up_nhwc, skip_nhwc, w1, b1, w2, b2):
    """up_nhwc, skip_nhwc: (N,Ho,Wo,C).  w1: (C, 2C, 3, 3), w2: (C, C, 3, 3)."""
    N, Ho, Wo, C = up_nhwc.shape
    # Split conv1 weight over the (up, skip) channel halves -> concat never
    # materialized.  im2col weight row order = (kh, kw, cin).
    w1a = jnp.transpose(w1[:, :C], (2, 3, 1, 0)).reshape(9 * C, C)
    w1b = jnp.transpose(w1[:, C:], (2, 3, 1, 0)).reshape(9 * C, C)
    w2m = jnp.transpose(w2, (2, 3, 1, 0)).reshape(9 * C, C)
    b1m = b1.reshape(1, C)
    b2m = b2.reshape(1, C)

    kernel = functools.partial(_conv_block_kernel, Ho=Ho, Wo=Wo, C=C)
    pad_shape = (Ho + 2, Wo + 2 * _PAD, C)
    return pl.pallas_call(
        kernel,
        out_shape=jax.ShapeDtypeStruct((N, Ho, Wo, C), up_nhwc.dtype),
        grid=(N,),
        in_specs=[
            pl.BlockSpec((1, Ho, Wo, C), lambda n: (n, 0, 0, 0)),
            pl.BlockSpec((1, Ho, Wo, C), lambda n: (n, 0, 0, 0)),
            pl.BlockSpec((9 * C, C), lambda n: (0, 0)),
            pl.BlockSpec((9 * C, C), lambda n: (0, 0)),
            pl.BlockSpec((1, C), lambda n: (0, 0)),
            pl.BlockSpec((9 * C, C), lambda n: (0, 0)),
            pl.BlockSpec((1, C), lambda n: (0, 0)),
        ],
        out_specs=pl.BlockSpec((1, Ho, Wo, C), lambda n: (n, 0, 0, 0)),
        scratch_shapes=[
            pltpu.VMEM(pad_shape, jnp.float32),   # padded up image
            pltpu.VMEM(pad_shape, jnp.float32),   # padded skip image
            pltpu.VMEM(pad_shape, jnp.float32),   # padded conv1 output
        ],
        compiler_params=pltpu.CompilerParams(dimension_semantics=("parallel",)),
    )(up_nhwc, skip_nhwc, w1a, w1b, b1m, w2m, b2m)


# ----------------------------------------------------------------------------
# decoder_block forward
# ----------------------------------------------------------------------------
def init_params(key, in_c, out_c):
    ks = jax.random.split(key, 6)
    scale = 0.1
    return {
        # ConvTranspose2d(in_c, out_c, 2, 2): weight (in_c, out_c, 2, 2)
        "up_w": scale * jax.random.normal(ks[0], (in_c, out_c, 2, 2), jnp.float32),
        "up_b": scale * jax.random.normal(ks[1], (out_c,), jnp.float32),
        # Conv2d(2*out_c, out_c, 3, 3): weight (out_c, 2*out_c, 3, 3)
        "c1_w": scale * jax.random.normal(ks[2], (out_c, 2 * out_c, 3, 3), jnp.float32),
        "c1_b": scale * jax.random.normal(ks[3], (out_c,), jnp.float32),
        # Conv2d(out_c, out_c, 3, 3)
        "c2_w": scale * jax.random.normal(ks[4], (out_c, out_c, 3, 3), jnp.float32),
        "c2_b": scale * jax.random.normal(ks[5], (out_c,), jnp.float32),
    }


@jax.jit
def decoder_block_forward(params, inputs_nchw, skip_nchw):
    # NCHW -> NHWC (channels on the lane axis)
    x = jnp.transpose(inputs_nchw, (0, 2, 3, 1))
    skip = jnp.transpose(skip_nchw, (0, 2, 3, 1))

    # up-sample: ConvTranspose2d(k=2, s=2)
    up = conv_transpose_2x2(x, params["up_w"], params["up_b"])

    # fused: (implicit concat) -> conv1 -> ReLU -> conv2 -> ReLU
    y = conv_block(up, skip, params["c1_w"], params["c1_b"],
                   params["c2_w"], params["c2_b"])

    # NHWC -> NCHW
    return jnp.transpose(y, (0, 3, 1, 2))


if __name__ == "__main__":
    in_c, out_c = 8, 4
    N, H, W = 2, 8, 8  # inputs spatial 8x8 -> upsampled/skip spatial 16x16

    key = jax.random.PRNGKey(0)
    k_in, k_skip, k_par = jax.random.split(key, 3)
    inputs = jax.random.normal(k_in, (N, in_c, H, W), jnp.float32)           # NCHW
    skip = jax.random.normal(k_skip, (N, out_c, 2 * H, 2 * W), jnp.float32)  # NCHW
    params = init_params(k_par, in_c, out_c)

    out = decoder_block_forward(params, inputs, skip)
    jax.block_until_ready(out)
    assert out.shape == (N, out_c, 2 * H, 2 * W), out.shape
    print("KERNEL_OK")
</pallas_src>

<mosaic_0001>
module attributes {stable_mosaic.version = 11 : i64} {
  func.func @_convT_kernel(%arg0: i32, %arg1: memref<1x8x8x8xf32, #tpu.memory_space<vmem>>, %arg2: memref<8x16xf32, #tpu.memory_space<vmem>>, %arg3: memref<1x16xf32, #tpu.memory_space<vmem>>, %arg4: memref<1x8x8x16xf32, #tpu.memory_space<vmem>>) attributes {dimension_semantics = [#tpu.dimension_semantics<parallel>], iteration_bounds = array<i64: 2>, scalar_prefetch = 0 : i64, scratch_operands = 0 : i64, tpu.core_type = #tpu.core_type<tc>, window_params = [{transform_indices = @transform_0, window_bounds = array<i64: 1, 8, 8, 8>}, {pipeline_mode = #tpu.pipeline_mode<synchronous>, transform_indices = @transform_1, window_bounds = array<i64: 8, 16>}, {pipeline_mode = #tpu.pipeline_mode<synchronous>, transform_indices = @transform_2, window_bounds = array<i64: 1, 16>}, {transform_indices = @transform_3, window_bounds = array<i64: 1, 8, 8, 16>}]} {
    %c0 = arith.constant 0 : index
    %c0_0 = arith.constant 0 : index
    %c0_1 = arith.constant 0 : index
    %c0_2 = arith.constant 0 : index
    %0 = vector.load %arg1[%c0, %c0_0, %c0_1, %c0_2] : memref<1x8x8x8xf32, #tpu.memory_space<vmem>>, vector<1x8x8x8xf32>
    %1 = vector.shape_cast %0 : vector<1x8x8x8xf32> to vector<8x8x8xf32>
    %2 = vector.shape_cast %1 : vector<8x8x8xf32> to vector<64x8xf32>
    %c0_3 = arith.constant 0 : index
    %c0_4 = arith.constant 0 : index
    %3 = vector.load %arg2[%c0_3, %c0_4] : memref<8x16xf32, #tpu.memory_space<vmem>>, vector<8x16xf32>
    %cst = arith.constant dense<0.000000e+00> : vector<64x16xf32>
    %4 = tpu.matmul %2, %3, %cst {dimension_numbers = #tpu.dot_dimension_numbers<[1], [0], [0], [1], [0, 0, 1, 1], [], []>} : vector<64x8xf32>, vector<8x16xf32>, vector<64x16xf32> -> vector<64x16xf32>
    %c0_5 = arith.constant 0 : index
    %c0_6 = arith.constant 0 : index
    %5 = vector.load %arg3[%c0_5, %c0_6] : memref<1x16xf32, #tpu.memory_space<vmem>>, vector<1x16xf32>
    %6 = vector.shape_cast %5 : vector<1x16xf32> to vector<16xf32>
    %7 = vector.shape_cast %6 : vector<16xf32> to vector<1x16xf32>
    %8 = vector.broadcast %7 : vector<1x16xf32> to vector<64x16xf32>
    %9 = arith.addf %4, %8 : vector<64x16xf32>
    %10 = vector.shape_cast %9 : vector<64x16xf32> to vector<8x8x16xf32>
    %c0_7 = arith.constant 0 : index
    %c0_8 = arith.constant 0 : index
    %c0_9 = arith.constant 0 : index
    %c0_10 = arith.constant 0 : index
    %11 = vector.load %arg4[%c0_7, %c0_8, %c0_9, %c0_10] : memref<1x8x8x16xf32, #tpu.memory_space<vmem>>, vector<1x8x8x16xf32>
    %12 = vector.shape_cast %11 : vector<1x8x8x16xf32> to vector<8x8x16xf32>
    %13 = vector.shape_cast %10 : vector<8x8x16xf32> to vector<1x8x8x16xf32>
    tpu.vector_store %arg4[%c0_7, %c0_8, %c0_9, %c0_10], %13 {strides = array<i32>} : memref<1x8x8x16xf32, #tpu.memory_space<vmem>>, vector<1x8x8x16xf32>,
    return
  }
  func.func @transform_0(%arg0: i32) -> (i32, i32, i32, i32) {
    %c0_i32 = arith.constant 0 : i32
    %c0_i32_0 = arith.constant 0 : i32
    %c0_i32_1 = arith.constant 0 : i32
    %c0_i32_2 = arith.constant 0 : i32
    return %arg0, %c0_i32, %c0_i32_0, %c0_i32_1 : i32, i32, i32, i32
  }
  func.func @transform_1(%arg0: i32) -> (i32, i32) {
    %c0_i32 = arith.constant 0 : i32
    %c0_i32_0 = arith.constant 0 : i32
    %c0_i32_1 = arith.constant 0 : i32
    return %c0_i32, %c0_i32_0 : i32, i32
  }
  func.func @transform_2(%arg0: i32) -> (i32, i32) {
    %c0_i32 = arith.constant 0 : i32
    %c0_i32_0 = arith.constant 0 : i32
    %c0_i32_1 = arith.constant 0 : i32
    return %c0_i32, %c0_i32_0 : i32, i32
  }
  func.func @transform_3(%arg0: i32) -> (i32, i32, i32, i32) {
    %c0_i32 = arith.constant 0 : i32
    %c0_i32_0 = arith.constant 0 : i32
    %c0_i32_1 = arith.constant 0 : i32
    %c0_i32_2 = arith.constant 0 : i32
    return %arg0, %c0_i32, %c0_i32_0, %c0_i32_1 : i32, i32, i32, i32
  }
}

module attributes {stable_mosaic.version = 11 : i64} {
  func.func @_conv_block_kernel(%arg0: i32, %arg1: memref<1x16x16x4xf32, #tpu.memory_space<vmem>>, %arg2: memref<1x16x16x4xf32, #tpu.memory_space<vmem>>, %arg3: memref<36x4xf32, #tpu.memory_space<vmem>>, %arg4: memref<36x4xf32, #tpu.memory_space<vmem>>, %arg5: memref<1x4xf32, #tpu.memory_space<vmem>>, %arg6: memref<36x4xf32, #tpu.memory_space<vmem>>, %arg7: memref<1x4xf32, #tpu.memory_space<vmem>>, %arg8: memref<1x16x16x4xf32, #tpu.memory_space<vmem>>, %arg9: memref<18x32x4xf32, #tpu.memory_space<vmem>>, %arg10: memref<18x32x4xf32, #tpu.memory_space<vmem>>, %arg11: memref<18x32x4xf32, #tpu.memory_space<vmem>>) attributes {dimension_semantics = [#tpu.dimension_semantics<parallel>], iteration_bounds = array<i64: 2>, scalar_prefetch = 0 : i64, scratch_operands = 3 : i64, tpu.core_type = #tpu.core_type<tc>, window_params = [{transform_indices = @transform_0, window_bounds = array<i64: 1, 16, 16, 4>}, {transform_indices = @transform_1, window_bounds = array<i64: 1, 16, 16, 4>}, {pipeline_mode = #tpu.pipeline_mode<synchronous>, transform_indices = @transform_2, window_bounds = array<i64: 36, 4>}, {pipeline_mode = #tpu.pipeline_mode<synchronous>, transform_indices = @transform_3, window_bounds = array<i64: 36, 4>}, {pipeline_mode = #tpu.pipeline_mode<synchronous>, transform_indices = @transform_4, window_bounds = array<i64: 1, 4>}, {pipeline_mode = #tpu.pipeline_mode<synchronous>, transform_indices = @transform_5, window_bounds = array<i64: 36, 4>}, {pipeline_mode = #tpu.pipeline_mode<synchronous>, transform_indices = @transform_6, window_bounds = array<i64: 1, 4>}, {transform_indices = @transform_7, window_bounds = array<i64: 1, 16, 16, 4>}]} {
    %c0 = arith.constant 0 : index
    %c0_0 = arith.constant 0 : index
    %c0_1 = arith.constant 0 : index
    %c0_2 = arith.constant 0 : index
    %0 = vector.load %arg1[%c0, %c0_0, %c0_1, %c0_2] : memref<1x16x16x4xf32, #tpu.memory_space<vmem>>, vector<1x16x16x4xf32>
    %1 = vector.shape_cast %0 : vector<1x16x16x4xf32> to vector<16x16x4xf32>
    %c1 = arith.constant 1 : index
    %c8 = arith.constant 8 : index
    %c0_3 = arith.constant 0 : index
    %2 = vector.load %arg9[%c1, %c8, %c0_3] : memref<18x32x4xf32, #tpu.memory_space<vmem>>, vector<16x16x4xf32>
    tpu.vector_store %arg9[%c1, %c8, %c0_3], %1 {strides = array<i32>} : memref<18x32x4xf32, #tpu.memory_space<vmem>>, vector<16x16x4xf32>,
    %3 = vector.extract_strided_slice %1 {offsets = [0, 0, 0], sizes = [1, 16, 4], strides = [1, 1, 1]} : vector<16x16x4xf32> to vector<1x16x4xf32>
    %c0_4 = arith.constant 0 : index
    %c8_5 = arith.constant 8 : index
    %c0_6 = arith.constant 0 : index
    %4 = vector.load %arg9[%c0_4, %c8_5, %c0_6] : memref<18x32x4xf32, #tpu.memory_space<vmem>>, vector<1x16x4xf32>
    tpu.vector_store %arg9[%c0_4, %c8_5, %c0_6], %3 {strides = array<i32>} : memref<18x32x4xf32, #tpu.memory_space<vmem>>, vector<1x16x4xf32>,
    %5 = vector.extract_strided_slice %1 {offsets = [15, 0, 0], sizes = [1, 16, 4], strides = [1, 1, 1]} : vector<16x16x4xf32> to vector<1x16x4xf32>
    %c17 = arith.constant 17 : index
    %c8_7 = arith.constant 8 : index
    %c0_8 = arith.constant 0 : index
    %6 = vector.load %arg9[%c17, %c8_7, %c0_8] : memref<18x32x4xf32, #tpu.memory_space<vmem>>, vector<1x16x4xf32>
    tpu.vector_store %arg9[%c17, %c8_7, %c0_8], %5 {strides = array<i32>} : memref<18x32x4xf32, #tpu.memory_space<vmem>>, vector<1x16x4xf32>,
    %c0_9 = arith.constant 0 : index
    %c8_10 = arith.constant 8 : index
    %c0_11 = arith.constant 0 : index
    %7 = vector.load %arg9[%c0_9, %c8_10, %c0_11] : memref<18x32x4xf32, #tpu.memory_space<vmem>>, vector<18x1x4xf32>
    %8 = vector.shape_cast %7 : vector<18x1x4xf32> to vector<18x1x4xf32>
    %9 = vector.broadcast %8 : vector<18x1x4xf32> to vector<18x8x4xf32>
    %c0_12 = arith.constant 0 : index
    %c0_13 = arith.constant 0 : index
    %c0_14 = arith.constant 0 : index
    %10 = vector.load %arg9[%c0_12, %c0_13, %c0_14] : memref<18x32x4xf32, #tpu.memory_space<vmem>>, vector<18x8x4xf32>
    tpu.vector_store %arg9[%c0_12, %c0_13, %c0_14], %9 {strides = array<i32>} : memref<18x32x4xf32, #tpu.memory_space<vmem>>, vector<18x8x4xf32>,
    %c0_15 = arith.constant 0 : index
    %c23 = arith.constant 23 : index
    %c0_16 = arith.constant 0 : index
    %11 = vector.load %arg9[%c0_15, %c23, %c0_16] : memref<18x32x4xf32, #tpu.memory_space<vmem>>, vector<18x1x4xf32>
    %12 = vector.shape_cast %11 : vector<18x1x4xf32> to vector<18x1x4xf32>
    %13 = vector.broadcast %12 : vector<18x1x4xf32> to vector<18x8x4xf32>
    %c0_17 = arith.constant 0 : index
    %c24 = arith.constant 24 : index
    %c0_18 = arith.constant 0 : index
    %14 = vector.load %arg9[%c0_17, %c24, %c0_18] : memref<18x32x4xf32, #tpu.memory_space<vmem>>, vector<18x8x4xf32>
    tpu.vector_store %arg9[%c0_17, %c24, %c0_18], %13 {strides = array<i32>} : memref<18x32x4xf32, #tpu.memory_space<vmem>>, vector<18x8x4xf32>,
    %c0_19 = arith.constant 0 : index
    %c0_20 = arith.constant 0 : index
    %c0_21 = arith.constant 0 : index
    %c0_22 = arith.constant 0 : index
    %15 = vector.load %arg2[%c0_19, %c0_20, %c0_21, %c0_22] : memref<1x16x16x4xf32, #tpu.memory_space<vmem>>, vector<1x16x16x4xf32>
    %16 = vector.shape_cast %15 : vector<1x16x16x4xf32> to vector<16x16x4xf32>
    %c1_23 = arith.constant 1 : index
    %c8_24 = arith.constant 8 : index
    %c0_25 = arith.constant 0 : index
    %17 = vector.load %arg10[%c1_23, %c8_24, %c0_25] : memref<18x32x4xf32, #tpu.memory_space<vmem>>, vector<16x16x4xf32>
    tpu.vector_store %arg10[%c1_23, %c8_24, %c0_25], %16 {strides = array<i32>} : memref<18x32x4xf32, #tpu.memory_space<vmem>>, vector<16x16x4xf32>,
    %18 = vector.extract_strided_slice %16 {offsets = [0, 0, 0], sizes = [1, 16, 4], strides = [1, 1, 1]} : vector<16x16x4xf32> to vector<1x16x4xf32>
    %c0_26 = arith.constant 0 : index
    %c8_27 = arith.constant 8 : index
    %c0_28 = arith.constant 0 : index
    %19 = vector.load %arg10[%c0_26, %c8_27, %c0_28] : memref<18x32x4xf32, #tpu.memory_space<vmem>>, vector<1x16x4xf32>
    tpu.vector_store %arg10[%c0_26, %c8_27, %c0_28], %18 {strides = array<i32>} : memref<18x32x4xf32, #tpu.memory_space<vmem>>, vector<1x16x4xf32>,
    %20 = vector.extract_strided_slice %16 {offsets = [15, 0, 0], sizes = [1, 16, 4], strides = [1, 1, 1]} : vector<16x16x4xf32> to vector<1x16x4xf32>
    %c17_29 = arith.constant 17 : index
    %c8_30 = arith.constant 8 : index
    %c0_31 = arith.constant 0 : index
    %21 = vector.load %arg10[%c17_29, %c8_30, %c0_31] : memref<18x32x4xf32, #tpu.memory_space<vmem>>, vector<1x16x4xf32>
    tpu.vector_store %arg10[%c17_29, %c8_30, %c0_31], %20 {strides = array<i32>} : memref<18x32x4xf32, #tpu.memory_space<vmem>>, vector<1x16x4xf32>,
    %c0_32 = arith.constant 0 : index
    %c8_33 = arith.constant 8 : index
    %c0_34 = arith.constant 0 : index
    %22 = vector.load %arg10[%c0_32, %c8_33, %c0_34] : memref<18x32x4xf32, #tpu.memory_space<vmem>>, vector<18x1x4xf32>
    %23 = vector.shape_cast %22 : vector<18x1x4xf32> to vector<18x1x4xf32>
    %24 = vector.broadcast %23 : vector<18x1x4xf32> to vector<18x8x4xf32>
    %c0_35 = arith.constant 0 : index
    %c0_36 = arith.constant 0 : index
    %c0_37 = arith.constant 0 : index
    %25 = vector.load %arg10[%c0_35, %c0_36, %c0_37] : memref<18x32x4xf32, #tpu.memory_space<vmem>>, vector<18x8x4xf32>
    tpu.vector_store %arg10[%c0_35, %c0_36, %c0_37], %24 {strides = array<i32>} : memref<18x32x4xf32, #tpu.memory_space<vmem>>, vector<18x8x4xf32>,
    %c0_38 = arith.constant 0 : index
    %c23_39 = arith.constant 23 : index
    %c0_40 = arith.constant 0 : index
    %26 = vector.load %arg10[%c0_38, %c23_39, %c0_40] : memref<18x32x4xf32, #tpu.memory_space<vmem>>, vector<18x1x4xf32>
    %27 = vector.shape_cast %26 : vector<18x1x4xf32> to vector<18x1x4xf32>
    %28 = vector.broadcast %27 : vector<18x1x4xf32> to vector<18x8x4xf32>
    %c0_41 = arith.constant 0 : index
    %c24_42 = arith.constant 24 : index
    %c0_43 = arith.constant 0 : index
    %29 = vector.load %arg10[%c0_41, %c24_42, %c0_43] : memref<18x32x4xf32, #tpu.memory_space<vmem>>, vector<18x8x4xf32>
    tpu.vector_store %arg10[%c0_41, %c24_42, %c0_43], %28 {strides = array<i32>} : memref<18x32x4xf32, #tpu.memory_space<vmem>>, vector<18x8x4xf32>,
    %c0_44 = arith.constant 0 : index
    %c7 = arith.constant 7 : index
    %c0_45 = arith.constant 0 : index
    %30 = vector.load %arg9[%c0_44, %c7, %c0_45] : memref<18x32x4xf32, #tpu.memory_space<vmem>>, vector<16x16x4xf32>
    %31 = vector.shape_cast %30 : vector<16x16x4xf32> to vector<256x4xf32>
    %c0_46 = arith.constant 0 : index
    %c8_47 = arith.constant 8 : index
    %c0_48 = arith.constant 0 : index
    %32 = vector.load %arg9[%c0_46, %c8_47, %c0_48] : memref<18x32x4xf32, #tpu.memory_space<vmem>>, vector<16x16x4xf32>
    %33 = vector.shape_cast %32 : vector<16x16x4xf32> to vector<256x4xf32>
    %c0_49 = arith.constant 0 : index
    %c9 = arith.constant 9 : index
    %c0_50 = arith.constant 0 : index
    %34 = vector.load %arg9[%c0_49, %c9, %c0_50] : memref<18x32x4xf32, #tpu.memory_space<vmem>>, vector<16x16x4xf32>
    %35 = vector.shape_cast %34 : vector<16x16x4xf32> to vector<256x4xf32>
    %c1_51 = arith.constant 1 : index
    %c7_52 = arith.constant 7 : index
    %c0_53 = arith.constant 0 : index
    %36 = vector.load %arg9[%c1_51, %c7_52, %c0_53] : memref<18x32x4xf32, #tpu.memory_space<vmem>>, vector<16x16x4xf32>
    %37 = vector.shape_cast %36 : vector<16x16x4xf32> to vector<256x4xf32>
    %c1_54 = arith.constant 1 : index
    %c8_55 = arith.constant 8 : index
    %c0_56 = arith.constant 0 : index
    %38 = vector.load %arg9[%c1_54, %c8_55, %c0_56] : memref<18x32x4xf32, #tpu.memory_space<vmem>>, vector<16x16x4xf32>
    %39 = vector.shape_cast %38 : vector<16x16x4xf32> to vector<256x4xf32>
    %c1_57 = arith.constant 1 : index
    %c9_58 = arith.constant 9 : index
    %c0_59 = arith.constant 0 : index
    %40 = vector.load %arg9[%c1_57, %c9_58, %c0_59] : memref<18x32x4xf32, #tpu.memory_space<vmem>>, vector<16x16x4xf32>
    %41 = vector.shape_cast %40 : vector<16x16x4xf32> to vector<256x4xf32>
    %c2 = arith.constant 2 : index
    %c7_60 = arith.constant 7 : index
    %c0_61 = arith.constant 0 : index
    %42 = vector.load %arg9[%c2, %c7_60, %c0_61] : memref<18x32x4xf32, #tpu.memory_space<vmem>>, vector<16x16x4xf32>
    %43 = vector.shape_cast %42 : vector<16x16x4xf32> to vector<256x4xf32>
    %c2_62 = arith.constant 2 : index
    %c8_63 = arith.constant 8 : index
    %c0_64 = arith.constant 0 : index
    %44 = vector.load %arg9[%c2_62, %c8_63, %c0_64] : memref<18x32x4xf32, #tpu.memory_space<vmem>>, vector<16x16x4xf32>
    %45 = vector.shape_cast %44 : vector<16x16x4xf32> to vector<256x4xf32>
    %c2_65 = arith.constant 2 : index
    %c9_66 = arith.constant 9 : index
    %c0_67 = arith.constant 0 : index
    %46 = vector.load %arg9[%c2_65, %c9_66, %c0_67] : memref<18x32x4xf32, #tpu.memory_space<vmem>>, vector<16x16x4xf32>
    %47 = vector.shape_cast %46 : vector<16x16x4xf32> to vector<256x4xf32>
    %48 = tpu.concatenate %31, %33, %35, %37, %39, %41, %43, %45, %47 in 1 : vector<256x4xf32>, vector<256x4xf32>, vector<256x4xf32>, vector<256x4xf32>, vector<256x4xf32>, vector<256x4xf32>, vector<256x4xf32>, vector<256x4xf32>, vector<256x4xf32> -> vector<256x36xf32>
    %c0_68 = arith.constant 0 : index
    %c7_69 = arith.constant 7 : index
    %c0_70 = arith.constant 0 : index
    %49 = vector.load %arg10[%c0_68, %c7_69, %c0_70] : memref<18x32x4xf32, #tpu.memory_space<vmem>>, vector<16x16x4xf32>
    %50 = vector.shape_cast %49 : vector<16x16x4xf32> to vector<256x4xf32>
    %c0_71 = arith.constant 0 : index
    %c8_72 = arith.constant 8 : index
    %c0_73 = arith.constant 0 : index
    %51 = vector.load %arg10[%c0_71, %c8_72, %c0_73] : memref<18x32x4xf32, #tpu.memory_space<vmem>>, vector<16x16x4xf32>
    %52 = vector.shape_cast %51 : vector<16x16x4xf32> to vector<256x4xf32>
    %c0_74 = arith.constant 0 : index
    %c9_75 = arith.constant 9 : index
    %c0_76 = arith.constant 0 : index
    %53 = vector.load %arg10[%c0_74, %c9_75, %c0_76] : memref<18x32x4xf32, #tpu.memory_space<vmem>>, vector<16x16x4xf32>
    %54 = vector.shape_cast %53 : vector<16x16x4xf32> to vector<256x4xf32>
    %c1_77 = arith.constant 1 : index
    %c7_78 = arith.constant 7 : index
    %c0_79 = arith.constant 0 : index
    %55 = vector.load %arg10[%c1_77, %c7_78, %c0_79] : memref<18x32x4xf32, #tpu.memory_space<vmem>>, vector<16x16x4xf32>
    %56 = vector.shape_cast %55 : vector<16x16x4xf32> to vector<256x4xf32>
    %c1_80 = arith.constant 1 : index
    %c8_81 = arith.constant 8 : index
    %c0_82 = arith.constant 0 : index
    %57 = vector.load %arg10[%c1_80, %c8_81, %c0_82] : memref<18x32x4xf32, #tpu.memory_space<vmem>>, vector<16x16x4xf32>
    %58 = vector.shape_cast %57 : vector<16x16x4xf32> to vector<256x4xf32>
    %c1_83 = arith.constant 1 : index
    %c9_84 = arith.constant 9 : index
    %c0_85 = arith.constant 0 : index
    %59 = vector.load %arg10[%c1_83, %c9_84, %c0_85] : memref<18x32x4xf32, #tpu.memory_space<vmem>>, vector<16x16x4xf32>
    %60 = vector.shape_cast %59 : vector<16x16x4xf32> to vector<256x4xf32>
    %c2_86 = arith.constant 2 : index
    %c7_87 = arith.constant 7 : index
    %c0_88 = arith.constant 0 : index
    %61 = vector.load %arg10[%c2_86, %c7_87, %c0_88] : memref<18x32x4xf32, #tpu.memory_space<vmem>>, vector<16x16x4xf32>
    %62 = vector.shape_cast %61 : vector<16x16x4xf32> to vector<256x4xf32>
    %c2_89 = arith.constant 2 : index
    %c8_90 = arith.constant 8 : index
    %c0_91 = arith.constant 0 : index
    %63 = vector.load %arg10[%c2_89, %c8_90, %c0_91] : memref<18x32x4xf32, #tpu.memory_space<vmem>>, vector<16x16x4xf32>
    %64 = vector.shape_cast %63 : vector<16x16x4xf32> to vector<256x4xf32>
    %c2_92 = arith.constant 2 : index
    %c9_93 = arith.constant 9 : index
    %c0_94 = arith.constant 0 : index
    %65 = vector.load %arg10[%c2_92, %c9_93, %c0_94] : memref<18x32x4xf32, #tpu.memory_space<vmem>>, vector<16x16x4xf32>
    %66 = vector.shape_cast %65 : vector<16x16x4xf32> to vector<256x4xf32>
    %67 = tpu.concatenate %50, %52, %54, %56, %58, %60, %62, %64, %66 in 1 : vector<256x4xf32>, vector<256x4xf32>, vector<256x4xf32>, vector<256x4xf32>, vector<256x4xf32>, vector<256x4xf32>, vector<256x4xf32>, vector<256x4xf32>, vector<256x4xf32> -> vector<256x36xf32>
    %c0_95 = arith.constant 0 : index
    %c0_96 = arith.constant 0 : index
    %68 = vector.load %arg3[%c0_95, %c0_96] : memref<36x4xf32, #tpu.memory_space<vmem>>, vector<36x4xf32>
    %cst = arith.constant dense<0.000000e+00> : vector<256x4xf32>
    %69 = tpu.matmul %48, %68, %cst {dimension_numbers = #tpu.dot_dimension_numbers<[1], [0], [0], [1], [0, 0, 1, 1], [], []>} : vector<256x36xf32>, vector<36x4xf32>, vector<256x4xf32> -> vector<256x4xf32>
    %c0_97 = arith.constant 0 : index
    %c0_98 = arith.constant 0 : index
    %70 = vector.load %arg4[%c0_97, %c0_98] : memref<36x4xf32, #tpu.memory_space<vmem>>, vector<36x4xf32>
    %cst_99 = arith.constant dense<0.000000e+00> : vector<256x4xf32>
    %71 = tpu.matmul %67, %70, %cst_99 {dimension_numbers = #tpu.dot_dimension_numbers<[1], [0], [0], [1], [0, 0, 1, 1], [], []>} : vector<256x36xf32>, vector<36x4xf32>, vector<256x4xf32> -> vector<256x4xf32>
    %72 = arith.addf %69, %71 : vector<256x4xf32>
    %c0_100 = arith.constant 0 : index
    %c0_101 = arith.constant 0 : index
    %73 = vector.load %arg5[%c0_100, %c0_101] : memref<1x4xf32, #tpu.memory_space<vmem>>, vector<1x4xf32>
    %74 = vector.shape_cast %73 : vector<1x4xf32> to vector<4xf32>
    %75 = vector.shape_cast %74 : vector<4xf32> to vector<1x4xf32>
    %76 = vector.broadcast %75 : vector<1x4xf32> to vector<256x4xf32>
    %77 = arith.addf %72, %76 : vector<256x4xf32>
    %cst_102 = arith.constant 0.000000e+00 : f32
    %78 = vector.broadcast %cst_102 : f32 to vector<256x4xf32>
    %79 = arith.maximumf %77, %78 : vector<256x4xf32>
    %80 = vector.shape_cast %79 : vector<256x4xf32> to vector<16x16x4xf32>
    %c1_103 = arith.constant 1 : index
    %c8_104 = arith.constant 8 : index
    %c0_105 = arith.constant 0 : index
    %81 = vector.load %arg11[%c1_103, %c8_104, %c0_105] : memref<18x32x4xf32, #tpu.memory_space<vmem>>, vector<16x16x4xf32>
    tpu.vector_store %arg11[%c1_103, %c8_104, %c0_105], %80 {strides = array<i32>} : memref<18x32x4xf32, #tpu.memory_space<vmem>>, vector<16x16x4xf32>,
    %82 = vector.extract_strided_slice %80 {offsets = [0, 0, 0], sizes = [1, 16, 4], strides = [1, 1, 1]} : vector<16x16x4xf32> to vector<1x16x4xf32>
    %c0_106 = arith.constant 0 : index
    %c8_107 = arith.constant 8 : index
    %c0_108 = arith.constant 0 : index
    %83 = vector.load %arg11[%c0_106, %c8_107, %c0_108] : memref<18x32x4xf32, #tpu.memory_space<vmem>>, vector<1x16x4xf32>
    tpu.vector_store %arg11[%c0_106, %c8_107, %c0_108], %82 {strides = array<i32>} : memref<18x32x4xf32, #tpu.memory_space<vmem>>, vector<1x16x4xf32>,
    %84 = vector.extract_strided_slice %80 {offsets = [15, 0, 0], sizes = [1, 16, 4], strides = [1, 1, 1]} : vector<16x16x4xf32> to vector<1x16x4xf32>
    %c17_109 = arith.constant 17 : index
    %c8_110 = arith.constant 8 : index
    %c0_111 = arith.constant 0 : index
    %85 = vector.load %arg11[%c17_109, %c8_110, %c0_111] : memref<18x32x4xf32, #tpu.memory_space<vmem>>, vector<1x16x4xf32>
    tpu.vector_store %arg11[%c17_109, %c8_110, %c0_111], %84 {strides = array<i32>} : memref<18x32x4xf32, #tpu.memory_space<vmem>>, vector<1x16x4xf32>,
    %c0_112 = arith.constant 0 : index
    %c8_113 = arith.constant 8 : index
    %c0_114 = arith.constant 0 : index
    %86 = vector.load %arg11[%c0_112, %c8_113, %c0_114] : memref<18x32x4xf32, #tpu.memory_space<vmem>>, vector<18x1x4xf32>
    %87 = vector.shape_cast %86 : vector<18x1x4xf32> to vector<18x1x4xf32>
    %88 = vector.broadcast %87 : vector<18x1x4xf32> to vector<18x8x4xf32>
    %c0_115 = arith.constant 0 : index
    %c0_116 = arith.constant 0 : index
    %c0_117 = arith.constant 0 : index
    %89 = vector.load %arg11[%c0_115, %c0_116, %c0_117] : memref<18x32x4xf32, #tpu.memory_space<vmem>>, vector<18x8x4xf32>
    tpu.vector_store %arg11[%c0_115, %c0_116, %c0_117], %88 {strides = array<i32>} : memref<18x32x4xf32, #tpu.memory_space<vmem>>, vector<18x8x4xf32>,
    %c0_118 = arith.constant 0 : index
    %c23_119 = arith.constant 23 : index
    %c0_120 = arith.constant 0 : index
    %90 = vector.load %arg11[%c0_118, %c23_119, %c0_120] : memref<18x32x4xf32, #tpu.memory_space<vmem>>, vector<18x1x4xf32>
    %91 = vector.shape_cast %90 : vector<18x1x4xf32> to vector<18x1x4xf32>
    %92 = vector.broadcast %91 : vector<18x1x4xf32> to vector<18x8x4xf32>
    %c0_121 = arith.constant 0 : index
    %c24_122 = arith.constant 24 : index
    %c0_123 = arith.constant 0 : index
    %93 = vector.load %arg11[%c0_121, %c24_122, %c0_123] : memref<18x32x4xf32, #tpu.memory_space<vmem>>, vector<18x8x4xf32>
    tpu.vector_store %arg11[%c0_121, %c24_122, %c0_123], %92 {strides = array<i32>} : memref<18x32x4xf32, #tpu.memory_space<vmem>>, vector<18x8x4xf32>,
    %c0_124 = arith.constant 0 : index
    %c7_125 = arith.constant 7 : index
    %c0_126 = arith.constant 0 : index
    %94 = vector.load %arg11[%c0_124, %c7_125, %c0_126] : memref<18x32x4xf32, #tpu.memory_space<vmem>>, vector<16x16x4xf32>
    %95 = vector.shape_cast %94 : vector<16x16x4xf32> to vector<256x4xf32>
    %c0_127 = arith.constant 0 : index
    %c8_128 = arith.constant 8 : index
    %c0_129 = arith.constant 0 : index
    %96 = vector.load %arg11[%c0_127, %c8_128, %c0_129] : memref<18x32x4xf32, #tpu.memory_space<vmem>>, vector<16x16x4xf32>
    %97 = vector.shape_cast %96 : vector<16x16x4xf32> to vector<256x4xf32>
    %c0_130 = arith.constant 0 : index
    %c9_131 = arith.constant 9 : index
    %c0_132 = arith.constant 0 : index
    %98 = vector.load %arg11[%c0_130, %c9_131, %c0_132] : memref<18x32x4xf32, #tpu.memory_space<vmem>>, vector<16x16x4xf32>
    %99 = vector.shape_cast %98 : vector<16x16x4xf32> to vector<256x4xf32>
    %c1_133 = arith.constant 1 : index
    %c7_134 = arith.constant 7 : index
    %c0_135 = arith.constant 0 : index
    %100 = vector.load %arg11[%c1_133, %c7_134, %c0_135] : memref<18x32x4xf32, #tpu.memory_space<vmem>>, vector<16x16x4xf32>
    %101 = vector.shape_cast %100 : vector<16x16x4xf32> to vector<256x4xf32>
    %c1_136 = arith.constant 1 : index
    %c8_137 = arith.constant 8 : index
    %c0_138 = arith.constant 0 : index
    %102 = vector.load %arg11[%c1_136, %c8_137, %c0_138] : memref<18x32x4xf32, #tpu.memory_space<vmem>>, vector<16x16x4xf32>
    %103 = vector.shape_cast %102 : vector<16x16x4xf32> to vector<256x4xf32>
    %c1_139 = arith.constant 1 : index
    %c9_140 = arith.constant 9 : index
    %c0_141 = arith.constant 0 : index
    %104 = vector.load %arg11[%c1_139, %c9_140, %c0_141] : memref<18x32x4xf32, #tpu.memory_space<vmem>>, vector<16x16x4xf32>
    %105 = vector.shape_cast %104 : vector<16x16x4xf32> to vector<256x4xf32>
    %c2_142 = arith.constant 2 : index
    %c7_143 = arith.constant 7 : index
    %c0_144 = arith.constant 0 : index
    %106 = vector.load %arg11[%c2_142, %c7_143, %c0_144] : memref<18x32x4xf32, #tpu.memory_space<vmem>>, vector<16x16x4xf32>
    %107 = vector.shape_cast %106 : vector<16x16x4xf32> to vector<256x4xf32>
    %c2_145 = arith.constant 2 : index
    %c8_146 = arith.constant 8 : index
    %c0_147 = arith.constant 0 : index
    %108 = vector.load %arg11[%c2_145, %c8_146, %c0_147] : memref<18x32x4xf32, #tpu.memory_space<vmem>>, vector<16x16x4xf32>
    %109 = vector.shape_cast %108 : vector<16x16x4xf32> to vector<256x4xf32>
    %c2_148 = arith.constant 2 : index
    %c9_149 = arith.constant 9 : index
    %c0_150 = arith.constant 0 : index
    %110 = vector.load %arg11[%c2_148, %c9_149, %c0_150] : memref<18x32x4xf32, #tpu.memory_space<vmem>>, vector<16x16x4xf32>
    %111 = vector.shape_cast %110 : vector<16x16x4xf32> to vector<256x4xf32>
    %112 = tpu.concatenate %95, %97, %99, %101, %103, %105, %107, %109, %111 in 1 : vector<256x4xf32>, vector<256x4xf32>, vector<256x4xf32>, vector<256x4xf32>, vector<256x4xf32>, vector<256x4xf32>, vector<256x4xf32>, vector<256x4xf32>, vector<256x4xf32> -> vector<256x36xf32>
    %c0_151 = arith.constant 0 : index
    %c0_152 = arith.constant 0 : index
    %113 = vector.load %arg6[%c0_151, %c0_152] : memref<36x4xf32, #tpu.memory_space<vmem>>, vector<36x4xf32>
    %cst_153 = arith.constant dense<0.000000e+00> : vector<256x4xf32>
    %114 = tpu.matmul %112, %113, %cst_153 {dimension_numbers = #tpu.dot_dimension_numbers<[1], [0], [0], [1], [0, 0, 1, 1], [], []>} : vector<256x36xf32>, vector<36x4xf32>, vector<256x4xf32> -> vector<256x4xf32>
    %c0_154 = arith.constant 0 : index
    %c0_155 = arith.constant 0 : index
    %115 = vector.load %arg7[%c0_154, %c0_155] : memref<1x4xf32, #tpu.memory_space<vmem>>, vector<1x4xf32>
    %116 = vector.shape_cast %115 : vector<1x4xf32> to vector<4xf32>
    %117 = vector.shape_cast %116 : vector<4xf32> to vector<1x4xf32>
    %118 = vector.broadcast %117 : vector<1x4xf32> to vector<256x4xf32>
    %119 = arith.addf %114, %118 : vector<256x4xf32>
    %cst_156 = arith.constant 0.000000e+00 : f32
    %120 = vector.broadcast %cst_156 : f32 to vector<256x4xf32>
    %121 = arith.maximumf %119, %120 : vector<256x4xf32>
    %122 = vector.shape_cast %121 : vector<256x4xf32> to vector<16x16x4xf32>
    %c0_157 = arith.constant 0 : index
    %c0_158 = arith.constant 0 : index
    %c0_159 = arith.constant 0 : index
    %c0_160 = arith.constant 0 : index
    %123 = vector.load %arg8[%c0_157, %c0_158, %c0_159, %c0_160] : memref<1x16x16x4xf32, #tpu.memory_space<vmem>>, vector<1x16x16x4xf32>
    %124 = vector.shape_cast %123 : vector<1x16x16x4xf32> to vector<16x16x4xf32>
    %125 = vector.shape_cast %122 : vector<16x16x4xf32> to vector<1x16x16x4xf32>
    tpu.vector_store %arg8[%c0_157, %c0_158, %c0_159, %c0_160], %125 {strides = array<i32>} : memref<1x16x16x4xf32, #tpu.memory_space<vmem>>, vector<1x16x16x4xf32>,
    return
  }
  func.func @transform_0(%arg0: i32) -> (i32, i32, i32, i32) {
    %c0_i32 = arith.constant 0 : i32
    %c0_i32_0 = arith.constant 0 : i32
    %c0_i32_1 = arith.constant 0 : i32
    %c0_i32_2 = arith.constant 0 : i32
    return %arg0, %c0_i32, %c0_i32_0, %c0_i32_1 : i32, i32, i32, i32
  }
  func.func @transform_1(%arg0: i32) -> (i32, i32, i32, i32) {
    %c0_i32 = arith.constant 0 : i32
    %c0_i32_0 = arith.constant 0 : i32
    %c0_i32_1 = arith.constant 0 : i32
    %c0_i32_2 = arith.constant 0 : i32
    return %arg0, %c0_i32, %c0_i32_0, %c0_i32_1 : i32, i32, i32, i32
  }
  func.func @transform_2(%arg0: i32) -> (i32, i32) {
    %c0_i32 = arith.constant 0 : i32
    %c0_i32_0 = arith.constant 0 : i32
    %c0_i32_1 = arith.constant 0 : i32
    return %c0_i32, %c0_i32_0 : i32, i32
  }
  func.func @transform_3(%arg0: i32) -> (i32, i32) {
    %c0_i32 = arith.constant 0 : i32
    %c0_i32_0 = arith.constant 0 : i32
    %c0_i32_1 = arith.constant 0 : i32
    return %c0_i32, %c0_i32_0 : i32, i32
  }
  func.func @transform_4(%arg0: i32) -> (i32, i32) {
    %c0_i32 = arith.constant 0 : i32
    %c0_i32_0 = arith.constant 0 : i32
    %c0_i32_1 = arith.constant 0 : i32
    return %c0_i32, %c0_i32_0 : i32, i32
  }
  func.func @transform_5(%arg0: i32) -> (i32, i32) {
    %c0_i32 = arith.constant 0 : i32
    %c0_i32_0 = arith.constant 0 : i32
    %c0_i32_1 = arith.constant 0 : i32
    return %c0_i32, %c0_i32_0 : i32, i32
  }
  func.func @transform_6(%arg0: i32) -> (i32, i32) {
    %c0_i32 = arith.constant 0 : i32
    %c0_i32_0 = arith.constant 0 : i32
    %c0_i32_1 = arith.constant 0 : i32
    return %c0_i32, %c0_i32_0 : i32, i32
  }
  func.func @transform_7(%arg0: i32) -> (i32, i32, i32, i32) {
    %c0_i32 = arith.constant 0 : i32
    %c0_i32_0 = arith.constant 0 : i32
    %c0_i32_1 = arith.constant 0 : i32
    %c0_i32_2 = arith.constant 0 : i32
    return %arg0, %c0_i32, %c0_i32_0, %c0_i32_1 : i32, i32, i32, i32
  }
}

</mosaic_0001>

<bundles_post_ra>
// kernel: tile.9
= control target key start
LH: loop header
LB: loop body
LE: loop exit
PB: predicated region body
PF: predicated region fallthrough
CT: control target
= control target key end

     0   :  { %vm8_vm0 = vcmask 31744   ;;  %s40_s8 = smov 4   ;;  %s41_s9 = smov 8   ;;  %vm14_vm1 = vcmask 130144   ;;  %vm20_vm2 = vcmask 97344   ;;  %vm26_vm3 = vcmask 64544   ;;  %s58_s0 = inlined_call_operand.vmem [shape: f32[4,4], index: 0, kind: input, shape index: {}]   ;;  %s59_s1 = inlined_call_operand.vmem [shape: f32[1,16], index: 1, kind: output, shape index: {}]  }
   0x1   :  { %v5_v0 = vld [vmem:[%s58_s0] sm:$0xf]  ;;  %s39_s0 = smov 12  }
   0x2   :  { %6 = vst [vmem:[#allocation1] sm:$0xf] %v5_v0 }
   0x9   :  { %v11_v1 = vld [vmem:[#allocation1 + $0x3] sm:$0x1]   ;;  %v23_v2 = vld [vmem:[#allocation1 + $0x1] sm:$0x1]   ;;  %v7_v3 = vld [vmem:[#allocation1] sm:$0x1]  }
   0xa   :  { %12 = vrot.lane.b32.xlu0 %v11_v1, %s39_s0  ;;  %24 = vrot.lane.b32.xlu1 %v23_v2, %s40_s8  ;;  %v17_v4 = vld [vmem:[#allocation1 + $0x2] sm:$0x1]   ;;  %9 = vst.msk [vmem:[#allocation0] sm:$0x1] %vm8_vm0, %v7_v3  }
   0xe   :  { %18 = vrot.lane.b32.xlu0 %v17_v4, %s41_s9 }
  0x7c   :  { %v13_v5 = vpop.permute.xlu0 %12   ;;  %v25_v6 = vpop.permute.xlu1 %24  }
  0x7d   :  { %15 = vst.msk [vmem:[#allocation0] sm:$0x1] %vm14_vm1, %v13_v5  }
  0x80   :  { %v19_v7 = vpop.permute.xlu0 %18  }
  0x81   :  { %21 = vst.msk [vmem:[#allocation0] sm:$0x1] %vm20_vm2, %v19_v7  }
  0x82   :  { %27 = vst.msk [vmem:[#allocation0] sm:$0x1] %vm26_vm3, %v25_v6  }
  0x89   :  { %v32_v8 = vld [vmem:[#allocation0] sm:$0x1] }
  0x8a   :  { %35 = vst [vmem:[%s59_s1] sm:$0x1] %v32_v8 }

// kernel: tile.8
= control target key start
LH: loop header
LB: loop body
LE: loop exit
PB: predicated region body
PF: predicated region fallthrough
CT: control target
= control target key end

     0   :  { %2 = vsyncpa [#allocation1], 0  ;;  %s42_s6 = smov [#allocation0]   ;;  %s59_s0 = inlined_call_operand.hbm [shape: f32[4], index: 0, kind: input, shape index: {}]   ;;  %s60_s1 = inlined_call_operand.vmem [shape: f32[4,4], index: 1, kind: output, shape index: {}]  }
   0x1   :  { %s9_s7 = sshll.u32 %s42_s6, 4  ;;  %s10_s7 = int_to_ptr.vmem [resolvable:$true] %s9_s7 }
   0x2   :  { %s28_s8 = scalar_lea.vmem %s10_s7, 16  ;;  %s32_s9 = scalar_lea.vmem %s10_s7, 32 }
   0x3   :  { %p29_p0 = scmp.ne.s32.totalorder %s10_s7, %s28_s8  ;;  %p33_p1 = scmp.lt.s32.totalorder %s10_s7, %s10_s7 }
   0x4   :  { %p34_p2 = scmp.lt.s32.totalorder %s32_s9, %s28_s8 }
   0x6   :  { %p35_p3 = por %p34_p2, %p33_p1 }
   0x8   :  { %p36_p4 = pnand %p35_p3, %p29_p0 }
   0xa   :  { %39 = shalt.err (!%p36_p4)
}
   0xb   :  { %12 = dma.hbm_to_vmem [thread:$0]  %s59_s0, 16, %s10_s7, [#allocation1]  }
   0xc   :  { %40 = dma.done.wait [#allocation1], 16  }
   0xd   :  { %41 = vsyncadd [#allocation1], 4294967280  ;;  %v16_v0 = vld [vmem:[#allocation0] ss:$0 sm:$0xff] }
   0xe   :  { %17 = vst [vmem:[%s60_s1] sm:$0xf] %v16_v0 }
   0xf   :  { %18 = vsyncpa [#allocation1], 1 }

// kernel: decoder_block_forward.2
= control target key start
LH: loop header
LB: loop body
LE: loop exit
PB: predicated region body
PF: predicated region fallthrough
CT: control target
= control target key end

     0   :  { %s464_s12 = smov 0   ;;  %s503_s0 = inlined_call_operand.vmem [shape: f32[2,8,8,8], index: 0, kind: input, shape index: {}]   ;;  %s504_s1 = inlined_call_operand.vmem [shape: f32[8,16], index: 1, kind: input, shape index: {}]   ;;  %s505_s2 = inlined_call_operand.vmem [shape: f32[1,16], index: 2, kind: input, shape index: {}]   ;;  %s506_s3 = inlined_call_operand.vmem [shape: f32[2,8,8,16], index: 3, kind: output, shape index: {}]  }
   0x1 LB: > { %s381_s13 = sadd.s32 4294967295, %s442_s12   ;;  %p385_p0 = scmp.ge.s32.totalorder %s442_s12, 1  ;;  %s442_s12 = sphi %s464_s12, %s13_s12  }
   0x2   : > { %p137_p1 = scmp.lt.s32.totalorder %s442_s12, 3 }
   0x4   : > { %p138_p2 = pnand %p385_p0, %p137_p1 }
   0x5   : > { %p161_p3 = scmp.lt.s32.totalorder (!%p138_p2), %s381_s13, 1 }
   0x6   : > { %141 = sbr.rel (%p138_p2) target bundleno = 219 (0xdb), region = 32 }
   0xb   : > { %v179_v0 = vld [vmem:[%s504_s1] sm:$0xff]  ;;  %s508_s13 = smov (!%p161_p3, %s381_s13), 1  ;;  %vm187_vm0 = vcmask 64512   ;;  %vm317_vm1 = vcmask 130048  }
   0xc   : > { %412 = vmatprep.subr.mxu0 %v179_v0  ;;  %426 = vmatprep.subr.mxu1 %v179_v0  ;;  %s401_s16 = sshll.u32 %s508_s13, 6  ;;  %v390_v9 = vld [vmem:[%s505_s2] ss:$0 sm:$0xff] }
   0xd   : > { %413 = vmatpush3.msra.mxu0 %v179_v0  ;;  %427 = vmatpush3.msra.mxu1 %v179_v0  ;;  %s165_s19 = scalar_lea.vmem %s503_s0, %s401_s16  ;;  %s170_s24 = scalar_lea.vmem %s506_s3, %s401_s16 }
   0xe   : > { %v171_v1 = vld [vmem:[%s165_s19] sm:$0xff]  ;;  %v172_v3 = vld [vmem:[%s165_s19 + $0x8] sm:$0xff]  ;;  %v173_v5 = vld [vmem:[%s165_s19 + $0x10] sm:$0xff] }
   0xf   : > { %v175_v2 = vld [vmem:[%s165_s19 + $0x20] sm:$0xff]  ;;  %414 = vmatprep.mubr.msk.f32.mxu0 %vm187_vm0, %v171_v1  ;;  %v176_v4 = vld [vmem:[%s165_s19 + $0x28] sm:$0xff]  ;;  %v177_v6 = vld [vmem:[%s165_s19 + $0x30] sm:$0xff] }
  0x10   : > { %420 = vmatprep.mubr.msk.f32.mxu1 %vm187_vm0, %v175_v2  ;;  %415 = vmatmul.mubr.msk.f32.vlgmr.msra.gmra.mxu0 %vm187_vm0, %v172_v3  ;;  %v174_v7 = vld [vmem:[%s165_s19 + $0x18] sm:$0xff] }
  0x11   : > { %421 = vmatmul.mubr.msk.f32.vlgmr.msra.gmra.mxu1 %vm187_vm0, %v176_v4  ;;  %417 = vmatprep.mubr.msk.f32.mxu0 %vm187_vm0, %v173_v5  ;;  %v178_v8 = vld [vmem:[%s165_s19 + $0x38] sm:$0xff] }
  0x12   : > { %423 = vmatprep.mubr.msk.f32.mxu1 %vm187_vm0, %v177_v6 }
  0x14   : > { %418 = vmatmul.mubr.msk.f32.gmra.mxu0 %vm187_vm0, %v174_v7 }
  0x15   : > { %424 = vmatmul.mubr.msk.f32.gmra.mxu1 %vm187_vm0, %v178_v8 }
  0xd0   : > { %v416_v10 = vpop.f32.mrf.mxu0 }
  0xd1   : > { %v422_v11 = vpop.f32.mrf.mxu1  ;;  %v284_v12 = vadd.f32 %v416_v10, %v390_v9 }
  0xd2   : > { %v304_v13 = vadd.f32 %v422_v11, %v390_v9  ;;  %v278_v14 = vpop.f32.mrf.mxu0 }
  0xd3   : > { %v298_v15 = vpop.f32.mrf.mxu1  ;;  %319 = vst.msk [vmem:[%s170_s24 + $0x8] sm:$0xff] %vm317_vm1, %v284_v12  ;;  %v279_v16 = vadd.f32 %v390_v9, %v278_v14 }
  0xd4   : > { %323 = vst.msk [vmem:[%s170_s24 + $0x28] sm:$0xff] %vm317_vm1, %v304_v13  ;;  %v299_v17 = vadd.f32 %v390_v9, %v298_v15  ;;  %v419_v18 = vpop.f32.mrf.mxu0 }
  0xd5   : > { %v425_v19 = vpop.f32.mrf.mxu1  ;;  %318 = vst.msk [vmem:[%s170_s24] sm:$0xff] %vm317_vm1, %v279_v16  ;;  %v294_v20 = vadd.f32 %v419_v18, %v390_v9 }
  0xd6   : > { %322 = vst.msk [vmem:[%s170_s24 + $0x20] sm:$0xff] %vm317_vm1, %v299_v17  ;;  %v314_v21 = vadd.f32 %v425_v19, %v390_v9  ;;  %v288_v22 = vpop.f32.mrf.mxu0 }
  0xd7   : > { %v308_v23 = vpop.f32.mrf.mxu1  ;;  %321 = vst.msk [vmem:[%s170_s24 + $0x18] sm:$0xff] %vm317_vm1, %v294_v20  ;;  %v289_v24 = vadd.f32 %v390_v9, %v288_v22 }
  0xd8   : > { %325 = vst.msk [vmem:[%s170_s24 + $0x38] sm:$0xff] %vm317_vm1, %v314_v21  ;;  %v309_v25 = vadd.f32 %v390_v9, %v308_v23 }
  0xd9   : > { %320 = vst.msk [vmem:[%s170_s24 + $0x10] sm:$0xff] %vm317_vm1, %v289_v24 }
  0xda   : > { %324 = vst.msk [vmem:[%s170_s24 + $0x30] sm:$0xff] %vm317_vm1, %v309_v25 }
  0xdb PF: > { %s13_s12 = sadd.s32 1, %s442_s12  }
  0xdc   : > { %p10_p4 = scmp.ge.s32.totalorder %s13_s12, 4  }
  0xde   :  { %12 = sbr.rel (!%p10_p4) target bundleno = 1 (0x1), region = 62 }

// kernel: decoder_block_forward.3
= control target key start
LH: loop header
LB: loop body
LE: loop exit
PB: predicated region body
PF: predicated region fallthrough
CT: control target
= control target key end

     0   :  { %s7706_s24 = smov 0   ;;  %s12872_s0 = inlined_call_operand.vmem [shape: f32[2,16,16,4], index: 0, kind: input, shape index: {}]   ;;  %s12873_s1 = inlined_call_operand.vmem [shape: f32[2,16,16,4], index: 1, kind: input, shape index: {}]   ;;  %s12874_s2 = inlined_call_operand.vmem [shape: f32[36,4], index: 2, kind: input, shape index: {}]   ;;  %s12875_s3 = inlined_call_operand.vmem [shape: f32[36,4], index: 3, kind: input, shape index: {}]   ;;  %s12876_s4 = inlined_call_operand.vmem [shape: f32[1,4], index: 4, kind: input, shape index: {}]   ;;  %s12877_s5 = inlined_call_operand.vmem [shape: f32[36,4], index: 5, kind: input, shape index: {}]   ;;  %s12878_s6 = inlined_call_operand.vmem [shape: f32[1,4], index: 6, kind: input, shape index: {}]   ;;  %s12879_s7 = inlined_call_operand.vmem [shape: f32[2,16,16,4], index: 7, kind: output, shape index: {}]  }
   0x1 LB: > { %s7038_s25 = sadd.s32 4294967295, %s7656_s24   ;;  %p7042_p0 = scmp.ge.s32.totalorder %s7656_s24, 1  ;;  %s7656_s24 = sphi %s7706_s24, %s17_s24  }
   0x2   : > { %p247_p1 = scmp.lt.s32.totalorder %s7656_s24, 3 }
   0x4   : > { %p248_p2 = pnand %p7042_p0, %p247_p1 }
   0x6   : > { %251 = sbr.rel (%p248_p2) target bundleno = 2201 (0x899), region = 48 }
   0xb   : > { %p284_p3 = scmp.lt.s32.totalorder %s7038_s25, 1  ;;  %vm332_vm0 = vcmask 31744   ;;  %s7658_s30 = smov 4   ;;  %vm4124_vm1 = vcmask 1043456   ;;  %vm2217_vm2 = vcmask 64512   ;;  %vm2250_vm3 = vcmask 97280  }
   0xc   : > { %s7659_s8 = smov 8   ;;  %s7660_s9 = smov 12   ;;  %vm2283_vm4 = vcmask 130048   ;;  %vm2316_vm5 = vcmask 162816   ;;  %vm2349_vm6 = vcmask 195584   ;;  %vm2382_vm7 = vcmask 228352  }
   0xd   : > { %s14057_s25 = smov (!%p284_p3, %s7038_s25), 1  ;;  %s7661_s10 = smov 16   ;;  %vm2415_vm8 = vcmask 261120   ;;  %vm4027_vm9 = vcmask 293888  }
   0xe   : > { %s7714_s26 = sshll.u32 %s14057_s25, 8  ;;  %s7662_s11 = smov 20  }
   0xf   : > { %s7720_s29 = scalar_lea.vmem %s12872_s0, %s7714_s26  ;;  %s7663_s12 = smov 24  }
  0x10   : > { %v299_v0 = vld [vmem:[%s7720_s29] sm:$0xff]  ;;  %v300_v1 = vld [vmem:[%s7720_s29 + $0x8] sm:$0xff]  ;;  %v301_v2 = vld [vmem:[%s7720_s29 + $0x10] sm:$0xff]  ;;  %s8652_s15 = scalar_lea.vmem %s12873_s1, %s7714_s26  ;;  %s7664_s16 = smov 28  }
  0x11   : > { %365 = vst.msk [vmem:[#allocation2 + $0x8] sm:$0xff] %vm332_vm0, %v299_v0  ;;  %333 = vst.msk [vmem:[#allocation2 + $0x28] sm:$0xff] %vm332_vm0, %v299_v0  ;;  %v302_v3 = vld [vmem:[%s7720_s29 + $0x18] sm:$0xff]  ;;  %v303_v4 = vld [vmem:[%s7720_s29 + $0x20] sm:$0xff]  ;;  %s7665_s17 = smov 32  }
  0x12   : > { %366 = vst.msk [vmem:[#allocation2 + $0x10] sm:$0xff] %vm332_vm0, %v300_v1  ;;  %334 = vst.msk [vmem:[#allocation2 + $0x30] sm:$0xff] %vm332_vm0, %v300_v1  ;;  %v304_v5 = vld [vmem:[%s7720_s29 + $0x28] sm:$0xff]  ;;  %v305_v6 = vld [vmem:[%s7720_s29 + $0x30] sm:$0xff] }
  0x13   : > { %335 = vst.msk [vmem:[#allocation2 + $0x48] sm:$0xff] %vm332_vm0, %v301_v2  ;;  %336 = vst.msk [vmem:[#allocation2 + $0x50] sm:$0xff] %vm332_vm0, %v302_v3  ;;  %v306_v7 = vld [vmem:[%s7720_s29 + $0x38] sm:$0xff]  ;;  %v307_v8 = vld [vmem:[%s7720_s29 + $0x40] sm:$0xff] }
  0x14   : > { %337 = vst.msk [vmem:[#allocation2 + $0x68] sm:$0xff] %vm332_vm0, %v303_v4  ;;  %338 = vst.msk [vmem:[#allocation2 + $0x70] sm:$0xff] %vm332_vm0, %v304_v5  ;;  %v308_v9 = vld [vmem:[%s7720_s29 + $0x48] sm:$0xff]  ;;  %v309_v10 = vld [vmem:[%s7720_s29 + $0x50] sm:$0xff] }
  0x15   : > { %339 = vst.msk [vmem:[#allocation2 + $0x88] sm:$0xff] %vm332_vm0, %v305_v6  ;;  %340 = vst.msk [vmem:[#allocation2 + $0x90] sm:$0xff] %vm332_vm0, %v306_v7  ;;  %v310_v11 = vld [vmem:[%s7720_s29 + $0x58] sm:$0xff]  ;;  %v311_v12 = vld [vmem:[%s7720_s29 + $0x60] sm:$0xff] }
  0x16   : > { %341 = vst.msk [vmem:[#allocation2 + $0xa8] sm:$0xff] %vm332_vm0, %v307_v8  ;;  %342 = vst.msk [vmem:[#allocation2 + $0xb0] sm:$0xff] %vm332_vm0, %v308_v9  ;;  %v312_v13 = vld [vmem:[%s7720_s29 + $0x68] sm:$0xff]  ;;  %v313_v14 = vld [vmem:[%s7720_s29 + $0x70] sm:$0xff] }
  0x17   : > { %343 = vst.msk [vmem:[#allocation2 + $0xc8] sm:$0xff] %vm332_vm0, %v309_v10  ;;  %344 = vst.msk [vmem:[#allocation2 + $0xd0] sm:$0xff] %vm332_vm0, %v310_v11  ;;  %v314_v15 = vld [vmem:[%s7720_s29 + $0x78] sm:$0xff]  ;;  %v315_v16 = vld [vmem:[%s7720_s29 + $0x80] sm:$0xff] }
  0x18   : > { %345 = vst.msk [vmem:[#allocation2 + $0xe8] sm:$0xff] %vm332_vm0, %v311_v12  ;;  %346 = vst.msk [vmem:[#allocation2 + $0xf0] sm:$0xff] %vm332_vm0, %v312_v13  ;;  %v316_v17 = vld [vmem:[%s7720_s29 + $0x88] sm:$0xff]  ;;  %v317_v18 = vld [vmem:[%s7720_s29 + $0x90] sm:$0xff] }
  0x19   : > { %347 = vst.msk [vmem:[#allocation2 + $0x108] sm:$0xff] %vm332_vm0, %v313_v14  ;;  %348 = vst.msk [vmem:[#allocation2 + $0x110] sm:$0xff] %vm332_vm0, %v314_v15  ;;  %v318_v19 = vld [vmem:[%s7720_s29 + $0x98] sm:$0xff]  ;;  %v319_v20 = vld [vmem:[%s7720_s29 + $0xa0] sm:$0xff] }
  0x1a   : > { %349 = vst.msk [vmem:[#allocation2 + $0x128] sm:$0xff] %vm332_vm0, %v315_v16  ;;  %350 = vst.msk [vmem:[#allocation2 + $0x130] sm:$0xff] %vm332_vm0, %v316_v17  ;;  %v320_v21 = vld [vmem:[%s7720_s29 + $0xa8] sm:$0xff]  ;;  %v321_v22 = vld [vmem:[%s7720_s29 + $0xb0] sm:$0xff] }
  0x1b   : > { %351 = vst.msk [vmem:[#allocation2 + $0x148] sm:$0xff] %vm332_vm0, %v317_v18  ;;  %352 = vst.msk [vmem:[#allocation2 + $0x150] sm:$0xff] %vm332_vm0, %v318_v19  ;;  %v322_v23 = vld [vmem:[%s7720_s29 + $0xb8] sm:$0xff]  ;;  %v904_v24 = vld [vmem:[#allocation2 + $0x8] sm:$0xff] }
  0x1c   : > { %353 = vst.msk [vmem:[#allocation2 + $0x168] sm:$0xff] %vm332_vm0, %v319_v20  ;;  %v7769_v25 = vld [vmem:[#allocation2 + $0x28] sm:$0xff]  ;;  %354 = vst.msk [vmem:[#allocation2 + $0x170] sm:$0xff] %vm332_vm0, %v320_v21  ;;  %1193 = vrot.lane.b32.xlu0 %v904_v24, %s7658_s30  ;;  %v905_v26 = vld [vmem:[#allocation2 + $0x10] sm:$0xff] }
  0x1d   : > { %355 = vst.msk [vmem:[#allocation2 + $0x188] sm:$0xff] %vm332_vm0, %v321_v22  ;;  %356 = vst.msk [vmem:[#allocation2 + $0x190] sm:$0xff] %vm332_vm0, %v322_v23  ;;  %1197 = vrot.lane.b32.xlu1 %v7769_v25, %s7658_s30  ;;  %v7777_v27 = vld [vmem:[#allocation2 + $0x30] sm:$0xff]  ;;  %v7782_v28 = vld [vmem:[#allocation2 + $0x48] sm:$0xff] }
  0x1e   : > { %v7784_v29 = vld [vmem:[#allocation2 + $0x50] sm:$0xff]  ;;  %v7786_v30 = vld [vmem:[#allocation2 + $0x68] sm:$0xff]  ;;  %v323_v31 = vld [vmem:[%s7720_s29 + $0xc0] sm:$0xff] }
  0x1f   : > { %v7793_v32 = vld [vmem:[#allocation2 + $0x70] sm:$0xff]  ;;  %357 = vst.msk [vmem:[#allocation2 + $0x1a8] sm:$0xff] %vm332_vm0, %v323_v31  ;;  %v324_v33 = vld [vmem:[%s7720_s29 + $0xc8] sm:$0xff]  ;;  %v326_v35 = vld [vmem:[%s7720_s29 + $0xd8] sm:$0xff] }
  0x20   : > { %1195 = vrot.lane.b32.xlu0 %v905_v26, %s7658_s30  ;;  %v325_v34 = vld [vmem:[%s7720_s29 + $0xd0] sm:$0xff]  ;;  %358 = vst.msk [vmem:[#allocation2 + $0x1b0] sm:$0xff] %vm332_vm0, %v324_v33  ;;  %v327_v36 = vld [vmem:[%s7720_s29 + $0xe0] sm:$0xff]  ;;  %v328_v37 = vld [vmem:[%s7720_s29 + $0xe8] sm:$0xff] }
  0x21   : > { %1199 = vrot.lane.b32.xlu1 %v7777_v27, %s7658_s30  ;;  %359 = vst.msk [vmem:[#allocation2 + $0x1c8] sm:$0xff] %vm332_vm0, %v325_v34  ;;  %360 = vst.msk [vmem:[#allocation2 + $0x1d0] sm:$0xff] %vm332_vm0, %v326_v35  ;;  %v7067_v38 = vld [vmem:[#allocation2 + $0x17] ss:$0 sm:$0xff]  ;;  %v7813_v43 = vld [vmem:[#allocation2 + $0x88] sm:$0xff] }
  0x22   : > { %361 = vst.msk [vmem:[#allocation2 + $0x1e8] sm:$0xff] %vm332_vm0, %v327_v36  ;;  %362 = vst.msk [vmem:[#allocation2 + $0x1f0] sm:$0xff] %vm332_vm0, %v328_v37  ;;  %v7068_v39 = vld [vmem:[#allocation2 + $0x37] ss:$0 sm:$0xff]  ;;  %v7827_v49 = vld [vmem:[#allocation2 + $0xa8] sm:$0xff] }
  0x23   : > { %568 = vst.msk [vmem:[#allocation2 + $0x18] sm:$0xff] %vm332_vm0, %v7067_v38  ;;  %569 = vst.msk [vmem:[#allocation2 + $0x38] sm:$0xff] %vm332_vm0, %v7068_v39  ;;  %v7069_v40 = vld [vmem:[#allocation2 + $0x57] ss:$0 sm:$0xff]  ;;  %v7837_v53 = vld [vmem:[#allocation2 + $0xc8] sm:$0xff] }
  0x24   : > { %1201 = vrot.lane.b32.xlu0 %v7782_v28, %s7658_s30  ;;  %570 = vst.msk [vmem:[#allocation2 + $0x58] sm:$0xff] %vm332_vm0, %v7069_v40  ;;  %v7070_v41 = vld [vmem:[#allocation2 + $0x77] ss:$0 sm:$0xff]  ;;  %v7049_v57 = vld [vmem:[#allocation2 + $0x8] ss:$0 sm:$0xff]  ;;  %v330_v33 = vld [vmem:[%s7720_s29 + $0xf8] sm:$0xff] }
  0x25   : > { %1203 = vrot.lane.b32.xlu1 %v7784_v29, %s7658_s30  ;;  %v7071_v42 = vld [vmem:[#allocation2 + $0x97] ss:$0 sm:$0xff]  ;;  %571 = vst.msk [vmem:[#allocation2 + $0x78] sm:$0xff] %vm332_vm0, %v7070_v41  ;;  %v7050_v58 = vld [vmem:[#allocation2 + $0x28] ss:$0 sm:$0xff]  ;;  %460 = vst.msk [vmem:[#allocation2] sm:$0xff] %vm332_vm0, %v7049_v57 }
  0x26   : > { %v7815_v44 = vld [vmem:[#allocation2 + $0x90] sm:$0xff]  ;;  %572 = vst.msk [vmem:[#allocation2 + $0x98] sm:$0xff] %vm332_vm0, %v7071_v42  ;;  %461 = vst.msk [vmem:[#allocation2 + $0x20] sm:$0xff] %vm332_vm0, %v7050_v58  ;;  %v7849_v60 = vld [vmem:[#allocation2 + $0xe8] sm:$0xff] }
  0x27   : > { %v7072_v45 = vld [vmem:[#allocation2 + $0xb7] ss:$0 sm:$0xff]  ;;  %v7051_v63 = vld [vmem:[#allocation2 + $0x48] ss:$0 sm:$0xff]  ;;  %364 = vst.msk [vmem:[#allocation2 + $0x210] sm:$0xff] %vm332_vm0, %v330_v33  ;;  %369 = vst.msk [vmem:[#allocation2 + $0x230] sm:$0xff] %vm332_vm0, %v330_v33 }
  0x28   : > { %1205 = vrot.lane.b32.xlu0 %v7786_v30, %s7658_s30  ;;  %573 = vst.msk [vmem:[#allocation2 + $0xb8] sm:$0xff] %vm332_vm0, %v7072_v45  ;;  %v7073_v46 = vld [vmem:[#allocation2 + $0xd7] ss:$0 sm:$0xff]  ;;  %462 = vst.msk [vmem:[#allocation2 + $0x40] sm:$0xff] %vm332_vm0, %v7051_v63  ;;  %v7052_v1 = vld [vmem:[#allocation2 + $0x68] ss:$0 sm:$0xff] }
  0x29   : > { %1207 = vrot.lane.b32.xlu1 %v7793_v32, %s7658_s30  ;;  %v7074_v47 = vld [vmem:[#allocation2 + $0xf7] ss:$0 sm:$0xff]  ;;  %574 = vst.msk [vmem:[#allocation2 + $0xd8] sm:$0xff] %vm332_vm0, %v7073_v46  ;;  %v7053_v2 = vld [vmem:[#allocation2 + $0x88] ss:$0 sm:$0xff]  ;;  %463 = vst.msk [vmem:[#allocation2 + $0x60] sm:$0xff] %vm332_vm0, %v7052_v1 }
  0x2a   : > { %575 = vst.msk [vmem:[#allocation2 + $0xf8] sm:$0xff] %vm332_vm0, %v7074_v47  ;;  %v7075_v48 = vld [vmem:[#allocation2 + $0x117] ss:$0 sm:$0xff]  ;;  %v7861_v3 = vld [vmem:[#allocation2 + $0x108] sm:$0xff]  ;;  %464 = vst.msk [vmem:[#allocation2 + $0x80] sm:$0xff] %vm332_vm0, %v7053_v2 }
  0x2b   : > { %576 = vst.msk [vmem:[#allocation2 + $0x118] sm:$0xff] %vm332_vm0, %v7075_v48  ;;  %v7829_v50 = vld [vmem:[#allocation2 + $0xb0] sm:$0xff]  ;;  %v7054_v5 = vld [vmem:[#allocation2 + $0xa8] ss:$0 sm:$0xff] }
  0x2c   : > { %1209 = vrot.lane.b32.xlu0 %v7813_v43, %s7658_s30  ;;  %v7076_v51 = vld [vmem:[#allocation2 + $0x137] ss:$0 sm:$0xff]  ;;  %465 = vst.msk [vmem:[#allocation2 + $0xa0] sm:$0xff] %vm332_vm0, %v7054_v5  ;;  %v7055_v6 = vld [vmem:[#allocation2 + $0xc8] ss:$0 sm:$0xff]  ;;  %v936_v39 = vld [vmem:[#allocation2 + $0x9] sm:$0xff] }
  0x2d   : > { %1211 = vrot.lane.b32.xlu1 %v7815_v44, %s7658_s30  ;;  %577 = vst.msk [vmem:[#allocation2 + $0x138] sm:$0xff] %vm332_vm0, %v7076_v51  ;;  %v7077_v52 = vld [vmem:[#allocation2 + $0x157] ss:$0 sm:$0xff]  ;;  %466 = vst.msk [vmem:[#allocation2 + $0xc0] sm:$0xff] %vm332_vm0, %v7055_v6  ;;  %v7056_v7 = vld [vmem:[#allocation2 + $0xe8] ss:$0 sm:$0xff] }
  0x2e   : > { %578 = vst.msk [vmem:[#allocation2 + $0x158] sm:$0xff] %vm332_vm0, %v7077_v52  ;;  %v7839_v54 = vld [vmem:[#allocation2 + $0xd0] sm:$0xff]  ;;  %v7873_v8 = vld [vmem:[#allocation2 + $0x128] sm:$0xff]  ;;  %467 = vst.msk [vmem:[#allocation2 + $0xe0] sm:$0xff] %vm332_vm0, %v7056_v7 }
  0x2f   : > { %v7078_v55 = vld [vmem:[#allocation2 + $0x177] ss:$0 sm:$0xff]  ;;  %v7057_v10 = vld [vmem:[#allocation2 + $0x108] ss:$0 sm:$0xff]  ;;  %v7947_v41 = vld [vmem:[#allocation2 + $0x29] sm:$0xff] }
  0x30   : > { %1213 = vrot.lane.b32.xlu0 %v7827_v49, %s7658_s30  ;;  %579 = vst.msk [vmem:[#allocation2 + $0x178] sm:$0xff] %vm332_vm0, %v7078_v55  ;;  %v7079_v56 = vld [vmem:[#allocation2 + $0x197] ss:$0 sm:$0xff]  ;;  %468 = vst.msk [vmem:[#allocation2 + $0x100] sm:$0xff] %vm332_vm0, %v7057_v10  ;;  %v7058_v11 = vld [vmem:[#allocation2 + $0x128] ss:$0 sm:$0xff] }
  0x31   : > { %1215 = vrot.lane.b32.xlu1 %v7829_v50, %s7658_s30  ;;  %580 = vst.msk [vmem:[#allocation2 + $0x198] sm:$0xff] %vm332_vm0, %v7079_v56  ;;  %v7080_v59 = vld [vmem:[#allocation2 + $0x1b7] ss:$0 sm:$0xff]  ;;  %469 = vst.msk [vmem:[#allocation2 + $0x120] sm:$0xff] %vm332_vm0, %v7058_v11  ;;  %v7059_v12 = vld [vmem:[#allocation2 + $0x148] ss:$0 sm:$0xff] }
  0x32   : > { %v7851_v61 = vld [vmem:[#allocation2 + $0xf0] sm:$0xff]  ;;  %581 = vst.msk [vmem:[#allocation2 + $0x1b8] sm:$0xff] %vm332_vm0, %v7080_v59  ;;  %470 = vst.msk [vmem:[#allocation2 + $0x140] sm:$0xff] %vm332_vm0, %v7059_v12  ;;  %v7060_v13 = vld [vmem:[#allocation2 + $0x168] ss:$0 sm:$0xff] }
  0x33   : > { %v7081_v62 = vld [vmem:[#allocation2 + $0x1d7] ss:$0 sm:$0xff]  ;;  %v7885_v14 = vld [vmem:[#allocation2 + $0x148] sm:$0xff]  ;;  %471 = vst.msk [vmem:[#allocation2 + $0x160] sm:$0xff] %vm332_vm0, %v7060_v13 }
  0x34   : > { %1217 = vrot.lane.b32.xlu0 %v7837_v53, %s7658_s30  ;;  %582 = vst.msk [vmem:[#allocation2 + $0x1d8] sm:$0xff] %vm332_vm0, %v7081_v62  ;;  %v7082_v0 = vld [vmem:[#allocation2 + $0x1f7] ss:$0 sm:$0xff]  ;;  %v7061_v16 = vld [vmem:[#allocation2 + $0x188] ss:$0 sm:$0xff]  ;;  %v7955_v45 = vld [vmem:[#allocation2 + $0x49] sm:$0xff] }
  0x35   : > { %1219 = vrot.lane.b32.xlu1 %v7839_v54, %s7658_s30  ;;  %583 = vst.msk [vmem:[#allocation2 + $0x1f8] sm:$0xff] %vm332_vm0, %v7082_v0  ;;  %v7863_v4 = vld [vmem:[#allocation2 + $0x110] sm:$0xff]  ;;  %472 = vst.msk [vmem:[#allocation2 + $0x180] sm:$0xff] %vm332_vm0, %v7061_v16  ;;  %v7062_v17 = vld [vmem:[#allocation2 + $0x1a8] ss:$0 sm:$0xff] }
  0x36   : > { %v7875_v9 = vld [vmem:[#allocation2 + $0x130] sm:$0xff]  ;;  %473 = vst.msk [vmem:[#allocation2 + $0x1a0] sm:$0xff] %vm332_vm0, %v7062_v17  ;;  %v7063_v18 = vld [vmem:[#allocation2 + $0x1c8] ss:$0 sm:$0xff] }
  0x37   : > { %v7887_v15 = vld [vmem:[#allocation2 + $0x150] sm:$0xff]  ;;  %v7064_v19 = vld [vmem:[#allocation2 + $0x1e8] ss:$0 sm:$0xff]  ;;  %474 = vst.msk [vmem:[#allocation2 + $0x1c0] sm:$0xff] %vm332_vm0, %v7063_v18 }
  0x38   : > { %1221 = vrot.lane.b32.xlu0 %v7849_v60, %s7658_s30  ;;  %475 = vst.msk [vmem:[#allocation2 + $0x1e0] sm:$0xff] %vm332_vm0, %v7064_v19  ;;  %v7898_v20 = vld [vmem:[#allocation2 + $0x168] sm:$0xff]  ;;  %v7900_v21 = vld [vmem:[#allocation2 + $0x170] sm:$0xff] }
  0x39   : > { %1223 = vrot.lane.b32.xlu1 %v7851_v61, %s7658_s30  ;;  %v329_v22 = vld [vmem:[%s7720_s29 + $0xf0] sm:$0xff]  ;;  %v7909_v23 = vld [vmem:[#allocation2 + $0x188] sm:$0xff] }
  0x3a   : > { %363 = vst.msk [vmem:[#allocation2 + $0x208] sm:$0xff] %vm332_vm0, %v329_v22  ;;  %368 = vst.msk [vmem:[#allocation2 + $0x228] sm:$0xff] %vm332_vm0, %v329_v22  ;;  %v7911_v24 = vld [vmem:[#allocation2 + $0x190] sm:$0xff]  ;;  %v7917_v26 = vld [vmem:[#allocation2 + $0x1a8] sm:$0xff] }
  0x3b   : > { %v7919_v31 = vld [vmem:[#allocation2 + $0x1b0] sm:$0xff]  ;;  %v7929_v35 = vld [vmem:[#allocation2 + $0x1c8] sm:$0xff] }
  0x3c   : > { %1225 = vrot.lane.b32.xlu0 %v7861_v3, %s7658_s30  ;;  %v7931_v36 = vld [vmem:[#allocation2 + $0x1d0] sm:$0xff]  ;;  %v7937_v37 = vld [vmem:[#allocation2 + $0x1e8] sm:$0xff] }
  0x3d   : > { %1227 = vrot.lane.b32.xlu1 %v7863_v4, %s7658_s30  ;;  %v7939_v38 = vld [vmem:[#allocation2 + $0x1f0] sm:$0xff] }
  0x3e   : > { %v937_v40 = vld [vmem:[#allocation2 + $0x11] sm:$0xff]  ;;  %v7963_v47 = vld [vmem:[#allocation2 + $0x69] sm:$0xff] }
  0x3f   : > { %v7949_v42 = vld [vmem:[#allocation2 + $0x31] sm:$0xff]  ;;  %v7971_v51 = vld [vmem:[#allocation2 + $0x89] sm:$0xff] }
  0x40   : > { %1229 = vrot.lane.b32.xlu0 %v7873_v8, %s7658_s30  ;;  %v7957_v46 = vld [vmem:[#allocation2 + $0x51] sm:$0xff]  ;;  %v7979_v55 = vld [vmem:[#allocation2 + $0xa9] sm:$0xff] }
  0x41   : > { %1231 = vrot.lane.b32.xlu1 %v7875_v9, %s7658_s30  ;;  %v7065_v34 = vld [vmem:[#allocation2 + $0x208] ss:$0 sm:$0xff]  ;;  %v7965_v48 = vld [vmem:[#allocation2 + $0x71] sm:$0xff]  ;;  %v7987_v57 = vld [vmem:[#allocation2 + $0xc9] sm:$0xff] }
  0x42   : > { %476 = vst.msk [vmem:[#allocation2 + $0x200] sm:$0xff] %vm332_vm0, %v7065_v34  ;;  %v7973_v52 = vld [vmem:[#allocation2 + $0x91] sm:$0xff]  ;;  %v7995_v59 = vld [vmem:[#allocation2 + $0xe9] sm:$0xff] }
  0x43   : > { %v7981_v56 = vld [vmem:[#allocation2 + $0xb1] sm:$0xff]  ;;  %v8003_v63 = vld [vmem:[#allocation2 + $0x109] sm:$0xff] }
  0x44   : > { %1233 = vrot.lane.b32.xlu0 %v7885_v14, %s7658_s30  ;;  %v7989_v58 = vld [vmem:[#allocation2 + $0xd1] sm:$0xff]  ;;  %v8011_v1 = vld [vmem:[#allocation2 + $0x129] sm:$0xff] }
  0x45   : > { %1235 = vrot.lane.b32.xlu1 %v7887_v15, %s7658_s30  ;;  %v7997_v62 = vld [vmem:[#allocation2 + $0xf1] sm:$0xff]  ;;  %v8019_v5 = vld [vmem:[#allocation2 + $0x149] sm:$0xff] }
  0x46   : > { %v8005_v0 = vld [vmem:[#allocation2 + $0x111] sm:$0xff]  ;;  %v8027_v7 = vld [vmem:[#allocation2 + $0x169] sm:$0xff] }
  0x47   : > { %v8013_v2 = vld [vmem:[#allocation2 + $0x131] sm:$0xff]  ;;  %v8035_v11 = vld [vmem:[#allocation2 + $0x189] sm:$0xff] }
  0x48   : > { %1237 = vrot.lane.b32.xlu0 %v7898_v20, %s7658_s30  ;;  %v8021_v6 = vld [vmem:[#allocation2 + $0x151] sm:$0xff]  ;;  %v8043_v13 = vld [vmem:[#allocation2 + $0x1a9] sm:$0xff] }
  0x49   : > { %1239 = vrot.lane.b32.xlu1 %v7900_v21, %s7658_s30  ;;  %v8029_v10 = vld [vmem:[#allocation2 + $0x171] sm:$0xff]  ;;  %12942 = vst [vmem:[#allocation5_spill] sm:$0xff] %v8043_v13  ;;  %v8055_v19 = vld [vmem:[#allocation2 + $0x1c9] sm:$0xff] }
  0x4a   : > { %v8037_v12 = vld [vmem:[#allocation2 + $0x191] sm:$0xff]  ;;  %12945 = vst [vmem:[#allocation8_spill] sm:$0xff] %v8055_v19 }
  0x4b   : > { %v8045_v16 = vld [vmem:[#allocation2 + $0x1b1] sm:$0xff] }
  0x4c   : > { %1241 = vrot.lane.b32.xlu0 %v7909_v23, %s7658_s30  ;;  %v8057_v22 = vld [vmem:[#allocation2 + $0x1d1] sm:$0xff] }
  0x4d   : > { %1243 = vrot.lane.b32.xlu1 %v7911_v24, %s7658_s30  ;;  %12946 = vst [vmem:[#allocation9_spill] sm:$0xff] %v8057_v22 }
  0x50   : > { %1245 = vrot.lane.b32.xlu0 %v7917_v26, %s7658_s30 }
  0x51   : > { %1247 = vrot.lane.b32.xlu1 %v7919_v31, %s7658_s30 }
  0x54   : > { %1249 = vrot.lane.b32.xlu0 %v7929_v35, %s7658_s30 }
  0x55   : > { %1251 = vrot.lane.b32.xlu1 %v7931_v36, %s7658_s30 }
  0x58   : > { %1253 = vrot.lane.b32.xlu0 %v7937_v37, %s7658_s30 }
  0x59   : > { %1255 = vrot.lane.b32.xlu1 %v7939_v38, %s7658_s30 }
  0x5c   : > { %1321 = vrot.lane.b32.xlu0 %v936_v39, %s7659_s8  ;;  %v8067_v39 = vld [vmem:[#allocation2 + $0x1e9] sm:$0xff] }
  0x5d   : > { %1323 = vrot.lane.b32.xlu1 %v937_v40, %s7659_s8  ;;  %12949 = vst [vmem:[#allocation12_spill] sm:$0xff] %v8067_v39  ;;  %v8069_v40 = vld [vmem:[#allocation2 + $0x1f1] sm:$0xff] }
  0x60   : > { %1325 = vrot.lane.b32.xlu0 %v7947_v41, %s7659_s8 }
  0x61   : > { %1327 = vrot.lane.b32.xlu1 %v7949_v42, %s7659_s8 }
  0x64   : > { %1329 = vrot.lane.b32.xlu0 %v7955_v45, %s7659_s8 }
  0x65   : > { %1331 = vrot.lane.b32.xlu1 %v7957_v46, %s7659_s8 }
  0x68   : > { %1333 = vrot.lane.b32.xlu0 %v7963_v47, %s7659_s8 }
  0x69   : > { %1335 = vrot.lane.b32.xlu1 %v7965_v48, %s7659_s8 }
  0x6c   : > { %1337 = vrot.lane.b32.xlu0 %v7971_v51, %s7659_s8 }
  0x6d   : > { %1339 = vrot.lane.b32.xlu1 %v7973_v52, %s7659_s8 }
  0x70   : > { %1341 = vrot.lane.b32.xlu0 %v7979_v55, %s7659_s8 }
  0x71   : > { %1343 = vrot.lane.b32.xlu1 %v7981_v56, %s7659_s8 }
  0x74   : > { %1345 = vrot.lane.b32.xlu0 %v7987_v57, %s7659_s8 }
  0x75   : > { %1347 = vrot.lane.b32.xlu1 %v7989_v58, %s7659_s8 }
  0x78   : > { %1349 = vrot.lane.b32.xlu0 %v7995_v59, %s7659_s8 }
  0x79   : > { %1351 = vrot.lane.b32.xlu1 %v7997_v62, %s7659_s8 }
  0x7c   : > { %1353 = vrot.lane.b32.xlu0 %v8003_v63, %s7659_s8 }
  0x7d   : > { %1355 = vrot.lane.b32.xlu1 %v8005_v0, %s7659_s8 }
  0x80   : > { %1357 = vrot.lane.b32.xlu0 %v8011_v1, %s7659_s8 }
  0x81   : > { %1359 = vrot.lane.b32.xlu1 %v8013_v2, %s7659_s8 }
  0x84   : > { %1361 = vrot.lane.b32.xlu0 %v8019_v5, %s7659_s8 }
  0x85   : > { %1363 = vrot.lane.b32.xlu1 %v8021_v6, %s7659_s8 }
  0x88   : > { %1365 = vrot.lane.b32.xlu0 %v8027_v7, %s7659_s8 }
  0x89   : > { %1367 = vrot.lane.b32.xlu1 %v8029_v10, %s7659_s8 }
  0x8c   : > { %1369 = vrot.lane.b32.xlu0 %v8035_v11, %s7659_s8 }
  0x8d   : > { %1371 = vrot.lane.b32.xlu1 %v8037_v12, %s7659_s8 }
  0x8e   : > { %v8047_v17 = vpop.permute.xlu0 %1193 }
  0x8f   : > { %12943 = vst [vmem:[#allocation6_spill] sm:$0xff] %v8047_v17  ;;  %v8049_v18 = vpop.permute.xlu1 %1197 }
  0x90   : > { %12944 = vst [vmem:[#allocation7_spill] sm:$0xff] %v8049_v18  ;;  %1373 = vrot.lane.b32.xlu0 %v8043_v13, %s7659_s8  ;;  %v8089_v13 = vld [vmem:[#allocation2 + $0x47] sm:$0xff] }
  0x91   : > { %1375 = vrot.lane.b32.xlu1 %v8045_v16, %s7659_s8  ;;  %12956 = vst [vmem:[#allocation19_spill] sm:$0xff] %v8089_v13 }
  0x92   : > { %v8059_v33 = vpop.permute.xlu0 %1195 }
  0x93   : > { %12947 = vst [vmem:[#allocation10_spill] sm:$0xff] %v8059_v33  ;;  %v8061_v34 = vpop.permute.xlu1 %1199 }
  0x94   : > { %12948 = vst [vmem:[#allocation11_spill] sm:$0xff] %v8061_v34  ;;  %1377 = vrot.lane.b32.xlu0 %v8055_v19, %s7659_s8  ;;  %v874_v19 = vld [vmem:[#allocation2 + $0x27] sm:$0xff] }
  0x95   : > { %1379 = vrot.lane.b32.xlu1 %v8057_v22, %s7659_s8  ;;  %v875_v22 = vld [vmem:[#allocation2 + $0x2f] sm:$0xff] }
  0x96   : > { %v8071_v18 = vpop.permute.xlu0 %1201 }
  0x97   : > { %12950 = vst [vmem:[#allocation13_spill] sm:$0xff] %v8071_v18  ;;  %v8073_v17 = vpop.permute.xlu1 %1203 }
  0x98   : > { %12951 = vst [vmem:[#allocation14_spill] sm:$0xff] %v8073_v17  ;;  %1381 = vrot.lane.b32.xlu0 %v8067_v39, %s7659_s8  ;;  %v8091_v39 = vld [vmem:[#allocation2 + $0x4f] sm:$0xff] }
  0x99   : > { %1383 = vrot.lane.b32.xlu1 %v8069_v40, %s7659_s8  ;;  %12957 = vst [vmem:[#allocation20_spill] sm:$0xff] %v8091_v39 }
  0x9a   : > { %v8079_v34 = vpop.permute.xlu0 %1205 }
  0x9b   : > { %12952 = vst [vmem:[#allocation15_spill] sm:$0xff] %v8079_v34  ;;  %v8081_v33 = vpop.permute.xlu1 %1207 }
  0x9c   : > { %12953 = vst [vmem:[#allocation16_spill] sm:$0xff] %v8081_v33  ;;  %1449 = vrot.lane.b32.xlu0 %v874_v19, %s7660_s9  ;;  %v8103_v19 = vld [vmem:[#allocation2 + $0x6f] sm:$0xff] }
  0x9d   : > { %1451 = vrot.lane.b32.xlu1 %v875_v22, %s7660_s9  ;;  %v8101_v22 = vld [vmem:[#allocation2 + $0x67] sm:$0xff]  ;;  %12961 = vst [vmem:[#allocation24_spill] sm:$0xff] %v8103_v19 }
  0x9e   : > { %v8085_v18 = vpop.permute.xlu0 %1209  ;;  %12960 = vst [vmem:[#allocation23_spill] sm:$0xff] %v8101_v22 }
  0x9f   : > { %12954 = vst [vmem:[#allocation17_spill] sm:$0xff] %v8085_v18  ;;  %v8087_v17 = vpop.permute.xlu1 %1211 }
  0xa0   : > { %12955 = vst [vmem:[#allocation18_spill] sm:$0xff] %v8087_v17  ;;  %1453 = vrot.lane.b32.xlu0 %v8089_v13, %s7660_s9  ;;  %v8115_v13 = vld [vmem:[#allocation2 + $0x8f] sm:$0xff] }
  0xa1   : > { %1455 = vrot.lane.b32.xlu1 %v8091_v39, %s7660_s9  ;;  %v8113_v39 = vld [vmem:[#allocation2 + $0x87] sm:$0xff]  ;;  %12965 = vst [vmem:[#allocation28_spill] sm:$0xff] %v8115_v13 }
  0xa2   : > { %v8097_v33 = vpop.permute.xlu0 %1213  ;;  %12964 = vst [vmem:[#allocation27_spill] sm:$0xff] %v8113_v39 }
  0xa3   : > { %12958 = vst [vmem:[#allocation21_spill] sm:$0xff] %v8097_v33  ;;  %v8099_v34 = vpop.permute.xlu1 %1215 }
  0xa4   : > { %12959 = vst [vmem:[#allocation22_spill] sm:$0xff] %v8099_v34  ;;  %1457 = vrot.lane.b32.xlu0 %v8101_v22, %s7660_s9  ;;  %v8127_v22 = vld [vmem:[#allocation2 + $0xaf] sm:$0xff] }
  0xa5   : > { %1459 = vrot.lane.b32.xlu1 %v8103_v19, %s7660_s9  ;;  %v8125_v19 = vld [vmem:[#allocation2 + $0xa7] sm:$0xff]  ;;  %12969 = vst [vmem:[#allocation32_spill] sm:$0xff] %v8127_v22 }
  0xa6   : > { %v8109_v17 = vpop.permute.xlu0 %1217  ;;  %12968 = vst [vmem:[#allocation31_spill] sm:$0xff] %v8125_v19 }
  0xa7   : > { %12962 = vst [vmem:[#allocation25_spill] sm:$0xff] %v8109_v17  ;;  %v8111_v18 = vpop.permute.xlu1 %1219 }
  0xa8   : > { %12963 = vst [vmem:[#allocation26_spill] sm:$0xff] %v8111_v18  ;;  %1461 = vrot.lane.b32.xlu0 %v8113_v39, %s7660_s9  ;;  %v8139_v39 = vld [vmem:[#allocation2 + $0xcf] sm:$0xff] }
  0xa9   : > { %1463 = vrot.lane.b32.xlu1 %v8115_v13, %s7660_s9  ;;  %v8137_v13 = vld [vmem:[#allocation2 + $0xc7] sm:$0xff]  ;;  %12973 = vst [vmem:[#allocation36_spill] sm:$0xff] %v8139_v39 }
  0xaa   : > { %v8121_v34 = vpop.permute.xlu0 %1221  ;;  %12972 = vst [vmem:[#allocation35_spill] sm:$0xff] %v8137_v13 }
  0xab   : > { %12966 = vst [vmem:[#allocation29_spill] sm:$0xff] %v8121_v34  ;;  %v8123_v33 = vpop.permute.xlu1 %1223 }
  0xac   : > { %12967 = vst [vmem:[#allocation30_spill] sm:$0xff] %v8123_v33  ;;  %1465 = vrot.lane.b32.xlu0 %v8125_v19, %s7660_s9  ;;  %v8151_v19 = vld [vmem:[#allocation2 + $0xef] sm:$0xff] }
  0xad   : > { %1467 = vrot.lane.b32.xlu1 %v8127_v22, %s7660_s9  ;;  %v8149_v22 = vld [vmem:[#allocation2 + $0xe7] sm:$0xff]  ;;  %12977 = vst [vmem:[#allocation40_spill] sm:$0xff] %v8151_v19 }
  0xae   : > { %v8133_v18 = vpop.permute.xlu0 %1225  ;;  %12976 = vst [vmem:[#allocation39_spill] sm:$0xff] %v8149_v22 }
  0xaf   : > { %12970 = vst [vmem:[#allocation33_spill] sm:$0xff] %v8133_v18  ;;  %v8135_v17 = vpop.permute.xlu1 %1227 }
  0xb0   : > { %12971 = vst [vmem:[#allocation34_spill] sm:$0xff] %v8135_v17  ;;  %1469 = vrot.lane.b32.xlu0 %v8137_v13, %s7660_s9  ;;  %v8163_v13 = vld [vmem:[#allocation2 + $0x10f] sm:$0xff] }
  0xb1   : > { %1471 = vrot.lane.b32.xlu1 %v8139_v39, %s7660_s9  ;;  %v8161_v39 = vld [vmem:[#allocation2 + $0x107] sm:$0xff]  ;;  %12981 = vst [vmem:[#allocation44_spill] sm:$0xff] %v8163_v13 }
  0xb2   : > { %v8145_v33 = vpop.permute.xlu0 %1229  ;;  %12980 = vst [vmem:[#allocation43_spill] sm:$0xff] %v8161_v39 }
  0xb3   : > { %12974 = vst [vmem:[#allocation37_spill] sm:$0xff] %v8145_v33  ;;  %v8147_v34 = vpop.permute.xlu1 %1231 }
  0xb4   : > { %12975 = vst [vmem:[#allocation38_spill] sm:$0xff] %v8147_v34  ;;  %1473 = vrot.lane.b32.xlu0 %v8149_v22, %s7660_s9  ;;  %v8175_v22 = vld [vmem:[#allocation2 + $0x12f] sm:$0xff] }
  0xb5   : > { %1475 = vrot.lane.b32.xlu1 %v8151_v19, %s7660_s9  ;;  %v8173_v19 = vld [vmem:[#allocation2 + $0x127] sm:$0xff]  ;;  %12985 = vst [vmem:[#allocation48_spill] sm:$0xff] %v8175_v22 }
  0xb6   : > { %v8157_v17 = vpop.permute.xlu0 %1233  ;;  %12984 = vst [vmem:[#allocation47_spill] sm:$0xff] %v8173_v19 }
  0xb7   : > { %12978 = vst [vmem:[#allocation41_spill] sm:$0xff] %v8157_v17  ;;  %v8159_v18 = vpop.permute.xlu1 %1235 }
  0xb8   : > { %12979 = vst [vmem:[#allocation42_spill] sm:$0xff] %v8159_v18  ;;  %1477 = vrot.lane.b32.xlu0 %v8161_v39, %s7660_s9  ;;  %v8187_v39 = vld [vmem:[#allocation2 + $0x14f] sm:$0xff] }
  0xb9   : > { %1479 = vrot.lane.b32.xlu1 %v8163_v13, %s7660_s9  ;;  %v8185_v13 = vld [vmem:[#allocation2 + $0x147] sm:$0xff]  ;;  %12989 = vst [vmem:[#allocation52_spill] sm:$0xff] %v8187_v39 }
  0xba   : > { %v8169_v34 = vpop.permute.xlu0 %1237  ;;  %12988 = vst [vmem:[#allocation51_spill] sm:$0xff] %v8185_v13 }
  0xbb   : > { %12982 = vst [vmem:[#allocation45_spill] sm:$0xff] %v8169_v34  ;;  %v8171_v33 = vpop.permute.xlu1 %1239 }
  0xbc   : > { %12983 = vst [vmem:[#allocation46_spill] sm:$0xff] %v8171_v33  ;;  %1481 = vrot.lane.b32.xlu0 %v8173_v19, %s7660_s9  ;;  %v8199_v19 = vld [vmem:[#allocation2 + $0x16f] sm:$0xff] }
  0xbd   : > { %1483 = vrot.lane.b32.xlu1 %v8175_v22, %s7660_s9  ;;  %v8197_v22 = vld [vmem:[#allocation2 + $0x167] sm:$0xff]  ;;  %12993 = vst [vmem:[#allocation56_spill] sm:$0xff] %v8199_v19 }
  0xbe   : > { %v8181_v18 = vpop.permute.xlu0 %1241  ;;  %12992 = vst [vmem:[#allocation55_spill] sm:$0xff] %v8197_v22 }
  0xbf   : > { %12986 = vst [vmem:[#allocation49_spill] sm:$0xff] %v8181_v18  ;;  %v8183_v17 = vpop.permute.xlu1 %1243 }
  0xc0   : > { %12987 = vst [vmem:[#allocation50_spill] sm:$0xff] %v8183_v17  ;;  %1485 = vrot.lane.b32.xlu0 %v8185_v13, %s7660_s9  ;;  %v8211_v13 = vld [vmem:[#allocation2 + $0x18f] sm:$0xff] }
  0xc1   : > { %1487 = vrot.lane.b32.xlu1 %v8187_v39, %s7660_s9  ;;  %v8209_v39 = vld [vmem:[#allocation2 + $0x187] sm:$0xff]  ;;  %12997 = vst [vmem:[#allocation60_spill] sm:$0xff] %v8211_v13 }
  0xc2   : > { %v8193_v33 = vpop.permute.xlu0 %1245  ;;  %12996 = vst [vmem:[#allocation59_spill] sm:$0xff] %v8209_v39 }
  0xc3   : > { %12990 = vst [vmem:[#allocation53_spill] sm:$0xff] %v8193_v33  ;;  %v8195_v34 = vpop.permute.xlu1 %1247 }
  0xc4   : > { %12991 = vst [vmem:[#allocation54_spill] sm:$0xff] %v8195_v34  ;;  %1489 = vrot.lane.b32.xlu0 %v8197_v22, %s7660_s9  ;;  %v8223_v22 = vld [vmem:[#allocation2 + $0x1af] sm:$0xff] }
  0xc5   : > { %1491 = vrot.lane.b32.xlu1 %v8199_v19, %s7660_s9  ;;  %v8221_v19 = vld [vmem:[#allocation2 + $0x1a7] sm:$0xff]  ;;  %13001 = vst [vmem:[#allocation64_spill] sm:$0xff] %v8223_v22 }
  0xc6   : > { %v8205_v17 = vpop.permute.xlu0 %1249  ;;  %13000 = vst [vmem:[#allocation63_spill] sm:$0xff] %v8221_v19 }
  0xc7   : > { %12994 = vst [vmem:[#allocation57_spill] sm:$0xff] %v8205_v17  ;;  %v8207_v18 = vpop.permute.xlu1 %1251 }
  0xc8   : > { %12995 = vst [vmem:[#allocation58_spill] sm:$0xff] %v8207_v18  ;;  %1493 = vrot.lane.b32.xlu0 %v8209_v39, %s7660_s9  ;;  %v8235_v39 = vld [vmem:[#allocation2 + $0x1cf] sm:$0xff] }
  0xc9   : > { %1495 = vrot.lane.b32.xlu1 %v8211_v13, %s7660_s9  ;;  %v8233_v13 = vld [vmem:[#allocation2 + $0x1c7] sm:$0xff]  ;;  %13005 = vst [vmem:[#allocation68_spill] sm:$0xff] %v8235_v39 }
  0xca   : > { %v8217_v34 = vpop.permute.xlu0 %1253  ;;  %13004 = vst [vmem:[#allocation67_spill] sm:$0xff] %v8233_v13 }
  0xcb   : > { %12998 = vst [vmem:[#allocation61_spill] sm:$0xff] %v8217_v34  ;;  %v8219_v33 = vpop.permute.xlu1 %1255  ;;  %v7083_v34 = vld [vmem:[#allocation2 + $0x217] ss:$0 sm:$0xff] }
  0xcc   : > { %12999 = vst [vmem:[#allocation62_spill] sm:$0xff] %v8219_v33  ;;  %1497 = vrot.lane.b32.xlu0 %v8221_v19, %s7660_s9  ;;  %584 = vst.msk [vmem:[#allocation2 + $0x218] sm:$0xff] %vm332_vm0, %v7083_v34 }
  0xcd   : > { %1499 = vrot.lane.b32.xlu1 %v8223_v22, %s7660_s9  ;;  %v8256_v22 = vld [vmem:[#allocation2 + $0x207] sm:$0xff] }
  0xce   : > { %v8229_v18 = vpop.permute.xlu0 %1321 }
  0xcf   : > { %13002 = vst [vmem:[#allocation65_spill] sm:$0xff] %v8229_v18  ;;  %v8231_v17 = vpop.permute.xlu1 %1323  ;;  %v8246_v18 = vld [vmem:[#allocation2 + $0x1e7] sm:$0xff] }
  0xd0   : > { %13003 = vst [vmem:[#allocation66_spill] sm:$0xff] %v8231_v17  ;;  %1501 = vrot.lane.b32.xlu0 %v8233_v13, %s7660_s9  ;;  %v8248_v17 = vld [vmem:[#allocation2 + $0x1ef] sm:$0xff] }
  0xd1   : > { %1503 = vrot.lane.b32.xlu1 %v8235_v39, %s7660_s9  ;;  %v8254_v39 = vld [vmem:[#allocation2 + $0x20f] sm:$0xff] }
  0xd2   : > { %v8242_v33 = vpop.permute.xlu0 %1325 }
  0xd3   : > { %13006 = vst [vmem:[#allocation69_spill] sm:$0xff] %v8242_v33  ;;  %v8244_v19 = vpop.permute.xlu1 %1327 }
  0xd4   : > { %13007 = vst [vmem:[#allocation70_spill] sm:$0xff] %v8244_v19  ;;  %1505 = vrot.lane.b32.xlu0 %v8246_v18, %s7660_s9 }
  0xd5   : > { %1507 = vrot.lane.b32.xlu1 %v8248_v17, %s7660_s9 }
  0xd6   : > { %v8258_v13 = vpop.permute.xlu0 %1329 }
  0xd7   : > { %13008 = vst [vmem:[#allocation71_spill] sm:$0xff] %v8258_v13  ;;  %v8260_v34 = vpop.permute.xlu1 %1331 }
  0xd8   : > { %13009 = vst [vmem:[#allocation72_spill] sm:$0xff] %v8260_v34  ;;  %1509 = vrot.lane.b32.xlu0 %v8256_v22, %s7660_s9 }
  0xd9   : > { %1511 = vrot.lane.b32.xlu1 %v8254_v39, %s7660_s9 }
  0xda   : > { %v8266_v19 = vpop.permute.xlu0 %1333 }
  0xdb   : > { %13010 = vst [vmem:[#allocation73_spill] sm:$0xff] %v8266_v19  ;;  %v8268_v33 = vpop.permute.xlu1 %1335 }
  0xdc   : > { %13011 = vst [vmem:[#allocation74_spill] sm:$0xff] %v8268_v33  ;;  %1577 = vrot.lane.b32.xlu0 %v7769_v25, %s7661_s10 }
  0xdd   : > { %1579 = vrot.lane.b32.xlu1 %v7777_v27, %s7661_s10 }
  0xde   : > { %v8274_v13 = vpop.permute.xlu0 %1337 }
  0xdf   : > { %13012 = vst [vmem:[#allocation75_spill] sm:$0xff] %v8274_v13  ;;  %v8276_v34 = vpop.permute.xlu1 %1339 }
  0xe0   : > { %13013 = vst [vmem:[#allocation76_spill] sm:$0xff] %v8276_v34  ;;  %1581 = vrot.lane.b32.xlu0 %v7782_v28, %s7661_s10 }
  0xe1   : > { %1583 = vrot.lane.b32.xlu1 %v7784_v29, %s7661_s10 }
  0xe2   : > { %v8282_v19 = vpop.permute.xlu0 %1341 }
  0xe3   : > { %13014 = vst [vmem:[#allocation77_spill] sm:$0xff] %v8282_v19  ;;  %v8284_v33 = vpop.permute.xlu1 %1343 }
  0xe4   : > { %13015 = vst [vmem:[#allocation78_spill] sm:$0xff] %v8284_v33  ;;  %1585 = vrot.lane.b32.xlu0 %v7786_v30, %s7661_s10 }
  0xe5   : > { %1587 = vrot.lane.b32.xlu1 %v7793_v32, %s7661_s10 }
  0xe6   : > { %v8290_v25 = vpop.permute.xlu0 %1345 }
  0xe7   : > { %13016 = vst [vmem:[#allocation79_spill] sm:$0xff] %v8290_v25  ;;  %v8292_v27 = vpop.permute.xlu1 %1347 }
  0xe8   : > { %13017 = vst [vmem:[#allocation80_spill] sm:$0xff] %v8292_v27  ;;  %1589 = vrot.lane.b32.xlu0 %v7813_v43, %s7661_s10 }
  0xe9   : > { %1591 = vrot.lane.b32.xlu1 %v7815_v44, %s7661_s10 }
  0xea   : > { %v8298_v28 = vpop.permute.xlu0 %1349 }
  0xeb   : > { %13018 = vst [vmem:[#allocation81_spill] sm:$0xff] %v8298_v28  ;;  %v8300_v29 = vpop.permute.xlu1 %1351 }
  0xec   : > { %13019 = vst [vmem:[#allocation82_spill] sm:$0xff] %v8300_v29  ;;  %1593 = vrot.lane.b32.xlu0 %v7827_v49, %s7661_s10 }
  0xed   : > { %1595 = vrot.lane.b32.xlu1 %v7829_v50, %s7661_s10 }
  0xee   : > { %v8306_v30 = vpop.permute.xlu0 %1353 }
  0xef   : > { %13020 = vst [vmem:[#allocation83_spill] sm:$0xff] %v8306_v30  ;;  %v8308_v32 = vpop.permute.xlu1 %1355 }
  0xf0   : > { %13021 = vst [vmem:[#allocation84_spill] sm:$0xff] %v8308_v32  ;;  %1597 = vrot.lane.b32.xlu0 %v7837_v53, %s7661_s10 }
  0xf1   : > { %1599 = vrot.lane.b32.xlu1 %v7839_v54, %s7661_s10 }
  0xf2   : > { %v8314_v43 = vpop.permute.xlu0 %1357 }
  0xf3   : > { %13022 = vst [vmem:[#allocation85_spill] sm:$0xff] %v8314_v43  ;;  %v8316_v44 = vpop.permute.xlu1 %1359 }
  0xf4   : > { %13023 = vst [vmem:[#allocation86_spill] sm:$0xff] %v8316_v44  ;;  %1601 = vrot.lane.b32.xlu0 %v7849_v60, %s7661_s10 }
  0xf5   : > { %1603 = vrot.lane.b32.xlu1 %v7851_v61, %s7661_s10 }
  0xf6   : > { %v8322_v49 = vpop.permute.xlu0 %1361 }
  0xf7   : > { %13024 = vst [vmem:[#allocation87_spill] sm:$0xff] %v8322_v49  ;;  %v8324_v50 = vpop.permute.xlu1 %1363 }
  0xf8   : > { %13025 = vst [vmem:[#allocation88_spill] sm:$0xff] %v8324_v50  ;;  %1605 = vrot.lane.b32.xlu0 %v7861_v3, %s7661_s10 }
  0xf9   : > { %1607 = vrot.lane.b32.xlu1 %v7863_v4, %s7661_s10 }
  0xfa   : > { %v8330_v53 = vpop.permute.xlu0 %1365 }
  0xfb   : > { %13026 = vst [vmem:[#allocation89_spill] sm:$0xff] %v8330_v53  ;;  %v8332_v54 = vpop.permute.xlu1 %1367 }
  0xfc   : > { %13027 = vst [vmem:[#allocation90_spill] sm:$0xff] %v8332_v54  ;;  %1609 = vrot.lane.b32.xlu0 %v7873_v8, %s7661_s10 }
  0xfd   : > { %1611 = vrot.lane.b32.xlu1 %v7875_v9, %s7661_s10 }
  0xfe   : > { %v8338_v60 = vpop.permute.xlu0 %1369 }
  0xff   : > { %13028 = vst [vmem:[#allocation91_spill] sm:$0xff] %v8338_v60  ;;  %v8340_v61 = vpop.permute.xlu1 %1371 }
 0x100   : > { %13029 = vst [vmem:[#allocation92_spill] sm:$0xff] %v8340_v61  ;;  %1613 = vrot.lane.b32.xlu0 %v7885_v14, %s7661_s10 }
 0x101   : > { %1615 = vrot.lane.b32.xlu1 %v7887_v15, %s7661_s10 }
 0x102   : > { %v8346_v3 = vpop.permute.xlu0 %1373 }
 0x103   : > { %13030 = vst [vmem:[#allocation93_spill] sm:$0xff] %v8346_v3  ;;  %v8348_v4 = vpop.permute.xlu1 %1375 }
 0x104   : > { %13031 = vst [vmem:[#allocation94_spill] sm:$0xff] %v8348_v4  ;;  %1617 = vrot.lane.b32.xlu0 %v7898_v20, %s7661_s10 }
 0x105   : > { %1619 = vrot.lane.b32.xlu1 %v7900_v21, %s7661_s10 }
 0x106   : > { %v8354_v8 = vpop.permute.xlu0 %1377 }
 0x107   : > { %13032 = vst [vmem:[#allocation95_spill] sm:$0xff] %v8354_v8  ;;  %v8356_v9 = vpop.permute.xlu1 %1379 }
 0x108   : > { %13033 = vst [vmem:[#allocation96_spill] sm:$0xff] %v8356_v9  ;;  %1621 = vrot.lane.b32.xlu0 %v7909_v23, %s7661_s10  ;;  %v7066_v9 = vld [vmem:[#allocation2 + $0x228] ss:$0 sm:$0xff] }
 0x109   : > { %1623 = vrot.lane.b32.xlu1 %v7911_v24, %s7661_s10  ;;  %477 = vst.msk [vmem:[#allocation2 + $0x220] sm:$0xff] %vm332_vm0, %v7066_v9 }
 0x10a   : > { %v8362_v14 = vpop.permute.xlu0 %1381 }
 0x10b   : > { %13034 = vst [vmem:[#allocation97_spill] sm:$0xff] %v8362_v14  ;;  %v8364_v15 = vpop.permute.xlu1 %1383 }
 0x10c   : > { %13035 = vst [vmem:[#allocation98_spill] sm:$0xff] %v8364_v15  ;;  %1625 = vrot.lane.b32.xlu0 %v7917_v26, %s7661_s10  ;;  %v8387_v26 = vld [vmem:[#allocation2 + $0x210] sm:$0xff] }
 0x10d   : > { %1627 = vrot.lane.b32.xlu1 %v7919_v31, %s7661_s10  ;;  %v8389_v31 = vld [vmem:[#allocation2 + $0x208] sm:$0xff] }
 0x10e   : > { %v8372_v21 = vpop.permute.xlu0 %1449 }
 0x10f   : > { %v8370_v20 = vpop.permute.xlu1 %1451  ;;  %13037 = vst [vmem:[#allocation100_spill] sm:$0xff] %v8372_v21 }
 0x110   : > { %13036 = vst [vmem:[#allocation99_spill] sm:$0xff] %v8370_v20  ;;  %1629 = vrot.lane.b32.xlu0 %v7929_v35, %s7661_s10 }
 0x111   : > { %1631 = vrot.lane.b32.xlu1 %v7931_v36, %s7661_s10 }
 0x112   : > { %v8381_v24 = vpop.permute.xlu0 %1453 }
 0x113   : > { %v8379_v23 = vpop.permute.xlu1 %1455  ;;  %13039 = vst [vmem:[#allocation102_spill] sm:$0xff] %v8381_v24 }
 0x114   : > { %13038 = vst [vmem:[#allocation101_spill] sm:$0xff] %v8379_v23  ;;  %1633 = vrot.lane.b32.xlu0 %v7937_v37, %s7661_s10 }
 0x115   : > { %1635 = vrot.lane.b32.xlu1 %v7939_v38, %s7661_s10 }
 0x116   : > { %v8393_v15 = vpop.permute.xlu0 %1457 }
 0x117   : > { %v8391_v36 = vpop.permute.xlu1 %1459  ;;  %13041 = vst [vmem:[#allocation104_spill] sm:$0xff] %v8393_v15 }
 0x118   : > { %13040 = vst [vmem:[#allocation103_spill] sm:$0xff] %v8391_v36  ;;  %1637 = vrot.lane.b32.xlu0 %v8389_v31, %s7661_s10 }
 0x119   : > { %1639 = vrot.lane.b32.xlu1 %v8387_v26, %s7661_s10 }
 0x11a   : > { %v8401_v38 = vpop.permute.xlu0 %1461 }
 0x11b   : > { %v8399_v35 = vpop.permute.xlu1 %1463  ;;  %13043 = vst [vmem:[#allocation106_spill] sm:$0xff] %v8401_v38 }
 0x11c   : > { %13042 = vst [vmem:[#allocation105_spill] sm:$0xff] %v8399_v35  ;;  %1705 = vrot.lane.b32.xlu0 %v7947_v41, %s7662_s11 }
 0x11d   : > { %1707 = vrot.lane.b32.xlu1 %v7949_v42, %s7662_s11 }
 0x11e   : > { %v8409_v9 = vpop.permute.xlu0 %1465 }
 0x11f   : > { %v8407_v37 = vpop.permute.xlu1 %1467  ;;  %13045 = vst [vmem:[#allocation108_spill] sm:$0xff] %v8409_v9 }
 0x120   : > { %13044 = vst [vmem:[#allocation107_spill] sm:$0xff] %v8407_v37  ;;  %1709 = vrot.lane.b32.xlu0 %v7955_v45, %s7662_s11 }
 0x121   : > { %1711 = vrot.lane.b32.xlu1 %v7957_v46, %s7662_s11 }
 0x122   : > { %v8417_v38 = vpop.permute.xlu0 %1469 }
 0x123   : > { %v8415_v35 = vpop.permute.xlu1 %1471  ;;  %13047 = vst [vmem:[#allocation110_spill] sm:$0xff] %v8417_v38 }
 0x124   : > { %13046 = vst [vmem:[#allocation109_spill] sm:$0xff] %v8415_v35  ;;  %1713 = vrot.lane.b32.xlu0 %v7963_v47, %s7662_s11 }
 0x125   : > { %1715 = vrot.lane.b32.xlu1 %v7965_v48, %s7662_s11 }
 0x126   : > { %v8425_v42 = vpop.permute.xlu0 %1473 }
 0x127   : > { %v8423_v41 = vpop.permute.xlu1 %1475  ;;  %13049 = vst [vmem:[#allocation112_spill] sm:$0xff] %v8425_v42 }
 0x128   : > { %13048 = vst [vmem:[#allocation111_spill] sm:$0xff] %v8423_v41  ;;  %1717 = vrot.lane.b32.xlu0 %v7971_v51, %s7662_s11 }
 0x129   : > { %1719 = vrot.lane.b32.xlu1 %v7973_v52, %s7662_s11 }
 0x12a   : > { %v8433_v46 = vpop.permute.xlu0 %1477 }
 0x12b   : > { %v8431_v45 = vpop.permute.xlu1 %1479  ;;  %13051 = vst [vmem:[#allocation114_spill] sm:$0xff] %v8433_v46 }
 0x12c   : > { %13050 = vst [vmem:[#allocation113_spill] sm:$0xff] %v8431_v45  ;;  %1721 = vrot.lane.b32.xlu0 %v7979_v55, %s7662_s11 }
 0x12d   : > { %1723 = vrot.lane.b32.xlu1 %v7981_v56, %s7662_s11 }
 0x12e   : > { %v8441_v48 = vpop.permute.xlu0 %1481 }
 0x12f   : > { %v8439_v47 = vpop.permute.xlu1 %1483  ;;  %13053 = vst [vmem:[#allocation116_spill] sm:$0xff] %v8441_v48 }
 0x130   : > { %13052 = vst [vmem:[#allocation115_spill] sm:$0xff] %v8439_v47  ;;  %1725 = vrot.lane.b32.xlu0 %v7987_v57, %s7662_s11 }
 0x131   : > { %1727 = vrot.lane.b32.xlu1 %v7989_v58, %s7662_s11 }
 0x132   : > { %v8449_v52 = vpop.permute.xlu0 %1485 }
 0x133   : > { %v8447_v51 = vpop.permute.xlu1 %1487  ;;  %13055 = vst [vmem:[#allocation118_spill] sm:$0xff] %v8449_v52 }
 0x134   : > { %13054 = vst [vmem:[#allocation117_spill] sm:$0xff] %v8447_v51  ;;  %1729 = vrot.lane.b32.xlu0 %v7995_v59, %s7662_s11 }
 0x135   : > { %1731 = vrot.lane.b32.xlu1 %v7997_v62, %s7662_s11 }
 0x136   : > { %v8457_v56 = vpop.permute.xlu0 %1489 }
 0x137   : > { %v8455_v55 = vpop.permute.xlu1 %1491  ;;  %13057 = vst [vmem:[#allocation120_spill] sm:$0xff] %v8457_v56 }
 0x138   : > { %13056 = vst [vmem:[#allocation119_spill] sm:$0xff] %v8455_v55  ;;  %1733 = vrot.lane.b32.xlu0 %v8003_v63, %s7662_s11 }
 0x139   : > { %1735 = vrot.lane.b32.xlu1 %v8005_v0, %s7662_s11 }
 0x13a   : > { %v8465_v58 = vpop.permute.xlu0 %1493 }
 0x13b   : > { %v8463_v57 = vpop.permute.xlu1 %1495  ;;  %13059 = vst [vmem:[#allocation122_spill] sm:$0xff] %v8465_v58 }
 0x13c   : > { %13058 = vst [vmem:[#allocation121_spill] sm:$0xff] %v8463_v57  ;;  %1737 = vrot.lane.b32.xlu0 %v8011_v1, %s7662_s11 }
 0x13d   : > { %1739 = vrot.lane.b32.xlu1 %v8013_v2, %s7662_s11 }
 0x13e   : > { %v8473_v62 = vpop.permute.xlu0 %1497 }
 0x13f   : > { %v8471_v59 = vpop.permute.xlu1 %1499  ;;  %13061 = vst [vmem:[#allocation124_spill] sm:$0xff] %v8473_v62 }
 0x140   : > { %13060 = vst [vmem:[#allocation123_spill] sm:$0xff] %v8471_v59  ;;  %1741 = vrot.lane.b32.xlu0 %v8019_v5, %s7662_s11 }
 0x141   : > { %1743 = vrot.lane.b32.xlu1 %v8021_v6, %s7662_s11 }
 0x142   : > { %v8481_v0 = vpop.permute.xlu0 %1501 }
 0x143   : > { %v8479_v63 = vpop.permute.xlu1 %1503  ;;  %13063 = vst [vmem:[#allocation126_spill] sm:$0xff] %v8481_v0  ;;  %v13088_v0 = vld [vmem:[#allocation28_spill] sm:$0xff] }
 0x144   : > { %13062 = vst [vmem:[#allocation125_spill] sm:$0xff] %v8479_v63  ;;  %1745 = vrot.lane.b32.xlu0 %v8027_v7, %s7662_s11 }
 0x145   : > { %1747 = vrot.lane.b32.xlu1 %v8029_v10, %s7662_s11  ;;  %v13068_v10 = vld [vmem:[#allocation5_spill] sm:$0xff] }
 0x146   : > { %v8489_v2 = vpop.permute.xlu0 %1505 }
 0x147   : > { %v8487_v1 = vpop.permute.xlu1 %1507  ;;  %13065 = vst [vmem:[#allocation128_spill] sm:$0xff] %v8489_v2  ;;  %v13071_v2 = vld [vmem:[#allocation9_spill] sm:$0xff] }
 0x148   : > { %13064 = vst [vmem:[#allocation127_spill] sm:$0xff] %v8487_v1  ;;  %1749 = vrot.lane.b32.xlu0 %v8035_v11, %s7662_s11 }
 0x149   : > { %1751 = vrot.lane.b32.xlu1 %v8037_v12, %s7662_s11  ;;  %v13072_v12 = vld [vmem:[#allocation8_spill] sm:$0xff] }
 0x14a   : > { %v8497_v6 = vpop.permute.xlu0 %1509 }
 0x14b   : > { %v8495_v5 = vpop.permute.xlu1 %1511  ;;  %13067 = vst [vmem:[#allocation130_spill] sm:$0xff] %v8497_v6  ;;  %v13085_v6 = vld [vmem:[#allocation23_spill] sm:$0xff] }
 0x14c   : > { %13066 = vst [vmem:[#allocation129_spill] sm:$0xff] %v8495_v5  ;;  %1753 = vrot.lane.b32.xlu0 %v13068_v10, %s7662_s11  ;;  %v8519_v10 = vld [vmem:[#allocation2 + $0x211] sm:$0xff] }
 0x14d   : > { %1755 = vrot.lane.b32.xlu1 %v8045_v16, %s7662_s11  ;;  %v13075_v16 = vld [vmem:[#allocation12_spill] sm:$0xff] }
 0x14e   : > { %v8505_v1 = vpop.permute.xlu0 %1577 }
 0x14f   : > { %v8503_v7 = vpop.permute.xlu1 %1579  ;;  %13070 = vst [vmem:[#allocation131_spill] sm:$0xff] %v8505_v1 }
 0x150   : > { %13069 = vst [vmem:[#allocation5_spill] sm:$0xff] %v8503_v7  ;;  %1757 = vrot.lane.b32.xlu0 %v13072_v12, %s7662_s11  ;;  %v8521_v7 = vld [vmem:[#allocation2 + $0x209] sm:$0xff] }
 0x151   : > { %1759 = vrot.lane.b32.xlu1 %v13071_v2, %s7662_s11 }
 0x152   : > { %v8513_v5 = vpop.permute.xlu0 %1581 }
 0x153   : > { %v8511_v11 = vpop.permute.xlu1 %1583  ;;  %13074 = vst [vmem:[#allocation8_spill] sm:$0xff] %v8513_v5  ;;  %v13081_v5 = vld [vmem:[#allocation19_spill] sm:$0xff] }
 0x154   : > { %13073 = vst [vmem:[#allocation9_spill] sm:$0xff] %v8511_v11  ;;  %1761 = vrot.lane.b32.xlu0 %v13075_v16, %s7662_s11  ;;  %v13080_v16 = vld [vmem:[#allocation20_spill] sm:$0xff] }
 0x155   : > { %1763 = vrot.lane.b32.xlu1 %v8069_v40, %s7662_s11  ;;  %v13084_v11 = vld [vmem:[#allocation24_spill] sm:$0xff] }
 0x156   : > { %v8525_v2 = vpop.permute.xlu0 %1585 }
 0x157   : > { %v8523_v1 = vpop.permute.xlu1 %1587  ;;  %13077 = vst [vmem:[#allocation132_spill] sm:$0xff] %v8525_v2 }
 0x158   : > { %13076 = vst [vmem:[#allocation12_spill] sm:$0xff] %v8523_v1  ;;  %1765 = vrot.lane.b32.xlu0 %v8521_v7, %s7662_s11 }
 0x159   : > { %1767 = vrot.lane.b32.xlu1 %v8519_v10, %s7662_s11 }
 0x15a   : > { %v8533_v40 = vpop.permute.xlu0 %1589 }
 0x15b   : > { %v8531_v12 = vpop.permute.xlu1 %1591  ;;  %13079 = vst [vmem:[#allocation134_spill] sm:$0xff] %v8533_v40 }
 0x15c   : > { %13078 = vst [vmem:[#allocation133_spill] sm:$0xff] %v8531_v12  ;;  %1833 = vrot.lane.b32.xlu0 %v13081_v5, %s7663_s12 }
 0x15d   : > { %1835 = vrot.lane.b32.xlu1 %v13080_v16, %s7663_s12  ;;  %v13089_v16 = vld [vmem:[#allocation27_spill] sm:$0xff] }
 0x15e   : > { %v8541_v2 = vpop.permute.xlu0 %1593 }
 0x15f   : > { %v8539_v1 = vpop.permute.xlu1 %1595  ;;  %13083 = vst [vmem:[#allocation19_spill] sm:$0xff] %v8541_v2  ;;  %v13092_v2 = vld [vmem:[#allocation32_spill] sm:$0xff] }
 0x160   : > { %13082 = vst [vmem:[#allocation20_spill] sm:$0xff] %v8539_v1  ;;  %1837 = vrot.lane.b32.xlu0 %v13085_v6, %s7663_s12 }
 0x161   : > { %1839 = vrot.lane.b32.xlu1 %v13084_v11, %s7663_s12  ;;  %v13093_v11 = vld [vmem:[#allocation31_spill] sm:$0xff] }
 0x162   : > { %v8549_v40 = vpop.permute.xlu0 %1597 }
 0x163   : > { %v8547_v12 = vpop.permute.xlu1 %1599  ;;  %13087 = vst [vmem:[#allocation23_spill] sm:$0xff] %v8549_v40  ;;  %v13096_v40 = vld [vmem:[#allocation36_spill] sm:$0xff] }
 0x164   : > { %13086 = vst [vmem:[#allocation24_spill] sm:$0xff] %v8547_v12  ;;  %1841 = vrot.lane.b32.xlu0 %v13089_v16, %s7663_s12 }
 0x165   : > { %1843 = vrot.lane.b32.xlu1 %v13088_v0, %s7663_s12  ;;  %v13097_v0 = vld [vmem:[#allocation35_spill] sm:$0xff] }
 0x166   : > { %v8557_v1 = vpop.permute.xlu0 %1601 }
 0x167   : > { %v8555_v5 = vpop.permute.xlu1 %1603  ;;  %13091 = vst [vmem:[#allocation27_spill] sm:$0xff] %v8557_v1  ;;  %v13100_v1 = vld [vmem:[#allocation40_spill] sm:$0xff] }
 0x168   : > { %13090 = vst [vmem:[#allocation28_spill] sm:$0xff] %v8555_v5  ;;  %1845 = vrot.lane.b32.xlu0 %v13093_v11, %s7663_s12 }
 0x169   : > { %1847 = vrot.lane.b32.xlu1 %v13092_v2, %s7663_s12  ;;  %v13101_v2 = vld [vmem:[#allocation39_spill] sm:$0xff] }
 0x16a   : > { %v8565_v12 = vpop.permute.xlu0 %1605 }
 0x16b   : > { %v8563_v6 = vpop.permute.xlu1 %1607  ;;  %13095 = vst [vmem:[#allocation31_spill] sm:$0xff] %v8565_v12  ;;  %v13104_v12 = vld [vmem:[#allocation44_spill] sm:$0xff] }
 0x16c   : > { %13094 = vst [vmem:[#allocation32_spill] sm:$0xff] %v8563_v6  ;;  %1849 = vrot.lane.b32.xlu0 %v13097_v0, %s7663_s12 }
 0x16d   : > { %1851 = vrot.lane.b32.xlu1 %v13096_v40, %s7663_s12  ;;  %v13105_v40 = vld [vmem:[#allocation43_spill] sm:$0xff] }
 0x16e   : > { %v8573_v5 = vpop.permute.xlu0 %1609 }
 0x16f   : > { %v8571_v16 = vpop.permute.xlu1 %1611  ;;  %13099 = vst [vmem:[#allocation35_spill] sm:$0xff] %v8573_v5  ;;  %v13108_v5 = vld [vmem:[#allocation48_spill] sm:$0xff] }
 0x170   : > { %13098 = vst [vmem:[#allocation36_spill] sm:$0xff] %v8571_v16  ;;  %1853 = vrot.lane.b32.xlu0 %v13101_v2, %s7663_s12 }
 0x171   : > { %1855 = vrot.lane.b32.xlu1 %v13100_v1, %s7663_s12  ;;  %v13109_v1 = vld [vmem:[#allocation47_spill] sm:$0xff] }
 0x172   : > { %v8581_v6 = vpop.permute.xlu0 %1613 }
 0x173   : > { %v8579_v11 = vpop.permute.xlu1 %1615  ;;  %13103 = vst [vmem:[#allocation39_spill] sm:$0xff] %v8581_v6  ;;  %v13112_v6 = vld [vmem:[#allocation52_spill] sm:$0xff] }
 0x174   : > { %13102 = vst [vmem:[#allocation40_spill] sm:$0xff] %v8579_v11  ;;  %1857 = vrot.lane.b32.xlu0 %v13105_v40, %s7663_s12 }
 0x175   : > { %1859 = vrot.lane.b32.xlu1 %v13104_v12, %s7663_s12  ;;  %v13113_v12 = vld [vmem:[#allocation51_spill] sm:$0xff] }
 0x176   : > { %v8589_v16 = vpop.permute.xlu0 %1617 }
 0x177   : > { %v8587_v0 = vpop.permute.xlu1 %1619  ;;  %13107 = vst [vmem:[#allocation43_spill] sm:$0xff] %v8589_v16  ;;  %v13116_v16 = vld [vmem:[#allocation56_spill] sm:$0xff] }
 0x178   : > { %13106 = vst [vmem:[#allocation44_spill] sm:$0xff] %v8587_v0  ;;  %1861 = vrot.lane.b32.xlu0 %v13109_v1, %s7663_s12 }
 0x179   : > { %1863 = vrot.lane.b32.xlu1 %v13108_v5, %s7663_s12  ;;  %v13117_v5 = vld [vmem:[#allocation55_spill] sm:$0xff] }
 0x17a   : > { %v8597_v11 = vpop.permute.xlu0 %1621 }
 0x17b   : > { %v8595_v2 = vpop.permute.xlu1 %1623  ;;  %13111 = vst [vmem:[#allocation47_spill] sm:$0xff] %v8597_v11  ;;  %v13120_v11 = vld [vmem:[#allocation60_spill] sm:$0xff] }
 0x17c   : > { %13110 = vst [vmem:[#allocation48_spill] sm:$0xff] %v8595_v2  ;;  %1865 = vrot.lane.b32.xlu0 %v13113_v12, %s7663_s12 }
 0x17d   : > { %1867 = vrot.lane.b32.xlu1 %v13112_v6, %s7663_s12  ;;  %v13121_v6 = vld [vmem:[#allocation59_spill] sm:$0xff] }
 0x17e   : > { %v8605_v0 = vpop.permute.xlu0 %1625 }
 0x17f   : > { %v8603_v40 = vpop.permute.xlu1 %1627  ;;  %13115 = vst [vmem:[#allocation51_spill] sm:$0xff] %v8605_v0 }
 0x180   : > { %13114 = vst [vmem:[#allocation52_spill] sm:$0xff] %v8603_v40  ;;  %1869 = vrot.lane.b32.xlu0 %v13117_v5, %s7663_s12  ;;  %v13125_v5 = vld [vmem:[#allocation63_spill] sm:$0xff] }
 0x181   : > { %1871 = vrot.lane.b32.xlu1 %v13116_v16, %s7663_s12  ;;  %v13124_v16 = vld [vmem:[#allocation64_spill] sm:$0xff] }
 0x182   : > { %v8613_v2 = vpop.permute.xlu0 %1629 }
 0x183   : > { %v8611_v1 = vpop.permute.xlu1 %1631  ;;  %13119 = vst [vmem:[#allocation55_spill] sm:$0xff] %v8613_v2 }
 0x184   : > { %13118 = vst [vmem:[#allocation56_spill] sm:$0xff] %v8611_v1  ;;  %1873 = vrot.lane.b32.xlu0 %v13121_v6, %s7663_s12  ;;  %v13129_v6 = vld [vmem:[#allocation67_spill] sm:$0xff] }
 0x185   : > { %1875 = vrot.lane.b32.xlu1 %v13120_v11, %s7663_s12  ;;  %v13128_v11 = vld [vmem:[#allocation68_spill] sm:$0xff] }
 0x186   : > { %v8621_v0 = vpop.permute.xlu0 %1633 }
 0x187   : > { %v8619_v12 = vpop.permute.xlu1 %1635  ;;  %13123 = vst [vmem:[#allocation59_spill] sm:$0xff] %v8621_v0  ;;  %v7084_v0 = vld [vmem:[#allocation2 + $0x237] ss:$0 sm:$0xff] }
 0x188   : > { %13122 = vst [vmem:[#allocation60_spill] sm:$0xff] %v8619_v12  ;;  %1877 = vrot.lane.b32.xlu0 %v13125_v5, %s7663_s12  ;;  %585 = vst.msk [vmem:[#allocation2 + $0x238] sm:$0xff] %vm332_vm0, %v7084_v0 }
 0x189   : > { %1879 = vrot.lane.b32.xlu1 %v13124_v16, %s7663_s12 }
 0x18a   : > { %v8629_v2 = vpop.permute.xlu0 %1637 }
 0x18b   : > { %v8627_v1 = vpop.permute.xlu1 %1639  ;;  %13127 = vst [vmem:[#allocation63_spill] sm:$0xff] %v8629_v2 }
 0x18c   : > { %13126 = vst [vmem:[#allocation64_spill] sm:$0xff] %v8627_v1  ;;  %1881 = vrot.lane.b32.xlu0 %v13129_v6, %s7663_s12  ;;  %v586_v6 = vld [vmem:[%s8652_s15] sm:$0xff] }
 0x18d   : > { %1883 = vrot.lane.b32.xlu1 %v13128_v11, %s7663_s12  ;;  %v587_v11 = vld [vmem:[%s8652_s15 + $0x8] sm:$0xff]  ;;  %651 = vst.msk [vmem:[#allocation3 + $0x8] sm:$0xff] %vm332_vm0, %v586_v6  ;;  %619 = vst.msk [vmem:[#allocation3 + $0x28] sm:$0xff] %vm332_vm0, %v586_v6  ;;  %v589_v6 = vld [vmem:[%s8652_s15 + $0x18] sm:$0xff] }
 0x18e   : > { %v8637_v40 = vpop.permute.xlu0 %1705  ;;  %652 = vst.msk [vmem:[#allocation3 + $0x10] sm:$0xff] %vm332_vm0, %v587_v11  ;;  %620 = vst.msk [vmem:[#allocation3 + $0x30] sm:$0xff] %vm332_vm0, %v587_v11 }
 0x18f   : > { %v8635_v12 = vpop.permute.xlu1 %1707  ;;  %13131 = vst [vmem:[#allocation67_spill] sm:$0xff] %v8637_v40  ;;  %622 = vst.msk [vmem:[#allocation3 + $0x50] sm:$0xff] %vm332_vm0, %v589_v6  ;;  %v1101_v6 = vld [vmem:[#allocation2 + $0x88] sm:$0xff] }
 0x190   : > { %13130 = vst [vmem:[#allocation68_spill] sm:$0xff] %v8635_v12  ;;  %1885 = vrot.lane.b32.xlu0 %v8246_v18, %s7663_s12  ;;  %v1095_v18 = vld [vmem:[#allocation2 + $0x227] sm:$0xff]  ;;  %v617_v12 = vld [vmem:[%s8652_s15 + $0xf8] sm:$0xff] }
 0x191   : > { %1887 = vrot.lane.b32.xlu1 %v8248_v17, %s7663_s12  ;;  %v1096_v17 = vld [vmem:[#allocation2 + $0x22f] sm:$0xff]  ;;  %650 = vst.msk [vmem:[#allocation3 + $0x210] sm:$0xff] %vm332_vm0, %v617_v12  ;;  %655 = vst.msk [vmem:[#allocation3 + $0x230] sm:$0xff] %vm332_vm0, %v617_v12 }
 0x192   : > { %v8646_v5 = vpop.permute.xlu0 %1709 }
 0x193   : > { %v8644_v16 = vpop.permute.xlu1 %1711  ;;  %13133 = vst [vmem:[#allocation136_spill] sm:$0xff] %v8646_v5 }
 0x194   : > { %13132 = vst [vmem:[#allocation135_spill] sm:$0xff] %v8644_v16  ;;  %1889 = vrot.lane.b32.xlu0 %v8256_v22, %s7663_s12  ;;  %v1097_v22 = vld [vmem:[#allocation2 + $0x48] sm:$0xff] }
 0x195   : > { %1891 = vrot.lane.b32.xlu1 %v8254_v39, %s7663_s12  ;;  %v1098_v39 = vld [vmem:[#allocation2 + $0x50] sm:$0xff] }
 0x196   : > { %v8666_v1 = vpop.permute.xlu0 %1713  ;;  %v2451_v50 = vld [vmem:[#allocation3 + $0x2f] sm:$0xff] }
 0x197   : > { %v8664_v0 = vpop.permute.xlu1 %1715  ;;  %13135 = vst [vmem:[#allocation138_spill] sm:$0xff] %v8666_v1  ;;  %v588_v1 = vld [vmem:[%s8652_s15 + $0x10] sm:$0xff] }
 0x198   : > { %13134 = vst [vmem:[#allocation137_spill] sm:$0xff] %v8664_v0  ;;  %1893 = vrot.lane.b32.xlu0 %v1095_v18, %s7663_s12  ;;  %v1099_v18 = vld [vmem:[#allocation2 + $0x68] sm:$0xff]  ;;  %621 = vst.msk [vmem:[#allocation3 + $0x48] sm:$0xff] %vm332_vm0, %v588_v1 }
 0x199   : > { %1895 = vrot.lane.b32.xlu1 %v1096_v17, %s7663_s12  ;;  %v1100_v17 = vld [vmem:[#allocation2 + $0x70] sm:$0xff] }
 0x19a   : > { %v8672_v11 = vpop.permute.xlu0 %1717 }
 0x19b   : > { %v8670_v2 = vpop.permute.xlu1 %1719  ;;  %13137 = vst [vmem:[#allocation140_spill] sm:$0xff] %v8672_v11  ;;  %v591_v11 = vld [vmem:[%s8652_s15 + $0x28] sm:$0xff] }
 0x19c   : > { %13136 = vst [vmem:[#allocation139_spill] sm:$0xff] %v8670_v2  ;;  %1961 = vrot.lane.b32.xlu0 %v1097_v22, %s7664_s16  ;;  %624 = vst.msk [vmem:[#allocation3 + $0x70] sm:$0xff] %vm332_vm0, %v591_v11  ;;  %v1102_v22 = vld [vmem:[#allocation2 + $0x90] sm:$0xff] }
 0x19d   : > { %1963 = vrot.lane.b32.xlu1 %v1098_v39, %s7664_s16  ;;  %v590_v39 = vld [vmem:[%s8652_s15 + $0x20] sm:$0xff]  ;;  %v1104_v11 = vld [vmem:[#allocation2 + $0xb0] sm:$0xff] }
 0x19e   : > { %v8682_v2 = vpop.permute.xlu0 %1721  ;;  %623 = vst.msk [vmem:[#allocation3 + $0x68] sm:$0xff] %vm332_vm0, %v590_v39 }
 0x19f   : > { %v8680_v0 = vpop.permute.xlu1 %1723  ;;  %13139 = vst [vmem:[#allocation142_spill] sm:$0xff] %v8682_v2  ;;  %v592_v2 = vld [vmem:[%s8652_s15 + $0x30] sm:$0xff] }
 0x1a0   : > { %13138 = vst [vmem:[#allocation141_spill] sm:$0xff] %v8680_v0  ;;  %1965 = vrot.lane.b32.xlu0 %v1099_v18, %s7664_s16  ;;  %v593_v0 = vld [vmem:[%s8652_s15 + $0x38] sm:$0xff]  ;;  %625 = vst.msk [vmem:[#allocation3 + $0x88] sm:$0xff] %vm332_vm0, %v592_v2  ;;  %v1105_v2 = vld [vmem:[#allocation2 + $0xc8] sm:$0xff] }
 0x1a1   : > { %1967 = vrot.lane.b32.xlu1 %v1100_v17, %s7664_s16  ;;  %626 = vst.msk [vmem:[#allocation3 + $0x90] sm:$0xff] %vm332_vm0, %v593_v0  ;;  %v1103_v17 = vld [vmem:[#allocation2 + $0xa8] sm:$0xff]  ;;  %v1106_v0 = vld [vmem:[#allocation2 + $0xd0] sm:$0xff] }
 0x1a2   : > { %v8692_v1 = vpop.permute.xlu0 %1725 }
 0x1a3   : > { %v8690_v5 = vpop.permute.xlu1 %1727  ;;  %13141 = vst [vmem:[#allocation144_spill] sm:$0xff] %v8692_v1  ;;  %v594_v1 = vld [vmem:[%s8652_s15 + $0x40] sm:$0xff] }
 0x1a4   : > { %13140 = vst [vmem:[#allocation143_spill] sm:$0xff] %v8690_v5  ;;  %1969 = vrot.lane.b32.xlu0 %v1101_v6, %s7664_s16  ;;  %v595_v5 = vld [vmem:[%s8652_s15 + $0x48] sm:$0xff]  ;;  %627 = vst.msk [vmem:[#allocation3 + $0xa8] sm:$0xff] %vm332_vm0, %v594_v1 }
 0x1a5   : > { %1971 = vrot.lane.b32.xlu1 %v1102_v22, %s7664_s16  ;;  %628 = vst.msk [vmem:[#allocation3 + $0xb0] sm:$0xff] %vm332_vm0, %v595_v5  ;;  %v1108_v5 = vld [vmem:[#allocation2 + $0xf0] sm:$0xff] }
 0x1a6   : > { %v8702_v39 = vpop.permute.xlu0 %1729 }
 0x1a7   : > { %v8700_v18 = vpop.permute.xlu1 %1731  ;;  %13143 = vst [vmem:[#allocation146_spill] sm:$0xff] %v8702_v39  ;;  %v599_v39 = vld [vmem:[%s8652_s15 + $0x68] sm:$0xff] }
 0x1a8   : > { %13142 = vst [vmem:[#allocation145_spill] sm:$0xff] %v8700_v18  ;;  %1973 = vrot.lane.b32.xlu0 %v1103_v17, %s7664_s16  ;;  %v597_v18 = vld [vmem:[%s8652_s15 + $0x58] sm:$0xff]  ;;  %v1107_v17 = vld [vmem:[#allocation2 + $0xe8] sm:$0xff]  ;;  %632 = vst.msk [vmem:[#allocation3 + $0xf0] sm:$0xff] %vm332_vm0, %v599_v39 }
 0x1a9   : > { %1975 = vrot.lane.b32.xlu1 %v1104_v11, %s7664_s16  ;;  %630 = vst.msk [vmem:[#allocation3 + $0xd0] sm:$0xff] %vm332_vm0, %v597_v18  ;;  %v596_v11 = vld [vmem:[%s8652_s15 + $0x50] sm:$0xff] }
 0x1aa   : > { %v8712_v6 = vpop.permute.xlu0 %1733  ;;  %629 = vst.msk [vmem:[#allocation3 + $0xc8] sm:$0xff] %vm332_vm0, %v596_v11  ;;  %v1110_v18 = vld [vmem:[#allocation2 + $0x110] sm:$0xff] }
 0x1ab   : > { %v8710_v22 = vpop.permute.xlu1 %1735  ;;  %13145 = vst [vmem:[#allocation148_spill] sm:$0xff] %v8712_v6  ;;  %v1112_v39 = vld [vmem:[#allocation2 + $0x130] sm:$0xff] }
 0x1ac   : > { %13144 = vst [vmem:[#allocation147_spill] sm:$0xff] %v8710_v22  ;;  %1977 = vrot.lane.b32.xlu0 %v1105_v2, %s7664_s16  ;;  %v1109_v2 = vld [vmem:[#allocation2 + $0x108] sm:$0xff] }
 0x1ad   : > { %1979 = vrot.lane.b32.xlu1 %v1106_v0, %s7664_s16  ;;  %v598_v0 = vld [vmem:[%s8652_s15 + $0x60] sm:$0xff]  ;;  %v9325_v32 = vld [vmem:[#allocation3 + $0x8f] sm:$0xff] }
 0x1ae   : > { %v8722_v22 = vpop.permute.xlu0 %1737  ;;  %631 = vst.msk [vmem:[#allocation3 + $0xe8] sm:$0xff] %vm332_vm0, %v598_v0  ;;  %v9337_v29 = vld [vmem:[#allocation3 + $0xaf] sm:$0xff] }
 0x1af   : > { %v8720_v1 = vpop.permute.xlu1 %1739  ;;  %13147 = vst [vmem:[#allocation150_spill] sm:$0xff] %v8722_v22  ;;  %v600_v22 = vld [vmem:[%s8652_s15 + $0x70] sm:$0xff] }
 0x1b0   : > { %13146 = vst [vmem:[#allocation149_spill] sm:$0xff] %v8720_v1  ;;  %1981 = vrot.lane.b32.xlu0 %v1107_v17, %s7664_s16  ;;  %v601_v1 = vld [vmem:[%s8652_s15 + $0x78] sm:$0xff]  ;;  %633 = vst.msk [vmem:[#allocation3 + $0x108] sm:$0xff] %vm332_vm0, %v600_v22  ;;  %v1113_v22 = vld [vmem:[#allocation2 + $0x148] sm:$0xff] }
 0x1b1   : > { %1983 = vrot.lane.b32.xlu1 %v1108_v5, %s7664_s16  ;;  %634 = vst.msk [vmem:[#allocation3 + $0x110] sm:$0xff] %vm332_vm0, %v601_v1  ;;  %v1111_v5 = vld [vmem:[#allocation2 + $0x128] sm:$0xff]  ;;  %v1114_v1 = vld [vmem:[#allocation2 + $0x150] sm:$0xff] }
 0x1b2   : > { %v8732_v11 = vpop.permute.xlu0 %1741  ;;  %v9349_v27 = vld [vmem:[#allocation3 + $0xcf] sm:$0xff] }
 0x1b3   : > { %v8730_v6 = vpop.permute.xlu1 %1743  ;;  %13149 = vst [vmem:[#allocation152_spill] sm:$0xff] %v8732_v11  ;;  %v602_v11 = vld [vmem:[%s8652_s15 + $0x80] sm:$0xff]  ;;  %13277 = vst [vmem:[#allocation280_spill] sm:$0xff] %v9349_v27 }
 0x1b4   : > { %13148 = vst [vmem:[#allocation151_spill] sm:$0xff] %v8730_v6  ;;  %1985 = vrot.lane.b32.xlu0 %v1109_v2, %s7664_s16  ;;  %v603_v6 = vld [vmem:[%s8652_s15 + $0x88] sm:$0xff]  ;;  %635 = vst.msk [vmem:[#allocation3 + $0x128] sm:$0xff] %vm332_vm0, %v602_v11 }
 0x1b5   : > { %1987 = vrot.lane.b32.xlu1 %v1110_v18, %s7664_s16  ;;  %636 = vst.msk [vmem:[#allocation3 + $0x130] sm:$0xff] %vm332_vm0, %v603_v6  ;;  %v1116_v6 = vld [vmem:[#allocation2 + $0x170] sm:$0xff] }
 0x1b6   : > { %v8742_v0 = vpop.permute.xlu0 %1745  ;;  %v9361_v33 = vld [vmem:[#allocation3 + $0xef] sm:$0xff] }
 0x1b7   : > { %v8740_v17 = vpop.permute.xlu1 %1747  ;;  %13151 = vst [vmem:[#allocation154_spill] sm:$0xff] %v8742_v0  ;;  %v607_v0 = vld [vmem:[%s8652_s15 + $0xa8] sm:$0xff]  ;;  %13281 = vst [vmem:[#allocation284_spill] sm:$0xff] %v9361_v33 }
 0x1b8   : > { %13150 = vst [vmem:[#allocation153_spill] sm:$0xff] %v8740_v17  ;;  %1989 = vrot.lane.b32.xlu0 %v1111_v5, %s7664_s16  ;;  %v605_v17 = vld [vmem:[%s8652_s15 + $0x98] sm:$0xff]  ;;  %v1115_v5 = vld [vmem:[#allocation2 + $0x168] sm:$0xff]  ;;  %640 = vst.msk [vmem:[#allocation3 + $0x170] sm:$0xff] %vm332_vm0, %v607_v0 }
 0x1b9   : > { %1991 = vrot.lane.b32.xlu1 %v1112_v39, %s7664_s16  ;;  %638 = vst.msk [vmem:[#allocation3 + $0x150] sm:$0xff] %vm332_vm0, %v605_v17  ;;  %v604_v39 = vld [vmem:[%s8652_s15 + $0x90] sm:$0xff] }
 0x1ba   : > { %v8752_v2 = vpop.permute.xlu0 %1749  ;;  %637 = vst.msk [vmem:[#allocation3 + $0x148] sm:$0xff] %vm332_vm0, %v604_v39  ;;  %v1118_v17 = vld [vmem:[#allocation2 + $0x190] sm:$0xff] }
 0x1bb   : > { %v8750_v18 = vpop.permute.xlu1 %1751  ;;  %13153 = vst [vmem:[#allocation156_spill] sm:$0xff] %v8752_v2  ;;  %v1120_v0 = vld [vmem:[#allocation2 + $0x1b0] sm:$0xff] }
 0x1bc   : > { %13152 = vst [vmem:[#allocation155_spill] sm:$0xff] %v8750_v18  ;;  %1993 = vrot.lane.b32.xlu0 %v1113_v22, %s7664_s16  ;;  %v1117_v22 = vld [vmem:[#allocation2 + $0x188] sm:$0xff] }
 0x1bd   : > { %1995 = vrot.lane.b32.xlu1 %v1114_v1, %s7664_s16  ;;  %v606_v1 = vld [vmem:[%s8652_s15 + $0xa0] sm:$0xff] }
 0x1be   : > { %v8762_v18 = vpop.permute.xlu0 %1753  ;;  %639 = vst.msk [vmem:[#allocation3 + $0x168] sm:$0xff] %vm332_vm0, %v606_v1 }
 0x1bf   : > { %v8760_v11 = vpop.permute.xlu1 %1755  ;;  %13155 = vst [vmem:[#allocation158_spill] sm:$0xff] %v8762_v18  ;;  %v608_v18 = vld [vmem:[%s8652_s15 + $0xb0] sm:$0xff] }
 0x1c0   : > { %13154 = vst [vmem:[#allocation157_spill] sm:$0xff] %v8760_v11  ;;  %1997 = vrot.lane.b32.xlu0 %v1115_v5, %s7664_s16  ;;  %v609_v11 = vld [vmem:[%s8652_s15 + $0xb8] sm:$0xff]  ;;  %641 = vst.msk [vmem:[#allocation3 + $0x188] sm:$0xff] %vm332_vm0, %v608_v18  ;;  %v1121_v18 = vld [vmem:[#allocation2 + $0x1c8] sm:$0xff] }
 0x1c1   : > { %1999 = vrot.lane.b32.xlu1 %v1116_v6, %s7664_s16  ;;  %642 = vst.msk [vmem:[#allocation3 + $0x190] sm:$0xff] %vm332_vm0, %v609_v11  ;;  %v1119_v6 = vld [vmem:[#allocation2 + $0x1a8] sm:$0xff]  ;;  %v1122_v11 = vld [vmem:[#allocation2 + $0x1d0] sm:$0xff] }
 0x1c2   : > { %v8772_v39 = vpop.permute.xlu0 %1757 }
 0x1c3   : > { %v8770_v2 = vpop.permute.xlu1 %1759  ;;  %13157 = vst [vmem:[#allocation160_spill] sm:$0xff] %v8772_v39  ;;  %v610_v39 = vld [vmem:[%s8652_s15 + $0xc0] sm:$0xff] }
 0x1c4   : > { %13156 = vst [vmem:[#allocation159_spill] sm:$0xff] %v8770_v2  ;;  %2001 = vrot.lane.b32.xlu0 %v1117_v22, %s7664_s16  ;;  %v611_v2 = vld [vmem:[%s8652_s15 + $0xc8] sm:$0xff]  ;;  %643 = vst.msk [vmem:[#allocation3 + $0x1a8] sm:$0xff] %vm332_vm0, %v610_v39 }
 0x1c5   : > { %2003 = vrot.lane.b32.xlu1 %v1118_v17, %s7664_s16  ;;  %644 = vst.msk [vmem:[#allocation3 + $0x1b0] sm:$0xff] %vm332_vm0, %v611_v2  ;;  %v1123_v2 = vld [vmem:[#allocation2 + $0x1e8] sm:$0xff] }
 0x1c6   : > { %v8782_v1 = vpop.permute.xlu0 %1761 }
 0x1c7   : > { %v8780_v5 = vpop.permute.xlu1 %1763  ;;  %13159 = vst [vmem:[#allocation162_spill] sm:$0xff] %v8782_v1 }
 0x1c8   : > { %13158 = vst [vmem:[#allocation161_spill] sm:$0xff] %v8780_v5  ;;  %2005 = vrot.lane.b32.xlu0 %v1119_v6, %s7664_s16  ;;  %v613_v5 = vld [vmem:[%s8652_s15 + $0xd8] sm:$0xff]  ;;  %v1124_v6 = vld [vmem:[#allocation2 + $0x1f0] sm:$0xff] }
 0x1c9   : > { %2007 = vrot.lane.b32.xlu1 %v1120_v0, %s7664_s16  ;;  %646 = vst.msk [vmem:[#allocation3 + $0x1d0] sm:$0xff] %vm332_vm0, %v613_v5  ;;  %v612_v0 = vld [vmem:[%s8652_s15 + $0xd0] sm:$0xff] }
 0x1ca   : > { %v8792_v22 = vpop.permute.xlu0 %1765  ;;  %645 = vst.msk [vmem:[#allocation3 + $0x1c8] sm:$0xff] %vm332_vm0, %v612_v0  ;;  %v1128_v0 = vld [vmem:[#allocation2 + $0x230] sm:$0xff] }
 0x1cb   : > { %v8790_v17 = vpop.permute.xlu1 %1767  ;;  %13161 = vst [vmem:[#allocation164_spill] sm:$0xff] %v8792_v22  ;;  %v7103_v22 = vld [vmem:[#allocation3 + $0x17] ss:$0 sm:$0xff]  ;;  %v9067_v16 = vld [vmem:[#allocation3 + $0x1a8] sm:$0xff] }
 0x1cc   : > { %13160 = vst [vmem:[#allocation163_spill] sm:$0xff] %v8790_v17  ;;  %2009 = vrot.lane.b32.xlu0 %v1121_v18, %s7664_s16  ;;  %v615_v17 = vld [vmem:[%s8652_s15 + $0xe8] sm:$0xff]  ;;  %854 = vst.msk [vmem:[#allocation3 + $0x18] sm:$0xff] %vm332_vm0, %v7103_v22  ;;  %v7105_v22 = vld [vmem:[#allocation3 + $0x57] ss:$0 sm:$0xff] }
 0x1cd   : > { %2011 = vrot.lane.b32.xlu1 %v1122_v11, %s7664_s16  ;;  %648 = vst.msk [vmem:[#allocation3 + $0x1f0] sm:$0xff] %vm332_vm0, %v615_v17  ;;  %v614_v11 = vld [vmem:[%s8652_s15 + $0xe0] sm:$0xff]  ;;  %856 = vst.msk [vmem:[#allocation3 + $0x58] sm:$0xff] %vm332_vm0, %v7105_v22  ;;  %v7107_v22 = vld [vmem:[#allocation3 + $0x97] ss:$0 sm:$0xff] }
 0x1ce   : > { %v8802_v1 = vpop.permute.xlu0 %1833  ;;  %647 = vst.msk [vmem:[#allocation3 + $0x1e8] sm:$0xff] %vm332_vm0, %v614_v11  ;;  %v7104_v11 = vld [vmem:[#allocation3 + $0x37] ss:$0 sm:$0xff]  ;;  %858 = vst.msk [vmem:[#allocation3 + $0x98] sm:$0xff] %vm332_vm0, %v7107_v22 }
 0x1cf   : > { %v8800_v39 = vpop.permute.xlu1 %1835  ;;  %13163 = vst [vmem:[#allocation166_spill] sm:$0xff] %v8802_v1  ;;  %855 = vst.msk [vmem:[#allocation3 + $0x38] sm:$0xff] %vm332_vm0, %v7104_v11  ;;  %v7106_v11 = vld [vmem:[#allocation3 + $0x77] ss:$0 sm:$0xff] }
 0x1d0   : > { %13162 = vst [vmem:[#allocation165_spill] sm:$0xff] %v8800_v39  ;;  %2013 = vrot.lane.b32.xlu0 %v1123_v2, %s7664_s16  ;;  %857 = vst.msk [vmem:[#allocation3 + $0x78] sm:$0xff] %vm332_vm0, %v7106_v11  ;;  %v7108_v11 = vld [vmem:[#allocation3 + $0xb7] ss:$0 sm:$0xff] }
 0x1d1   : > { %2015 = vrot.lane.b32.xlu1 %v1124_v6, %s7664_s16  ;;  %v1127_v6 = vld [vmem:[#allocation2 + $0x228] sm:$0xff]  ;;  %859 = vst.msk [vmem:[#allocation3 + $0xb8] sm:$0xff] %vm332_vm0, %v7108_v11  ;;  %v7109_v22 = vld [vmem:[#allocation3 + $0xd7] ss:$0 sm:$0xff] }
 0x1d2   : > { %v8812_v18 = vpop.permute.xlu0 %1837  ;;  %860 = vst.msk [vmem:[#allocation3 + $0xd8] sm:$0xff] %vm332_vm0, %v7109_v22  ;;  %v7110_v11 = vld [vmem:[#allocation3 + $0xf7] ss:$0 sm:$0xff] }
 0x1d3   : > { %v8810_v5 = vpop.permute.xlu1 %1839  ;;  %13165 = vst [vmem:[#allocation168_spill] sm:$0xff] %v8812_v18  ;;  %861 = vst.msk [vmem:[#allocation3 + $0xf8] sm:$0xff] %vm332_vm0, %v7110_v11  ;;  %v7111_v22 = vld [vmem:[#allocation3 + $0x117] ss:$0 sm:$0xff] }
 0x1d4   : > { %13164 = vst [vmem:[#allocation167_spill] sm:$0xff] %v8810_v5  ;;  %2017 = vrot.lane.b32.xlu0 %v8389_v31, %s7664_s16  ;;  %v1130_v5 = vld [vmem:[#allocation2 + $0x51] sm:$0xff]  ;;  %862 = vst.msk [vmem:[#allocation3 + $0x118] sm:$0xff] %vm332_vm0, %v7111_v22 }
 0x1d5   : > { %2019 = vrot.lane.b32.xlu1 %v8387_v26, %s7664_s16  ;;  %v1129_v26 = vld [vmem:[#allocation2 + $0x49] sm:$0xff]  ;;  %v7112_v11 = vld [vmem:[#allocation3 + $0x137] ss:$0 sm:$0xff] }
 0x1d6   : > { %v8821_v17 = vpop.permute.xlu0 %1841  ;;  %863 = vst.msk [vmem:[#allocation3 + $0x138] sm:$0xff] %vm332_vm0, %v7112_v11  ;;  %v7113_v22 = vld [vmem:[#allocation3 + $0x157] ss:$0 sm:$0xff]  ;;  %v9095_v59 = vld [vmem:[#allocation3 + $0x1e8] sm:$0xff] }
 0x1d7   : > { %v8819_v2 = vpop.permute.xlu1 %1843  ;;  %13167 = vst [vmem:[#allocation170_spill] sm:$0xff] %v8821_v17  ;;  %864 = vst.msk [vmem:[#allocation3 + $0x158] sm:$0xff] %vm332_vm0, %v7113_v22  ;;  %v7114_v11 = vld [vmem:[#allocation3 + $0x177] ss:$0 sm:$0xff] }
 0x1d8   : > { %13166 = vst [vmem:[#allocation169_spill] sm:$0xff] %v8819_v2  ;;  %2021 = vrot.lane.b32.xlu0 %v1127_v6, %s7664_s16  ;;  %v1132_v2 = vld [vmem:[#allocation2 + $0x71] sm:$0xff]  ;;  %865 = vst.msk [vmem:[#allocation3 + $0x178] sm:$0xff] %vm332_vm0, %v7114_v11  ;;  %v7085_v11 = vld [vmem:[#allocation3 + $0x8] ss:$0 sm:$0xff] }
 0x1d9   : > { %2023 = vrot.lane.b32.xlu1 %v1128_v0, %s7664_s16  ;;  %v1131_v0 = vld [vmem:[#allocation2 + $0x69] sm:$0xff]  ;;  %v7115_v22 = vld [vmem:[#allocation3 + $0x197] ss:$0 sm:$0xff]  ;;  %746 = vst.msk [vmem:[#allocation3] sm:$0xff] %vm332_vm0, %v7085_v11 }
 0x1da   : > { %v8828_v31 = vpop.permute.xlu0 %1845  ;;  %866 = vst.msk [vmem:[#allocation3 + $0x198] sm:$0xff] %vm332_vm0, %v7115_v22  ;;  %v7116_v1 = vld [vmem:[#allocation3 + $0x1b7] ss:$0 sm:$0xff] }
 0x1db   : > { %v8826_v18 = vpop.permute.xlu1 %1847  ;;  %13169 = vst [vmem:[#allocation172_spill] sm:$0xff] %v8828_v31  ;;  %v1133_v31 = vld [vmem:[#allocation2 + $0x89] sm:$0xff]  ;;  %867 = vst.msk [vmem:[#allocation3 + $0x1b8] sm:$0xff] %vm332_vm0, %v7116_v1  ;;  %v9111_v56 = vld [vmem:[#allocation3 + $0x31] sm:$0xff] }
 0x1dc   : > { %13168 = vst [vmem:[#allocation171_spill] sm:$0xff] %v8826_v18  ;;  %2089 = vrot.lane.b32.xlu0 %v1129_v26, %s7665_s17  ;;  %v1134_v18 = vld [vmem:[#allocation2 + $0x91] sm:$0xff] }
 0x1dd   : > { %2091 = vrot.lane.b32.xlu1 %v1130_v5, %s7665_s17  ;;  %v9093_v62 = vld [vmem:[#allocation3 + $0x1f0] sm:$0xff] }
 0x1de   : > { %v8835_v6 = vpop.permute.xlu0 %1849 }
 0x1df   : > { %v8833_v17 = vpop.permute.xlu1 %1851  ;;  %13171 = vst [vmem:[#allocation174_spill] sm:$0xff] %v8835_v6  ;;  %v1135_v6 = vld [vmem:[#allocation2 + $0xa9] sm:$0xff] }
 0x1e0   : > { %13170 = vst [vmem:[#allocation173_spill] sm:$0xff] %v8833_v17  ;;  %2093 = vrot.lane.b32.xlu0 %v1131_v0, %s7665_s17  ;;  %v1136_v17 = vld [vmem:[#allocation2 + $0xb1] sm:$0xff] }
 0x1e1   : > { %2095 = vrot.lane.b32.xlu1 %v1132_v2, %s7665_s17 }
 0x1e2   : > { %v8842_v26 = vpop.permute.xlu0 %1853 }
 0x1e3   : > { %v8840_v5 = vpop.permute.xlu1 %1855  ;;  %13173 = vst [vmem:[#allocation176_spill] sm:$0xff] %v8842_v26  ;;  %v1137_v26 = vld [vmem:[#allocation2 + $0xc9] sm:$0xff] }
 0x1e4   : > { %13172 = vst [vmem:[#allocation175_spill] sm:$0xff] %v8840_v5  ;;  %2097 = vrot.lane.b32.xlu0 %v1133_v31, %s7665_s17  ;;  %v1138_v5 = vld [vmem:[#allocation2 + $0xd1] sm:$0xff] }
 0x1e5   : > { %2099 = vrot.lane.b32.xlu1 %v1134_v18, %s7665_s17 }
 0x1e6   : > { %v8849_v0 = vpop.permute.xlu0 %1857 }
 0x1e7   : > { %v8847_v2 = vpop.permute.xlu1 %1859  ;;  %13175 = vst [vmem:[#allocation178_spill] sm:$0xff] %v8849_v0  ;;  %v1139_v0 = vld [vmem:[#allocation2 + $0xe9] sm:$0xff] }
 0x1e8   : > { %13174 = vst [vmem:[#allocation177_spill] sm:$0xff] %v8847_v2  ;;  %2101 = vrot.lane.b32.xlu0 %v1135_v6, %s7665_s17  ;;  %v1140_v2 = vld [vmem:[#allocation2 + $0xf1] sm:$0xff] }
 0x1e9   : > { %2103 = vrot.lane.b32.xlu1 %v1136_v17, %s7665_s17 }
 0x1ea   : > { %v8856_v31 = vpop.permute.xlu0 %1861 }
 0x1eb   : > { %v8854_v18 = vpop.permute.xlu1 %1863  ;;  %13177 = vst [vmem:[#allocation180_spill] sm:$0xff] %v8856_v31  ;;  %v1141_v31 = vld [vmem:[#allocation2 + $0x109] sm:$0xff] }
 0x1ec   : > { %13176 = vst [vmem:[#allocation179_spill] sm:$0xff] %v8854_v18  ;;  %2105 = vrot.lane.b32.xlu0 %v1137_v26, %s7665_s17  ;;  %v1142_v18 = vld [vmem:[#allocation2 + $0x111] sm:$0xff] }
 0x1ed   : > { %2107 = vrot.lane.b32.xlu1 %v1138_v5, %s7665_s17 }
 0x1ee   : > { %v8863_v6 = vpop.permute.xlu0 %1865 }
 0x1ef   : > { %v8861_v17 = vpop.permute.xlu1 %1867  ;;  %13179 = vst [vmem:[#allocation182_spill] sm:$0xff] %v8863_v6  ;;  %v1143_v6 = vld [vmem:[#allocation2 + $0x129] sm:$0xff] }
 0x1f0   : > { %13178 = vst [vmem:[#allocation181_spill] sm:$0xff] %v8861_v17  ;;  %2109 = vrot.lane.b32.xlu0 %v1139_v0, %s7665_s17  ;;  %v1144_v17 = vld [vmem:[#allocation2 + $0x131] sm:$0xff] }
 0x1f1   : > { %2111 = vrot.lane.b32.xlu1 %v1140_v2, %s7665_s17 }
 0x1f2   : > { %v8870_v26 = vpop.permute.xlu0 %1869 }
 0x1f3   : > { %v8868_v5 = vpop.permute.xlu1 %1871  ;;  %13181 = vst [vmem:[#allocation184_spill] sm:$0xff] %v8870_v26  ;;  %v1145_v26 = vld [vmem:[#allocation2 + $0x149] sm:$0xff] }
 0x1f4   : > { %13180 = vst [vmem:[#allocation183_spill] sm:$0xff] %v8868_v5  ;;  %2113 = vrot.lane.b32.xlu0 %v1141_v31, %s7665_s17  ;;  %v1146_v5 = vld [vmem:[#allocation2 + $0x151] sm:$0xff] }
 0x1f5   : > { %2115 = vrot.lane.b32.xlu1 %v1142_v18, %s7665_s17 }
 0x1f6   : > { %v8877_v0 = vpop.permute.xlu0 %1873 }
 0x1f7   : > { %v8875_v2 = vpop.permute.xlu1 %1875  ;;  %13183 = vst [vmem:[#allocation186_spill] sm:$0xff] %v8877_v0  ;;  %v1147_v0 = vld [vmem:[#allocation2 + $0x169] sm:$0xff] }
 0x1f8   : > { %13182 = vst [vmem:[#allocation185_spill] sm:$0xff] %v8875_v2  ;;  %2117 = vrot.lane.b32.xlu0 %v1143_v6, %s7665_s17  ;;  %v1148_v2 = vld [vmem:[#allocation2 + $0x171] sm:$0xff] }
 0x1f9   : > { %2119 = vrot.lane.b32.xlu1 %v1144_v17, %s7665_s17 }
 0x1fa   : > { %v8884_v31 = vpop.permute.xlu0 %1877 }
 0x1fb   : > { %v8882_v18 = vpop.permute.xlu1 %1879  ;;  %13185 = vst [vmem:[#allocation188_spill] sm:$0xff] %v8884_v31  ;;  %v1149_v31 = vld [vmem:[#allocation2 + $0x189] sm:$0xff] }
 0x1fc   : > { %13184 = vst [vmem:[#allocation187_spill] sm:$0xff] %v8882_v18  ;;  %2121 = vrot.lane.b32.xlu0 %v1145_v26, %s7665_s17  ;;  %v1150_v18 = vld [vmem:[#allocation2 + $0x191] sm:$0xff] }
 0x1fd   : > { %2123 = vrot.lane.b32.xlu1 %v1146_v5, %s7665_s17 }
 0x1fe   : > { %v8891_v6 = vpop.permute.xlu0 %1881 }
 0x1ff   : > { %v8889_v17 = vpop.permute.xlu1 %1883  ;;  %13187 = vst [vmem:[#allocation190_spill] sm:$0xff] %v8891_v6  ;;  %v1151_v6 = vld [vmem:[#allocation2 + $0x1a9] sm:$0xff] }
 0x200   : > { %13186 = vst [vmem:[#allocation189_spill] sm:$0xff] %v8889_v17  ;;  %2125 = vrot.lane.b32.xlu0 %v1147_v0, %s7665_s17  ;;  %v1152_v17 = vld [vmem:[#allocation2 + $0x1b1] sm:$0xff] }
 0x201   : > { %2127 = vrot.lane.b32.xlu1 %v1148_v2, %s7665_s17 }
 0x202   : > { %v8898_v26 = vpop.permute.xlu0 %1885 }
 0x203   : > { %v8896_v5 = vpop.permute.xlu1 %1887  ;;  %13189 = vst [vmem:[#allocation192_spill] sm:$0xff] %v8898_v26  ;;  %v7086_v26 = vld [vmem:[#allocation3 + $0x28] ss:$0 sm:$0xff] }
 0x204   : > { %13188 = vst [vmem:[#allocation191_spill] sm:$0xff] %v8896_v5  ;;  %2129 = vrot.lane.b32.xlu0 %v1149_v31, %s7665_s17  ;;  %v1153_v31 = vld [vmem:[#allocation2 + $0x1c9] sm:$0xff]  ;;  %747 = vst.msk [vmem:[#allocation3 + $0x20] sm:$0xff] %vm332_vm0, %v7086_v26 }
 0x205   : > { %2131 = vrot.lane.b32.xlu1 %v1150_v18, %s7665_s17  ;;  %v1154_v18 = vld [vmem:[#allocation2 + $0x1d1] sm:$0xff] }
 0x206   : > { %v8905_v0 = vpop.permute.xlu0 %1889 }
 0x207   : > { %v8903_v2 = vpop.permute.xlu1 %1891  ;;  %13191 = vst [vmem:[#allocation194_spill] sm:$0xff] %v8905_v0  ;;  %v7087_v0 = vld [vmem:[#allocation3 + $0x48] ss:$0 sm:$0xff] }
 0x208   : > { %13190 = vst [vmem:[#allocation193_spill] sm:$0xff] %v8903_v2  ;;  %2133 = vrot.lane.b32.xlu0 %v1151_v6, %s7665_s17  ;;  %v7117_v2 = vld [vmem:[#allocation3 + $0x1d7] ss:$0 sm:$0xff]  ;;  %v1155_v6 = vld [vmem:[#allocation2 + $0x1e9] sm:$0xff]  ;;  %748 = vst.msk [vmem:[#allocation3 + $0x40] sm:$0xff] %vm332_vm0, %v7087_v0 }
 0x209   : > { %2135 = vrot.lane.b32.xlu1 %v1152_v17, %s7665_s17  ;;  %868 = vst.msk [vmem:[#allocation3 + $0x1d8] sm:$0xff] %vm332_vm0, %v7117_v2  ;;  %v1156_v17 = vld [vmem:[#allocation2 + $0x1f1] sm:$0xff]  ;;  %v7088_v2 = vld [vmem:[#allocation3 + $0x68] ss:$0 sm:$0xff] }
 0x20a   : > { %v8913_v22 = vpop.permute.xlu0 %1893  ;;  %749 = vst.msk [vmem:[#allocation3 + $0x60] sm:$0xff] %vm332_vm0, %v7088_v2  ;;  %v1160_v0 = vld [vmem:[#allocation2 + $0x231] sm:$0xff] }
 0x20b   : > { %v8911_v5 = vpop.permute.xlu1 %1895  ;;  %13193 = vst [vmem:[#allocation196_spill] sm:$0xff] %v8913_v22  ;;  %v2481_v2 = vld [vmem:[#allocation3 + $0x10] sm:$0xff]  ;;  %v2480_v22 = vld [vmem:[#allocation3 + $0x8] sm:$0xff] }
 0x20c   : > { %13192 = vst [vmem:[#allocation195_spill] sm:$0xff] %v8911_v5  ;;  %2137 = vrot.lane.b32.xlu0 %v1153_v31, %s7665_s17  ;;  %v7118_v5 = vld [vmem:[#allocation3 + $0x1f7] ss:$0 sm:$0xff]  ;;  %v1159_v31 = vld [vmem:[#allocation2 + $0x229] sm:$0xff] }
 0x20d   : > { %2139 = vrot.lane.b32.xlu1 %v1154_v18, %s7665_s17  ;;  %869 = vst.msk [vmem:[#allocation3 + $0x1f8] sm:$0xff] %vm332_vm0, %v7118_v5  ;;  %v7089_v5 = vld [vmem:[#allocation3 + $0x88] ss:$0 sm:$0xff] }
 0x20e   : > { %v8921_v1 = vpop.permute.xlu0 %1961  ;;  %750 = vst.msk [vmem:[#allocation3 + $0x80] sm:$0xff] %vm332_vm0, %v7089_v5  ;;  %v2450_v49 = vld [vmem:[#allocation3 + $0x27] sm:$0xff] }
 0x20f   : > { %v8919_v11 = vpop.permute.xlu1 %1963  ;;  %13195 = vst [vmem:[#allocation198_spill] sm:$0xff] %v8921_v1  ;;  %v9303_v43 = vld [vmem:[#allocation3 + $0x47] sm:$0xff] }
 0x210   : > { %13194 = vst [vmem:[#allocation197_spill] sm:$0xff] %v8919_v11  ;;  %2141 = vrot.lane.b32.xlu0 %v1155_v6, %s7665_s17 }
 0x211   : > { %2143 = vrot.lane.b32.xlu1 %v1156_v17, %s7665_s17 }
 0x212   : > { %v8929_v18 = vpop.permute.xlu0 %1965 }
 0x213   : > { %v8927_v26 = vpop.permute.xlu1 %1967  ;;  %13197 = vst [vmem:[#allocation200_spill] sm:$0xff] %v8929_v18 }
 0x214   : > { %13196 = vst [vmem:[#allocation199_spill] sm:$0xff] %v8927_v26  ;;  %2145 = vrot.lane.b32.xlu0 %v8521_v7, %s7665_s17  ;;  %v7090_v7 = vld [vmem:[#allocation3 + $0xa8] ss:$0 sm:$0xff] }
 0x215   : > { %2147 = vrot.lane.b32.xlu1 %v8519_v10, %s7665_s17  ;;  %751 = vst.msk [vmem:[#allocation3 + $0xa0] sm:$0xff] %vm332_vm0, %v7090_v7  ;;  %v9327_v30 = vld [vmem:[#allocation3 + $0x87] sm:$0xff] }
 0x216   : > { %v8938_v6 = vpop.permute.xlu0 %1969 }
 0x217   : > { %v8936_v17 = vpop.permute.xlu1 %1971  ;;  %13199 = vst [vmem:[#allocation202_spill] sm:$0xff] %v8938_v6  ;;  %v2482_v6 = vld [vmem:[#allocation3 + $0x28] sm:$0xff] }
 0x218   : > { %13198 = vst [vmem:[#allocation201_spill] sm:$0xff] %v8936_v17  ;;  %2149 = vrot.lane.b32.xlu0 %v1159_v31, %s7665_s17  ;;  %v2483_v17 = vld [vmem:[#allocation3 + $0x30] sm:$0xff]  ;;  %v7091_v31 = vld [vmem:[#allocation3 + $0xc8] ss:$0 sm:$0xff] }
 0x219   : > { %2151 = vrot.lane.b32.xlu1 %v1160_v0, %s7665_s17  ;;  %752 = vst.msk [vmem:[#allocation3 + $0xc0] sm:$0xff] %vm332_vm0, %v7091_v31 }
 0x21a   : > { %v8945_v10 = vpop.permute.xlu0 %1973 }
 0x21b   : > { %v8943_v26 = vpop.permute.xlu1 %1975  ;;  %13201 = vst [vmem:[#allocation204_spill] sm:$0xff] %v8945_v10  ;;  %v2484_v10 = vld [vmem:[#allocation3 + $0x48] sm:$0xff] }
 0x21c   : > { %13200 = vst [vmem:[#allocation203_spill] sm:$0xff] %v8943_v26  ;;  %2769 = vrot.lane.b32.xlu0 %v2480_v22, %s7658_s30  ;;  %v2485_v26 = vld [vmem:[#allocation3 + $0x50] sm:$0xff]  ;;  %v7092_v22 = vld [vmem:[#allocation3 + $0xe8] ss:$0 sm:$0xff] }
 0x21d   : > { %2771 = vrot.lane.b32.xlu1 %v2481_v2, %s7658_s30  ;;  %753 = vst.msk [vmem:[#allocation3 + $0xe0] sm:$0xff] %vm332_vm0, %v7092_v22  ;;  %v9339_v28 = vld [vmem:[#allocation3 + $0xa7] sm:$0xff] }
 0x21e   : > { %v8952_v0 = vpop.permute.xlu0 %1977  ;;  %13274 = vst [vmem:[#allocation277_spill] sm:$0xff] %v9339_v28 }
 0x21f   : > { %v8950_v5 = vpop.permute.xlu1 %1979  ;;  %13203 = vst [vmem:[#allocation206_spill] sm:$0xff] %v8952_v0  ;;  %v2486_v0 = vld [vmem:[#allocation3 + $0x68] sm:$0xff] }
 0x220   : > { %13202 = vst [vmem:[#allocation205_spill] sm:$0xff] %v8950_v5  ;;  %2773 = vrot.lane.b32.xlu0 %v2482_v6, %s7658_s30  ;;  %v2487_v5 = vld [vmem:[#allocation3 + $0x70] sm:$0xff]  ;;  %v7093_v6 = vld [vmem:[#allocation3 + $0x108] ss:$0 sm:$0xff] }
 0x221   : > { %2775 = vrot.lane.b32.xlu1 %v2483_v17, %s7658_s30  ;;  %754 = vst.msk [vmem:[#allocation3 + $0x100] sm:$0xff] %vm332_vm0, %v7093_v6  ;;  %v9351_v25 = vld [vmem:[#allocation3 + $0xc7] sm:$0xff] }
 0x222   : > { %v8959_v2 = vpop.permute.xlu0 %1981  ;;  %13278 = vst [vmem:[#allocation281_spill] sm:$0xff] %v9351_v25 }
 0x223   : > { %v8957_v7 = vpop.permute.xlu1 %1983  ;;  %13205 = vst [vmem:[#allocation208_spill] sm:$0xff] %v8959_v2  ;;  %v2488_v2 = vld [vmem:[#allocation3 + $0x88] sm:$0xff] }
 0x224   : > { %13204 = vst [vmem:[#allocation207_spill] sm:$0xff] %v8957_v7  ;;  %2777 = vrot.lane.b32.xlu0 %v2484_v10, %s7658_s30  ;;  %v2489_v7 = vld [vmem:[#allocation3 + $0x90] sm:$0xff]  ;;  %v7094_v10 = vld [vmem:[#allocation3 + $0x128] ss:$0 sm:$0xff] }
 0x225   : > { %2779 = vrot.lane.b32.xlu1 %v2485_v26, %s7658_s30  ;;  %755 = vst.msk [vmem:[#allocation3 + $0x120] sm:$0xff] %vm332_vm0, %v7094_v10  ;;  %v9363_v19 = vld [vmem:[#allocation3 + $0xe7] sm:$0xff] }
 0x226   : > { %v8966_v17 = vpop.permute.xlu0 %1985  ;;  %13282 = vst [vmem:[#allocation285_spill] sm:$0xff] %v9363_v19 }
 0x227   : > { %v8964_v31 = vpop.permute.xlu1 %1987  ;;  %13207 = vst [vmem:[#allocation210_spill] sm:$0xff] %v8966_v17  ;;  %v2490_v17 = vld [vmem:[#allocation3 + $0xa8] sm:$0xff] }
 0x228   : > { %13206 = vst [vmem:[#allocation209_spill] sm:$0xff] %v8964_v31  ;;  %2781 = vrot.lane.b32.xlu0 %v2486_v0, %s7658_s30  ;;  %v2491_v31 = vld [vmem:[#allocation3 + $0xb0] sm:$0xff]  ;;  %v7095_v0 = vld [vmem:[#allocation3 + $0x148] ss:$0 sm:$0xff] }
 0x229   : > { %2783 = vrot.lane.b32.xlu1 %v2487_v5, %s7658_s30  ;;  %756 = vst.msk [vmem:[#allocation3 + $0x140] sm:$0xff] %vm332_vm0, %v7095_v0 }
 0x22a   : > { %v8973_v26 = vpop.permute.xlu0 %1989 }
 0x22b   : > { %v8971_v22 = vpop.permute.xlu1 %1991  ;;  %13209 = vst [vmem:[#allocation212_spill] sm:$0xff] %v8973_v26  ;;  %v2492_v26 = vld [vmem:[#allocation3 + $0xc8] sm:$0xff] }
 0x22c   : > { %13208 = vst [vmem:[#allocation211_spill] sm:$0xff] %v8971_v22  ;;  %2785 = vrot.lane.b32.xlu0 %v2488_v2, %s7658_s30  ;;  %v2493_v22 = vld [vmem:[#allocation3 + $0xd0] sm:$0xff]  ;;  %v7096_v2 = vld [vmem:[#allocation3 + $0x168] ss:$0 sm:$0xff] }
 0x22d   : > { %2787 = vrot.lane.b32.xlu1 %v2489_v7, %s7658_s30  ;;  %757 = vst.msk [vmem:[#allocation3 + $0x160] sm:$0xff] %vm332_vm0, %v7096_v2  ;;  %v9001_v2 = vld [vmem:[#allocation3 + $0x108] sm:$0xff] }
 0x22e   : > { %v8980_v5 = vpop.permute.xlu0 %1993 }
 0x22f   : > { %v8978_v6 = vpop.permute.xlu1 %1995  ;;  %13211 = vst [vmem:[#allocation214_spill] sm:$0xff] %v8980_v5  ;;  %v2494_v5 = vld [vmem:[#allocation3 + $0xe8] sm:$0xff] }
 0x230   : > { %13210 = vst [vmem:[#allocation213_spill] sm:$0xff] %v8978_v6  ;;  %2789 = vrot.lane.b32.xlu0 %v2490_v17, %s7658_s30  ;;  %v2495_v6 = vld [vmem:[#allocation3 + $0xf0] sm:$0xff]  ;;  %v7097_v17 = vld [vmem:[#allocation3 + $0x188] ss:$0 sm:$0xff] }
 0x231   : > { %2791 = vrot.lane.b32.xlu1 %v2491_v31, %s7658_s30  ;;  %758 = vst.msk [vmem:[#allocation3 + $0x180] sm:$0xff] %vm332_vm0, %v7097_v17 }
 0x232   : > { %v8987_v7 = vpop.permute.xlu0 %1997 }
 0x233   : > { %v8985_v10 = vpop.permute.xlu1 %1999  ;;  %13213 = vst [vmem:[#allocation216_spill] sm:$0xff] %v8987_v7  ;;  %v7098_v7 = vld [vmem:[#allocation3 + $0x1a8] ss:$0 sm:$0xff] }
 0x234   : > { %13212 = vst [vmem:[#allocation215_spill] sm:$0xff] %v8985_v10  ;;  %2793 = vrot.lane.b32.xlu0 %v2492_v26, %s7658_s30  ;;  %v8999_v10 = vld [vmem:[#allocation3 + $0x110] sm:$0xff]  ;;  %759 = vst.msk [vmem:[#allocation3 + $0x1a0] sm:$0xff] %vm332_vm0, %v7098_v7 }
 0x235   : > { %2795 = vrot.lane.b32.xlu1 %v2493_v22, %s7658_s30  ;;  %v9025_v7 = vld [vmem:[#allocation3 + $0x150] sm:$0xff] }
 0x236   : > { %v8994_v31 = vpop.permute.xlu0 %2001 }
 0x237   : > { %v8992_v0 = vpop.permute.xlu1 %2003  ;;  %13215 = vst [vmem:[#allocation218_spill] sm:$0xff] %v8994_v31 }
 0x238   : > { %13214 = vst [vmem:[#allocation217_spill] sm:$0xff] %v8992_v0  ;;  %2797 = vrot.lane.b32.xlu0 %v2494_v5, %s7658_s30  ;;  %v9014_v5 = vld [vmem:[#allocation3 + $0x128] sm:$0xff] }
 0x239   : > { %2799 = vrot.lane.b32.xlu1 %v2495_v6, %s7658_s30  ;;  %v9012_v6 = vld [vmem:[#allocation3 + $0x130] sm:$0xff] }
 0x23a   : > { %v9005_v26 = vpop.permute.xlu0 %2005 }
 0x23b   : > { %v9003_v22 = vpop.permute.xlu1 %2007  ;;  %13217 = vst [vmem:[#allocation220_spill] sm:$0xff] %v9005_v26  ;;  %v9027_v26 = vld [vmem:[#allocation3 + $0x148] sm:$0xff] }
 0x23c   : > { %13216 = vst [vmem:[#allocation219_spill] sm:$0xff] %v9003_v22  ;;  %2801 = vrot.lane.b32.xlu0 %v9001_v2, %s7658_s30  ;;  %v7099_v22 = vld [vmem:[#allocation3 + $0x1c8] ss:$0 sm:$0xff] }
 0x23d   : > { %2803 = vrot.lane.b32.xlu1 %v8999_v10, %s7658_s30  ;;  %760 = vst.msk [vmem:[#allocation3 + $0x1c0] sm:$0xff] %vm332_vm0, %v7099_v22  ;;  %v9038_v22 = vld [vmem:[#allocation3 + $0x170] sm:$0xff] }
 0x23e   : > { %v9018_v0 = vpop.permute.xlu0 %2009 }
 0x23f   : > { %v9016_v17 = vpop.permute.xlu1 %2011  ;;  %13219 = vst [vmem:[#allocation222_spill] sm:$0xff] %v9018_v0  ;;  %v9040_v0 = vld [vmem:[#allocation3 + $0x168] sm:$0xff] }
 0x240   : > { %13218 = vst [vmem:[#allocation221_spill] sm:$0xff] %v9016_v17  ;;  %2805 = vrot.lane.b32.xlu0 %v9014_v5, %s7658_s30  ;;  %v7100_v17 = vld [vmem:[#allocation3 + $0x1e8] ss:$0 sm:$0xff] }
 0x241   : > { %2807 = vrot.lane.b32.xlu1 %v9012_v6, %s7658_s30  ;;  %761 = vst.msk [vmem:[#allocation3 + $0x1e0] sm:$0xff] %vm332_vm0, %v7100_v17  ;;  %v9053_v17 = vld [vmem:[#allocation3 + $0x190] sm:$0xff] }
 0x242   : > { %v9031_v18 = vpop.permute.xlu0 %2013 }
 0x243   : > { %v9029_v31 = vpop.permute.xlu1 %2015  ;;  %13221 = vst [vmem:[#allocation224_spill] sm:$0xff] %v9031_v18  ;;  %v9055_v18 = vld [vmem:[#allocation3 + $0x188] sm:$0xff] }
 0x244   : > { %13220 = vst [vmem:[#allocation223_spill] sm:$0xff] %v9029_v31  ;;  %2809 = vrot.lane.b32.xlu0 %v9027_v26, %s7658_s30  ;;  %v616_v31 = vld [vmem:[%s8652_s15 + $0xf0] sm:$0xff] }
 0x245   : > { %2811 = vrot.lane.b32.xlu1 %v9025_v7, %s7658_s30  ;;  %649 = vst.msk [vmem:[#allocation3 + $0x208] sm:$0xff] %vm332_vm0, %v616_v31  ;;  %654 = vst.msk [vmem:[#allocation3 + $0x228] sm:$0xff] %vm332_vm0, %v616_v31 }
 0x246   : > { %v9044_v1 = vpop.permute.xlu0 %2017 }
 0x247   : > { %v9042_v11 = vpop.permute.xlu1 %2019  ;;  %13223 = vst [vmem:[#allocation226_spill] sm:$0xff] %v9044_v1  ;;  %v9065_v1 = vld [vmem:[#allocation3 + $0x1b0] sm:$0xff] }
 0x248   : > { %13222 = vst [vmem:[#allocation225_spill] sm:$0xff] %v9042_v11  ;;  %2813 = vrot.lane.b32.xlu0 %v9040_v0, %s7658_s30 }
 0x249   : > { %2815 = vrot.lane.b32.xlu1 %v9038_v22, %s7658_s30 }
 0x24a   : > { %v9059_v11 = vpop.permute.xlu0 %2021 }
 0x24b   : > { %v9057_v39 = vpop.permute.xlu1 %2023  ;;  %13225 = vst [vmem:[#allocation228_spill] sm:$0xff] %v9059_v11  ;;  %v9083_v11 = vld [vmem:[#allocation3 + $0x1c8] sm:$0xff] }
 0x24c   : > { %13224 = vst [vmem:[#allocation227_spill] sm:$0xff] %v9057_v39  ;;  %2817 = vrot.lane.b32.xlu0 %v9055_v18, %s7658_s30  ;;  %v7101_v63 = vld [vmem:[#allocation3 + $0x208] ss:$0 sm:$0xff]  ;;  %v9081_v39 = vld [vmem:[#allocation3 + $0x1d0] sm:$0xff] }
 0x24d   : > { %2819 = vrot.lane.b32.xlu1 %v9053_v17, %s7658_s30  ;;  %762 = vst.msk [vmem:[#allocation3 + $0x200] sm:$0xff] %vm332_vm0, %v7101_v63 }
 0x24e   : > { %v9071_v31 = vpop.permute.xlu0 %2089 }
 0x24f   : > { %v9069_v40 = vpop.permute.xlu1 %2091  ;;  %13227 = vst [vmem:[#allocation230_spill] sm:$0xff] %v9071_v31 }
 0x250   : > { %13226 = vst [vmem:[#allocation229_spill] sm:$0xff] %v9069_v40  ;;  %2821 = vrot.lane.b32.xlu0 %v9067_v16, %s7658_s30 }
 0x251   : > { %2823 = vrot.lane.b32.xlu1 %v9065_v1, %s7658_s30 }
 0x252   : > { %v9087_v31 = vpop.permute.xlu0 %2093 }
 0x253   : > { %v9085_v40 = vpop.permute.xlu1 %2095  ;;  %13229 = vst [vmem:[#allocation232_spill] sm:$0xff] %v9087_v31  ;;  %v2512_v31 = vld [vmem:[#allocation3 + $0x9] sm:$0xff] }
 0x254   : > { %13228 = vst [vmem:[#allocation231_spill] sm:$0xff] %v9085_v40  ;;  %2825 = vrot.lane.b32.xlu0 %v9083_v11, %s7658_s30  ;;  %v2513_v40 = vld [vmem:[#allocation3 + $0x11] sm:$0xff] }
 0x255   : > { %2827 = vrot.lane.b32.xlu1 %v9081_v39, %s7658_s30 }
 0x256   : > { %v9099_v63 = vpop.permute.xlu0 %2097 }
 0x257   : > { %v9097_v12 = vpop.permute.xlu1 %2099  ;;  %13231 = vst [vmem:[#allocation234_spill] sm:$0xff] %v9099_v63 }
 0x258   : > { %13230 = vst [vmem:[#allocation233_spill] sm:$0xff] %v9097_v12  ;;  %2829 = vrot.lane.b32.xlu0 %v9095_v59, %s7658_s30  ;;  %v9113_v12 = vld [vmem:[#allocation3 + $0x29] sm:$0xff] }
 0x259   : > { %2831 = vrot.lane.b32.xlu1 %v9093_v62, %s7658_s30 }
 0x25a   : > { %v9107_v57 = vpop.permute.xlu0 %2101 }
 0x25b   : > { %v9105_v58 = vpop.permute.xlu1 %2103  ;;  %13233 = vst [vmem:[#allocation236_spill] sm:$0xff] %v9107_v57  ;;  %v9125_v57 = vld [vmem:[#allocation3 + $0x49] sm:$0xff] }
 0x25c   : > { %13232 = vst [vmem:[#allocation235_spill] sm:$0xff] %v9105_v58  ;;  %2897 = vrot.lane.b32.xlu0 %v2512_v31, %s7659_s8  ;;  %v9123_v58 = vld [vmem:[#allocation3 + $0x51] sm:$0xff] }
 0x25d   : > { %2899 = vrot.lane.b32.xlu1 %v2513_v40, %s7659_s8 }
 0x25e   : > { %v9117_v55 = vpop.permute.xlu0 %2105 }
 0x25f   : > { %v9115_v63 = vpop.permute.xlu1 %2107  ;;  %13235 = vst [vmem:[#allocation238_spill] sm:$0xff] %v9117_v55  ;;  %v9137_v55 = vld [vmem:[#allocation3 + $0x69] sm:$0xff] }
 0x260   : > { %13234 = vst [vmem:[#allocation237_spill] sm:$0xff] %v9115_v63  ;;  %2901 = vrot.lane.b32.xlu0 %v9113_v12, %s7659_s8  ;;  %v9135_v63 = vld [vmem:[#allocation3 + $0x71] sm:$0xff] }
 0x261   : > { %2903 = vrot.lane.b32.xlu1 %v9111_v56, %s7659_s8 }
 0x262   : > { %v9129_v31 = vpop.permute.xlu0 %2109 }
 0x263   : > { %v9127_v40 = vpop.permute.xlu1 %2111  ;;  %13237 = vst [vmem:[#allocation240_spill] sm:$0xff] %v9129_v31  ;;  %v9149_v31 = vld [vmem:[#allocation3 + $0x89] sm:$0xff] }
 0x264   : > { %13236 = vst [vmem:[#allocation239_spill] sm:$0xff] %v9127_v40  ;;  %2905 = vrot.lane.b32.xlu0 %v9125_v57, %s7659_s8  ;;  %v9147_v40 = vld [vmem:[#allocation3 + $0x91] sm:$0xff] }
 0x265   : > { %2907 = vrot.lane.b32.xlu1 %v9123_v58, %s7659_s8 }
 0x266   : > { %v9141_v51 = vpop.permute.xlu0 %2113 }
 0x267   : > { %v9139_v52 = vpop.permute.xlu1 %2115  ;;  %13239 = vst [vmem:[#allocation242_spill] sm:$0xff] %v9141_v51  ;;  %v9161_v51 = vld [vmem:[#allocation3 + $0xa9] sm:$0xff] }
 0x268   : > { %13238 = vst [vmem:[#allocation241_spill] sm:$0xff] %v9139_v52  ;;  %2909 = vrot.lane.b32.xlu0 %v9137_v55, %s7659_s8  ;;  %v9159_v52 = vld [vmem:[#allocation3 + $0xb1] sm:$0xff] }
 0x269   : > { %2911 = vrot.lane.b32.xlu1 %v9135_v63, %s7659_s8 }
 0x26a   : > { %v9153_v47 = vpop.permute.xlu0 %2117 }
 0x26b   : > { %v9151_v48 = vpop.permute.xlu1 %2119  ;;  %13241 = vst [vmem:[#allocation244_spill] sm:$0xff] %v9153_v47  ;;  %v9173_v47 = vld [vmem:[#allocation3 + $0xc9] sm:$0xff] }
 0x26c   : > { %13240 = vst [vmem:[#allocation243_spill] sm:$0xff] %v9151_v48  ;;  %2913 = vrot.lane.b32.xlu0 %v9149_v31, %s7659_s8  ;;  %v9171_v48 = vld [vmem:[#allocation3 + $0xd1] sm:$0xff] }
 0x26d   : > { %2915 = vrot.lane.b32.xlu1 %v9147_v40, %s7659_s8 }
 0x26e   : > { %v9165_v45 = vpop.permute.xlu0 %2121 }
 0x26f   : > { %v9163_v46 = vpop.permute.xlu1 %2123  ;;  %13243 = vst [vmem:[#allocation246_spill] sm:$0xff] %v9165_v45  ;;  %v9185_v45 = vld [vmem:[#allocation3 + $0xe9] sm:$0xff] }
 0x270   : > { %13242 = vst [vmem:[#allocation245_spill] sm:$0xff] %v9163_v46  ;;  %2917 = vrot.lane.b32.xlu0 %v9161_v51, %s7659_s8  ;;  %v9183_v46 = vld [vmem:[#allocation3 + $0xf1] sm:$0xff] }
 0x271   : > { %2919 = vrot.lane.b32.xlu1 %v9159_v52, %s7659_s8 }
 0x272   : > { %v9177_v41 = vpop.permute.xlu0 %2125 }
 0x273   : > { %v9175_v42 = vpop.permute.xlu1 %2127  ;;  %13245 = vst [vmem:[#allocation248_spill] sm:$0xff] %v9177_v41  ;;  %v9197_v41 = vld [vmem:[#allocation3 + $0x109] sm:$0xff] }
 0x274   : > { %13244 = vst [vmem:[#allocation247_spill] sm:$0xff] %v9175_v42  ;;  %2921 = vrot.lane.b32.xlu0 %v9173_v47, %s7659_s8  ;;  %v9195_v42 = vld [vmem:[#allocation3 + $0x111] sm:$0xff] }
 0x275   : > { %2923 = vrot.lane.b32.xlu1 %v9171_v48, %s7659_s8 }
 0x276   : > { %v9189_v35 = vpop.permute.xlu0 %2129 }
 0x277   : > { %v9187_v38 = vpop.permute.xlu1 %2131  ;;  %13247 = vst [vmem:[#allocation250_spill] sm:$0xff] %v9189_v35  ;;  %v9209_v35 = vld [vmem:[#allocation3 + $0x129] sm:$0xff] }
 0x278   : > { %13246 = vst [vmem:[#allocation249_spill] sm:$0xff] %v9187_v38  ;;  %2925 = vrot.lane.b32.xlu0 %v9185_v45, %s7659_s8  ;;  %v9207_v38 = vld [vmem:[#allocation3 + $0x131] sm:$0xff] }
 0x279   : > { %2927 = vrot.lane.b32.xlu1 %v9183_v46, %s7659_s8 }
 0x27a   : > { %v9201_v37 = vpop.permute.xlu0 %2133 }
 0x27b   : > { %v9199_v9 = vpop.permute.xlu1 %2135  ;;  %13249 = vst [vmem:[#allocation252_spill] sm:$0xff] %v9201_v37  ;;  %v9221_v37 = vld [vmem:[#allocation3 + $0x149] sm:$0xff] }
 0x27c   : > { %13248 = vst [vmem:[#allocation251_spill] sm:$0xff] %v9199_v9  ;;  %2929 = vrot.lane.b32.xlu0 %v9197_v41, %s7659_s8  ;;  %v9219_v9 = vld [vmem:[#allocation3 + $0x151] sm:$0xff] }
 0x27d   : > { %2931 = vrot.lane.b32.xlu1 %v9195_v42, %s7659_s8 }
 0x27e   : > { %v9213_v36 = vpop.permute.xlu0 %2137 }
 0x27f   : > { %v9211_v15 = vpop.permute.xlu1 %2139  ;;  %13251 = vst [vmem:[#allocation254_spill] sm:$0xff] %v9213_v36  ;;  %v9233_v36 = vld [vmem:[#allocation3 + $0x169] sm:$0xff] }
 0x280   : > { %13250 = vst [vmem:[#allocation253_spill] sm:$0xff] %v9211_v15  ;;  %2933 = vrot.lane.b32.xlu0 %v9209_v35, %s7659_s8  ;;  %v9231_v15 = vld [vmem:[#allocation3 + $0x171] sm:$0xff] }
 0x281   : > { %2935 = vrot.lane.b32.xlu1 %v9207_v38, %s7659_s8 }
 0x282   : > { %v9225_v23 = vpop.permute.xlu0 %2141 }
 0x283   : > { %v9223_v24 = vpop.permute.xlu1 %2143  ;;  %13253 = vst [vmem:[#allocation256_spill] sm:$0xff] %v9225_v23  ;;  %v9245_v23 = vld [vmem:[#allocation3 + $0x189] sm:$0xff] }
 0x284   : > { %13252 = vst [vmem:[#allocation255_spill] sm:$0xff] %v9223_v24  ;;  %2937 = vrot.lane.b32.xlu0 %v9221_v37, %s7659_s8  ;;  %v9243_v24 = vld [vmem:[#allocation3 + $0x191] sm:$0xff] }
 0x285   : > { %2939 = vrot.lane.b32.xlu1 %v9219_v9, %s7659_s8 }
 0x286   : > { %v9237_v20 = vpop.permute.xlu0 %2145 }
 0x287   : > { %v9235_v21 = vpop.permute.xlu1 %2147  ;;  %13255 = vst [vmem:[#allocation258_spill] sm:$0xff] %v9237_v20  ;;  %v9257_v20 = vld [vmem:[#allocation3 + $0x1a9] sm:$0xff] }
 0x288   : > { %13254 = vst [vmem:[#allocation257_spill] sm:$0xff] %v9235_v21  ;;  %2941 = vrot.lane.b32.xlu0 %v9233_v36, %s7659_s8  ;;  %v9255_v21 = vld [vmem:[#allocation3 + $0x1b1] sm:$0xff] }
 0x289   : > { %2943 = vrot.lane.b32.xlu1 %v9231_v15, %s7659_s8 }
 0x28a   : > { %v9249_v8 = vpop.permute.xlu0 %2149 }
 0x28b   : > { %v9247_v14 = vpop.permute.xlu1 %2151  ;;  %13257 = vst [vmem:[#allocation260_spill] sm:$0xff] %v9249_v8  ;;  %v9269_v8 = vld [vmem:[#allocation3 + $0x1c9] sm:$0xff] }
 0x28c   : > { %13256 = vst [vmem:[#allocation259_spill] sm:$0xff] %v9247_v14  ;;  %2945 = vrot.lane.b32.xlu0 %v9245_v23, %s7659_s8  ;;  %v9267_v14 = vld [vmem:[#allocation3 + $0x1d1] sm:$0xff] }
 0x28d   : > { %2947 = vrot.lane.b32.xlu1 %v9243_v24, %s7659_s8 }
 0x28e   : > { %v9261_v3 = vpop.permute.xlu0 %2769 }
 0x28f   : > { %v9259_v4 = vpop.permute.xlu1 %2771  ;;  %13259 = vst [vmem:[#allocation262_spill] sm:$0xff] %v9261_v3  ;;  %v9281_v3 = vld [vmem:[#allocation3 + $0x1e9] sm:$0xff] }
 0x290   : > { %13258 = vst [vmem:[#allocation261_spill] sm:$0xff] %v9259_v4  ;;  %2949 = vrot.lane.b32.xlu0 %v9257_v20, %s7659_s8  ;;  %v9279_v4 = vld [vmem:[#allocation3 + $0x1f1] sm:$0xff] }
 0x291   : > { %2951 = vrot.lane.b32.xlu1 %v9255_v21, %s7659_s8 }
 0x292   : > { %v9273_v60 = vpop.permute.xlu0 %2773 }
 0x293   : > { %v9271_v61 = vpop.permute.xlu1 %2775  ;;  %13261 = vst [vmem:[#allocation264_spill] sm:$0xff] %v9273_v60 }
 0x294   : > { %13260 = vst [vmem:[#allocation263_spill] sm:$0xff] %v9271_v61  ;;  %2953 = vrot.lane.b32.xlu0 %v9269_v8, %s7659_s8 }
 0x295   : > { %2955 = vrot.lane.b32.xlu1 %v9267_v14, %s7659_s8 }
 0x296   : > { %v9285_v53 = vpop.permute.xlu0 %2777 }
 0x297   : > { %v9283_v54 = vpop.permute.xlu1 %2779  ;;  %13263 = vst [vmem:[#allocation266_spill] sm:$0xff] %v9285_v53  ;;  %v9301_v53 = vld [vmem:[#allocation3 + $0x4f] sm:$0xff] }
 0x298   : > { %13262 = vst [vmem:[#allocation265_spill] sm:$0xff] %v9283_v54  ;;  %2957 = vrot.lane.b32.xlu0 %v9281_v3, %s7659_s8 }
 0x299   : > { %2959 = vrot.lane.b32.xlu1 %v9279_v4, %s7659_s8 }
 0x29a   : > { %v9293_v61 = vpop.permute.xlu0 %2781 }
 0x29b   : > { %v9291_v60 = vpop.permute.xlu1 %2783  ;;  %13265 = vst [vmem:[#allocation268_spill] sm:$0xff] %v9293_v61 }
 0x29c   : > { %13264 = vst [vmem:[#allocation267_spill] sm:$0xff] %v9291_v60  ;;  %3025 = vrot.lane.b32.xlu0 %v2450_v49, %s7660_s9  ;;  %v9315_v49 = vld [vmem:[#allocation3 + $0x67] sm:$0xff] }
 0x29d   : > { %3027 = vrot.lane.b32.xlu1 %v2451_v50, %s7660_s9  ;;  %v9313_v50 = vld [vmem:[#allocation3 + $0x6f] sm:$0xff] }
 0x29e   : > { %v9299_v54 = vpop.permute.xlu0 %2785 }
 0x29f   : > { %v9297_v44 = vpop.permute.xlu1 %2787  ;;  %13267 = vst [vmem:[#allocation270_spill] sm:$0xff] %v9299_v54 }
 0x2a0   : > { %13266 = vst [vmem:[#allocation269_spill] sm:$0xff] %v9297_v44  ;;  %3029 = vrot.lane.b32.xlu0 %v9303_v43, %s7660_s9 }
 0x2a1   : > { %3031 = vrot.lane.b32.xlu1 %v9301_v53, %s7660_s9 }
 0x2a2   : > { %v9311_v60 = vpop.permute.xlu0 %2789 }
 0x2a3   : > { %v9309_v61 = vpop.permute.xlu1 %2791  ;;  %13269 = vst [vmem:[#allocation272_spill] sm:$0xff] %v9311_v60 }
 0x2a4   : > { %13268 = vst [vmem:[#allocation271_spill] sm:$0xff] %v9309_v61  ;;  %3033 = vrot.lane.b32.xlu0 %v9315_v49, %s7660_s9 }
 0x2a5   : > { %3035 = vrot.lane.b32.xlu1 %v9313_v50, %s7660_s9 }
 0x2a6   : > { %v9323_v44 = vpop.permute.xlu0 %2793 }
 0x2a7   : > { %v9321_v54 = vpop.permute.xlu1 %2795  ;;  %13271 = vst [vmem:[#allocation274_spill] sm:$0xff] %v9323_v44 }
 0x2a8   : > { %13270 = vst [vmem:[#allocation273_spill] sm:$0xff] %v9321_v54  ;;  %3037 = vrot.lane.b32.xlu0 %v9327_v30, %s7660_s9 }
 0x2a9   : > { %3039 = vrot.lane.b32.xlu1 %v9325_v32, %s7660_s9 }
 0x2aa   : > { %v9335_v61 = vpop.permute.xlu0 %2797 }
 0x2ab   : > { %v9333_v60 = vpop.permute.xlu1 %2799  ;;  %13273 = vst [vmem:[#allocation276_spill] sm:$0xff] %v9335_v61 }
 0x2ac   : > { %13272 = vst [vmem:[#allocation275_spill] sm:$0xff] %v9333_v60  ;;  %3041 = vrot.lane.b32.xlu0 %v9339_v28, %s7660_s9 }
 0x2ad   : > { %3043 = vrot.lane.b32.xlu1 %v9337_v29, %s7660_s9 }
 0x2ae   : > { %v9347_v54 = vpop.permute.xlu0 %2801 }
 0x2af   : > { %v9345_v44 = vpop.permute.xlu1 %2803  ;;  %13276 = vst [vmem:[#allocation279_spill] sm:$0xff] %v9347_v54  ;;  %v9375_v54 = vld [vmem:[#allocation3 + $0x107] sm:$0xff] }
 0x2b0   : > { %13275 = vst [vmem:[#allocation278_spill] sm:$0xff] %v9345_v44  ;;  %3045 = vrot.lane.b32.xlu0 %v9351_v25, %s7660_s9  ;;  %v9373_v44 = vld [vmem:[#allocation3 + $0x10f] sm:$0xff]  ;;  %13286 = vst [vmem:[#allocation289_spill] sm:$0xff] %v9375_v54 }
 0x2b1   : > { %3047 = vrot.lane.b32.xlu1 %v9349_v27, %s7660_s9  ;;  %13285 = vst [vmem:[#allocation288_spill] sm:$0xff] %v9373_v44  ;;  %v2584_v27 = vld [vmem:[#allocation3 + $0xa8] sm:$0xff] }
 0x2b2   : > { %v9359_v60 = vpop.permute.xlu0 %2805 }
 0x2b3   : > { %v9357_v61 = vpop.permute.xlu1 %2807  ;;  %13280 = vst [vmem:[#allocation283_spill] sm:$0xff] %v9359_v60 }
 0x2b4   : > { %13279 = vst [vmem:[#allocation282_spill] sm:$0xff] %v9357_v61  ;;  %3049 = vrot.lane.b32.xlu0 %v9363_v19, %s7660_s9  ;;  %v9387_v19 = vld [vmem:[#allocation3 + $0x127] sm:$0xff] }
 0x2b5   : > { %3051 = vrot.lane.b32.xlu1 %v9361_v33, %s7660_s9  ;;  %v9385_v33 = vld [vmem:[#allocation3 + $0x12f] sm:$0xff]  ;;  %13290 = vst [vmem:[#allocation293_spill] sm:$0xff] %v9387_v19 }
 0x2b6   : > { %v9371_v13 = vpop.permute.xlu0 %2809  ;;  %13289 = vst [vmem:[#allocation292_spill] sm:$0xff] %v9385_v33 }
 0x2b7   : > { %v9369_v34 = vpop.permute.xlu1 %2811  ;;  %13284 = vst [vmem:[#allocation287_spill] sm:$0xff] %v9371_v13 }
 0x2b8   : > { %13283 = vst [vmem:[#allocation286_spill] sm:$0xff] %v9369_v34  ;;  %3053 = vrot.lane.b32.xlu0 %v9375_v54, %s7660_s9  ;;  %v9399_v54 = vld [vmem:[#allocation3 + $0x147] sm:$0xff] }
 0x2b9   : > { %3055 = vrot.lane.b32.xlu1 %v9373_v44, %s7660_s9  ;;  %v9397_v44 = vld [vmem:[#allocation3 + $0x14f] sm:$0xff]  ;;  %13294 = vst [vmem:[#allocation297_spill] sm:$0xff] %v9399_v54 }
 0x2ba   : > { %v9383_v60 = vpop.permute.xlu0 %2813  ;;  %13293 = vst [vmem:[#allocation296_spill] sm:$0xff] %v9397_v44 }
 0x2bb   : > { %v9381_v61 = vpop.permute.xlu1 %2815  ;;  %13288 = vst [vmem:[#allocation291_spill] sm:$0xff] %v9383_v60 }
 0x2bc   : > { %13287 = vst [vmem:[#allocation290_spill] sm:$0xff] %v9381_v61  ;;  %3057 = vrot.lane.b32.xlu0 %v9387_v19, %s7660_s9  ;;  %v9411_v19 = vld [vmem:[#allocation3 + $0x167] sm:$0xff] }
 0x2bd   : > { %3059 = vrot.lane.b32.xlu1 %v9385_v33, %s7660_s9  ;;  %v9409_v33 = vld [vmem:[#allocation3 + $0x16f] sm:$0xff]  ;;  %13298 = vst [vmem:[#allocation301_spill] sm:$0xff] %v9411_v19 }
 0x2be   : > { %v9395_v13 = vpop.permute.xlu0 %2817  ;;  %13297 = vst [vmem:[#allocation300_spill] sm:$0xff] %v9409_v33 }
 0x2bf   : > { %v9393_v34 = vpop.permute.xlu1 %2819  ;;  %13292 = vst [vmem:[#allocation295_spill] sm:$0xff] %v9395_v13 }
 0x2c0   : > { %13291 = vst [vmem:[#allocation294_spill] sm:$0xff] %v9393_v34  ;;  %3061 = vrot.lane.b32.xlu0 %v9399_v54, %s7660_s9  ;;  %v9423_v54 = vld [vmem:[#allocation3 + $0x187] sm:$0xff] }
 0x2c1   : > { %3063 = vrot.lane.b32.xlu1 %v9397_v44, %s7660_s9  ;;  %v9421_v44 = vld [vmem:[#allocation3 + $0x18f] sm:$0xff]  ;;  %13302 = vst [vmem:[#allocation305_spill] sm:$0xff] %v9423_v54 }
 0x2c2   : > { %v9407_v60 = vpop.permute.xlu0 %2821  ;;  %13301 = vst [vmem:[#allocation304_spill] sm:$0xff] %v9421_v44 }
 0x2c3   : > { %v9405_v61 = vpop.permute.xlu1 %2823  ;;  %13296 = vst [vmem:[#allocation299_spill] sm:$0xff] %v9407_v60 }
 0x2c4   : > { %13295 = vst [vmem:[#allocation298_spill] sm:$0xff] %v9405_v61  ;;  %3065 = vrot.lane.b32.xlu0 %v9411_v19, %s7660_s9  ;;  %v9435_v19 = vld [vmem:[#allocation3 + $0x1a7] sm:$0xff] }
 0x2c5   : > { %3067 = vrot.lane.b32.xlu1 %v9409_v33, %s7660_s9  ;;  %v9433_v33 = vld [vmem:[#allocation3 + $0x1af] sm:$0xff]  ;;  %13306 = vst [vmem:[#allocation309_spill] sm:$0xff] %v9435_v19 }
 0x2c6   : > { %v9419_v13 = vpop.permute.xlu0 %2825  ;;  %13305 = vst [vmem:[#allocation308_spill] sm:$0xff] %v9433_v33 }
 0x2c7   : > { %v9417_v34 = vpop.permute.xlu1 %2827  ;;  %13300 = vst [vmem:[#allocation303_spill] sm:$0xff] %v9419_v13 }
 0x2c8   : > { %13299 = vst [vmem:[#allocation302_spill] sm:$0xff] %v9417_v34  ;;  %3069 = vrot.lane.b32.xlu0 %v9423_v54, %s7660_s9  ;;  %v9447_v54 = vld [vmem:[#allocation3 + $0x1c7] sm:$0xff] }
 0x2c9   : > { %3071 = vrot.lane.b32.xlu1 %v9421_v44, %s7660_s9  ;;  %v9445_v44 = vld [vmem:[#allocation3 + $0x1cf] sm:$0xff]  ;;  %13310 = vst [vmem:[#allocation313_spill] sm:$0xff] %v9447_v54 }
 0x2ca   : > { %v9431_v60 = vpop.permute.xlu0 %2829  ;;  %13309 = vst [vmem:[#allocation312_spill] sm:$0xff] %v9445_v44 }
 0x2cb   : > { %v9429_v61 = vpop.permute.xlu1 %2831  ;;  %13304 = vst [vmem:[#allocation307_spill] sm:$0xff] %v9431_v60 }
 0x2cc   : > { %13303 = vst [vmem:[#allocation306_spill] sm:$0xff] %v9429_v61  ;;  %3073 = vrot.lane.b32.xlu0 %v9435_v19, %s7660_s9  ;;  %v7119_v61 = vld [vmem:[#allocation3 + $0x217] ss:$0 sm:$0xff] }
 0x2cd   : > { %3075 = vrot.lane.b32.xlu1 %v9433_v33, %s7660_s9  ;;  %870 = vst.msk [vmem:[#allocation3 + $0x218] sm:$0xff] %vm332_vm0, %v7119_v61  ;;  %v9468_v33 = vld [vmem:[#allocation3 + $0x207] sm:$0xff] }
 0x2ce   : > { %v9443_v13 = vpop.permute.xlu0 %2897  ;;  %13316 = vst [vmem:[#allocation319_spill] sm:$0xff] %v9468_v33 }
 0x2cf   : > { %v9441_v34 = vpop.permute.xlu1 %2899  ;;  %13308 = vst [vmem:[#allocation311_spill] sm:$0xff] %v9443_v13  ;;  %v9460_v13 = vld [vmem:[#allocation3 + $0x1e7] sm:$0xff] }
 0x2d0   : > { %13307 = vst [vmem:[#allocation310_spill] sm:$0xff] %v9441_v34  ;;  %3077 = vrot.lane.b32.xlu0 %v9447_v54, %s7660_s9  ;;  %v9458_v34 = vld [vmem:[#allocation3 + $0x1ef] sm:$0xff]  ;;  %13314 = vst [vmem:[#allocation317_spill] sm:$0xff] %v9460_v13 }
 0x2d1   : > { %3079 = vrot.lane.b32.xlu1 %v9445_v44, %s7660_s9  ;;  %13313 = vst [vmem:[#allocation316_spill] sm:$0xff] %v9458_v34  ;;  %v9466_v44 = vld [vmem:[#allocation3 + $0x20f] sm:$0xff] }
 0x2d2   : > { %v9456_v19 = vpop.permute.xlu0 %2901  ;;  %13315 = vst [vmem:[#allocation318_spill] sm:$0xff] %v9466_v44 }
 0x2d3   : > { %v9454_v60 = vpop.permute.xlu1 %2903  ;;  %13312 = vst [vmem:[#allocation315_spill] sm:$0xff] %v9456_v19  ;;  %v2577_v19 = vld [vmem:[#allocation3 + $0x30] sm:$0xff] }
 0x2d4   : > { %13311 = vst [vmem:[#allocation314_spill] sm:$0xff] %v9454_v60  ;;  %3081 = vrot.lane.b32.xlu0 %v9460_v13, %s7660_s9  ;;  %v2576_v60 = vld [vmem:[#allocation3 + $0x28] sm:$0xff]  ;;  %v9484_v13 = vld [vmem:[#allocation3 + $0x50] sm:$0xff] }
 0x2d5   : > { %3083 = vrot.lane.b32.xlu1 %v9458_v34, %s7660_s9  ;;  %13321 = vst [vmem:[#allocation324_spill] sm:$0xff] %v9484_v13 }
 0x2d6   : > { %v9472_v61 = vpop.permute.xlu0 %2905 }
 0x2d7   : > { %v9470_v54 = vpop.permute.xlu1 %2907  ;;  %13318 = vst [vmem:[#allocation321_spill] sm:$0xff] %v9472_v61 }
 0x2d8   : > { %13317 = vst [vmem:[#allocation320_spill] sm:$0xff] %v9470_v54  ;;  %3085 = vrot.lane.b32.xlu0 %v9468_v33, %s7660_s9  ;;  %v9486_v54 = vld [vmem:[#allocation3 + $0x48] sm:$0xff] }
 0x2d9   : > { %3087 = vrot.lane.b32.xlu1 %v9466_v44, %s7660_s9  ;;  %13322 = vst [vmem:[#allocation325_spill] sm:$0xff] %v9486_v54 }
 0x2da   : > { %v9480_v25 = vpop.permute.xlu0 %2909 }
 0x2db   : > { %v9478_v34 = vpop.permute.xlu1 %2911  ;;  %13320 = vst [vmem:[#allocation323_spill] sm:$0xff] %v9480_v25  ;;  %v9496_v25 = vld [vmem:[#allocation3 + $0x68] sm:$0xff] }
 0x2dc   : > { %13319 = vst [vmem:[#allocation322_spill] sm:$0xff] %v9478_v34  ;;  %3153 = vrot.lane.b32.xlu0 %v2576_v60, %s7661_s10  ;;  %v2581_v34 = vld [vmem:[#allocation3 + $0x70] sm:$0xff]  ;;  %13325 = vst [vmem:[#allocation328_spill] sm:$0xff] %v9496_v25 }
 0x2dd   : > { %3155 = vrot.lane.b32.xlu1 %v2577_v19, %s7661_s10 }
 0x2de   : > { %v9490_v44 = vpop.permute.xlu0 %2913 }
 0x2df   : > { %v9488_v61 = vpop.permute.xlu1 %2915  ;;  %13324 = vst [vmem:[#allocation327_spill] sm:$0xff] %v9490_v44  ;;  %v2582_v44 = vld [vmem:[#allocation3 + $0x88] sm:$0xff] }
 0x2e0   : > { %13323 = vst [vmem:[#allocation326_spill] sm:$0xff] %v9488_v61  ;;  %3157 = vrot.lane.b32.xlu0 %v9486_v54, %s7661_s10  ;;  %v2583_v61 = vld [vmem:[#allocation3 + $0x90] sm:$0xff] }
 0x2e1   : > { %3159 = vrot.lane.b32.xlu1 %v9484_v13, %s7661_s10  ;;  %v2585_v54 = vld [vmem:[#allocation3 + $0xb0] sm:$0xff] }
 0x2e2   : > { %v9500_v60 = vpop.permute.xlu0 %2917 }
 0x2e3   : > { %v9498_v19 = vpop.permute.xlu1 %2919  ;;  %13327 = vst [vmem:[#allocation330_spill] sm:$0xff] %v9500_v60 }
 0x2e4   : > { %13326 = vst [vmem:[#allocation329_spill] sm:$0xff] %v9498_v19  ;;  %3161 = vrot.lane.b32.xlu0 %v9496_v25, %s7661_s10  ;;  %v2586_v25 = vld [vmem:[#allocation3 + $0xc8] sm:$0xff] }
 0x2e5   : > { %3163 = vrot.lane.b32.xlu1 %v2581_v34, %s7661_s10  ;;  %v2587_v34 = vld [vmem:[#allocation3 + $0xd0] sm:$0xff] }
 0x2e6   : > { %v9507_v13 = vpop.permute.xlu0 %2921 }
 0x2e7   : > { %v9505_v33 = vpop.permute.xlu1 %2923  ;;  %13329 = vst [vmem:[#allocation332_spill] sm:$0xff] %v9507_v13 }
 0x2e8   : > { %13328 = vst [vmem:[#allocation331_spill] sm:$0xff] %v9505_v33  ;;  %3165 = vrot.lane.b32.xlu0 %v2582_v44, %s7661_s10  ;;  %v2589_v44 = vld [vmem:[#allocation3 + $0xf0] sm:$0xff] }
 0x2e9   : > { %3167 = vrot.lane.b32.xlu1 %v2583_v61, %s7661_s10  ;;  %v2588_v61 = vld [vmem:[#allocation3 + $0xe8] sm:$0xff] }
 0x2ea   : > { %v9513_v60 = vpop.permute.xlu0 %2925 }
 0x2eb   : > { %v9511_v19 = vpop.permute.xlu1 %2927  ;;  %13331 = vst [vmem:[#allocation334_spill] sm:$0xff] %v9513_v60  ;;  %v7102_v60 = vld [vmem:[#allocation3 + $0x228] ss:$0 sm:$0xff] }
 0x2ec   : > { %13330 = vst [vmem:[#allocation333_spill] sm:$0xff] %v9511_v19  ;;  %3169 = vrot.lane.b32.xlu0 %v2584_v27, %s7661_s10  ;;  %763 = vst.msk [vmem:[#allocation3 + $0x220] sm:$0xff] %vm332_vm0, %v7102_v60 }
 0x2ed   : > { %3171 = vrot.lane.b32.xlu1 %v2585_v54, %s7661_s10 }
 0x2ee   : > { %v9519_v33 = vpop.permute.xlu0 %2929 }
 0x2ef   : > { %v9517_v28 = vpop.permute.xlu1 %2931 }
 0x2f0   : > { %3173 = vrot.lane.b32.xlu0 %v2586_v25, %s7661_s10 }
 0x2f1   : > { %3175 = vrot.lane.b32.xlu1 %v2587_v34, %s7661_s10 }
 0x2f2   : > { %v9525_v19 = vpop.permute.xlu0 %2933 }
 0x2f3   : > { %v9523_v13 = vpop.permute.xlu1 %2935 }
 0x2f4   : > { %3177 = vrot.lane.b32.xlu0 %v2588_v61, %s7661_s10 }
 0x2f5   : > { %3179 = vrot.lane.b32.xlu1 %v2589_v44, %s7661_s10 }
 0x2f6   : > { %v9531_v54 = vpop.permute.xlu0 %2937 }
 0x2f7   : > { %v9529_v27 = vpop.permute.xlu1 %2939 }
 0x2f8   : > { %13332 = vst [vmem:[#allocation335_spill] sm:$0xff] %v9529_v27  ;;  %3181 = vrot.lane.b32.xlu0 %v9001_v2, %s7661_s10 }
 0x2f9   : > { %3183 = vrot.lane.b32.xlu1 %v8999_v10, %s7661_s10 }
 0x2fa   : > { %v9539_v34 = vpop.permute.xlu0 %2941 }
 0x2fb   : > { %v9537_v25 = vpop.permute.xlu1 %2943  ;;  %13334 = vst [vmem:[#allocation337_spill] sm:$0xff] %v9539_v34 }
 0x2fc   : > { %13333 = vst [vmem:[#allocation336_spill] sm:$0xff] %v9537_v25  ;;  %3185 = vrot.lane.b32.xlu0 %v9014_v5, %s7661_s10  ;;  %v7589_v25 = vld [vmem:[#allocation2 + $0x10f] sm:$0xff] }
 0x2fd   : > { %3187 = vrot.lane.b32.xlu1 %v9012_v6, %s7661_s10 }
 0x2fe   : > { %v9547_v61 = vpop.permute.xlu0 %2945 }
 0x2ff   : > { %v9545_v44 = vpop.permute.xlu1 %2947  ;;  %13336 = vst [vmem:[#allocation339_spill] sm:$0xff] %v9547_v61  ;;  %v13493_v61 = vld [vmem:[#allocation26_spill] sm:$0xff] }
 0x300   : > { %13335 = vst [vmem:[#allocation338_spill] sm:$0xff] %v9545_v44  ;;  %3189 = vrot.lane.b32.xlu0 %v9027_v26, %s7661_s10 }
 0x301   : > { %3191 = vrot.lane.b32.xlu1 %v9025_v7, %s7661_s10 }
 0x302   : > { %v9555_v2 = vpop.permute.xlu0 %2949 }
 0x303   : > { %v9553_v10 = vpop.permute.xlu1 %2951  ;;  %13338 = vst [vmem:[#allocation341_spill] sm:$0xff] %v9555_v2 }
 0x304   : > { %13337 = vst [vmem:[#allocation340_spill] sm:$0xff] %v9553_v10  ;;  %3193 = vrot.lane.b32.xlu0 %v9040_v0, %s7661_s10 }
 0x305   : > { %3195 = vrot.lane.b32.xlu1 %v9038_v22, %s7661_s10 }
 0x306   : > { %v9563_v5 = vpop.permute.xlu0 %2953 }
 0x307   : > { %v9561_v6 = vpop.permute.xlu1 %2955  ;;  %13340 = vst [vmem:[#allocation343_spill] sm:$0xff] %v9563_v5 }
 0x308   : > { %13339 = vst [vmem:[#allocation342_spill] sm:$0xff] %v9561_v6  ;;  %3197 = vrot.lane.b32.xlu0 %v9055_v18, %s7661_s10 }
 0x309   : > { %3199 = vrot.lane.b32.xlu1 %v9053_v17, %s7661_s10 }
 0x30a   : > { %v9571_v7 = vpop.permute.xlu0 %2957 }
 0x30b   : > { %v9569_v26 = vpop.permute.xlu1 %2959  ;;  %13342 = vst [vmem:[#allocation345_spill] sm:$0xff] %v9571_v7 }
 0x30c   : > { %13341 = vst [vmem:[#allocation344_spill] sm:$0xff] %v9569_v26  ;;  %3201 = vrot.lane.b32.xlu0 %v9067_v16, %s7661_s10  ;;  %v9594_v16 = vld [vmem:[#allocation3 + $0x210] sm:$0xff] }
 0x30d   : > { %3203 = vrot.lane.b32.xlu1 %v9065_v1, %s7661_s10  ;;  %v9596_v1 = vld [vmem:[#allocation3 + $0x208] sm:$0xff] }
 0x30e   : > { %v9579_v22 = vpop.permute.xlu0 %3025 }
 0x30f   : > { %v9577_v0 = vpop.permute.xlu1 %3027  ;;  %13344 = vst [vmem:[#allocation347_spill] sm:$0xff] %v9579_v22 }
 0x310   : > { %13343 = vst [vmem:[#allocation346_spill] sm:$0xff] %v9577_v0  ;;  %3205 = vrot.lane.b32.xlu0 %v9083_v11, %s7661_s10 }
 0x311   : > { %3207 = vrot.lane.b32.xlu1 %v9081_v39, %s7661_s10 }
 0x312   : > { %v9588_v17 = vpop.permute.xlu0 %3029 }
 0x313   : > { %v9586_v18 = vpop.permute.xlu1 %3031  ;;  %13346 = vst [vmem:[#allocation349_spill] sm:$0xff] %v9588_v17  ;;  %v13419_v17 = vld [vmem:[#allocation316_spill] sm:$0xff] }
 0x314   : > { %13345 = vst [vmem:[#allocation348_spill] sm:$0xff] %v9586_v18  ;;  %3209 = vrot.lane.b32.xlu0 %v9095_v59, %s7661_s10  ;;  %v13424_v18 = vld [vmem:[#allocation319_spill] sm:$0xff] }
 0x315   : > { %3211 = vrot.lane.b32.xlu1 %v9093_v62, %s7661_s10 }
 0x316   : > { %v9600_v0 = vpop.permute.xlu0 %3033 }
 0x317   : > { %v9598_v39 = vpop.permute.xlu1 %3035  ;;  %13348 = vst [vmem:[#allocation351_spill] sm:$0xff] %v9600_v0 }
 0x318   : > { %13347 = vst [vmem:[#allocation350_spill] sm:$0xff] %v9598_v39  ;;  %3213 = vrot.lane.b32.xlu0 %v9596_v1, %s7661_s10 }
 0x319   : > { %3215 = vrot.lane.b32.xlu1 %v9594_v16, %s7661_s10 }
 0x31a   : > { %v9608_v62 = vpop.permute.xlu0 %3037 }
 0x31b   : > { %v9606_v11 = vpop.permute.xlu1 %3039  ;;  %13350 = vst [vmem:[#allocation353_spill] sm:$0xff] %v9608_v62  ;;  %v13407_v62 = vld [vmem:[#allocation304_spill] sm:$0xff] }
 0x31c   : > { %13349 = vst [vmem:[#allocation352_spill] sm:$0xff] %v9606_v11  ;;  %3281 = vrot.lane.b32.xlu0 %v9113_v12, %s7662_s11 }
 0x31d   : > { %3283 = vrot.lane.b32.xlu1 %v9111_v56, %s7662_s11 }
 0x31e   : > { %v9616_v60 = vpop.permute.xlu0 %3041 }
 0x31f   : > { %v9614_v59 = vpop.permute.xlu1 %3043  ;;  %13352 = vst [vmem:[#allocation355_spill] sm:$0xff] %v9616_v60 }
 0x320   : > { %13351 = vst [vmem:[#allocation354_spill] sm:$0xff] %v9614_v59  ;;  %3285 = vrot.lane.b32.xlu0 %v9125_v57, %s7662_s11 }
 0x321   : > { %3287 = vrot.lane.b32.xlu1 %v9123_v58, %s7662_s11 }
 0x322   : > { %v9624_v11 = vpop.permute.xlu0 %3045 }
 0x323   : > { %v9622_v0 = vpop.permute.xlu1 %3047  ;;  %13354 = vst [vmem:[#allocation357_spill] sm:$0xff] %v9624_v11 }
 0x324   : > { %13353 = vst [vmem:[#allocation356_spill] sm:$0xff] %v9622_v0  ;;  %3289 = vrot.lane.b32.xlu0 %v9137_v55, %s7662_s11  ;;  %v13395_v0 = vld [vmem:[#allocation292_spill] sm:$0xff] }
 0x325   : > { %3291 = vrot.lane.b32.xlu1 %v9135_v63, %s7662_s11 }
 0x326   : > { %v9632_v12 = vpop.permute.xlu0 %3049 }
 0x327   : > { %v9630_v56 = vpop.permute.xlu1 %3051  ;;  %13356 = vst [vmem:[#allocation359_spill] sm:$0xff] %v9632_v12 }
 0x328   : > { %13355 = vst [vmem:[#allocation358_spill] sm:$0xff] %v9630_v56  ;;  %3293 = vrot.lane.b32.xlu0 %v9149_v31, %s7662_s11 }
 0x329   : > { %3295 = vrot.lane.b32.xlu1 %v9147_v40, %s7662_s11 }
 0x32a   : > { %v9640_v58 = vpop.permute.xlu0 %3053 }
 0x32b   : > { %v9638_v57 = vpop.permute.xlu1 %3055  ;;  %13358 = vst [vmem:[#allocation361_spill] sm:$0xff] %v9640_v58 }
 0x32c   : > { %13357 = vst [vmem:[#allocation360_spill] sm:$0xff] %v9638_v57  ;;  %3297 = vrot.lane.b32.xlu0 %v9161_v51, %s7662_s11  ;;  %v7120_v57 = vld [vmem:[#allocation3 + $0x237] ss:$0 sm:$0xff] }
 0x32d   : > { %3299 = vrot.lane.b32.xlu1 %v9159_v52, %s7662_s11  ;;  %871 = vst.msk [vmem:[#allocation3 + $0x238] sm:$0xff] %vm332_vm0, %v7120_v57 }
 0x32e   : > { %v9648_v63 = vpop.permute.xlu0 %3057 }
 0x32f   : > { %v9646_v55 = vpop.permute.xlu1 %3059 }
 0x330   : > { %3301 = vrot.lane.b32.xlu0 %v9173_v47, %s7662_s11 }
 0x331   : > { %3303 = vrot.lane.b32.xlu1 %v9171_v48, %s7662_s11 }
 0x332   : > { %v9656_v31 = vpop.permute.xlu0 %3061 }
 0x333   : > { %v9654_v40 = vpop.permute.xlu1 %3063 }
 0x334   : > { %3305 = vrot.lane.b32.xlu0 %v9185_v45, %s7662_s11 }
 0x335   : > { %3307 = vrot.lane.b32.xlu1 %v9183_v46, %s7662_s11 }
 0x336   : > { %v9664_v52 = vpop.permute.xlu0 %3065 }
 0x337   : > { %v9662_v51 = vpop.permute.xlu1 %3067 }
 0x338   : > { %13359 = vst [vmem:[#allocation362_spill] sm:$0xff] %v9662_v51  ;;  %3309 = vrot.lane.b32.xlu0 %v9197_v41, %s7662_s11  ;;  %v13506_v51 = vld [vmem:[#allocation49_spill] sm:$0xff] }
 0x339   : > { %3311 = vrot.lane.b32.xlu1 %v9195_v42, %s7662_s11 }
 0x33a   : > { %v9672_v48 = vpop.permute.xlu0 %3069 }
 0x33b   : > { %v9670_v47 = vpop.permute.xlu1 %3071  ;;  %13361 = vst [vmem:[#allocation364_spill] sm:$0xff] %v9672_v48 }
 0x33c   : > { %13360 = vst [vmem:[#allocation363_spill] sm:$0xff] %v9670_v47  ;;  %3313 = vrot.lane.b32.xlu0 %v9209_v35, %s7662_s11  ;;  %v7587_v47 = vld [vmem:[#allocation2 + $0xef] sm:$0xff] }
 0x33d   : > { %3315 = vrot.lane.b32.xlu1 %v9207_v38, %s7662_s11 }
 0x33e   : > { %v9680_v46 = vpop.permute.xlu0 %3073 }
 0x33f   : > { %v9678_v45 = vpop.permute.xlu1 %3075  ;;  %13363 = vst [vmem:[#allocation366_spill] sm:$0xff] %v9680_v46  ;;  %v13489_v46 = vld [vmem:[#allocation18_spill] sm:$0xff] }
 0x340   : > { %13362 = vst [vmem:[#allocation365_spill] sm:$0xff] %v9678_v45  ;;  %3317 = vrot.lane.b32.xlu0 %v9221_v37, %s7662_s11 }
 0x341   : > { %3319 = vrot.lane.b32.xlu1 %v9219_v9, %s7662_s11 }
 0x342   : > { %v9688_v42 = vpop.permute.xlu0 %3077 }
 0x343   : > { %v9686_v41 = vpop.permute.xlu1 %3079  ;;  %13365 = vst [vmem:[#allocation368_spill] sm:$0xff] %v9688_v42  ;;  %v872_v42 = vld [vmem:[#allocation2 + $0x7] sm:$0xff] }
 0x344   : > { %13364 = vst [vmem:[#allocation367_spill] sm:$0xff] %v9686_v41  ;;  %3321 = vrot.lane.b32.xlu0 %v9233_v36, %s7662_s11 }
 0x345   : > { %3323 = vrot.lane.b32.xlu1 %v9231_v15, %s7662_s11 }
 0x346   : > { %v9696_v38 = vpop.permute.xlu0 %3081 }
 0x347   : > { %v9694_v35 = vpop.permute.xlu1 %3083  ;;  %13367 = vst [vmem:[#allocation370_spill] sm:$0xff] %v9696_v38 }
 0x348   : > { %13366 = vst [vmem:[#allocation369_spill] sm:$0xff] %v9694_v35  ;;  %3325 = vrot.lane.b32.xlu0 %v9245_v23, %s7662_s11 }
 0x349   : > { %3327 = vrot.lane.b32.xlu1 %v9243_v24, %s7662_s11 }
 0x34a   : > { %v9704_v9 = vpop.permute.xlu0 %3085 }
 0x34b   : > { %v9702_v37 = vpop.permute.xlu1 %3087  ;;  %13369 = vst [vmem:[#allocation372_spill] sm:$0xff] %v9704_v9 }
 0x34c   : > { %13368 = vst [vmem:[#allocation371_spill] sm:$0xff] %v9702_v37  ;;  %3329 = vrot.lane.b32.xlu0 %v9257_v20, %s7662_s11  ;;  %v9726_v20 = vld [vmem:[#allocation3 + $0x211] sm:$0xff] }
 0x34d   : > { %3331 = vrot.lane.b32.xlu1 %v9255_v21, %s7662_s11  ;;  %v9728_v21 = vld [vmem:[#allocation3 + $0x209] sm:$0xff] }
 0x34e   : > { %v9712_v36 = vpop.permute.xlu0 %3153 }
 0x34f   : > { %v9710_v15 = vpop.permute.xlu1 %3155  ;;  %13371 = vst [vmem:[#allocation374_spill] sm:$0xff] %v9712_v36 }
 0x350   : > { %13370 = vst [vmem:[#allocation373_spill] sm:$0xff] %v9710_v15  ;;  %3333 = vrot.lane.b32.xlu0 %v9269_v8, %s7662_s11 }
 0x351   : > { %3335 = vrot.lane.b32.xlu1 %v9267_v14, %s7662_s11 }
 0x352   : > { %v9720_v24 = vpop.permute.xlu0 %3157 }
 0x353   : > { %v9718_v23 = vpop.permute.xlu1 %3159  ;;  %13373 = vst [vmem:[#allocation376_spill] sm:$0xff] %v9720_v24  ;;  %v13415_v24 = vld [vmem:[#allocation312_spill] sm:$0xff] }
 0x354   : > { %13372 = vst [vmem:[#allocation375_spill] sm:$0xff] %v9718_v23  ;;  %3337 = vrot.lane.b32.xlu0 %v9281_v3, %s7662_s11 }
 0x355   : > { %3339 = vrot.lane.b32.xlu1 %v9279_v4, %s7662_s11 }
 0x356   : > { %v9732_v14 = vpop.permute.xlu0 %3161 }
 0x357   : > { %v9730_v58 = vpop.permute.xlu1 %3163  ;;  %13375 = vst [vmem:[#allocation378_spill] sm:$0xff] %v9732_v14 }
 0x358   : > { %13374 = vst [vmem:[#allocation377_spill] sm:$0xff] %v9730_v58  ;;  %3341 = vrot.lane.b32.xlu0 %v9728_v21, %s7662_s11  ;;  %v13411_v58 = vld [vmem:[#allocation308_spill] sm:$0xff] }
 0x359   : > { %3343 = vrot.lane.b32.xlu1 %v9726_v20, %s7662_s11 }
 0x35a   : > { %v9741_v3 = vpop.permute.xlu0 %3165 }
 0x35b   : > { %v9739_v4 = vpop.permute.xlu1 %3167  ;;  %13377 = vst [vmem:[#allocation380_spill] sm:$0xff] %v9741_v3  ;;  %v13403_v3 = vld [vmem:[#allocation300_spill] sm:$0xff] }
 0x35c   : > { %13376 = vst [vmem:[#allocation379_spill] sm:$0xff] %v9739_v4  ;;  %3409 = vrot.lane.b32.xlu0 %v9303_v43, %s7663_s12 }
 0x35d   : > { %3411 = vrot.lane.b32.xlu1 %v9301_v53, %s7663_s12 }
 0x35e   : > { %v9749_v12 = vpop.permute.xlu0 %3169 }
 0x35f   : > { %v9747_v8 = vpop.permute.xlu1 %3171  ;;  %13379 = vst [vmem:[#allocation382_spill] sm:$0xff] %v9749_v12 }
 0x360   : > { %13378 = vst [vmem:[#allocation381_spill] sm:$0xff] %v9747_v8  ;;  %3413 = vrot.lane.b32.xlu0 %v9315_v49, %s7663_s12  ;;  %v13399_v8 = vld [vmem:[#allocation296_spill] sm:$0xff] }
 0x361   : > { %3415 = vrot.lane.b32.xlu1 %v9313_v50, %s7663_s12  ;;  %v13384_v50 = vld [vmem:[#allocation277_spill] sm:$0xff] }
 0x362   : > { %v9757_v56 = vpop.permute.xlu0 %3173 }
 0x363   : > { %v9755_v57 = vpop.permute.xlu1 %3175  ;;  %13381 = vst [vmem:[#allocation384_spill] sm:$0xff] %v9757_v56  ;;  %v13387_v56 = vld [vmem:[#allocation280_spill] sm:$0xff] }
 0x364   : > { %13380 = vst [vmem:[#allocation383_spill] sm:$0xff] %v9755_v57  ;;  %3417 = vrot.lane.b32.xlu0 %v9327_v30, %s7663_s12 }
 0x365   : > { %3419 = vrot.lane.b32.xlu1 %v9325_v32, %s7663_s12  ;;  %v13388_v32 = vld [vmem:[#allocation281_spill] sm:$0xff] }
 0x366   : > { %v9765_v53 = vpop.permute.xlu0 %3177 }
 0x367   : > { %v9763_v43 = vpop.permute.xlu1 %3179  ;;  %13383 = vst [vmem:[#allocation386_spill] sm:$0xff] %v9765_v53  ;;  %v13389_v53 = vld [vmem:[#allocation284_spill] sm:$0xff] }
 0x368   : > { %13382 = vst [vmem:[#allocation385_spill] sm:$0xff] %v9763_v43  ;;  %3421 = vrot.lane.b32.xlu0 %v13384_v50, %s7663_s12 }
 0x369   : > { %3423 = vrot.lane.b32.xlu1 %v9337_v29, %s7663_s12  ;;  %v13390_v29 = vld [vmem:[#allocation285_spill] sm:$0xff] }
 0x36a   : > { %v9773_v57 = vpop.permute.xlu0 %3181 }
 0x36b   : > { %v9771_v49 = vpop.permute.xlu1 %3183  ;;  %13386 = vst [vmem:[#allocation387_spill] sm:$0xff] %v9773_v57  ;;  %v13391_v57 = vld [vmem:[#allocation288_spill] sm:$0xff] }
 0x36c   : > { %13385 = vst [vmem:[#allocation277_spill] sm:$0xff] %v9771_v49  ;;  %3425 = vrot.lane.b32.xlu0 %v13388_v32, %s7663_s12 }
 0x36d   : > { %3427 = vrot.lane.b32.xlu1 %v13387_v56, %s7663_s12  ;;  %v13392_v56 = vld [vmem:[#allocation289_spill] sm:$0xff] }
 0x36e   : > { %v9781_v43 = vpop.permute.xlu0 %3185 }
 0x36f   : > { %v9779_v30 = vpop.permute.xlu1 %3187 }
 0x370   : > { %3429 = vrot.lane.b32.xlu0 %v13390_v29, %s7663_s12 }
 0x371   : > { %3431 = vrot.lane.b32.xlu1 %v13389_v53, %s7663_s12  ;;  %v13396_v53 = vld [vmem:[#allocation293_spill] sm:$0xff] }
 0x372   : > { %v9789_v49 = vpop.permute.xlu0 %3189 }
 0x373   : > { %v9787_v50 = vpop.permute.xlu1 %3191 }
 0x374   : > { %3433 = vrot.lane.b32.xlu0 %v13392_v56, %s7663_s12 }
 0x375   : > { %3435 = vrot.lane.b32.xlu1 %v13391_v57, %s7663_s12  ;;  %v13400_v57 = vld [vmem:[#allocation297_spill] sm:$0xff] }
 0x376   : > { %v9797_v11 = vpop.permute.xlu0 %3193 }
 0x377   : > { %v9795_v32 = vpop.permute.xlu1 %3195  ;;  %13394 = vst [vmem:[#allocation281_spill] sm:$0xff] %v9797_v11  ;;  %v13514_v11 = vld [vmem:[#allocation58_spill] sm:$0xff] }
 0x378   : > { %13393 = vst [vmem:[#allocation280_spill] sm:$0xff] %v9795_v32  ;;  %3437 = vrot.lane.b32.xlu0 %v13396_v53, %s7663_s12  ;;  %v13505_v32 = vld [vmem:[#allocation46_spill] sm:$0xff] }
 0x379   : > { %3439 = vrot.lane.b32.xlu1 %v13395_v0, %s7663_s12  ;;  %v13404_v0 = vld [vmem:[#allocation301_spill] sm:$0xff] }
 0x37a   : > { %v9805_v12 = vpop.permute.xlu0 %3197 }
 0x37b   : > { %v9803_v29 = vpop.permute.xlu1 %3199  ;;  %13398 = vst [vmem:[#allocation285_spill] sm:$0xff] %v9805_v12 }
 0x37c   : > { %13397 = vst [vmem:[#allocation284_spill] sm:$0xff] %v9803_v29  ;;  %3441 = vrot.lane.b32.xlu0 %v13400_v57, %s7663_s12  ;;  %v2717_v29 = vld [vmem:[#allocation3 + $0x109] sm:$0xff] }
 0x37d   : > { %3443 = vrot.lane.b32.xlu1 %v13399_v8, %s7663_s12  ;;  %v13408_v8 = vld [vmem:[#allocation305_spill] sm:$0xff] }
 0x37e   : > { %v9813_v59 = vpop.permute.xlu0 %3201 }
 0x37f   : > { %v9811_v60 = vpop.permute.xlu1 %3203  ;;  %13402 = vst [vmem:[#allocation289_spill] sm:$0xff] %v9813_v59  ;;  %v13488_v59 = vld [vmem:[#allocation17_spill] sm:$0xff] }
 0x380   : > { %13401 = vst [vmem:[#allocation288_spill] sm:$0xff] %v9811_v60  ;;  %3445 = vrot.lane.b32.xlu0 %v13404_v0, %s7663_s12  ;;  %v13481_v60 = vld [vmem:[#allocation11_spill] sm:$0xff] }
 0x381   : > { %3447 = vrot.lane.b32.xlu1 %v13403_v3, %s7663_s12  ;;  %v13412_v3 = vld [vmem:[#allocation309_spill] sm:$0xff] }
 0x382   : > { %v9821_v4 = vpop.permute.xlu0 %3205 }
 0x383   : > { %v9819_v53 = vpop.permute.xlu1 %3207  ;;  %13406 = vst [vmem:[#allocation293_spill] sm:$0xff] %v9821_v4 }
 0x384   : > { %13405 = vst [vmem:[#allocation292_spill] sm:$0xff] %v9819_v53  ;;  %3449 = vrot.lane.b32.xlu0 %v13408_v8, %s7663_s12 }
 0x385   : > { %3451 = vrot.lane.b32.xlu1 %v13407_v62, %s7663_s12  ;;  %v13416_v62 = vld [vmem:[#allocation313_spill] sm:$0xff] }
 0x386   : > { %v9829_v14 = vpop.permute.xlu0 %3209 }
 0x387   : > { %v9827_v57 = vpop.permute.xlu1 %3211  ;;  %13410 = vst [vmem:[#allocation297_spill] sm:$0xff] %v9829_v14 }
 0x388   : > { %13409 = vst [vmem:[#allocation296_spill] sm:$0xff] %v9827_v57  ;;  %3453 = vrot.lane.b32.xlu0 %v13412_v3, %s7663_s12  ;;  %v4026_v3 = vld [vmem:[%s12875_s3 + $0x20] sm:$0xf] }
 0x389   : > { %3455 = vrot.lane.b32.xlu1 %v13411_v58, %s7663_s12  ;;  %v13420_v58 = vld [vmem:[#allocation317_spill] sm:$0xff]  ;;  %7548 = vmatprep.subr.msk.mxu1 %vm4124_vm1, %v4026_v3 }
 0x38a   : > { %v9837_v39 = vpop.permute.xlu0 %3213  ;;  %7374 = vmatprep.subr.msk.mxu0 %vm4124_vm1, %v4026_v3  ;;  %7553 = vmatpush3.msk.msra.mxu1 %vm4124_vm1, %v4026_v3 }
 0x38b   : > { %v9835_v0 = vpop.permute.xlu1 %3215  ;;  %13414 = vst [vmem:[#allocation301_spill] sm:$0xff] %v9837_v39  ;;  %7375 = vmatpush3.msk.msra.mxu0 %vm4124_vm1, %v4026_v3 }
 0x38c   : > { %13413 = vst [vmem:[#allocation300_spill] sm:$0xff] %v9835_v0  ;;  %3457 = vrot.lane.b32.xlu0 %v13416_v62, %s7663_s12 }
 0x38d   : > { %3459 = vrot.lane.b32.xlu1 %v13415_v24, %s7663_s12 }
 0x38e   : > { %v9845_v23 = vpop.permute.xlu0 %3281 }
 0x38f   : > { %v9843_v8 = vpop.permute.xlu1 %3283  ;;  %13418 = vst [vmem:[#allocation305_spill] sm:$0xff] %v9845_v23 }
 0x390   : > { %13417 = vst [vmem:[#allocation304_spill] sm:$0xff] %v9843_v8  ;;  %3461 = vrot.lane.b32.xlu0 %v13420_v58, %s7663_s12  ;;  %v13423_v58 = vld [vmem:[#allocation318_spill] sm:$0xff] }
 0x391   : > { %3463 = vrot.lane.b32.xlu1 %v13419_v17, %s7663_s12  ;;  %v4025_v17 = vld [vmem:[%s12875_s3 + $0x18] sm:$0xff]  ;;  %v2672_v8 = vld [vmem:[#allocation3 + $0x22f] sm:$0xff] }
 0x392   : > { %v9858_v62 = vpop.permute.xlu0 %3285  ;;  %7549 = vmatprep.subr.mxu1 %v4025_v17  ;;  %7376 = vmatprep.subr.mxu0 %v4025_v17 }
 0x393   : > { %v9856_v24 = vpop.permute.xlu1 %3287  ;;  %13422 = vst [vmem:[#allocation309_spill] sm:$0xff] %v9858_v62  ;;  %v2671_v62 = vld [vmem:[#allocation3 + $0x227] sm:$0xff]  ;;  %7554 = vmatpush3.msra.mxu1 %v4025_v17  ;;  %7377 = vmatpush3.msra.mxu0 %v4025_v17 }
 0x394   : > { %13421 = vst [vmem:[#allocation308_spill] sm:$0xff] %v9856_v24  ;;  %3465 = vrot.lane.b32.xlu0 %v13424_v18, %s7663_s12  ;;  %v4024_v24 = vld [vmem:[%s12875_s3 + $0x10] sm:$0xff]  ;;  %v4022_v17 = vld [vmem:[%s12875_s3] sm:$0xff] }
 0x395   : > { %3467 = vrot.lane.b32.xlu1 %v13423_v58, %s7663_s12  ;;  %7550 = vmatprep.subr.mxu1 %v4024_v24  ;;  %v4023_v58 = vld [vmem:[%s12875_s3 + $0x8] sm:$0xff] }
 0x396   : > { %v9874_v3 = vpop.permute.xlu0 %3289  ;;  %7378 = vmatprep.subr.mxu0 %v4024_v24  ;;  %7555 = vmatpush3.msra.mxu1 %v4024_v24 }
 0x397   : > { %v9872_v15 = vpop.permute.xlu1 %3291  ;;  %13426 = vst [vmem:[#allocation313_spill] sm:$0xff] %v9874_v3  ;;  %7379 = vmatpush3.msra.mxu0 %v4024_v24  ;;  %7551 = vmatprep.subr.mxu1 %v4023_v58  ;;  %v13429_v3 = vld [vmem:[#allocation324_spill] sm:$0xff] }
 0x398   : > { %13425 = vst [vmem:[#allocation312_spill] sm:$0xff] %v9872_v15  ;;  %3469 = vrot.lane.b32.xlu0 %v2671_v62, %s7663_s12  ;;  %7380 = vmatprep.subr.mxu0 %v4023_v58  ;;  %v2689_v62 = vld [vmem:[#allocation3 + $0x148] sm:$0xff]  ;;  %v2690_v15 = vld [vmem:[#allocation3 + $0x150] sm:$0xff] }
 0x399   : > { %3471 = vrot.lane.b32.xlu1 %v2672_v8, %s7663_s12  ;;  %7556 = vmatpush3.msra.mxu1 %v4023_v58  ;;  %v13430_v8 = vld [vmem:[#allocation325_spill] sm:$0xff] }
 0x39a   : > { %v9883_v23 = vpop.permute.xlu0 %3293  ;;  %7381 = vmatpush3.msra.mxu0 %v4023_v58  ;;  %7552 = vmatprep.subr.mxu1 %v4022_v17  ;;  %v2721_v58 = vld [vmem:[#allocation3 + $0x149] sm:$0xff] }
 0x39b   : > { %v9881_v18 = vpop.permute.xlu1 %3295  ;;  %13428 = vst [vmem:[#allocation317_spill] sm:$0xff] %v9883_v23  ;;  %7382 = vmatprep.subr.mxu0 %v4022_v17  ;;  %7557 = vmatpush3.msra.mxu1 %v4022_v17 }
 0x39c   : > { %13427 = vst [vmem:[#allocation316_spill] sm:$0xff] %v9881_v18  ;;  %3537 = vrot.lane.b32.xlu0 %v13430_v8, %s7664_s16  ;;  %7383 = vmatpush3.msra.mxu0 %v4022_v17  ;;  %v13433_v18 = vld [vmem:[#allocation328_spill] sm:$0xff]  ;;  %v2691_v8 = vld [vmem:[#allocation3 + $0x168] sm:$0xff] }
 0x39d   : > { %3539 = vrot.lane.b32.xlu1 %v13429_v3, %s7664_s16 }
 0x39e   : > { %v9894_v23 = vpop.permute.xlu0 %3297 }
 0x39f   : > { %v9892_v24 = vpop.permute.xlu1 %3299  ;;  %13432 = vst [vmem:[#allocation319_spill] sm:$0xff] %v9894_v23 }
 0x3a0   : > { %13431 = vst [vmem:[#allocation318_spill] sm:$0xff] %v9892_v24  ;;  %3541 = vrot.lane.b32.xlu0 %v13433_v18, %s7664_s16  ;;  %v2722_v24 = vld [vmem:[#allocation3 + $0x151] sm:$0xff]  ;;  %v2723_v18 = vld [vmem:[#allocation3 + $0x169] sm:$0xff] }
 0x3a1   : > { %3569 = vrot.lane.b32.xlu1 %v2689_v62, %s7664_s16  ;;  %v2692_v62 = vld [vmem:[#allocation3 + $0x170] sm:$0xff] }
 0x3a2   : > { %v9901_v0 = vpop.permute.xlu0 %3301 }
 0x3a3   : > { %v9899_v3 = vpop.permute.xlu1 %3303  ;;  %13435 = vst [vmem:[#allocation325_spill] sm:$0xff] %v9901_v0 }
 0x3a4   : > { %13434 = vst [vmem:[#allocation324_spill] sm:$0xff] %v9899_v3  ;;  %3571 = vrot.lane.b32.xlu0 %v2690_v15, %s7664_s16  ;;  %v2693_v15 = vld [vmem:[#allocation3 + $0x188] sm:$0xff] }
 0x3a5   : > { %3697 = vrot.lane.b32.xlu1 %v2721_v58, %s7665_s17  ;;  %v2724_v58 = vld [vmem:[#allocation3 + $0x171] sm:$0xff] }
 0x3a6   : > { %v9907_v17 = vpop.permute.xlu0 %3305 }
 0x3a7   : > { %v9905_v23 = vpop.permute.xlu1 %3307  ;;  %13437 = vst [vmem:[#allocation388_spill] sm:$0xff] %v9907_v17 }
 0x3a8   : > { %13436 = vst [vmem:[#allocation328_spill] sm:$0xff] %v9905_v23  ;;  %3699 = vrot.lane.b32.xlu0 %v2722_v24, %s7665_s17  ;;  %v2725_v24 = vld [vmem:[#allocation3 + $0x189] sm:$0xff] }
 0x3a9   : > { %3573 = vrot.lane.b32.xlu1 %v2691_v8, %s7664_s16  ;;  %v2694_v8 = vld [vmem:[#allocation3 + $0x190] sm:$0xff] }
 0x3aa   : > { %v9913_v3 = vpop.permute.xlu0 %3309 }
 0x3ab   : > { %v9911_v36 = vpop.permute.xlu1 %3311  ;;  %13439 = vst [vmem:[#allocation390_spill] sm:$0xff] %v9913_v3 }
 0x3ac   : > { %13438 = vst [vmem:[#allocation389_spill] sm:$0xff] %v9911_v36  ;;  %3575 = vrot.lane.b32.xlu0 %v2692_v62, %s7664_s16  ;;  %v2726_v62 = vld [vmem:[#allocation3 + $0x191] sm:$0xff] }
 0x3ad   : > { %3701 = vrot.lane.b32.xlu1 %v2723_v18, %s7665_s17  ;;  %v2695_v18 = vld [vmem:[#allocation3 + $0x1a8] sm:$0xff] }
 0x3ae   : > { %v9919_v23 = vpop.permute.xlu0 %3313 }
 0x3af   : > { %v9917_v0 = vpop.permute.xlu1 %3315 }
 0x3b0   : > { %3703 = vrot.lane.b32.xlu0 %v2724_v58, %s7665_s17  ;;  %v2696_v58 = vld [vmem:[#allocation3 + $0x1b0] sm:$0xff] }
 0x3b1   : > { %3577 = vrot.lane.b32.xlu1 %v2693_v15, %s7664_s16  ;;  %v2727_v15 = vld [vmem:[#allocation3 + $0x1a9] sm:$0xff] }
 0x3b2   : > { %v9925_v36 = vpop.permute.xlu0 %3317 }
 0x3b3   : > { %v9923_v17 = vpop.permute.xlu1 %3319 }
 0x3b4   : > { %3579 = vrot.lane.b32.xlu0 %v2694_v8, %s7664_s16  ;;  %v2728_v8 = vld [vmem:[#allocation3 + $0x1b1] sm:$0xff] }
 0x3b5   : > { %3705 = vrot.lane.b32.xlu1 %v2725_v24, %s7665_s17  ;;  %v2697_v24 = vld [vmem:[#allocation3 + $0x1c8] sm:$0xff] }
 0x3b6   : > { %v9931_v37 = vpop.permute.xlu0 %3321 }
 0x3b7   : > { %v9929_v3 = vpop.permute.xlu1 %3323  ;;  %13441 = vst [vmem:[#allocation392_spill] sm:$0xff] %v9931_v37  ;;  %v13513_v37 = vld [vmem:[#allocation57_spill] sm:$0xff] }
 0x3b8   : > { %13440 = vst [vmem:[#allocation391_spill] sm:$0xff] %v9929_v3  ;;  %3707 = vrot.lane.b32.xlu0 %v2726_v62, %s7665_s17  ;;  %v2698_v62 = vld [vmem:[#allocation3 + $0x1d0] sm:$0xff] }
 0x3b9   : > { %3581 = vrot.lane.b32.xlu1 %v2695_v18, %s7664_s16  ;;  %v2729_v18 = vld [vmem:[#allocation3 + $0x1c9] sm:$0xff] }
 0x3ba   : > { %v9937_v26 = vpop.permute.xlu0 %3325 }
 0x3bb   : > { %v9935_v22 = vpop.permute.xlu1 %3327  ;;  %13443 = vst [vmem:[#allocation394_spill] sm:$0xff] %v9937_v26  ;;  %v7590_v26 = vld [vmem:[#allocation2 + $0x127] sm:$0xff] }
 0x3bc   : > { %13442 = vst [vmem:[#allocation393_spill] sm:$0xff] %v9935_v22  ;;  %3583 = vrot.lane.b32.xlu0 %v2696_v58, %s7664_s16  ;;  %v2730_v58 = vld [vmem:[#allocation3 + $0x1d1] sm:$0xff]  ;;  %v13494_v22 = vld [vmem:[#allocation29_spill] sm:$0xff] }
 0x3bd   : > { %3709 = vrot.lane.b32.xlu1 %v2727_v15, %s7665_s17  ;;  %v2699_v15 = vld [vmem:[#allocation3 + $0x1e8] sm:$0xff] }
 0x3be   : > { %v9943_v9 = vpop.permute.xlu0 %3329 }
 0x3bf   : > { %v9941_v39 = vpop.permute.xlu1 %3331  ;;  %13445 = vst [vmem:[#allocation396_spill] sm:$0xff] %v9943_v9 }
 0x3c0   : > { %13444 = vst [vmem:[#allocation395_spill] sm:$0xff] %v9941_v39  ;;  %3711 = vrot.lane.b32.xlu0 %v2728_v8, %s7665_s17  ;;  %v2700_v8 = vld [vmem:[#allocation3 + $0x1f0] sm:$0xff] }
 0x3c1   : > { %3585 = vrot.lane.b32.xlu1 %v2697_v24, %s7664_s16  ;;  %v2731_v24 = vld [vmem:[#allocation3 + $0x1e9] sm:$0xff] }
 0x3c2   : > { %v9949_v57 = vpop.permute.xlu0 %3333  ;;  %v7575_v39 = vld [vmem:[#allocation2 + $0x2f] sm:$0xff] }
 0x3c3   : > { %v9947_v7 = vpop.permute.xlu1 %3335  ;;  %13447 = vst [vmem:[#allocation398_spill] sm:$0xff] %v9949_v57 }
 0x3c4   : > { %13446 = vst [vmem:[#allocation397_spill] sm:$0xff] %v9947_v7  ;;  %3587 = vrot.lane.b32.xlu0 %v2698_v62, %s7664_s16  ;;  %v2732_v62 = vld [vmem:[#allocation3 + $0x1f1] sm:$0xff] }
 0x3c5   : > { %3713 = vrot.lane.b32.xlu1 %v2729_v18, %s7665_s17  ;;  %v9968_v18 = vld [vmem:[%s12874_s2 + $0x20] sm:$0xf] }
 0x3c6   : > { %v9955_v6 = vpop.permute.xlu0 %3337  ;;  %7432 = vmatprep.subr.msk.mxu1 %vm4124_vm1, %v9968_v18 }
 0x3c7   : > { %v9953_v35 = vpop.permute.xlu1 %3339  ;;  %13449 = vst [vmem:[#allocation400_spill] sm:$0xff] %v9955_v6 }
 0x3c8   : > { %13448 = vst [vmem:[#allocation399_spill] sm:$0xff] %v9953_v35  ;;  %3715 = vrot.lane.b32.xlu0 %v2730_v58, %s7665_s17 }
 0x3c9   : > { %3589 = vrot.lane.b32.xlu1 %v2699_v15, %s7664_s16 }
 0x3ca   : > { %v9961_v38 = vpop.permute.xlu0 %3341 }
 0x3cb   : > { %v9959_v14 = vpop.permute.xlu1 %3343  ;;  %13451 = vst [vmem:[#allocation402_spill] sm:$0xff] %v9961_v38 }
 0x3cc   : > { %13450 = vst [vmem:[#allocation401_spill] sm:$0xff] %v9959_v14  ;;  %3591 = vrot.lane.b32.xlu0 %v2700_v8, %s7664_s16  ;;  %v2703_v14 = vld [vmem:[#allocation3 + $0x228] sm:$0xff] }
 0x3cd   : > { %3717 = vrot.lane.b32.xlu1 %v2731_v24, %s7665_s17 }
 0x3ce   : > { %v9974_v58 = vpop.permute.xlu0 %3409 }
 0x3cf   : > { %v9972_v15 = vpop.permute.xlu1 %3411  ;;  %13453 = vst [vmem:[#allocation404_spill] sm:$0xff] %v9974_v58 }
 0x3d0   : > { %13452 = vst [vmem:[#allocation403_spill] sm:$0xff] %v9972_v15  ;;  %3719 = vrot.lane.b32.xlu0 %v2732_v62, %s7665_s17  ;;  %v2704_v62 = vld [vmem:[#allocation3 + $0x230] sm:$0xff] }
 0x3d1   : > { %3593 = vrot.lane.b32.xlu1 %v9596_v1, %s7664_s16  ;;  %v2735_v1 = vld [vmem:[#allocation3 + $0x229] sm:$0xff] }
 0x3d2   : > { %v9981_v8 = vpop.permute.xlu0 %3413 }
 0x3d3   : > { %v9979_v24 = vpop.permute.xlu1 %3415  ;;  %13455 = vst [vmem:[#allocation406_spill] sm:$0xff] %v9981_v8 }
 0x3d4   : > { %13454 = vst [vmem:[#allocation405_spill] sm:$0xff] %v9979_v24  ;;  %3595 = vrot.lane.b32.xlu0 %v9594_v16, %s7664_s16  ;;  %v2705_v16 = vld [vmem:[#allocation3 + $0x49] sm:$0xff] }
 0x3d5   : > { %3721 = vrot.lane.b32.xlu1 %v9728_v21, %s7665_s17  ;;  %v2736_v21 = vld [vmem:[#allocation3 + $0x231] sm:$0xff] }
 0x3d6   : > { %v9989_v15 = vpop.permute.xlu0 %3417 }
 0x3d7   : > { %v9987_v38 = vpop.permute.xlu1 %3419  ;;  %13457 = vst [vmem:[#allocation408_spill] sm:$0xff] %v9989_v15 }
 0x3d8   : > { %13456 = vst [vmem:[#allocation407_spill] sm:$0xff] %v9987_v38  ;;  %3723 = vrot.lane.b32.xlu0 %v9726_v20, %s7665_s17  ;;  %v2676_v20 = vld [vmem:[#allocation3 + $0x70] sm:$0xff] }
 0x3d9   : > { %3597 = vrot.lane.b32.xlu1 %v2703_v14, %s7664_s16  ;;  %v2706_v14 = vld [vmem:[#allocation3 + $0x51] sm:$0xff] }
 0x3da   : > { %v9996_v8 = vpop.permute.xlu0 %3421 }
 0x3db   : > { %v9994_v24 = vpop.permute.xlu1 %3423  ;;  %13459 = vst [vmem:[#allocation410_spill] sm:$0xff] %v9996_v8 }
 0x3dc   : > { %13458 = vst [vmem:[#allocation409_spill] sm:$0xff] %v9994_v24  ;;  %3599 = vrot.lane.b32.xlu0 %v2704_v62, %s7664_s16  ;;  %v2707_v62 = vld [vmem:[#allocation3 + $0x69] sm:$0xff] }
 0x3dd   : > { %3725 = vrot.lane.b32.xlu1 %v2735_v1, %s7665_s17  ;;  %v2708_v1 = vld [vmem:[#allocation3 + $0x71] sm:$0xff] }
 0x3de   : > { %v10002_v15 = vpop.permute.xlu0 %3425 }
 0x3df   : > { %v10000_v38 = vpop.permute.xlu1 %3427  ;;  %13461 = vst [vmem:[#allocation412_spill] sm:$0xff] %v10002_v15 }
 0x3e0   : > { %13460 = vst [vmem:[#allocation411_spill] sm:$0xff] %v10000_v38  ;;  %3727 = vrot.lane.b32.xlu0 %v2736_v21, %s7665_s17  ;;  %v2677_v21 = vld [vmem:[#allocation3 + $0x88] sm:$0xff] }
 0x3e1   : > { %3665 = vrot.lane.b32.xlu1 %v2705_v16, %s7665_s17  ;;  %v2678_v16 = vld [vmem:[#allocation3 + $0x90] sm:$0xff] }
 0x3e2   : > { %v10008_v24 = vpop.permute.xlu0 %3429 }
 0x3e3   : > { %v10006_v58 = vpop.permute.xlu1 %3431  ;;  %13463 = vst [vmem:[#allocation414_spill] sm:$0xff] %v10008_v24 }
 0x3e4   : > { %13462 = vst [vmem:[#allocation413_spill] sm:$0xff] %v10006_v58  ;;  %3667 = vrot.lane.b32.xlu0 %v2706_v14, %s7665_s17  ;;  %v2709_v14 = vld [vmem:[#allocation3 + $0x89] sm:$0xff] }
 0x3e5   : > { %3543 = vrot.lane.b32.xlu1 %v2676_v20, %s7664_s16  ;;  %v2710_v20 = vld [vmem:[#allocation3 + $0x91] sm:$0xff] }
 0x3e6   : > { %v10014_v38 = vpop.permute.xlu0 %3433 }
 0x3e7   : > { %v10012_v8 = vpop.permute.xlu1 %3435  ;;  %13465 = vst [vmem:[#allocation416_spill] sm:$0xff] %v10014_v38 }
 0x3e8   : > { %13464 = vst [vmem:[#allocation415_spill] sm:$0xff] %v10012_v8  ;;  %3669 = vrot.lane.b32.xlu0 %v2707_v62, %s7665_s17  ;;  %v2679_v62 = vld [vmem:[#allocation3 + $0xa8] sm:$0xff] }
 0x3e9   : > { %3671 = vrot.lane.b32.xlu1 %v2708_v1, %s7665_s17  ;;  %v2680_v1 = vld [vmem:[#allocation3 + $0xb0] sm:$0xff] }
 0x3ea   : > { %v10020_v58 = vpop.permute.xlu0 %3437 }
 0x3eb   : > { %v10018_v15 = vpop.permute.xlu1 %3439  ;;  %13467 = vst [vmem:[#allocation418_spill] sm:$0xff] %v10020_v58 }
 0x3ec   : > { %13466 = vst [vmem:[#allocation417_spill] sm:$0xff] %v10018_v15  ;;  %3545 = vrot.lane.b32.xlu0 %v2677_v21, %s7664_s16  ;;  %v2711_v21 = vld [vmem:[#allocation3 + $0xa9] sm:$0xff] }
 0x3ed   : > { %3547 = vrot.lane.b32.xlu1 %v2678_v16, %s7664_s16  ;;  %v2712_v16 = vld [vmem:[#allocation3 + $0xb1] sm:$0xff] }
 0x3ee   : > { %v10026_v8 = vpop.permute.xlu0 %3441 }
 0x3ef   : > { %v10024_v24 = vpop.permute.xlu1 %3443 }
 0x3f0   : > { %3673 = vrot.lane.b32.xlu0 %v2709_v14, %s7665_s17  ;;  %v2681_v14 = vld [vmem:[#allocation3 + $0xc8] sm:$0xff] }
 0x3f1   : > { %3675 = vrot.lane.b32.xlu1 %v2710_v20, %s7665_s17  ;;  %v2682_v20 = vld [vmem:[#allocation3 + $0xd0] sm:$0xff] }
 0x3f2   : > { %v10032_v15 = vpop.permute.xlu0 %3445 }
 0x3f3   : > { %v10030_v38 = vpop.permute.xlu1 %3447 }
 0x3f4   : > { %3549 = vrot.lane.b32.xlu0 %v2679_v62, %s7664_s16  ;;  %v2713_v62 = vld [vmem:[#allocation3 + $0xc9] sm:$0xff] }
 0x3f5   : > { %3551 = vrot.lane.b32.xlu1 %v2680_v1, %s7664_s16  ;;  %v2714_v1 = vld [vmem:[#allocation3 + $0xd1] sm:$0xff] }
 0x3f6   : > { %v10038_v35 = vpop.permute.xlu0 %3449 }
 0x3f7   : > { %v10036_v58 = vpop.permute.xlu1 %3451  ;;  %13469 = vst [vmem:[#allocation420_spill] sm:$0xff] %v10038_v35 }
 0x3f8   : > { %13468 = vst [vmem:[#allocation419_spill] sm:$0xff] %v10036_v58  ;;  %3677 = vrot.lane.b32.xlu0 %v2711_v21, %s7665_s17  ;;  %v2683_v21 = vld [vmem:[#allocation3 + $0xe8] sm:$0xff] }
 0x3f9   : > { %3679 = vrot.lane.b32.xlu1 %v2712_v16, %s7665_s17  ;;  %v2684_v16 = vld [vmem:[#allocation3 + $0xf0] sm:$0xff] }
 0x3fa   : > { %v10044_v5 = vpop.permute.xlu0 %3453 }
 0x3fb   : > { %v10042_v6 = vpop.permute.xlu1 %3455  ;;  %13471 = vst [vmem:[#allocation422_spill] sm:$0xff] %v10044_v5  ;;  %v7588_v5 = vld [vmem:[#allocation2 + $0x107] sm:$0xff] }
 0x3fc   : > { %13470 = vst [vmem:[#allocation421_spill] sm:$0xff] %v10042_v6  ;;  %3553 = vrot.lane.b32.xlu0 %v2681_v14, %s7664_s16  ;;  %v2715_v14 = vld [vmem:[#allocation3 + $0xe9] sm:$0xff]  ;;  %v13490_v6 = vld [vmem:[#allocation21_spill] sm:$0xff] }
 0x3fd   : > { %3555 = vrot.lane.b32.xlu1 %v2682_v20, %s7664_s16  ;;  %v2716_v20 = vld [vmem:[#allocation3 + $0xf1] sm:$0xff] }
 0x3fe   : > { %v10050_v53 = vpop.permute.xlu0 %3457 }
 0x3ff   : > { %v10048_v7 = vpop.permute.xlu1 %3459  ;;  %13473 = vst [vmem:[#allocation424_spill] sm:$0xff] %v10050_v53 }
 0x400   : > { %13472 = vst [vmem:[#allocation423_spill] sm:$0xff] %v10048_v7  ;;  %3681 = vrot.lane.b32.xlu0 %v2713_v62, %s7665_s17  ;;  %v2686_v62 = vld [vmem:[#allocation3 + $0x110] sm:$0xff]  ;;  %v13478_v7 = vld [vmem:[#allocation6_spill] sm:$0xff] }
 0x401   : > { %3683 = vrot.lane.b32.xlu1 %v2714_v1, %s7665_s17  ;;  %v873_v1 = vld [vmem:[#allocation2 + $0xf] sm:$0xff] }
 0x402   : > { %v10056_v10 = vpop.permute.xlu0 %3461 }
 0x403   : > { %v10054_v41 = vpop.permute.xlu1 %3463  ;;  %13475 = vst [vmem:[#allocation426_spill] sm:$0xff] %v10056_v10  ;;  %v10068_v10 = vsel %vm332_vm0, %v872_v42, %v13478_v7  ;;  %v7576_v7 = vld [vmem:[#allocation2 + $0x47] sm:$0xff] }
 0x404   : > { %13474 = vst [vmem:[#allocation425_spill] sm:$0xff] %v10054_v41  ;;  %3557 = vrot.lane.b32.xlu0 %v2683_v21, %s7664_s16  ;;  %v2685_v41 = vld [vmem:[#allocation3 + $0x108] sm:$0xff]  ;;  %v13479_v21 = vld [vmem:[#allocation7_spill] sm:$0xff]  ;;  %v13484_v42 = vld [vmem:[#allocation13_spill] sm:$0xff] }
 0x405   : > { %3559 = vrot.lane.b32.xlu1 %v2684_v16, %s7664_s16  ;;  %v7574_v16 = vld [vmem:[#allocation2 + $0x27] sm:$0xff]  ;;  %v10088_v53 = vsel %vm332_vm0, %v7576_v7, %v13484_v42  ;;  %v7581_v42 = vld [vmem:[#allocation2 + $0x8f] sm:$0xff] }
 0x406   : > { %v10062_v4 = vpop.permute.xlu0 %3465  ;;  %v10072_v2 = vsel %vm332_vm0, %v7574_v16, %v13479_v21  ;;  %v7577_v16 = vld [vmem:[#allocation2 + $0x4f] sm:$0xff] }
 0x407   : > { %v10060_v57 = vpop.permute.xlu1 %3467  ;;  %13477 = vst [vmem:[#allocation428_spill] sm:$0xff] %v10062_v4  ;;  %v13485_v21 = vld [vmem:[#allocation14_spill] sm:$0xff] }
 0x408   : > { %13476 = vst [vmem:[#allocation427_spill] sm:$0xff] %v10060_v57  ;;  %3685 = vrot.lane.b32.xlu0 %v2715_v14, %s7665_s17  ;;  %v13480_v57 = vld [vmem:[#allocation10_spill] sm:$0xff]  ;;  %v10092_v44 = vsel %vm332_vm0, %v7577_v16, %v13485_v21  ;;  %v10108_v16 = vsel %vm332_vm0, %v7581_v42, %v13489_v46 }
 0x409   : > { %3687 = vrot.lane.b32.xlu1 %v2716_v20, %s7665_s17  ;;  %v10076_v4 = vsel %vm332_vm0, %v873_v1, %v13480_v57  ;;  %v10080_v20 = vsel %vm332_vm0, %v7575_v39, %v13481_v60  ;;  %v7578_v57 = vld [vmem:[#allocation2 + $0x67] sm:$0xff]  ;;  %v13486_v1 = vld [vmem:[#allocation15_spill] sm:$0xff]  ;;  %v13487_v60 = vld [vmem:[#allocation16_spill] sm:$0xff] }
 0x40a   : > { %v10084_v45 = vpop.permute.xlu0 %3469  ;;  %v10096_v9 = vsel %vm332_vm0, %v7578_v57, %v13486_v1  ;;  %v7579_v39 = vld [vmem:[#allocation2 + $0x6f] sm:$0xff]  ;;  %v7582_v21 = vld [vmem:[#allocation2 + $0xa7] sm:$0xff] }
 0x40b   : > { %v10082_v14 = vpop.permute.xlu1 %3471  ;;  %13483 = vst [vmem:[#allocation7_spill] sm:$0xff] %v10084_v45  ;;  %v7580_v45 = vld [vmem:[#allocation2 + $0x87] sm:$0xff]  ;;  %v10112_v57 = vsel %vm332_vm0, %v7582_v21, %v13490_v6  ;;  %v7583_v1 = vld [vmem:[#allocation2 + $0xaf] sm:$0xff] }
 0x40c   : > { %13482 = vst [vmem:[#allocation6_spill] sm:$0xff] %v10082_v14  ;;  %v10100_v14 = vsel %vm332_vm0, %v7579_v39, %v13487_v60  ;;  %v10104_v7 = vsel %vm332_vm0, %v7580_v45, %v13488_v59  ;;  %3561 = vrot.lane.b32.xlu0 %v2685_v41, %s7664_s16  ;;  %v13491_v39 = vld [vmem:[#allocation22_spill] sm:$0xff]  ;;  %v13492_v60 = vld [vmem:[#allocation25_spill] sm:$0xff]  ;;  %v2718_v41 = vld [vmem:[#allocation3 + $0x111] sm:$0xff] }
 0x40d   : > { %3563 = vrot.lane.b32.xlu1 %v2686_v62, %s7664_s16  ;;  %v10118_v59 = vsel %vm332_vm0, %v7583_v1, %v13491_v39  ;;  %v7584_v45 = vld [vmem:[#allocation2 + $0xc7] sm:$0xff]  ;;  %v7585_v42 = vld [vmem:[#allocation2 + $0xcf] sm:$0xff] }
 0x40e   : > { %v10122_v46 = vsel %vm332_vm0, %v7584_v45, %v13492_v60  ;;  %v10126_v6 = vsel %vm332_vm0, %v7585_v42, %v13493_v61  ;;  %v7586_v21 = vld [vmem:[#allocation2 + $0xe7] sm:$0xff]  ;;  %v10150_v48 = vpop.permute.xlu0 %3537 }
 0x40f   : > { %v10130_v62 = vsel %vm332_vm0, %v7586_v21, %v13494_v22  ;;  %v13495_v1 = vld [vmem:[#allocation30_spill] sm:$0xff]  ;;  %v13496_v45 = vld [vmem:[#allocation33_spill] sm:$0xff]  ;;  %v10148_v12 = vpop.permute.xlu1 %3539  ;;  %13500 = vst [vmem:[#allocation11_spill] sm:$0xff] %v10150_v48 }
 0x410   : > { %v10134_v39 = vsel %vm332_vm0, %v7587_v47, %v13495_v1  ;;  %v10138_v60 = vsel %vm332_vm0, %v7588_v5, %v13496_v45  ;;  %v13497_v61 = vld [vmem:[#allocation34_spill] sm:$0xff]  ;;  %v13498_v22 = vld [vmem:[#allocation37_spill] sm:$0xff]  ;;  %13499 = vst [vmem:[#allocation10_spill] sm:$0xff] %v10148_v12  ;;  %3689 = vrot.lane.b32.xlu0 %v2717_v29, %s7665_s17 }
 0x411   : > { %v10142_v42 = vsel %vm332_vm0, %v7589_v25, %v13497_v61  ;;  %v10146_v21 = vsel %vm332_vm0, %v7590_v26, %v13498_v22  ;;  %v7591_v47 = vld [vmem:[#allocation2 + $0x12f] sm:$0xff]  ;;  %v7592_v5 = vld [vmem:[#allocation2 + $0x147] sm:$0xff]  ;;  %3691 = vrot.lane.b32.xlu1 %v2718_v41, %s7665_s17 }
 0x412   : > { %v13501_v1 = vld [vmem:[#allocation38_spill] sm:$0xff]  ;;  %v13502_v45 = vld [vmem:[#allocation41_spill] sm:$0xff]  ;;  %v2688_v41 = vld [vmem:[#allocation3 + $0x130] sm:$0xff] }
 0x413   : > { %v10154_v58 = vsel %vm332_vm0, %v7591_v47, %v13501_v1  ;;  %v10158_v34 = vsel %vm332_vm0, %v7592_v5, %v13502_v45  ;;  %v7593_v25 = vld [vmem:[#allocation2 + $0x14f] sm:$0xff]  ;;  %v7594_v26 = vld [vmem:[#allocation2 + $0x167] sm:$0xff] }
 0x414   : > { %v13503_v61 = vld [vmem:[#allocation42_spill] sm:$0xff]  ;;  %v13504_v22 = vld [vmem:[#allocation45_spill] sm:$0xff]  ;;  %v13507_v45 = vld [vmem:[#allocation279_spill] sm:$0xff] }
 0x415   : > { %v10162_v3 = vsel %vm332_vm0, %v7593_v25, %v13503_v61  ;;  %v10166_v12 = vsel %vm332_vm0, %v7594_v26, %v13504_v22  ;;  %v7595_v48 = vld [vmem:[#allocation2 + $0x16f] sm:$0xff]  ;;  %v7596_v1 = vld [vmem:[#allocation2 + $0x187] sm:$0xff]  ;;  %v3777_v25 = vsel %vm332_vm0, %v13392_v56, %v13507_v45  ;;  %3567 = vrot.lane.b32.xlu1 %v2688_v41, %s7664_s16 }
 0x416   : > { %v10170_v47 = vsel %vm332_vm0, %v7595_v48, %v13505_v32  ;;  %v10174_v5 = vsel %vm332_vm0, %v7596_v1, %v13506_v51  ;;  %v7597_v61 = vld [vmem:[#allocation2 + $0x18f] sm:$0xff]  ;;  %v7598_v48 = vld [vmem:[#allocation2 + $0x1a7] sm:$0xff]  ;;  %v3809_v56 = vsel %vm2217_vm2, %v3777_v25, %v9519_v33 }
 0x417   : > { %v13508_v26 = vld [vmem:[#allocation50_spill] sm:$0xff]  ;;  %v13509_v32 = vld [vmem:[#allocation53_spill] sm:$0xff] }
 0x418   : > { %v10183_v22 = vsel %vm332_vm0, %v7597_v61, %v13508_v26  ;;  %v10187_v35 = vsel %vm332_vm0, %v7598_v48, %v13509_v32  ;;  %v7599_v51 = vld [vmem:[#allocation2 + $0x1af] sm:$0xff]  ;;  %v7600_v45 = vld [vmem:[#allocation2 + $0x1c7] sm:$0xff]  ;;  %v3841_v32 = vsel %vm2250_vm3, %v3809_v56, %v9648_v63 }
 0x419   : > { %13510 = vst [vmem:[#allocation13_spill] sm:$0xff] %v10187_v35  ;;  %v13511_v1 = vld [vmem:[#allocation54_spill] sm:$0xff]  ;;  %v10197_v61 = vsel %vm332_vm0, %v7600_v45, %v13513_v37  ;;  %v13516_v25 = vld [vmem:[#allocation61_spill] sm:$0xff] }
 0x41a   : > { %v10191_v27 = vsel %vm332_vm0, %v7599_v51, %v13511_v1  ;;  %v2687_v29 = vld [vmem:[#allocation3 + $0x128] sm:$0xff]  ;;  %v3570_v51 = vpop.permute.xlu1 %3569  ;;  %v10205_v1 = vpop.permute.xlu0 %3541 }
 0x41b   : > { %13512 = vst [vmem:[#allocation14_spill] sm:$0xff] %v10191_v27  ;;  %v7601_v26 = vld [vmem:[#allocation2 + $0x1cf] sm:$0xff]  ;;  %13515 = vst [vmem:[#allocation15_spill] sm:$0xff] %v10205_v1  ;;  %v7602_v33 = vld [vmem:[#allocation2 + $0x1e7] sm:$0xff]  ;;  %3565 = vrot.lane.b32.xlu0 %v2687_v29, %s7664_s16 }
 0x41c   : > { %v10201_v48 = vsel %vm332_vm0, %v7601_v26, %v13514_v11  ;;  %v10209_v27 = vsel %vm332_vm0, %v7602_v33, %v13516_v25  ;;  %v7603_v35 = vld [vmem:[#allocation2 + $0x1ef] sm:$0xff]  ;;  %v3873_v11 = vsel %vm2283_vm4, %v3841_v32, %v9781_v43  ;;  %v13518_v26 = vld [vmem:[#allocation65_spill] sm:$0xff] }
 0x41d   : > { %v13517_v37 = vld [vmem:[#allocation62_spill] sm:$0xff]  ;;  %v10220_v63 = vsel %vm2217_vm2, %v10068_v10, %v13518_v26  ;;  %v3905_v25 = vsel %vm2316_vm5, %v3873_v11, %v9919_v23 }
 0x41e   : > { %v10213_v45 = vsel %vm332_vm0, %v7603_v35, %v13517_v37  ;;  %v7604_v56 = vld [vmem:[#allocation3 + $0x10f] sm:$0xff]  ;;  %v3937_v32 = vsel %vm2349_vm6, %v3905_v25, %v10026_v8  ;;  %v3698_v29 = vpop.permute.xlu1 %3697  ;;  %v3572_v11 = vpop.permute.xlu0 %3571  ;;  %v7605_v25 = vld [vmem:[#allocation3 + $0x127] sm:$0xff] }
 0x41f   : > { %v13519_v1 = vld [vmem:[#allocation278_spill] sm:$0xff]  ;;  %v3969_v41 = vsel %vm2382_vm7, %v3937_v32, %v3570_v51  ;;  %v13526_v32 = vld [vmem:[#allocation73_spill] sm:$0xff] }
 0x420   : > { %v3778_v33 = vsel %vm332_vm0, %v7604_v56, %v13519_v1  ;;  %v13520_v35 = vld [vmem:[#allocation66_spill] sm:$0xff]  ;;  %v2720_v1 = vld [vmem:[#allocation3 + $0x131] sm:$0xff] }
 0x421   : > { %v10231_v43 = vsel %vm2217_vm2, %v10076_v4, %v13520_v35  ;;  %v3810_v10 = vsel %vm2217_vm2, %v3778_v33, %v9517_v28  ;;  %v2719_v37 = vld [vmem:[#allocation3 + $0x129] sm:$0xff]  ;;  %v13521_v4 = vld [vmem:[#allocation69_spill] sm:$0xff]  ;;  %3695 = vrot.lane.b32.xlu1 %v2720_v1, %s7665_s17 }
 0x422   : > { %v3842_v23 = vsel %vm2250_vm3, %v3810_v10, %v9646_v55  ;;  %v10243_v26 = vsel %vm2217_vm2, %v10072_v2, %v13521_v4  ;;  %v13522_v28 = vld [vmem:[#allocation70_spill] sm:$0xff]  ;;  %v4001_v55 = vsel %vm2415_vm8, %v3969_v41, %v3698_v29  ;;  %v13523_v33 = vld [vmem:[#allocation71_spill] sm:$0xff]  ;;  %3693 = vrot.lane.b32.xlu0 %v2719_v37, %s7665_s17  ;;  %v3574_v29 = vpop.permute.xlu1 %3573  ;;  %v3700_v4 = vpop.permute.xlu0 %3699 }
 0x423   : > { %v10248_v8 = vsel %vm2217_vm2, %v10080_v20, %v13522_v28  ;;  %v3874_v56 = vsel %vm2283_vm4, %v3842_v23, %v9779_v30  ;;  %v10256_v51 = vsel %vm2217_vm2, %v10088_v53, %v13523_v33  ;;  %v13524_v35 = vld [vmem:[#allocation283_spill] sm:$0xff]  ;;  %v13525_v20 = vld [vmem:[#allocation72_spill] sm:$0xff]  ;;  %v10272_v53 = vsel %vm2217_vm2, %v10096_v9, %v13526_v32  ;;  %7408 = vmatprep.mubr.msk.f32.mxu1 %vm4027_vm9, %v4001_v55  ;;  %v13527_v1 = vld [vmem:[#allocation74_spill] sm:$0xff] }
 0x424   : > { %v3779_v2 = vsel %vm332_vm0, %v7605_v25, %v13524_v35  ;;  %v3906_v10 = vsel %vm2316_vm5, %v3874_v56, %v9917_v0  ;;  %v10267_v30 = vsel %vm2217_vm2, %v10092_v44, %v13525_v20  ;;  %v10282_v37 = vsel %vm2217_vm2, %v10100_v14, %v13527_v1  ;;  %v13528_v44 = vld [vmem:[#allocation75_spill] sm:$0xff]  ;;  %v13530_v56 = vld [vmem:[#allocation77_spill] sm:$0xff]  ;;  %v13533_v35 = vld [vmem:[#allocation282_spill] sm:$0xff] }
 0x425   : > { %v3811_v23 = vsel %vm2217_vm2, %v3779_v2, %v9525_v19  ;;  %v3938_v0 = vsel %vm2349_vm6, %v3906_v10, %v10024_v24  ;;  %v10287_v41 = vsel %vm2217_vm2, %v10104_v7, %v13528_v44  ;;  %v13529_v24 = vld [vmem:[#allocation76_spill] sm:$0xff]  ;;  %v10300_v14 = vsel %vm2217_vm2, %v10112_v57, %v13530_v56  ;;  %v7606_v57 = vld [vmem:[#allocation3 + $0x12f] sm:$0xff]  ;;  %v7607_v56 = vld [vmem:[#allocation3 + $0x147] sm:$0xff] }
 0x426   : > { %v3843_v9 = vsel %vm2250_vm3, %v3811_v23, %v9656_v31  ;;  %v3970_v19 = vsel %vm2382_vm7, %v3938_v0, %v3572_v11  ;;  %v10295_v28 = vsel %vm2217_vm2, %v10108_v16, %v13529_v24  ;;  %v4020_v31 = vld [vmem:[%s12874_s2 + $0x18] sm:$0xff]  ;;  %v13531_v11 = vld [vmem:[#allocation78_spill] sm:$0xff]  ;;  %v13532_v16 = vld [vmem:[#allocation79_spill] sm:$0xff]  ;;  %v3576_v44 = vpop.permute.xlu0 %3575 }
 0x427   : > { %v3875_v7 = vsel %vm2283_vm4, %v3843_v9, %v9789_v49  ;;  %v4002_v55 = vsel %vm2415_vm8, %v3970_v19, %v3700_v4  ;;  %v10311_v33 = vsel %vm2217_vm2, %v10118_v59, %v13531_v11  ;;  %v10316_v25 = vsel %vm2217_vm2, %v10122_v46, %v13532_v16  ;;  %v13534_v10 = vld [vmem:[#allocation80_spill] sm:$0xff]  ;;  %v13535_v59 = vld [vmem:[#allocation81_spill] sm:$0xff]  ;;  %v13540_v24 = vld [vmem:[#allocation86_spill] sm:$0xff] }
 0x428   : > { %v3780_v49 = vsel %vm332_vm0, %v7606_v57, %v13533_v35  ;;  %v3907_v2 = vsel %vm2316_vm5, %v3875_v7, %v9925_v36  ;;  %7409 = vmatmul.mubr.msk.f32.vlgmr.msra.gmra.mxu1 %vm4027_vm9, %v4002_v55  ;;  %v10326_v20 = vsel %vm2217_vm2, %v10126_v6, %v13534_v10  ;;  %v10331_v32 = vsel %vm2217_vm2, %v10130_v62, %v13535_v59  ;;  %v4019_v36 = vld [vmem:[%s12874_s2 + $0x10] sm:$0xff]  ;;  %v13536_v6 = vld [vmem:[#allocation82_spill] sm:$0xff]  ;;  %v13538_v9 = vld [vmem:[#allocation84_spill] sm:$0xff] }
 0x429   : > { %v3812_v46 = vsel %vm2217_vm2, %v3780_v49, %v9523_v13  ;;  %v3939_v23 = vsel %vm2349_vm6, %v3907_v2, %v10032_v15  ;;  %7433 = vmatpush3.msk.msra.mxu1 %vm4124_vm1, %v9968_v18  ;;  %v10345_v0 = vsel %vm2217_vm2, %v10134_v39, %v13536_v6  ;;  %v13537_v62 = vld [vmem:[#allocation83_spill] sm:$0xff]  ;;  %v3702_v18 = vpop.permute.xlu1 %3701  ;;  %v10358_v19 = vsel %vm2217_vm2, %v10142_v42, %v13538_v9  ;;  %v13539_v39 = vld [vmem:[#allocation85_spill] sm:$0xff]  ;;  %v13543_v11 = vld [vmem:[#allocation88_spill] sm:$0xff] }
 0x42a   : > { %v10350_v1 = vsel %vm2217_vm2, %v10138_v60, %v13537_v62  ;;  %v3844_v13 = vsel %vm2250_vm3, %v3812_v46, %v9654_v40  ;;  %v3971_v15 = vsel %vm2382_vm7, %v3939_v23, %v3574_v29  ;;  %7434 = vmatprep.subr.mxu1 %v4020_v31  ;;  %v10363_v4 = vsel %vm2217_vm2, %v10146_v21, %v13539_v39  ;;  %v4018_v29 = vld [vmem:[%s12874_s2 + $0x8] sm:$0xff]  ;;  %v13541_v7 = vld [vmem:[#allocation287_spill] sm:$0xff]  ;;  %v13544_v35 = vld [vmem:[#allocation89_spill] sm:$0xff]  ;;  %v3704_v10 = vpop.permute.xlu0 %3703 }
 0x42b   : > { %v3876_v60 = vsel %vm2283_vm4, %v3844_v13, %v9787_v50  ;;  %v4003_v40 = vsel %vm2415_vm8, %v3971_v15, %v3702_v18  ;;  %7435 = vmatpush3.msra.mxu1 %v4020_v31  ;;  %v10374_v42 = vsel %vm2217_vm2, %v10154_v58, %v13540_v24  ;;  %v3781_v21 = vsel %vm332_vm0, %v7607_v56, %v13541_v7  ;;  %v13542_v50 = vld [vmem:[#allocation87_spill] sm:$0xff]  ;;  %v13545_v49 = vld [vmem:[#allocation90_spill] sm:$0xff]  ;;  %v13549_v6 = vld [vmem:[#allocation93_spill] sm:$0xff] }
 0x42c   : > { %v3908_v55 = vsel %vm2316_vm5, %v3876_v60, %v9923_v17  ;;  %7411 = vmatprep.mubr.msk.f32.mxu1 %vm4027_vm9, %v4003_v40  ;;  %7436 = vmatprep.subr.mxu1 %v4019_v36  ;;  %v10384_v31 = vsel %vm2217_vm2, %v10158_v34, %v13542_v50  ;;  %v10389_v58 = vsel %vm2217_vm2, %v10162_v3, %v13543_v11  ;;  %v4017_v17 = vld [vmem:[%s12874_s2] sm:$0xff]  ;;  %v13546_v59 = vld [vmem:[#allocation91_spill] sm:$0xff]  ;;  %v13551_v18 = vld [vmem:[#allocation286_spill] sm:$0xff] }
 0x42d   : > { %v3813_v16 = vsel %vm2217_vm2, %v3781_v21, %v9531_v54  ;;  %v3940_v57 = vsel %vm2349_vm6, %v3908_v55, %v10030_v38  ;;  %7437 = vmatpush3.msra.mxu1 %v4019_v36  ;;  %v10401_v34 = vsel %vm2217_vm2, %v10166_v12, %v13544_v35  ;;  %v10406_v3 = vsel %vm2217_vm2, %v10170_v47, %v13545_v49  ;;  %v3578_v2 = vpop.permute.xlu1 %3577  ;;  %v13547_v12 = vld [vmem:[#allocation92_spill] sm:$0xff]  ;;  %v13548_v47 = vld [vmem:[#allocation281_spill] sm:$0xff]  ;;  %v7608_v15 = vld [vmem:[#allocation3 + $0x14f] sm:$0xff] }
 0x42e   : > { %v3845_v54 = vsel %vm2250_vm3, %v3813_v16, %v9664_v52  ;;  %v3972_v38 = vsel %vm2382_vm7, %v3940_v57, %v3576_v44  ;;  %7438 = vmatprep.subr.mxu1 %v4018_v29  ;;  %v10414_v46 = vsel %vm2217_vm2, %v10174_v5, %v13546_v59  ;;  %v10419_v23 = vsel %vm2217_vm2, %v10183_v22, %v13547_v12  ;;  %v13550_v62 = vld [vmem:[#allocation13_spill] sm:$0xff]  ;;  %v13552_v44 = vld [vmem:[#allocation392_spill] sm:$0xff]  ;;  %v13553_v22 = vld [vmem:[#allocation94_spill] sm:$0xff] }
 0x42f   : > { %v3877_v36 = vsel %vm2283_vm4, %v3845_v54, %v13548_v47  ;;  %v4004_v52 = vsel %vm2415_vm8, %v3972_v38, %v3704_v10  ;;  %7439 = vmatpush3.msra.mxu1 %v4018_v29  ;;  %v10427_v13 = vsel %vm2217_vm2, %v13550_v62, %v13549_v6  ;;  %v3782_v5 = vsel %vm332_vm0, %v7608_v15, %v13551_v18  ;;  %v13554_v39 = vld [vmem:[#allocation14_spill] sm:$0xff]  ;;  %v13555_v40 = vld [vmem:[#allocation95_spill] sm:$0xff]  ;;  %v13557_v7 = vld [vmem:[#allocation420_spill] sm:$0xff]  ;;  %v3580_v54 = vpop.permute.xlu0 %3579 }
 0x430   : > { %v3909_v9 = vsel %vm2316_vm5, %v3877_v36, %v13552_v44  ;;  %7412 = vmatmul.mubr.msk.f32.gmra.mxu1 %vm4027_vm9, %v4004_v52  ;;  %7440 = vmatprep.subr.mxu1 %v4017_v17  ;;  %v10437_v60 = vsel %vm2217_vm2, %v13554_v39, %v13553_v22  ;;  %v10442_v29 = vsel %vm2217_vm2, %v10197_v61, %v13555_v40  ;;  %v13556_v24 = vld [vmem:[#allocation335_spill] sm:$0xff]  ;;  %v13558_v55 = vld [vmem:[#allocation96_spill] sm:$0xff]  ;;  %v13559_v11 = vld [vmem:[#allocation97_spill] sm:$0xff] }
 0x431   : > { %v3814_v56 = vsel %vm2217_vm2, %v3782_v5, %v13556_v24  ;;  %v3941_v21 = vsel %vm2349_vm6, %v3909_v9, %v13557_v7  ;;  %7441 = vmatpush3.msra.mxu1 %v4017_v17  ;;  %v10451_v50 = vsel %vm2217_vm2, %v10201_v48, %v13558_v55  ;;  %v10456_v16 = vsel %vm2217_vm2, %v10209_v27, %v13559_v11  ;;  %v13560_v57 = vld [vmem:[#allocation362_spill] sm:$0xff]  ;;  %v3706_v49 = vpop.permute.xlu1 %3705  ;;  %v13561_v38 = vld [vmem:[#allocation99_spill] sm:$0xff]  ;;  %v13562_v10 = vld [vmem:[#allocation100_spill] sm:$0xff] }
 0x432   : > { %v3846_v61 = vsel %vm2250_vm3, %v3814_v56, %v13560_v57  ;;  %v3973_v35 = vsel %vm2382_vm7, %v3941_v21, %v3578_v2  ;;  %v10464_v17 = vsel %vm2250_vm3, %v10231_v43, %v13561_v38  ;;  %v10469_v48 = vsel %vm2250_vm3, %v10220_v63, %v13562_v10  ;;  %v13563_v59 = vld [vmem:[#allocation280_spill] sm:$0xff]  ;;  %v13564_v47 = vld [vmem:[#allocation101_spill] sm:$0xff]  ;;  %v13565_v36 = vld [vmem:[#allocation102_spill] sm:$0xff] }
 0x433   : > { %v3878_v27 = vsel %vm2283_vm4, %v3846_v61, %v13563_v59  ;;  %v4005_v12 = vsel %vm2415_vm8, %v3973_v35, %v3706_v49  ;;  %v10477_v2 = vsel %vm2250_vm3, %v10248_v8, %v13564_v47  ;;  %v10482_v43 = vsel %vm2250_vm3, %v10243_v26, %v13565_v36  ;;  %v7609_v52 = vld [vmem:[#allocation3 + $0x167] sm:$0xff]  ;;  %v13566_v6 = vld [vmem:[#allocation291_spill] sm:$0xff]  ;;  %v13569_v8 = vld [vmem:[#allocation104_spill] sm:$0xff]  ;;  %v3708_v11 = vpop.permute.xlu0 %3707 }
 0x434   : > { %v3783_v63 = vsel %vm332_vm0, %v7609_v52, %v13566_v6  ;;  %v13567_v62 = vld [vmem:[#allocation391_spill] sm:$0xff]  ;;  %7414 = vmatprep.mubr.msk.f32.mxu1 %vm4027_vm9, %v4005_v12  ;;  %v10497_v44 = vsel %vm2250_vm3, %v10256_v51, %v13569_v8  ;;  %v13570_v26 = vld [vmem:[#allocation337_spill] sm:$0xff]  ;;  %v13573_v56 = vld [vmem:[#allocation106_spill] sm:$0xff] }
 0x435   : > { %v3910_v15 = vsel %vm2316_vm5, %v3878_v27, %v13567_v62  ;;  %v13568_v18 = vld [vmem:[#allocation103_spill] sm:$0xff]  ;;  %v3815_v9 = vsel %vm2217_vm2, %v3783_v63, %v13570_v26  ;;  %v13572_v40 = vld [vmem:[#allocation105_spill] sm:$0xff]  ;;  %v13574_v7 = vld [vmem:[#allocation364_spill] sm:$0xff]  ;;  %v3582_v55 = vpop.permute.xlu1 %3581 }
 0x436   : > { %v10492_v5 = vsel %vm2250_vm3, %v10267_v30, %v13568_v18  ;;  %v13571_v22 = vld [vmem:[#allocation419_spill] sm:$0xff]  ;;  %v10506_v24 = vsel %vm2250_vm3, %v10282_v37, %v13572_v40  ;;  %v10511_v30 = vsel %vm2250_vm3, %v10272_v53, %v13573_v56  ;;  %v3847_v51 = vsel %vm2250_vm3, %v3815_v9, %v13574_v7  ;;  %v13576_v35 = vld [vmem:[#allocation108_spill] sm:$0xff]  ;;  %v13577_v49 = vld [vmem:[#allocation285_spill] sm:$0xff] }
 0x437   : > { %v3942_v39 = vsel %vm2349_vm6, %v3910_v15, %v13571_v22  ;;  %v13575_v57 = vld [vmem:[#allocation107_spill] sm:$0xff]  ;;  %v10524_v37 = vsel %vm2250_vm3, %v10287_v41, %v13576_v35  ;;  %v3879_v53 = vsel %vm2283_vm4, %v3847_v51, %v13577_v49  ;;  %v13578_v10 = vld [vmem:[#allocation109_spill] sm:$0xff]  ;;  %v13579_v59 = vld [vmem:[#allocation110_spill] sm:$0xff]  ;;  %v3584_v56 = vpop.permute.xlu0 %3583 }
 0x438   : > { %v3974_v21 = vsel %vm2382_vm7, %v3942_v39, %v3580_v54  ;;  %v10519_v61 = vsel %vm2250_vm3, %v10295_v28, %v13575_v57  ;;  %v10532_v54 = vsel %vm2250_vm3, %v10311_v33, %v13578_v10  ;;  %v10537_v28 = vsel %vm2250_vm3, %v10300_v14, %v13579_v59  ;;  %v7610_v27 = vld [vmem:[#allocation3 + $0x16f] sm:$0xff]  ;;  %v13583_v33 = vld [vmem:[#allocation112_spill] sm:$0xff]  ;;  %v13586_v8 = vld [vmem:[#allocation113_spill] sm:$0xff] }
 0x439   : > { %v4006_v38 = vsel %vm2415_vm8, %v3974_v21, %v3708_v11  ;;  %v13580_v12 = vld [vmem:[#allocation290_spill] sm:$0xff]  ;;  %v13582_v52 = vld [vmem:[#allocation111_spill] sm:$0xff]  ;;  %v10552_v63 = vsel %vm2250_vm3, %v10316_v25, %v13583_v33  ;;  %v13584_v14 = vld [vmem:[#allocation336_spill] sm:$0xff]  ;;  %v10561_v26 = vsel %vm2250_vm3, %v10345_v0, %v13586_v8  ;;  %v3710_v40 = vpop.permute.xlu1 %3709 }
 0x43a   : > { %v3784_v41 = vsel %vm332_vm0, %v7610_v27, %v13580_v12  ;;  %v13581_v47 = vld [vmem:[#allocation394_spill] sm:$0xff]  ;;  %7415 = vmatmul.mubr.msk.f32.gmra.mxu1 %vm4027_vm9, %v4006_v38  ;;  %v10547_v6 = vsel %vm2250_vm3, %v10326_v20, %v13582_v52  ;;  %v13588_v22 = vld [vmem:[#allocation363_spill] sm:$0xff]  ;;  %v13590_v21 = vld [vmem:[#allocation116_spill] sm:$0xff] }
 0x43b   : > { %v3911_v36 = vsel %vm2316_vm5, %v3879_v53, %v13581_v47  ;;  %v3816_v62 = vsel %vm2217_vm2, %v3784_v41, %v13584_v14  ;;  %v13585_v15 = vld [vmem:[#allocation422_spill] sm:$0xff]  ;;  %v13589_v7 = vld [vmem:[#allocation115_spill] sm:$0xff]  ;;  %v10579_v0 = vsel %vm2250_vm3, %v10350_v1, %v13590_v21  ;;  %v13591_v11 = vld [vmem:[#allocation284_spill] sm:$0xff] }
 0x43c   : > { %v3943_v18 = vsel %vm2349_vm6, %v3911_v36, %v13585_v15  ;;  %v13587_v9 = vld [vmem:[#allocation114_spill] sm:$0xff]  ;;  %v3848_v25 = vsel %vm2250_vm3, %v3816_v62, %v13588_v22  ;;  %v10574_v51 = vsel %vm2250_vm3, %v10358_v19, %v13589_v7  ;;  %v13592_v35 = vld [vmem:[#allocation117_spill] sm:$0xff]  ;;  %v13594_v38 = vld [vmem:[#allocation295_spill] sm:$0xff] }
 0x43d   : > { %v10566_v20 = vsel %vm2250_vm3, %v10331_v32, %v13587_v9  ;;  %v3975_v39 = vsel %vm2382_vm7, %v3943_v18, %v3582_v55  ;;  %v3880_v32 = vsel %vm2283_vm4, %v3848_v25, %v13591_v11  ;;  %v10587_v55 = vsel %vm2250_vm3, %v10374_v42, %v13592_v35  ;;  %v13593_v49 = vld [vmem:[#allocation118_spill] sm:$0xff]  ;;  %v13595_v10 = vld [vmem:[#allocation393_spill] sm:$0xff]  ;;  %v13596_v27 = vld [vmem:[#allocation119_spill] sm:$0xff]  ;;  %v3586_v8 = vpop.permute.xlu1 %3585  ;;  %v3712_v9 = vpop.permute.xlu0 %3711 }
 0x43e   : > { %v4007_v57 = vsel %vm2415_vm8, %v3975_v39, %v3710_v40  ;;  %v10592_v19 = vsel %vm2250_vm3, %v10363_v4, %v13593_v49  ;;  %v7611_v53 = vld [vmem:[#allocation3 + $0x187] sm:$0xff]  ;;  %v3912_v59 = vsel %vm2316_vm5, %v3880_v32, %v13595_v10  ;;  %v10602_v12 = vsel %vm2250_vm3, %v10389_v58, %v13596_v27  ;;  %v13597_v42 = vld [vmem:[#allocation120_spill] sm:$0xff]  ;;  %v13598_v4 = vld [vmem:[#allocation339_spill] sm:$0xff] }
 0x43f   : > { %v3785_v1 = vsel %vm332_vm0, %v7611_v53, %v13594_v38  ;;  %7417 = vmatprep.mubr.msk.f32.mxu1 %vm4027_vm9, %v4007_v57  ;;  %v10607_v41 = vsel %vm2250_vm3, %v10384_v31, %v13597_v42  ;;  %v13599_v36 = vld [vmem:[#allocation421_spill] sm:$0xff]  ;;  %v13601_v62 = vld [vmem:[#allocation122_spill] sm:$0xff]  ;;  %v13603_v22 = vld [vmem:[#allocation123_spill] sm:$0xff] }
 0x440   : > { %v3817_v47 = vsel %vm2217_vm2, %v3785_v1, %v13598_v4  ;;  %v3944_v52 = vsel %vm2349_vm6, %v3912_v59, %v13599_v36  ;;  %v13600_v33 = vld [vmem:[#allocation121_spill] sm:$0xff]  ;;  %v10621_v58 = vsel %vm2250_vm3, %v10401_v34, %v13601_v62  ;;  %v13602_v15 = vld [vmem:[#allocation366_spill] sm:$0xff]  ;;  %v10629_v25 = vsel %vm2250_vm3, %v10419_v23, %v13603_v22  ;;  %v13604_v39 = vld [vmem:[#allocation124_spill] sm:$0xff] }
 0x441   : > { %v10616_v14 = vsel %vm2250_vm3, %v10406_v3, %v13600_v33  ;;  %v3849_v31 = vsel %vm2250_vm3, %v3817_v47, %v13602_v15  ;;  %v3976_v18 = vsel %vm2382_vm7, %v3944_v52, %v3584_v56  ;;  %v10634_v3 = vsel %vm2250_vm3, %v10414_v46, %v13604_v39  ;;  %v13605_v40 = vld [vmem:[#allocation289_spill] sm:$0xff]  ;;  %v13607_v11 = vld [vmem:[#allocation126_spill] sm:$0xff]  ;;  %v13609_v35 = vld [vmem:[#allocation396_spill] sm:$0xff]  ;;  %v3714_v33 = vpop.permute.xlu1 %3713  ;;  %v3588_v62 = vpop.permute.xlu0 %3587 }
 0x442   : > { %v3881_v34 = vsel %vm2283_vm4, %v3849_v31, %v13605_v40  ;;  %v4008_v7 = vsel %vm2415_vm8, %v3976_v18, %v3712_v9  ;;  %v13606_v21 = vld [vmem:[#allocation125_spill] sm:$0xff]  ;;  %v10647_v23 = vsel %vm2250_vm3, %v10427_v13, %v13607_v11  ;;  %v7612_v32 = vld [vmem:[#allocation3 + $0x18f] sm:$0xff]  ;;  %v13613_v59 = vld [vmem:[#allocation424_spill] sm:$0xff] }
 0x443   : > { %v10642_v56 = vsel %vm2250_vm3, %v10437_v60, %v13606_v21  ;;  %v13608_v57 = vld [vmem:[#allocation294_spill] sm:$0xff]  ;;  %v3913_v49 = vsel %vm2316_vm5, %v3881_v34, %v13609_v35  ;;  %7418 = vmatmul.mubr.msk.f32.gmra.mxu1 %vm4027_vm9, %v4008_v7  ;;  %v13610_v53 = vld [vmem:[#allocation127_spill] sm:$0xff]  ;;  %v13611_v60 = vld [vmem:[#allocation128_spill] sm:$0xff] }
 0x444   : > { %v3786_v46 = vsel %vm332_vm0, %v7612_v32, %v13608_v57  ;;  %v10657_v38 = vsel %vm2250_vm3, %v10451_v50, %v13610_v53  ;;  %v10662_v1 = vsel %vm2250_vm3, %v10442_v29, %v13611_v60  ;;  %v13612_v13 = vld [vmem:[#allocation338_spill] sm:$0xff]  ;;  %v3945_v27 = vsel %vm2349_vm6, %v3913_v49, %v13613_v59  ;;  %v13615_v47 = vld [vmem:[#allocation5_spill] sm:$0xff]  ;;  %v13617_v15 = vld [vmem:[#allocation131_spill] sm:$0xff] }
 0x445   : > { %v3818_v10 = vsel %vm2217_vm2, %v3786_v46, %v13612_v13  ;;  %v13614_v42 = vld [vmem:[#allocation130_spill] sm:$0xff]  ;;  %v10676_v50 = vsel %vm2283_vm4, %v10464_v17, %v13615_v47  ;;  %v13616_v36 = vld [vmem:[#allocation365_spill] sm:$0xff]  ;;  %v3977_v52 = vsel %vm2382_vm7, %v3945_v27, %v3586_v8  ;;  %v10684_v31 = vsel %vm2283_vm4, %v10469_v48, %v13617_v15  ;;  %v13619_v9 = vld [vmem:[#allocation288_spill] sm:$0xff]  ;;  %v3716_v47 = vpop.permute.xlu0 %3715 }
 0x446   : > { %v10671_v4 = vsel %vm2250_vm3, %v10456_v16, %v13614_v42  ;;  %v3850_v29 = vsel %vm2250_vm3, %v3818_v10, %v13616_v36  ;;  %v13618_v18 = vld [vmem:[#allocation9_spill] sm:$0xff]  ;;  %v4009_v22 = vsel %vm2415_vm8, %v3977_v52, %v3714_v33  ;;  %v13620_v39 = vld [vmem:[#allocation8_spill] sm:$0xff]  ;;  %v13622_v7 = vld [vmem:[#allocation299_spill] sm:$0xff]  ;;  %v3590_v42 = vpop.permute.xlu1 %3589 }
 0x447   : > { %v10689_v16 = vsel %vm2283_vm4, %v10477_v2, %v13618_v18  ;;  %v3882_v17 = vsel %vm2283_vm4, %v3850_v29, %v13619_v9  ;;  %v10697_v8 = vsel %vm2283_vm4, %v10482_v43, %v13620_v39  ;;  %v13621_v40 = vld [vmem:[#allocation12_spill] sm:$0xff]  ;;  %v7613_v34 = vld [vmem:[#allocation3 + $0x1a7] sm:$0xff]  ;;  %v13623_v21 = vld [vmem:[#allocation395_spill] sm:$0xff]  ;;  %7420 = vmatprep.mubr.msk.f32.mxu1 %vm4027_vm9, %v4009_v22 }
 0x448   : > { %v10702_v48 = vsel %vm2283_vm4, %v10492_v5, %v13621_v40  ;;  %v3787_v2 = vsel %vm332_vm0, %v7613_v34, %v13622_v7  ;;  %v3914_v11 = vsel %vm2316_vm5, %v3882_v17, %v13623_v21  ;;  %v13624_v32 = vld [vmem:[#allocation132_spill] sm:$0xff]  ;;  %v13625_v43 = vld [vmem:[#allocation133_spill] sm:$0xff]  ;;  %v13627_v49 = vld [vmem:[#allocation423_spill] sm:$0xff] }
 0x449   : > { %v10712_v57 = vsel %vm2283_vm4, %v10497_v44, %v13624_v32  ;;  %v10717_v46 = vsel %vm2283_vm4, %v10506_v24, %v13625_v43  ;;  %v13626_v5 = vld [vmem:[#allocation341_spill] sm:$0xff]  ;;  %v3946_v53 = vsel %vm2349_vm6, %v3914_v11, %v13627_v49  ;;  %v13628_v60 = vld [vmem:[#allocation134_spill] sm:$0xff]  ;;  %v13629_v10 = vld [vmem:[#allocation20_spill] sm:$0xff] }
 0x44a   : > { %v3819_v35 = vsel %vm2217_vm2, %v3787_v2, %v13626_v5  ;;  %v10726_v13 = vsel %vm2283_vm4, %v10511_v30, %v13628_v60  ;;  %v10731_v44 = vsel %vm2283_vm4, %v10519_v61, %v13629_v10  ;;  %v13630_v59 = vld [vmem:[#allocation368_spill] sm:$0xff]  ;;  %v3978_v27 = vsel %vm2382_vm7, %v3946_v53, %v3588_v62  ;;  %v13631_v36 = vld [vmem:[#allocation19_spill] sm:$0xff]  ;;  %v13633_v33 = vld [vmem:[#allocation293_spill] sm:$0xff]  ;;  %v3718_v60 = vpop.permute.xlu1 %3717  ;;  %v3592_v10 = vpop.permute.xlu0 %3591 }
 0x44b   : > { %v3851_v24 = vsel %vm2250_vm3, %v3819_v35, %v13630_v59  ;;  %v10739_v29 = vsel %vm2283_vm4, %v10524_v37, %v13631_v36  ;;  %v13632_v52 = vld [vmem:[#allocation24_spill] sm:$0xff]  ;;  %v4010_v15 = vsel %vm2415_vm8, %v3978_v27, %v3716_v47  ;;  %v13634_v18 = vld [vmem:[#allocation23_spill] sm:$0xff]  ;;  %v13636_v22 = vld [vmem:[#allocation298_spill] sm:$0xff] }
 0x44c   : > { %v10744_v30 = vsel %vm2283_vm4, %v10532_v54, %v13632_v52  ;;  %v3883_v61 = vsel %vm2283_vm4, %v3851_v24, %v13633_v33  ;;  %v10752_v62 = vsel %vm2283_vm4, %v10537_v28, %v13634_v18  ;;  %v13635_v9 = vld [vmem:[#allocation28_spill] sm:$0xff]  ;;  %v7614_v17 = vld [vmem:[#allocation3 + $0x1af] sm:$0xff]  ;;  %7421 = vmatmul.mubr.msk.f32.gmra.mxu1 %vm4027_vm9, %v4010_v15  ;;  %v13651_v18 = vld [vmem:[#allocation397_spill] sm:$0xff] }
 0x44d   : > { %v10757_v37 = vsel %vm2283_vm4, %v10547_v6, %v13635_v9  ;;  %v3788_v54 = vsel %vm332_vm0, %v7614_v17, %v13636_v22  ;;  %v13637_v39 = vld [vmem:[#allocation398_spill] sm:$0xff]  ;;  %v13638_v34 = vld [vmem:[#allocation27_spill] sm:$0xff]  ;;  %v13639_v28 = vld [vmem:[#allocation32_spill] sm:$0xff] }
 0x44e   : > { %v3915_v40 = vsel %vm2316_vm5, %v3883_v61, %v13637_v39  ;;  %v10767_v7 = vsel %vm2283_vm4, %v10552_v63, %v13638_v34  ;;  %v10772_v2 = vsel %vm2283_vm4, %v10561_v26, %v13639_v28  ;;  %v13640_v6 = vld [vmem:[#allocation340_spill] sm:$0xff]  ;;  %v13641_v11 = vld [vmem:[#allocation426_spill] sm:$0xff]  ;;  %v13642_v43 = vld [vmem:[#allocation31_spill] sm:$0xff] }
 0x44f   : > { %v3820_v21 = vsel %vm2217_vm2, %v3788_v54, %v13640_v6  ;;  %v3947_v32 = vsel %vm2349_vm6, %v3915_v40, %v13641_v11  ;;  %v10781_v5 = vsel %vm2283_vm4, %v10566_v20, %v13642_v43  ;;  %v13643_v35 = vld [vmem:[#allocation36_spill] sm:$0xff]  ;;  %v13644_v49 = vld [vmem:[#allocation367_spill] sm:$0xff]  ;;  %v7615_v61 = vld [vmem:[#allocation3 + $0x1c7] sm:$0xff]  ;;  %v3594_v43 = vpop.permute.xlu1 %3593 }
 0x450   : > { %v10786_v63 = vsel %vm2283_vm4, %v10574_v51, %v13643_v35  ;;  %v3852_v26 = vsel %vm2250_vm3, %v3820_v21, %v13644_v49  ;;  %v3979_v53 = vsel %vm2382_vm7, %v3947_v32, %v3590_v42  ;;  %v13645_v59 = vld [vmem:[#allocation35_spill] sm:$0xff]  ;;  %v13646_v27 = vld [vmem:[#allocation40_spill] sm:$0xff]  ;;  %v13655_v40 = vld [vmem:[#allocation425_spill] sm:$0xff]  ;;  %v3720_v35 = vpop.permute.xlu0 %3719 }
 0x451   : > { %v10794_v24 = vsel %vm2283_vm4, %v10579_v0, %v13645_v59  ;;  %v10799_v20 = vsel %vm2283_vm4, %v10587_v55, %v13646_v27  ;;  %v13647_v47 = vld [vmem:[#allocation292_spill] sm:$0xff]  ;;  %v4011_v36 = vsel %vm2415_vm8, %v3979_v53, %v3718_v60  ;;  %v13648_v52 = vld [vmem:[#allocation39_spill] sm:$0xff]  ;;  %v13658_v11 = vld [vmem:[#allocation370_spill] sm:$0xff] }
 0x452   : > { %v3884_v51 = vsel %vm2283_vm4, %v3852_v26, %v13647_v47  ;;  %v10807_v42 = vsel %vm2283_vm4, %v10592_v19, %v13648_v52  ;;  %v13649_v33 = vld [vmem:[#allocation44_spill] sm:$0xff]  ;;  %v13650_v15 = vld [vmem:[#allocation303_spill] sm:$0xff]  ;;  %7423 = vmatprep.mubr.msk.f32.mxu1 %vm4027_vm9, %v4011_v36  ;;  %v13661_v60 = vld [vmem:[#allocation297_spill] sm:$0xff] }
 0x453   : > { %v10812_v0 = vsel %vm2283_vm4, %v10602_v12, %v13649_v33  ;;  %v3789_v55 = vsel %vm332_vm0, %v7615_v61, %v13650_v15  ;;  %v3916_v9 = vsel %vm2316_vm5, %v3884_v51, %v13651_v18  ;;  %v13652_v17 = vld [vmem:[#allocation43_spill] sm:$0xff]  ;;  %v13653_v19 = vld [vmem:[#allocation48_spill] sm:$0xff]  ;;  %v13664_v36 = vld [vmem:[#allocation302_spill] sm:$0xff] }
 0x454   : > { %v10822_v22 = vsel %vm2283_vm4, %v10607_v41, %v13652_v17  ;;  %v10827_v54 = vsel %vm2283_vm4, %v10616_v14, %v13653_v19  ;;  %v13654_v12 = vld [vmem:[#allocation343_spill] sm:$0xff]  ;;  %v3948_v34 = vsel %vm2349_vm6, %v3916_v9, %v13655_v40  ;;  %v13657_v21 = vld [vmem:[#allocation52_spill] sm:$0xff] }
 0x455   : > { %v3821_v39 = vsel %vm2217_vm2, %v3789_v55, %v13654_v12  ;;  %v13656_v28 = vld [vmem:[#allocation47_spill] sm:$0xff]  ;;  %v10841_v41 = vsel %vm2283_vm4, %v10629_v25, %v13657_v21  ;;  %v3980_v32 = vsel %vm2382_vm7, %v3948_v34, %v3592_v10  ;;  %v13660_v53 = vld [vmem:[#allocation56_spill] sm:$0xff]  ;;  %v3596_v21 = vpop.permute.xlu0 %3595 }
 0x456   : > { %v10836_v6 = vsel %vm2283_vm4, %v10621_v58, %v13656_v28  ;;  %v3853_v14 = vsel %vm2250_vm3, %v3821_v39, %v13658_v11  ;;  %v13659_v49 = vld [vmem:[#allocation51_spill] sm:$0xff]  ;;  %v10854_v58 = vsel %vm2283_vm4, %v10642_v56, %v13660_v53  ;;  %v4012_v59 = vsel %vm2415_vm8, %v3980_v32, %v3720_v35  ;;  %v13663_v47 = vld [vmem:[#allocation60_spill] sm:$0xff]  ;;  %v3722_v28 = vpop.permute.xlu1 %3721  ;;  %v13674_v32 = vld [vmem:[#allocation137_spill] sm:$0xff] }
 0x457   : > { %v10849_v26 = vsel %vm2283_vm4, %v10634_v3, %v13659_v49  ;;  %v3885_v25 = vsel %vm2283_vm4, %v3853_v14, %v13661_v60  ;;  %v13662_v27 = vld [vmem:[#allocation55_spill] sm:$0xff]  ;;  %v10867_v3 = vsel %vm2283_vm4, %v10657_v38, %v13663_v47  ;;  %v13665_v52 = vld [vmem:[#allocation400_spill] sm:$0xff]  ;;  %7424 = vmatmul.mubr.msk.f32.gmra.mxu1 %vm4027_vm9, %v4012_v59  ;;  %v13668_v38 = vld [vmem:[#allocation342_spill] sm:$0xff] }
 0x458   : > { %v10862_v10 = vsel %vm2283_vm4, %v10647_v23, %v13662_v27  ;;  %v7616_v51 = vld [vmem:[#allocation3 + $0x1cf] sm:$0xff]  ;;  %v3917_v33 = vsel %vm2316_vm5, %v3885_v25, %v13665_v52  ;;  %v13667_v23 = vld [vmem:[#allocation68_spill] sm:$0xff]  ;;  %v13682_v52 = vld [vmem:[#allocation345_spill] sm:$0xff] }
 0x459   : > { %v3790_v56 = vsel %vm332_vm0, %v7616_v51, %v13664_v36  ;;  %v13666_v61 = vld [vmem:[#allocation59_spill] sm:$0xff]  ;;  %v2318_v55 = vsel %vm2316_vm5, %v10676_v50, %v13667_v23  ;;  %v13669_v9 = vld [vmem:[#allocation428_spill] sm:$0xff]  ;;  %v13676_v53 = vld [vmem:[#allocation138_spill] sm:$0xff] }
 0x45a   : > { %v10877_v15 = vsel %vm2283_vm4, %v10662_v1, %v13666_v61  ;;  %v3822_v18 = vsel %vm2217_vm2, %v3790_v56, %v13668_v38  ;;  %v3949_v17 = vsel %vm2349_vm6, %v3917_v33, %v13669_v9  ;;  %v13670_v19 = vld [vmem:[#allocation67_spill] sm:$0xff]  ;;  %v13672_v1 = vld [vmem:[#allocation369_spill] sm:$0xff]  ;;  %v13673_v11 = vld [vmem:[#allocation136_spill] sm:$0xff] }
 0x45b   : > { %v2317_v12 = vsel %vm2316_vm5, %v10684_v31, %v13670_v19  ;;  %v13671_v39 = vld [vmem:[#allocation135_spill] sm:$0xff]  ;;  %v3854_v34 = vsel %vm2250_vm3, %v3822_v18, %v13672_v1  ;;  %v3981_v50 = vsel %vm2382_vm7, %v3949_v17, %v3594_v43  ;;  %v2319_v14 = vsel %vm2316_vm5, %v10697_v8, %v13673_v11  ;;  %v13675_v35 = vld [vmem:[#allocation296_spill] sm:$0xff]  ;;  %v7617_v8 = vld [vmem:[#allocation3 + $0x1e7] sm:$0xff]  ;;  %v3724_v1 = vpop.permute.xlu0 %3723 }
 0x45c   : > { %v10892_v40 = vsel %vm2316_vm5, %v10689_v16, %v13671_v39  ;;  %v10903_v31 = vsel %vm2316_vm5, %v10702_v48, %v13674_v32  ;;  %v3886_v16 = vsel %vm2283_vm4, %v3854_v34, %v13675_v35  ;;  %v4013_v49 = vsel %vm2415_vm8, %v3981_v50, %v3722_v28  ;;  %v13677_v60 = vld [vmem:[#allocation139_spill] sm:$0xff]  ;;  %v13680_v51 = vld [vmem:[#allocation140_spill] sm:$0xff]  ;;  %v13684_v38 = vld [vmem:[#allocation142_spill] sm:$0xff]  ;;  %v3598_v39 = vpop.permute.xlu1 %3597 }
 0x45d   : > { %v10911_v43 = vsel %vm2316_vm5, %v10712_v57, %v13676_v53  ;;  %v10916_v25 = vsel %vm2316_vm5, %v10717_v46, %v13677_v60  ;;  %v13678_v59 = vld [vmem:[#allocation307_spill] sm:$0xff]  ;;  %7426 = vmatprep.mubr.msk.f32.mxu1 %vm4027_vm9, %v4013_v49  ;;  %v10926_v36 = vsel %vm2316_vm5, %v10726_v13, %v13680_v51  ;;  %v13681_v57 = vld [vmem:[#allocation141_spill] sm:$0xff]  ;;  %v10940_v18 = vsel %vm2316_vm5, %v10739_v29, %v13684_v38  ;;  %v13686_v17 = vld [vmem:[#allocation372_spill] sm:$0xff] }
 0x45e   : > { %v3791_v48 = vsel %vm332_vm0, %v7617_v8, %v13678_v59  ;;  %v13679_v27 = vld [vmem:[#allocation399_spill] sm:$0xff]  ;;  %v10931_v56 = vsel %vm2316_vm5, %v10731_v44, %v13681_v57  ;;  %v2448_v46 = vld [vmem:[#allocation3 + $0x7] sm:$0xff]  ;;  %v13687_v34 = vld [vmem:[#allocation144_spill] sm:$0xff] }
 0x45f   : > { %v3918_v47 = vsel %vm2316_vm5, %v3886_v16, %v13679_v27  ;;  %v3823_v33 = vsel %vm2217_vm2, %v3791_v48, %v13682_v52  ;;  %v13683_v61 = vld [vmem:[#allocation427_spill] sm:$0xff]  ;;  %v10953_v50 = vsel %vm2316_vm5, %v10752_v62, %v13687_v34  ;;  %v13688_v28 = vld [vmem:[#allocation145_spill] sm:$0xff]  ;;  %v13690_v35 = vld [vmem:[#allocation146_spill] sm:$0xff] }
 0x460   : > { %v3950_v23 = vsel %vm2349_vm6, %v3918_v47, %v13683_v61  ;;  %v13685_v9 = vld [vmem:[#allocation143_spill] sm:$0xff]  ;;  %v3855_v44 = vsel %vm2250_vm3, %v3823_v33, %v13686_v17  ;;  %v10958_v29 = vsel %vm2316_vm5, %v10757_v37, %v13688_v28  ;;  %v13689_v11 = vld [vmem:[#allocation301_spill] sm:$0xff]  ;;  %v13691_v16 = vld [vmem:[#allocation262_spill] sm:$0xff] }
 0x461   : > { %v10945_v13 = vsel %vm2316_vm5, %v10744_v30, %v13685_v9  ;;  %v3982_v19 = vsel %vm2382_vm7, %v3950_v23, %v3596_v21  ;;  %v3887_v30 = vsel %vm2283_vm4, %v3855_v44, %v13689_v11  ;;  %v10966_v21 = vsel %vm2316_vm5, %v10767_v7, %v13690_v35  ;;  %v7618_v62 = vld [vmem:[#allocation3 + $0x1ef] sm:$0xff]  ;;  %v13696_v51 = vld [vmem:[#allocation344_spill] sm:$0xff]  ;;  %v3726_v44 = vpop.permute.xlu1 %3725 }
 0x462   : > { %v4014_v32 = vsel %vm2415_vm8, %v3982_v19, %v3724_v1  ;;  %v3761_v49 = vsel %vm332_vm0, %v2448_v46, %v13691_v16  ;;  %v13692_v53 = vld [vmem:[#allocation306_spill] sm:$0xff]  ;;  %v13694_v59 = vld [vmem:[#allocation147_spill] sm:$0xff]  ;;  %v13698_v33 = vld [vmem:[#allocation148_spill] sm:$0xff]  ;;  %v3600_v19 = vpop.permute.xlu0 %3599 }
 0x463   : > { %v3792_v60 = vsel %vm332_vm0, %v7618_v62, %v13692_v53  ;;  %v13693_v8 = vld [vmem:[#allocation402_spill] sm:$0xff]  ;;  %7427 = vmatmul.mubr.msk.f32.gmra.mxu1 %vm4027_vm9, %v4014_v32  ;;  %v10978_v48 = vsel %vm2316_vm5, %v10772_v2, %v13694_v59  ;;  %v13695_v7 = vld [vmem:[#allocation311_spill] sm:$0xff]  ;;  %v10989_v61 = vsel %vm2316_vm5, %v10781_v5, %v13698_v33  ;;  %v13701_v1 = vld [vmem:[#allocation165_spill] sm:$0xff] }
 0x464   : > { %v3919_v37 = vsel %vm2316_vm5, %v3887_v30, %v13693_v8  ;;  %v2449_v27 = vld [vmem:[#allocation3 + $0xf] sm:$0xff]  ;;  %v3793_v47 = vsel %vm2217_vm2, %v3761_v49, %v13695_v7  ;;  %v3824_v57 = vsel %vm2217_vm2, %v3792_v60, %v13696_v51  ;;  %v2351_v34 = vsel %vm2349_vm6, %v2318_v55, %v13701_v1  ;;  %v13703_v30 = vld [vmem:[#allocation300_spill] sm:$0xff]  ;;  %v13705_v49 = vld [vmem:[#allocation261_spill] sm:$0xff] }
 0x465   : > { %v13697_v46 = vld [vmem:[#allocation7_spill] sm:$0xff]  ;;  %v13702_v28 = vld [vmem:[#allocation374_spill] sm:$0xff]  ;;  %v3762_v62 = vsel %vm332_vm0, %v2449_v27, %v13705_v49  ;;  %v13707_v60 = vld [vmem:[#allocation401_spill] sm:$0xff] }
 0x466   : > { %v3951_v52 = vsel %vm2349_vm6, %v3919_v37, %v13697_v46  ;;  %v13699_v23 = vld [vmem:[#allocation347_spill] sm:$0xff]  ;;  %v13704_v35 = vld [vmem:[#allocation166_spill] sm:$0xff]  ;;  %v13708_v8 = vld [vmem:[#allocation168_spill] sm:$0xff] }
 0x467   : > { %v3825_v38 = vsel %vm2250_vm3, %v3793_v47, %v13699_v23  ;;  %v13700_v2 = vld [vmem:[#allocation371_spill] sm:$0xff]  ;;  %v3983_v17 = vsel %vm2382_vm7, %v3951_v52, %v3598_v39  ;;  %v2350_v16 = vsel %vm2349_vm6, %v2317_v12, %v13704_v35  ;;  %v13706_v39 = vld [vmem:[#allocation305_spill] sm:$0xff]  ;;  %v2352_v37 = vsel %vm2349_vm6, %v2319_v14, %v13708_v8  ;;  %v13709_v59 = vld [vmem:[#allocation310_spill] sm:$0xff] }
 0x468   : > { %v3856_v9 = vsel %vm2250_vm3, %v3824_v57, %v13700_v2  ;;  %v3857_v11 = vsel %vm2283_vm4, %v3825_v38, %v13702_v28  ;;  %v4015_v32 = vsel %vm2415_vm8, %v3983_v17, %v3726_v44  ;;  %v3794_v7 = vsel %vm2217_vm2, %v3762_v62, %v13709_v59  ;;  %v13710_v47 = vld [vmem:[#allocation404_spill] sm:$0xff]  ;;  %v13711_v51 = vld [vmem:[#allocation6_spill] sm:$0xff]  ;;  %v13714_v23 = vld [vmem:[#allocation11_spill] sm:$0xff]  ;;  %v3666_v2 = vpop.permute.xlu1 %3665 }
 0x469   : > { %v3888_v5 = vsel %vm2283_vm4, %v3856_v9, %v13703_v30  ;;  %v3889_v53 = vsel %vm2316_vm5, %v3857_v11, %v13706_v39  ;;  %7429 = vmatprep.mubr.msk.f32.mxu1 %vm4027_vm9, %v4015_v32  ;;  %v13712_v57 = vld [vmem:[#allocation198_spill] sm:$0xff]  ;;  %v3728_v9 = vpop.permute.xlu0 %3727  ;;  %v13716_v1 = vld [vmem:[#allocation373_spill] sm:$0xff]  ;;  %v13717_v32 = vld [vmem:[#allocation263_spill] sm:$0xff] }
 0x46a   : > { %v3920_v55 = vsel %vm2316_vm5, %v3888_v5, %v13707_v60  ;;  %v3921_v12 = vsel %vm2349_vm6, %v3889_v53, %v13710_v47  ;;  %v2383_v46 = vsel %vm2382_vm7, %v2350_v16, %v13712_v57  ;;  %v13713_v52 = vld [vmem:[#allocation346_spill] sm:$0xff]  ;;  %v13718_v49 = vld [vmem:[#allocation264_spill] sm:$0xff]  ;;  %v13720_v53 = vld [vmem:[#allocation197_spill] sm:$0xff] }
 0x46b   : > { %v3952_v27 = vsel %vm2349_vm6, %v3920_v55, %v13711_v51  ;;  %v3826_v33 = vsel %vm2250_vm3, %v3794_v7, %v13713_v52  ;;  %v3953_v38 = vsel %vm2382_vm7, %v3921_v12, %v13714_v23  ;;  %v13715_v17 = vld [vmem:[#allocation230_spill] sm:$0xff]  ;;  %v13719_v62 = vld [vmem:[#allocation304_spill] sm:$0xff]  ;;  %v2384_v60 = vsel %vm2382_vm7, %v2351_v34, %v13720_v53  ;;  %v13722_v59 = vld [vmem:[#allocation315_spill] sm:$0xff] }
 0x46c   : > { %v3984_v14 = vsel %vm2382_vm7, %v3952_v27, %v3600_v19  ;;  %v2416_v44 = vsel %vm2415_vm8, %v2383_v46, %v13715_v17  ;;  %v3858_v28 = vsel %vm2283_vm4, %v3826_v33, %v13716_v1  ;;  %v3985_v30 = vsel %vm2415_vm8, %v3953_v38, %v3666_v2  ;;  %v7619_v5 = vld [vmem:[#allocation3 + $0x2f] sm:$0xff]  ;;  %v7620_v16 = vld [vmem:[#allocation3 + $0x27] sm:$0xff]  ;;  %v13724_v51 = vld [vmem:[#allocation200_spill] sm:$0xff]  ;;  %v3544_v38 = vpop.permute.xlu1 %3543 }
 0x46d   : > { %v4016_v11 = vsel %vm2415_vm8, %v3984_v14, %v3728_v9  ;;  %v3764_v35 = vsel %vm332_vm0, %v7619_v5, %v13717_v32  ;;  %v3763_v19 = vsel %vm332_vm0, %v7620_v16, %v13718_v49  ;;  %v3890_v39 = vsel %vm2316_vm5, %v3858_v28, %v13719_v62  ;;  %7384 = vmatprep.mubr.msk.f32.mxu0 %vm4027_vm9, %v3985_v30  ;;  %v13721_v55 = vld [vmem:[#allocation314_spill] sm:$0xff]  ;;  %v13723_v47 = vld [vmem:[#allocation403_spill] sm:$0xff]  ;;  %v13725_v57 = vld [vmem:[#allocation348_spill] sm:$0xff]  ;;  %v3668_v14 = vpop.permute.xlu0 %3667 }
 0x46e   : > { %7430 = vmatmul.mubr.msk.f32.gmra.mxu1 %vm4027_vm9, %v4016_v11  ;;  %v3796_v8 = vsel %vm2217_vm2, %v3764_v35, %v13721_v55  ;;  %v3795_v7 = vsel %vm2217_vm2, %v3763_v19, %v13722_v59  ;;  %v3922_v12 = vsel %vm2349_vm6, %v3890_v39, %v13723_v47  ;;  %v2385_v27 = vsel %vm2382_vm7, %v2352_v37, %v13724_v51  ;;  %v13726_v52 = vld [vmem:[#allocation349_spill] sm:$0xff]  ;;  %v13727_v33 = vld [vmem:[#allocation10_spill] sm:$0xff]  ;;  %v13729_v17 = vld [vmem:[#allocation375_spill] sm:$0xff] }
 0x46f   : > { %7442 = vmatprep.mubr.msk.f32.mxu1 %vm4027_vm9, %v2416_v44  ;;  %v3828_v46 = vsel %vm2250_vm3, %v3796_v8, %v13725_v57  ;;  %v3827_v34 = vsel %vm2250_vm3, %v3795_v7, %v13726_v52  ;;  %v3954_v23 = vsel %vm2382_vm7, %v3922_v12, %v13727_v33  ;;  %v13728_v2 = vld [vmem:[#allocation229_spill] sm:$0xff]  ;;  %v13730_v1 = vld [vmem:[#allocation376_spill] sm:$0xff]  ;;  %v13735_v62 = vld [vmem:[#allocation167_spill] sm:$0xff] }
 0x470   : > { %v2417_v9 = vsel %vm2415_vm8, %v2384_v60, %v13728_v2  ;;  %v3860_v44 = vsel %vm2283_vm4, %v3828_v46, %v13729_v17  ;;  %v3859_v37 = vsel %vm2283_vm4, %v3827_v34, %v13730_v1  ;;  %v3986_v28 = vsel %vm2415_vm8, %v3954_v23, %v3668_v14  ;;  %v13731_v11 = vld [vmem:[#allocation232_spill] sm:$0xff]  ;;  %v13733_v35 = vld [vmem:[#allocation309_spill] sm:$0xff]  ;;  %v13737_v55 = vld [vmem:[#allocation406_spill] sm:$0xff] }
 0x471   : > { %v2418_v30 = vsel %vm2415_vm8, %v2385_v27, %v13731_v11  ;;  %v13732_v5 = vld [vmem:[#allocation308_spill] sm:$0xff]  ;;  %v3891_v16 = vsel %vm2316_vm5, %v3859_v37, %v13733_v35  ;;  %7385 = vmatmul.mubr.msk.f32.vlgmr.msra.gmra.mxu0 %vm4027_vm9, %v3986_v28  ;;  %v13734_v49 = vld [vmem:[#allocation149_spill] sm:$0xff]  ;;  %v2353_v39 = vsel %vm2349_vm6, %v10892_v40, %v13735_v62  ;;  %v13738_v59 = vld [vmem:[#allocation170_spill] sm:$0xff]  ;;  %v3672_v27 = vpop.permute.xlu1 %3671  ;;  %v3670_v57 = vpop.permute.xlu0 %3669 }
 0x472   : > { %v3892_v32 = vsel %vm2316_vm5, %v3860_v44, %v13732_v5  ;;  %7443 = vmatmul.mubr.msk.f32.vlgmr.msra.gmra.mxu1 %vm4027_vm9, %v2417_v9  ;;  %v11076_v19 = vsel %vm2316_vm5, %v10786_v63, %v13734_v49  ;;  %v13736_v53 = vld [vmem:[#allocation405_spill] sm:$0xff]  ;;  %v3923_v8 = vsel %vm2349_vm6, %v3891_v16, %v13737_v55  ;;  %v2354_v7 = vsel %vm2349_vm6, %v10911_v43, %v13738_v59  ;;  %v13739_v47 = vld [vmem:[#allocation199_spill] sm:$0xff]  ;;  %v13741_v46 = vld [vmem:[#allocation202_spill] sm:$0xff] }
 0x473   : > { %v3924_v60 = vsel %vm2349_vm6, %v3892_v32, %v13736_v53  ;;  %7445 = vmatprep.mubr.msk.f32.mxu1 %vm4027_vm9, %v2418_v30  ;;  %v2386_v63 = vsel %vm2382_vm7, %v2353_v39, %v13739_v47  ;;  %v13740_v12 = vld [vmem:[#allocation15_spill] sm:$0xff]  ;;  %v2387_v52 = vsel %vm2382_vm7, %v2354_v7, %v13741_v46  ;;  %v13743_v14 = vld [vmem:[#allocation234_spill] sm:$0xff]  ;;  %v13744_v17 = vld [vmem:[#allocation265_spill] sm:$0xff] }
 0x474   : > { %v3955_v51 = vsel %vm2382_vm7, %v3923_v8, %v13740_v12  ;;  %v3956_v40 = vsel %vm2382_vm7, %v3924_v60, %v3544_v38  ;;  %v13742_v34 = vld [vmem:[#allocation231_spill] sm:$0xff]  ;;  %v2420_v2 = vsel %vm2415_vm8, %v2387_v52, %v13743_v14  ;;  %v7622_v38 = vld [vmem:[#allocation3 + $0x47] sm:$0xff]  ;;  %v13747_v30 = vld [vmem:[#allocation320_spill] sm:$0xff] }
 0x475   : > { %v2419_v33 = vsel %vm2415_vm8, %v2386_v63, %v13742_v34  ;;  %v3988_v23 = vsel %vm2415_vm8, %v3956_v40, %v3672_v27  ;;  %v3987_v43 = vsel %vm2415_vm8, %v3955_v51, %v3670_v57  ;;  %v7621_v9 = vld [vmem:[#allocation3 + $0x4f] sm:$0xff]  ;;  %v13746_v28 = vld [vmem:[#allocation169_spill] sm:$0xff]  ;;  %v13749_v16 = vld [vmem:[#allocation172_spill] sm:$0xff]  ;;  %v3548_v8 = vpop.permute.xlu1 %3547  ;;  %v3546_v59 = vpop.permute.xlu0 %3545 }
 0x476   : > { %v3766_v44 = vsel %vm332_vm0, %v7621_v9, %v13744_v17  ;;  %v13745_v1 = vld [vmem:[#allocation266_spill] sm:$0xff]  ;;  %7387 = vmatprep.mubr.msk.f32.mxu0 %vm4027_vm9, %v3987_v43  ;;  %7446 = vmatmul.mubr.msk.f32.gmra.mxu1 %vm4027_vm9, %v2419_v33  ;;  %v2355_v11 = vsel %vm2349_vm6, %v10903_v31, %v13746_v28  ;;  %v13748_v32 = vld [vmem:[#allocation321_spill] sm:$0xff]  ;;  %v2356_v49 = vsel %vm2349_vm6, %v10926_v36, %v13749_v16  ;;  %v13752_v60 = vld [vmem:[#allocation351_spill] sm:$0xff] }
 0x477   : > { %v3765_v37 = vsel %vm332_vm0, %v7622_v38, %v13745_v1  ;;  %v3798_v5 = vsel %vm2217_vm2, %v3766_v44, %v13747_v30  ;;  %7388 = vmatmul.mubr.msk.f32.gmra.mxu0 %vm4027_vm9, %v3988_v23  ;;  %7448 = vmatprep.mubr.msk.f32.mxu1 %vm4027_vm9, %v2420_v2  ;;  %v13750_v62 = vld [vmem:[#allocation201_spill] sm:$0xff]  ;;  %v13751_v53 = vld [vmem:[#allocation350_spill] sm:$0xff]  ;;  %v13753_v7 = vld [vmem:[#allocation204_spill] sm:$0xff] }
 0x478   : > { %v3797_v35 = vsel %vm2217_vm2, %v3765_v37, %v13748_v32  ;;  %v2388_v39 = vsel %vm2382_vm7, %v2355_v11, %v13750_v62  ;;  %v3830_v31 = vsel %vm2250_vm3, %v3798_v5, %v13751_v53  ;;  %v2389_v47 = vsel %vm2382_vm7, %v2356_v49, %v13753_v7  ;;  %v13754_v63 = vld [vmem:[#allocation233_spill] sm:$0xff]  ;;  %v13756_v40 = vld [vmem:[#allocation378_spill] sm:$0xff]  ;;  %v13758_v52 = vld [vmem:[#allocation236_spill] sm:$0xff] }
 0x479   : > { %v3829_v55 = vsel %vm2250_vm3, %v3797_v35, %v13752_v60  ;;  %v2421_v12 = vsel %vm2415_vm8, %v2388_v39, %v13754_v63  ;;  %v13755_v51 = vld [vmem:[#allocation377_spill] sm:$0xff]  ;;  %v13757_v57 = vld [vmem:[#allocation150_spill] sm:$0xff]  ;;  %v2422_v34 = vsel %vm2415_vm8, %v2389_v47, %v13758_v52  ;;  %v13759_v33 = vld [vmem:[#allocation312_spill] sm:$0xff]  ;;  %v3674_v35 = vpop.permute.xlu0 %3673 }
 0x47a   : > { %v3862_v36 = vsel %vm2283_vm4, %v3830_v31, %v13755_v51  ;;  %v3861_v27 = vsel %vm2283_vm4, %v3829_v55, %v13756_v40  ;;  %v11137_v46 = vsel %vm2316_vm5, %v10794_v24, %v13757_v57  ;;  %v13760_v43 = vld [vmem:[#allocation313_spill] sm:$0xff]  ;;  %7449 = vmatmul.mubr.msk.f32.gmra.mxu1 %vm4027_vm9, %v2421_v12  ;;  %v13761_v2 = vld [vmem:[#allocation151_spill] sm:$0xff]  ;;  %v13764_v1 = vld [vmem:[#allocation408_spill] sm:$0xff] }
 0x47b   : > { %v3894_v23 = vsel %vm2316_vm5, %v3862_v36, %v13759_v33  ;;  %v3893_v14 = vsel %vm2316_vm5, %v3861_v27, %v13760_v43  ;;  %v11149_v9 = vsel %vm2316_vm5, %v10799_v20, %v13761_v2  ;;  %v13762_v17 = vld [vmem:[#allocation171_spill] sm:$0xff]  ;;  %7451 = vmatprep.mubr.msk.f32.mxu1 %vm4027_vm9, %v2422_v34  ;;  %v13765_v28 = vld [vmem:[#allocation174_spill] sm:$0xff]  ;;  %v13771_v47 = vld [vmem:[#allocation268_spill] sm:$0xff] }
 0x47c   : > { %v2357_v24 = vsel %vm2349_vm6, %v10916_v25, %v13762_v17  ;;  %v13763_v44 = vld [vmem:[#allocation407_spill] sm:$0xff]  ;;  %v3925_v37 = vsel %vm2349_vm6, %v3893_v14, %v13764_v1  ;;  %v2358_v11 = vsel %vm2349_vm6, %v10940_v18, %v13765_v28  ;;  %v3676_v25 = vpop.permute.xlu1 %3675  ;;  %v13767_v16 = vld [vmem:[#allocation206_spill] sm:$0xff]  ;;  %v13772_v12 = vld [vmem:[#allocation173_spill] sm:$0xff] }
 0x47d   : > { %v3926_v38 = vsel %vm2349_vm6, %v3894_v23, %v13763_v44  ;;  %v13766_v30 = vld [vmem:[#allocation203_spill] sm:$0xff]  ;;  %v3957_v32 = vsel %vm2382_vm7, %v3925_v37, %v3546_v59  ;;  %v2391_v49 = vsel %vm2382_vm7, %v2358_v11, %v13767_v16  ;;  %v13769_v18 = vld [vmem:[#allocation238_spill] sm:$0xff]  ;;  %v2359_v51 = vsel %vm2349_vm6, %v10931_v56, %v13772_v12  ;;  %v13775_v52 = vld [vmem:[#allocation176_spill] sm:$0xff] }
 0x47e   : > { %v2390_v20 = vsel %vm2382_vm7, %v2357_v24, %v13766_v30  ;;  %v3958_v5 = vsel %vm2382_vm7, %v3926_v38, %v3548_v8  ;;  %v13768_v62 = vld [vmem:[#allocation235_spill] sm:$0xff]  ;;  %v3989_v31 = vsel %vm2415_vm8, %v3957_v32, %v3674_v35  ;;  %v2424_v60 = vsel %vm2415_vm8, %v2391_v49, %v13769_v18  ;;  %v7624_v59 = vld [vmem:[#allocation3 + $0x67] sm:$0xff]  ;;  %v13777_v43 = vld [vmem:[#allocation352_spill] sm:$0xff]  ;;  %v3550_v24 = vpop.permute.xlu0 %3549 }
 0x47f   : > { %v2423_v39 = vsel %vm2415_vm8, %v2390_v20, %v13768_v62  ;;  %v3990_v53 = vsel %vm2415_vm8, %v3958_v5, %v3676_v25  ;;  %v7623_v55 = vld [vmem:[#allocation3 + $0x6f] sm:$0xff]  ;;  %v3767_v63 = vsel %vm332_vm0, %v7624_v59, %v13771_v47  ;;  %7390 = vmatprep.mubr.msk.f32.mxu0 %vm4027_vm9, %v3989_v31  ;;  %v2360_v34 = vsel %vm2349_vm6, %v10953_v50, %v13775_v52  ;;  %v13776_v33 = vld [vmem:[#allocation205_spill] sm:$0xff]  ;;  %v13779_v44 = vld [vmem:[#allocation208_spill] sm:$0xff] }
 0x480   : > { %v13770_v7 = vld [vmem:[#allocation267_spill] sm:$0xff]  ;;  %7452 = vmatmul.mubr.msk.f32.gmra.mxu1 %vm4027_vm9, %v2423_v39  ;;  %v13773_v36 = vld [vmem:[#allocation322_spill] sm:$0xff]  ;;  %7391 = vmatmul.mubr.msk.f32.gmra.mxu0 %vm4027_vm9, %v3990_v53  ;;  %v2392_v23 = vsel %vm2382_vm7, %v2359_v51, %v13776_v33  ;;  %v13778_v14 = vld [vmem:[#allocation353_spill] sm:$0xff]  ;;  %v3552_v17 = vpop.permute.xlu1 %3551  ;;  %v2393_v38 = vsel %vm2382_vm7, %v2360_v34, %v13779_v44 }
 0x481   : > { %v3768_v8 = vsel %vm332_vm0, %v7623_v55, %v13770_v7  ;;  %v13774_v27 = vld [vmem:[#allocation323_spill] sm:$0xff]  ;;  %7454 = vmatprep.mubr.msk.f32.mxu1 %vm4027_vm9, %v2424_v60  ;;  %v13780_v1 = vld [vmem:[#allocation237_spill] sm:$0xff]  ;;  %v13782_v11 = vld [vmem:[#allocation380_spill] sm:$0xff] }
 0x482   : > { %v3800_v40 = vsel %vm2217_vm2, %v3768_v8, %v13773_v36  ;;  %v3799_v57 = vsel %vm2217_vm2, %v3767_v63, %v13774_v27  ;;  %v2425_v37 = vsel %vm2415_vm8, %v2392_v23, %v13780_v1  ;;  %v13781_v28 = vld [vmem:[#allocation379_spill] sm:$0xff]  ;;  %v13783_v20 = vld [vmem:[#allocation152_spill] sm:$0xff]  ;;  %v13786_v49 = vld [vmem:[#allocation317_spill] sm:$0xff]  ;;  %v3678_v51 = vpop.permute.xlu0 %3677 }
 0x483   : > { %v3832_v56 = vsel %vm2250_vm3, %v3800_v40, %v13777_v43  ;;  %v3831_v2 = vsel %vm2250_vm3, %v3799_v57, %v13778_v14  ;;  %v11209_v5 = vsel %vm2316_vm5, %v10807_v42, %v13783_v20  ;;  %v13784_v32 = vld [vmem:[#allocation240_spill] sm:$0xff]  ;;  %v13787_v39 = vld [vmem:[#allocation153_spill] sm:$0xff]  ;;  %v13788_v31 = vld [vmem:[#allocation175_spill] sm:$0xff] }
 0x484   : > { %v3864_v50 = vsel %vm2283_vm4, %v3832_v56, %v13781_v28  ;;  %v3863_v30 = vsel %vm2283_vm4, %v3831_v2, %v13782_v11  ;;  %v2426_v25 = vsel %vm2415_vm8, %v2393_v38, %v13784_v32  ;;  %v13785_v35 = vld [vmem:[#allocation316_spill] sm:$0xff]  ;;  %7455 = vmatmul.mubr.msk.f32.gmra.mxu1 %vm4027_vm9, %v2425_v37  ;;  %v11221_v53 = vsel %vm2316_vm5, %v10812_v0, %v13787_v39  ;;  %v13789_v18 = vld [vmem:[#allocation409_spill] sm:$0xff]  ;;  %v13790_v55 = vld [vmem:[#allocation410_spill] sm:$0xff] }
 0x485   : > { %v3896_v16 = vsel %vm2316_vm5, %v3864_v50, %v13785_v35  ;;  %v3895_v62 = vsel %vm2316_vm5, %v3863_v30, %v13786_v49  ;;  %v2361_v42 = vsel %vm2349_vm6, %v10945_v13, %v13788_v31  ;;  %7457 = vmatprep.mubr.msk.f32.mxu1 %vm4027_vm9, %v2426_v25  ;;  %v13791_v8 = vld [vmem:[#allocation178_spill] sm:$0xff]  ;;  %v13792_v47 = vld [vmem:[#allocation207_spill] sm:$0xff]  ;;  %v3680_v13 = vpop.permute.xlu1 %3679  ;;  %v13796_v43 = vld [vmem:[#allocation269_spill] sm:$0xff] }
 0x486   : > { %v3928_v60 = vsel %vm2349_vm6, %v3896_v16, %v13789_v18  ;;  %v3927_v7 = vsel %vm2349_vm6, %v3895_v62, %v13790_v55  ;;  %v2362_v59 = vsel %vm2349_vm6, %v10966_v21, %v13791_v8  ;;  %v2394_v0 = vsel %vm2382_vm7, %v2361_v42, %v13792_v47  ;;  %v13793_v36 = vld [vmem:[#allocation210_spill] sm:$0xff]  ;;  %v13794_v27 = vld [vmem:[#allocation239_spill] sm:$0xff]  ;;  %v13801_v50 = vld [vmem:[#allocation180_spill] sm:$0xff]  ;;  %v3554_v49 = vpop.permute.xlu0 %3553 }
 0x487   : > { %v3960_v63 = vsel %vm2382_vm7, %v3928_v60, %v3552_v17  ;;  %v3959_v12 = vsel %vm2382_vm7, %v3927_v7, %v3550_v24  ;;  %v2395_v40 = vsel %vm2382_vm7, %v2362_v59, %v13793_v36  ;;  %v2427_v57 = vsel %vm2415_vm8, %v2394_v0, %v13794_v27  ;;  %v13795_v21 = vld [vmem:[#allocation242_spill] sm:$0xff]  ;;  %v13798_v24 = vld [vmem:[#allocation177_spill] sm:$0xff]  ;;  %v13800_v37 = vld [vmem:[#allocation327_spill] sm:$0xff] }
 0x488   : > { %v3992_v52 = vsel %vm2415_vm8, %v3960_v63, %v3680_v13  ;;  %v3991_v34 = vsel %vm2415_vm8, %v3959_v12, %v3678_v51  ;;  %v2428_v33 = vsel %vm2415_vm8, %v2395_v40, %v13795_v21  ;;  %v7625_v23 = vld [vmem:[#allocation3 + $0x8f] sm:$0xff]  ;;  %v7626_v14 = vld [vmem:[#allocation3 + $0x87] sm:$0xff]  ;;  %7458 = vmatmul.mubr.msk.f32.gmra.mxu1 %vm4027_vm9, %v2427_v57  ;;  %v2363_v44 = vsel %vm2349_vm6, %v10958_v29, %v13798_v24  ;;  %v13805_v62 = vld [vmem:[#allocation212_spill] sm:$0xff] }
 0x489   : > { %v3770_v56 = vsel %vm332_vm0, %v7625_v23, %v13796_v43  ;;  %v13797_v2 = vld [vmem:[#allocation270_spill] sm:$0xff]  ;;  %7393 = vmatprep.mubr.msk.f32.mxu0 %vm4027_vm9, %v3991_v34  ;;  %7460 = vmatprep.mubr.msk.f32.mxu1 %vm4027_vm9, %v2428_v33  ;;  %v2364_v11 = vsel %vm2349_vm6, %v10989_v61, %v13801_v50  ;;  %v13802_v30 = vld [vmem:[#allocation209_spill] sm:$0xff]  ;;  %v13804_v25 = vld [vmem:[#allocation355_spill] sm:$0xff]  ;;  %v3556_v16 = vpop.permute.xlu1 %3555 }
 0x48a   : > { %v3769_v17 = vsel %vm332_vm0, %v7626_v14, %v13797_v2  ;;  %v13799_v38 = vld [vmem:[#allocation326_spill] sm:$0xff]  ;;  %7394 = vmatmul.mubr.msk.f32.gmra.mxu0 %vm4027_vm9, %v3992_v52  ;;  %v2396_v20 = vsel %vm2382_vm7, %v2363_v44, %v13802_v30  ;;  %v2397_v39 = vsel %vm2382_vm7, %v2364_v11, %v13805_v62  ;;  %v13806_v31 = vld [vmem:[#allocation241_spill] sm:$0xff]  ;;  %v13810_v59 = vld [vmem:[#allocation244_spill] sm:$0xff]  ;;  %v3682_v14 = vpop.permute.xlu0 %3681 }
 0x48b   : > { %v3802_v1 = vsel %vm2217_vm2, %v3770_v56, %v13799_v38  ;;  %v3801_v28 = vsel %vm2217_vm2, %v3769_v17, %v13800_v37  ;;  %v13803_v32 = vld [vmem:[#allocation354_spill] sm:$0xff]  ;;  %v2429_v42 = vsel %vm2415_vm8, %v2396_v20, %v13806_v31  ;;  %v13807_v18 = vld [vmem:[#allocation381_spill] sm:$0xff]  ;;  %v2430_v47 = vsel %vm2415_vm8, %v2397_v39, %v13810_v59  ;;  %v13812_v12 = vld [vmem:[#allocation319_spill] sm:$0xff] }
 0x48c   : > { %v3834_v29 = vsel %vm2250_vm3, %v3802_v1, %v13803_v32  ;;  %v3833_v35 = vsel %vm2250_vm3, %v3801_v28, %v13804_v25  ;;  %v13808_v60 = vld [vmem:[#allocation382_spill] sm:$0xff]  ;;  %7461 = vmatmul.mubr.msk.f32.gmra.mxu1 %vm4027_vm9, %v2429_v42  ;;  %v13813_v51 = vld [vmem:[#allocation155_spill] sm:$0xff]  ;;  %v13816_v52 = vld [vmem:[#allocation412_spill] sm:$0xff] }
 0x48d   : > { %v3866_v61 = vsel %vm2283_vm4, %v3834_v29, %v13807_v18  ;;  %v3865_v55 = vsel %vm2283_vm4, %v3833_v35, %v13808_v60  ;;  %v13809_v7 = vld [vmem:[#allocation154_spill] sm:$0xff]  ;;  %v11291_v36 = vsel %vm2316_vm5, %v10827_v54, %v13813_v51  ;;  %v13814_v40 = vld [vmem:[#allocation179_spill] sm:$0xff]  ;;  %7463 = vmatprep.mubr.msk.f32.mxu1 %vm4027_vm9, %v2430_v47  ;;  %v13823_v20 = vld [vmem:[#allocation272_spill] sm:$0xff] }
 0x48e   : > { %v2337_v8 = vsel %vm2316_vm5, %v10822_v22, %v13809_v7  ;;  %v13811_v0 = vld [vmem:[#allocation318_spill] sm:$0xff]  ;;  %v3897_v13 = vsel %vm2316_vm5, %v3865_v55, %v13812_v12  ;;  %v2365_v22 = vsel %vm2349_vm6, %v10978_v48, %v13814_v40  ;;  %v13815_v27 = vld [vmem:[#allocation411_spill] sm:$0xff]  ;;  %v3684_v48 = vpop.permute.xlu1 %3683  ;;  %v13824_v29 = vld [vmem:[#allocation181_spill] sm:$0xff]  ;;  %v3558_v59 = vpop.permute.xlu0 %3557 }
 0x48f   : > { %v3898_v63 = vsel %vm2316_vm5, %v3866_v61, %v13811_v0  ;;  %v3929_v34 = vsel %vm2349_vm6, %v3897_v13, %v13816_v52  ;;  %v13817_v21 = vld [vmem:[#allocation182_spill] sm:$0xff]  ;;  %v13818_v23 = vld [vmem:[#allocation211_spill] sm:$0xff]  ;;  %v2367_v25 = vsel %vm2349_vm6, %v11076_v19, %v13824_v29  ;;  %v13825_v35 = vld [vmem:[#allocation329_spill] sm:$0xff] }
 0x490   : > { %v3930_v57 = vsel %vm2349_vm6, %v3898_v63, %v13815_v27  ;;  %v2366_v33 = vsel %vm2349_vm6, %v11137_v46, %v13817_v21  ;;  %v2398_v54 = vsel %vm2382_vm7, %v2365_v22, %v13818_v23  ;;  %v3961_v56 = vsel %vm2382_vm7, %v3929_v34, %v3554_v49  ;;  %v13819_v2 = vld [vmem:[#allocation214_spill] sm:$0xff]  ;;  %v13820_v24 = vld [vmem:[#allocation243_spill] sm:$0xff]  ;;  %v13827_v39 = vld [vmem:[#allocation184_spill] sm:$0xff] }
 0x491   : > { %v3962_v43 = vsel %vm2382_vm7, %v3930_v57, %v3556_v16  ;;  %v2399_v17 = vsel %vm2382_vm7, %v2366_v33, %v13819_v2  ;;  %v2431_v44 = vsel %vm2415_vm8, %v2398_v54, %v13820_v24  ;;  %v3993_v1 = vsel %vm2415_vm8, %v3961_v56, %v3682_v14  ;;  %v13821_v46 = vld [vmem:[#allocation246_spill] sm:$0xff]  ;;  %v13822_v50 = vld [vmem:[#allocation271_spill] sm:$0xff]  ;;  %v13828_v42 = vld [vmem:[#allocation213_spill] sm:$0xff] }
 0x492   : > { %v3994_v38 = vsel %vm2415_vm8, %v3962_v43, %v3684_v48  ;;  %v2432_v37 = vsel %vm2415_vm8, %v2399_v17, %v13821_v46  ;;  %v7627_v28 = vld [vmem:[#allocation3 + $0xaf] sm:$0xff]  ;;  %v7628_v30 = vld [vmem:[#allocation3 + $0xa7] sm:$0xff]  ;;  %7396 = vmatprep.mubr.msk.f32.mxu0 %vm4027_vm9, %v3993_v1  ;;  %7464 = vmatmul.mubr.msk.f32.gmra.mxu1 %vm4027_vm9, %v2431_v44  ;;  %v2368_v31 = vsel %vm2349_vm6, %v11209_v5, %v13827_v39  ;;  %v13829_v61 = vld [vmem:[#allocation356_spill] sm:$0xff]  ;;  %v3560_v7 = vpop.permute.xlu1 %3559 }
 0x493   : > { %v3772_v11 = vsel %vm332_vm0, %v7627_v28, %v13822_v50  ;;  %v3771_v32 = vsel %vm332_vm0, %v7628_v30, %v13823_v20  ;;  %v13826_v49 = vld [vmem:[#allocation330_spill] sm:$0xff]  ;;  %7397 = vmatmul.mubr.msk.f32.gmra.mxu0 %vm4027_vm9, %v3994_v38  ;;  %7466 = vmatprep.mubr.msk.f32.mxu1 %vm4027_vm9, %v2432_v37  ;;  %v2400_v18 = vsel %vm2382_vm7, %v2367_v25, %v13828_v42  ;;  %v13830_v60 = vld [vmem:[#allocation357_spill] sm:$0xff]  ;;  %v13831_v47 = vld [vmem:[#allocation216_spill] sm:$0xff] }
 0x494   : > { %v3804_v16 = vsel %vm2217_vm2, %v3772_v11, %v13825_v35  ;;  %v3803_v62 = vsel %vm2217_vm2, %v3771_v32, %v13826_v49  ;;  %v2401_v0 = vsel %vm2382_vm7, %v2368_v31, %v13831_v47  ;;  %v13832_v63 = vld [vmem:[#allocation245_spill] sm:$0xff]  ;;  %v13833_v13 = vld [vmem:[#allocation383_spill] sm:$0xff]  ;;  %v13834_v51 = vld [vmem:[#allocation384_spill] sm:$0xff] }
 0x495   : > { %v3836_v19 = vsel %vm2250_vm3, %v3804_v16, %v13829_v61  ;;  %v3835_v55 = vsel %vm2250_vm3, %v3803_v62, %v13830_v60  ;;  %v2433_v12 = vsel %vm2415_vm8, %v2400_v18, %v13832_v63  ;;  %v13835_v22 = vld [vmem:[#allocation156_spill] sm:$0xff]  ;;  %v13838_v33 = vld [vmem:[#allocation325_spill] sm:$0xff]  ;;  %v13840_v56 = vld [vmem:[#allocation183_spill] sm:$0xff] }
 0x496   : > { %v3868_v5 = vsel %vm2283_vm4, %v3836_v19, %v13833_v13  ;;  %v3867_v40 = vsel %vm2283_vm4, %v3835_v55, %v13834_v51  ;;  %v2339_v27 = vsel %vm2316_vm5, %v10836_v6, %v13835_v22  ;;  %v13836_v57 = vld [vmem:[#allocation248_spill] sm:$0xff]  ;;  %7467 = vmatmul.mubr.msk.f32.gmra.mxu1 %vm4027_vm9, %v2433_v12  ;;  %v13839_v54 = vld [vmem:[#allocation157_spill] sm:$0xff]  ;;  %v2369_v6 = vsel %vm2349_vm6, %v11149_v9, %v13840_v56  ;;  %v13842_v2 = vld [vmem:[#allocation414_spill] sm:$0xff]  ;;  %v3688_v37 = vpop.permute.xlu1 %3687  ;;  %v3686_v9 = vpop.permute.xlu0 %3685 }
 0x497   : > { %v2434_v52 = vsel %vm2415_vm8, %v2401_v0, %v13836_v57  ;;  %v13837_v34 = vld [vmem:[#allocation324_spill] sm:$0xff]  ;;  %v3899_v23 = vsel %vm2316_vm5, %v3867_v40, %v13838_v33  ;;  %v11361_v43 = vsel %vm2316_vm5, %v10841_v41, %v13839_v54  ;;  %v13841_v48 = vld [vmem:[#allocation413_spill] sm:$0xff]  ;;  %v13843_v24 = vld [vmem:[#allocation186_spill] sm:$0xff] }
 0x498   : > { %v3900_v21 = vsel %vm2316_vm5, %v3868_v5, %v13837_v34  ;;  %v3931_v17 = vsel %vm2349_vm6, %v3899_v23, %v13842_v2  ;;  %7469 = vmatprep.mubr.msk.f32.mxu1 %vm4027_vm9, %v2434_v52  ;;  %v2370_v44 = vsel %vm2349_vm6, %v2337_v8, %v13843_v24  ;;  %v13844_v38 = vld [vmem:[#allocation215_spill] sm:$0xff]  ;;  %v13845_v28 = vld [vmem:[#allocation218_spill] sm:$0xff]  ;;  %v13848_v35 = vld [vmem:[#allocation273_spill] sm:$0xff] }
 0x499   : > { %v3932_v14 = vsel %vm2349_vm6, %v3900_v21, %v13841_v48  ;;  %v2402_v1 = vsel %vm2382_vm7, %v2369_v6, %v13844_v38  ;;  %v3963_v46 = vsel %vm2382_vm7, %v3931_v17, %v3558_v59  ;;  %v2403_v50 = vsel %vm2382_vm7, %v2370_v44, %v13845_v28  ;;  %v13846_v11 = vld [vmem:[#allocation247_spill] sm:$0xff]  ;;  %v13847_v8 = vld [vmem:[#allocation250_spill] sm:$0xff]  ;;  %v13850_v31 = vld [vmem:[#allocation185_spill] sm:$0xff] }
 0x49a   : > { %v3964_v41 = vsel %vm2382_vm7, %v3932_v14, %v3560_v7  ;;  %v2435_v30 = vsel %vm2415_vm8, %v2402_v1, %v13846_v11  ;;  %v3995_v32 = vsel %vm2415_vm8, %v3963_v46, %v3686_v9  ;;  %v2436_v29 = vsel %vm2415_vm8, %v2403_v50, %v13847_v8  ;;  %v7629_v25 = vld [vmem:[#allocation3 + $0xcf] sm:$0xff]  ;;  %v7630_v49 = vld [vmem:[#allocation3 + $0xc7] sm:$0xff]  ;;  %v13852_v19 = vld [vmem:[#allocation332_spill] sm:$0xff]  ;;  %v3564_v13 = vpop.permute.xlu1 %3563  ;;  %v3562_v5 = vpop.permute.xlu0 %3561 }
 0x49b   : > { %v3996_v20 = vsel %vm2415_vm8, %v3964_v41, %v3688_v37  ;;  %v3774_v16 = vsel %vm332_vm0, %v7629_v25, %v13848_v35  ;;  %v13849_v62 = vld [vmem:[#allocation274_spill] sm:$0xff]  ;;  %7399 = vmatprep.mubr.msk.f32.mxu0 %vm4027_vm9, %v3995_v32  ;;  %7470 = vmatmul.mubr.msk.f32.gmra.mxu1 %vm4027_vm9, %v2435_v30  ;;  %v2371_v42 = vsel %vm2349_vm6, %v11221_v53, %v13850_v31  ;;  %v13851_v18 = vld [vmem:[#allocation331_spill] sm:$0xff]  ;;  %v13853_v55 = vld [vmem:[#allocation188_spill] sm:$0xff] }
 0x49c   : > { %v3773_v39 = vsel %vm332_vm0, %v7630_v49, %v13849_v62  ;;  %v3806_v61 = vsel %vm2217_vm2, %v3774_v16, %v13851_v18  ;;  %7400 = vmatmul.mubr.msk.f32.gmra.mxu0 %vm4027_vm9, %v3996_v20  ;;  %7472 = vmatprep.mubr.msk.f32.mxu1 %vm4027_vm9, %v2436_v29  ;;  %v2372_v7 = vsel %vm2349_vm6, %v2339_v27, %v13853_v55  ;;  %v13854_v59 = vld [vmem:[#allocation217_spill] sm:$0xff]  ;;  %v13855_v0 = vld [vmem:[#allocation358_spill] sm:$0xff]  ;;  %v13856_v53 = vld [vmem:[#allocation359_spill] sm:$0xff] }
 0x49d   : > { %v3805_v60 = vsel %vm2217_vm2, %v3773_v39, %v13852_v19  ;;  %v2404_v47 = vsel %vm2382_vm7, %v2371_v42, %v13854_v59  ;;  %v3838_v63 = vsel %vm2250_vm3, %v3806_v61, %v13855_v0  ;;  %v13857_v51 = vld [vmem:[#allocation220_spill] sm:$0xff]  ;;  %v13858_v22 = vld [vmem:[#allocation249_spill] sm:$0xff]  ;;  %v13860_v34 = vld [vmem:[#allocation386_spill] sm:$0xff] }
 0x49e   : > { %v3837_v12 = vsel %vm2250_vm3, %v3805_v60, %v13856_v53  ;;  %v2405_v40 = vsel %vm2382_vm7, %v2372_v7, %v13857_v51  ;;  %v2437_v57 = vsel %vm2415_vm8, %v2404_v47, %v13858_v22  ;;  %v13859_v52 = vld [vmem:[#allocation385_spill] sm:$0xff]  ;;  %v13861_v33 = vld [vmem:[#allocation158_spill] sm:$0xff]  ;;  %v13862_v54 = vld [vmem:[#allocation252_spill] sm:$0xff]  ;;  %v3692_v30 = vpop.permute.xlu1 %3691 }
 0x49f   : > { %v3870_v27 = vsel %vm2283_vm4, %v3838_v63, %v13859_v52  ;;  %v3869_v21 = vsel %vm2283_vm4, %v3837_v12, %v13860_v34  ;;  %v2341_v23 = vsel %vm2316_vm5, %v10849_v26, %v13861_v33  ;;  %v2438_v56 = vsel %vm2415_vm8, %v2405_v40, %v13862_v54  ;;  %v13863_v6 = vld [vmem:[#allocation328_spill] sm:$0xff]  ;;  %7473 = vmatmul.mubr.msk.f32.gmra.mxu1 %vm4027_vm9, %v2437_v57  ;;  %v13866_v44 = vld [vmem:[#allocation187_spill] sm:$0xff]  ;;  %v13869_v37 = vld [vmem:[#allocation190_spill] sm:$0xff] }
 0x4a0   : > { %v3902_v48 = vsel %vm2316_vm5, %v3870_v27, %v13863_v6  ;;  %v13864_v14 = vld [vmem:[#allocation388_spill] sm:$0xff]  ;;  %v2373_v38 = vsel %vm2349_vm6, %v11291_v36, %v13866_v44  ;;  %v13867_v26 = vld [vmem:[#allocation415_spill] sm:$0xff]  ;;  %7475 = vmatprep.mubr.msk.f32.mxu1 %vm4027_vm9, %v2438_v56  ;;  %v2374_v9 = vsel %vm2349_vm6, %v2341_v23, %v13869_v37  ;;  %v3690_v36 = vpop.permute.xlu0 %3689  ;;  %v13871_v20 = vld [vmem:[#allocation222_spill] sm:$0xff] }
 0x4a1   : > { %v3901_v2 = vsel %vm2316_vm5, %v3869_v21, %v13864_v14  ;;  %v13865_v17 = vld [vmem:[#allocation160_spill] sm:$0xff]  ;;  %v3934_v1 = vsel %vm2349_vm6, %v3902_v48, %v13867_v26  ;;  %v13870_v28 = vld [vmem:[#allocation219_spill] sm:$0xff]  ;;  %v2407_v32 = vsel %vm2382_vm7, %v2374_v9, %v13871_v20  ;;  %v13873_v16 = vld [vmem:[#allocation254_spill] sm:$0xff] }
 0x4a2   : > { %v2343_v24 = vsel %vm2316_vm5, %v10862_v10, %v13865_v17  ;;  %v13868_v41 = vld [vmem:[#allocation416_spill] sm:$0xff]  ;;  %v2406_v50 = vsel %vm2382_vm7, %v2373_v38, %v13870_v28  ;;  %v3966_v10 = vsel %vm2382_vm7, %v3934_v1, %v3564_v13  ;;  %v13872_v8 = vld [vmem:[#allocation251_spill] sm:$0xff]  ;;  %v2440_v49 = vsel %vm2415_vm8, %v2407_v32, %v13873_v16  ;;  %v7632_v42 = vld [vmem:[#allocation3 + $0xe7] sm:$0xff]  ;;  %v3568_v40 = vpop.permute.xlu1 %3567 }
 0x4a3   : > { %v3933_v46 = vsel %vm2349_vm6, %v3901_v2, %v13868_v41  ;;  %v2439_v29 = vsel %vm2415_vm8, %v2406_v50, %v13872_v8  ;;  %v3998_v25 = vsel %vm2415_vm8, %v3966_v10, %v3692_v30  ;;  %v7631_v62 = vld [vmem:[#allocation3 + $0xef] sm:$0xff]  ;;  %v13875_v18 = vld [vmem:[#allocation276_spill] sm:$0xff]  ;;  %v13876_v19 = vld [vmem:[#allocation189_spill] sm:$0xff] }
 0x4a4   : > { %v3965_v11 = vsel %vm2382_vm7, %v3933_v46, %v3562_v5  ;;  %v13874_v39 = vld [vmem:[#allocation275_spill] sm:$0xff]  ;;  %v3775_v61 = vsel %vm332_vm0, %v7632_v42, %v13875_v18  ;;  %7476 = vmatmul.mubr.msk.f32.gmra.mxu1 %vm4027_vm9, %v2439_v29  ;;  %v2375_v60 = vsel %vm2349_vm6, %v11361_v43, %v13876_v19  ;;  %v13877_v55 = vld [vmem:[#allocation333_spill] sm:$0xff]  ;;  %v13878_v59 = vld [vmem:[#allocation334_spill] sm:$0xff]  ;;  %v3566_v22 = vpop.permute.xlu0 %3565 }
 0x4a5   : > { %v3997_v35 = vsel %vm2415_vm8, %v3965_v11, %v3690_v36  ;;  %v3776_v31 = vsel %vm332_vm0, %v7631_v62, %v13874_v39  ;;  %v3807_v47 = vsel %vm2217_vm2, %v3775_v61, %v13878_v59  ;;  %7478 = vmatprep.mubr.msk.f32.mxu1 %vm4027_vm9, %v2440_v49  ;;  %v13879_v0 = vld [vmem:[#allocation192_spill] sm:$0xff]  ;;  %v13880_v53 = vld [vmem:[#allocation221_spill] sm:$0xff]  ;;  %v13886_v23 = vld [vmem:[#allocation387_spill] sm:$0xff] }
 0x4a6   : > { %7402 = vmatprep.mubr.msk.f32.mxu0 %vm4027_vm9, %v3997_v35  ;;  %v3808_v7 = vsel %vm2217_vm2, %v3776_v31, %v13877_v55  ;;  %v2376_v63 = vsel %vm2349_vm6, %v2343_v24, %v13879_v0  ;;  %v2408_v12 = vsel %vm2382_vm7, %v2375_v60, %v13880_v53  ;;  %v13881_v13 = vld [vmem:[#allocation360_spill] sm:$0xff]  ;;  %v13882_v43 = vld [vmem:[#allocation361_spill] sm:$0xff]  ;;  %v13887_v56 = vld [vmem:[#allocation159_spill] sm:$0xff]  ;;  %v3696_v36 = vpop.permute.xlu1 %3695 }
 0x4a7   : > { %7403 = vmatmul.mubr.msk.f32.gmra.mxu0 %vm4027_vm9, %v3998_v25  ;;  %v3840_v5 = vsel %vm2250_vm3, %v3808_v7, %v13881_v13  ;;  %v3839_v51 = vsel %vm2250_vm3, %v3807_v47, %v13882_v43  ;;  %v13883_v57 = vld [vmem:[#allocation224_spill] sm:$0xff]  ;;  %v13884_v27 = vld [vmem:[#allocation253_spill] sm:$0xff]  ;;  %v2344_v6 = vsel %vm2316_vm5, %v10854_v58, %v13887_v56  ;;  %v13890_v24 = vld [vmem:[#allocation390_spill] sm:$0xff] }
 0x4a8   : > { %v2409_v52 = vsel %vm2382_vm7, %v2376_v63, %v13883_v57  ;;  %v2441_v34 = vsel %vm2415_vm8, %v2408_v12, %v13884_v27  ;;  %v13885_v21 = vld [vmem:[#allocation277_spill] sm:$0xff]  ;;  %v3871_v54 = vsel %vm2283_vm4, %v3839_v51, %v13886_v23  ;;  %v13888_v48 = vld [vmem:[#allocation256_spill] sm:$0xff]  ;;  %v13891_v38 = vld [vmem:[#allocation162_spill] sm:$0xff]  ;;  %v3694_v20 = vpop.permute.xlu0 %3693 }
 0x4a9   : > { %v3872_v33 = vsel %vm2283_vm4, %v3840_v5, %v13885_v21  ;;  %v2442_v14 = vsel %vm2415_vm8, %v2409_v52, %v13888_v48  ;;  %v13889_v2 = vld [vmem:[#allocation389_spill] sm:$0xff]  ;;  %v3903_v44 = vsel %vm2316_vm5, %v3871_v54, %v13890_v24  ;;  %7479 = vmatmul.mubr.msk.f32.gmra.mxu1 %vm4027_vm9, %v2441_v34  ;;  %v2345_v26 = vsel %vm2316_vm5, %v10877_v15, %v13891_v38  ;;  %v13892_v1 = vld [vmem:[#allocation191_spill] sm:$0xff]  ;;  %v13894_v37 = vld [vmem:[#allocation418_spill] sm:$0xff] }
 0x4aa   : > { %v3904_v17 = vsel %vm2316_vm5, %v3872_v33, %v13889_v2  ;;  %v2377_v41 = vsel %vm2349_vm6, %v2344_v6, %v13892_v1  ;;  %v13893_v46 = vld [vmem:[#allocation417_spill] sm:$0xff]  ;;  %v3935_v9 = vsel %vm2349_vm6, %v3903_v44, %v13894_v37  ;;  %7481 = vmatprep.mubr.msk.f32.mxu1 %vm4027_vm9, %v2442_v14  ;;  %v13895_v28 = vld [vmem:[#allocation194_spill] sm:$0xff]  ;;  %v13896_v10 = vld [vmem:[#allocation223_spill] sm:$0xff] }
 0x4ab   : > { %v3936_v58 = vsel %vm2349_vm6, %v3904_v17, %v13893_v46  ;;  %v2378_v50 = vsel %vm2349_vm6, %v2345_v26, %v13895_v28  ;;  %v2410_v11 = vsel %vm2382_vm7, %v2377_v41, %v13896_v10  ;;  %v3967_v15 = vsel %vm2382_vm7, %v3935_v9, %v3566_v22  ;;  %v13897_v32 = vld [vmem:[#allocation226_spill] sm:$0xff]  ;;  %v13898_v29 = vld [vmem:[#allocation255_spill] sm:$0xff]  ;;  %v13900_v39 = vld [vmem:[#allocation161_spill] sm:$0xff] }
 0x4ac   : > { %v3968_v30 = vsel %vm2382_vm7, %v3936_v58, %v3568_v40  ;;  %v2411_v8 = vsel %vm2382_vm7, %v2378_v50, %v13897_v32  ;;  %v2443_v25 = vsel %vm2415_vm8, %v2410_v11, %v13898_v29  ;;  %v3999_v16 = vsel %vm2415_vm8, %v3967_v15, %v3694_v20  ;;  %v13899_v49 = vld [vmem:[#allocation63_spill] sm:$0xff]  ;;  %v13901_v42 = vld [vmem:[#allocation258_spill] sm:$0xff]  ;;  %v13903_v60 = vld [vmem:[#allocation164_spill] sm:$0xff] }
 0x4ad   : > { %v4000_v35 = vsel %vm2415_vm8, %v3968_v30, %v3696_v36  ;;  %v2314_v62 = vsel %vm2283_vm4, %v10671_v4, %v13899_v49  ;;  %v2346_v31 = vsel %vm2316_vm5, %v10867_v3, %v13900_v39  ;;  %v2444_v18 = vsel %vm2415_vm8, %v2411_v8, %v13901_v42  ;;  %7405 = vmatprep.mubr.msk.f32.mxu0 %vm4027_vm9, %v3999_v16  ;;  %v13902_v61 = vld [vmem:[#allocation98_spill] sm:$0xff]  ;;  %v13904_v7 = vld [vmem:[#allocation193_spill] sm:$0xff]  ;;  %v13906_v47 = vld [vmem:[#allocation196_spill] sm:$0xff] }
 0x4ae   : > { %7482 = vmatmul.mubr.msk.f32.gmra.mxu1 %vm4027_vm9, %v2443_v25  ;;  %v2249_v19 = vsel %vm2217_vm2, %v10213_v45, %v13902_v61  ;;  %v2347_v55 = vsel %vm2316_vm5, %v2314_v62, %v13903_v60  ;;  %v2379_v4 = vsel %vm2349_vm6, %v2346_v31, %v13904_v7  ;;  %7406 = vmatmul.mubr.msk.f32.gmra.mxu0 %vm4027_vm9, %v4000_v35  ;;  %v13905_v3 = vld [vmem:[#allocation129_spill] sm:$0xff]  ;;  %v13908_v45 = vld [vmem:[#allocation64_spill] sm:$0xff]  ;;  %v13911_v40 = vld [vmem:[#allocation163_spill] sm:$0xff] }
 0x4af   : > { %7484 = vmatprep.mubr.msk.f32.mxu1 %vm4027_vm9, %v2444_v18  ;;  %v2282_v59 = vsel %vm2250_vm3, %v2249_v19, %v13905_v3  ;;  %v2380_v0 = vsel %vm2349_vm6, %v2347_v55, %v13906_v47  ;;  %v13907_v63 = vld [vmem:[#allocation225_spill] sm:$0xff]  ;;  %v13909_v13 = vld [vmem:[#allocation228_spill] sm:$0xff]  ;;  %v13913_v27 = vld [vmem:[#allocation195_spill] sm:$0xff] }
 0x4b0   : > { %v2412_v53 = vsel %vm2382_vm7, %v2379_v4, %v13907_v63  ;;  %v2315_v12 = vsel %vm2283_vm4, %v2282_v59, %v13908_v45  ;;  %v2413_v5 = vsel %vm2382_vm7, %v2380_v0, %v13909_v13  ;;  %v13910_v43 = vld [vmem:[#allocation257_spill] sm:$0xff]  ;;  %v13912_v57 = vld [vmem:[#allocation260_spill] sm:$0xff]  ;;  %v13914_v21 = vld [vmem:[#allocation227_spill] sm:$0xff] }
 0x4b1   : > { %v2445_v51 = vsel %vm2415_vm8, %v2412_v53, %v13910_v43  ;;  %v2348_v22 = vsel %vm2316_vm5, %v2315_v12, %v13911_v40  ;;  %v2446_v52 = vsel %vm2415_vm8, %v2413_v5, %v13912_v57  ;;  %v13915_v23 = vld [vmem:[#allocation259_spill] sm:$0xff]  ;;  %v11593_v10 = vld [vmem:[%s12876_s4] ss:$0 sm:$0xff] }
 0x4b2   : > { %7485 = vmatmul.mubr.msk.f32.gmra.mxu1 %vm4027_vm9, %v2445_v51  ;;  %v2381_v34 = vsel %vm2349_vm6, %v2348_v22, %v13913_v27 }
 0x4b3   : > { %7487 = vmatprep.mubr.msk.f32.mxu1 %vm4027_vm9, %v2446_v52  ;;  %v2414_v33 = vsel %vm2382_vm7, %v2381_v34, %v13914_v21 }
 0x4b4   : > { %v2447_v54 = vsel %vm2415_vm8, %v2414_v33, %v13915_v23 }
 0x4b6   : > { %7488 = vmatmul.mubr.msk.f32.gmra.mxu1 %vm4027_vm9, %v2447_v54 }
 0x4e8   : > { %v11558_v56 = vpop.f32.mrf.mxu1 }
 0x4ea   : > { %v11560_v6 = vpop.f32.mrf.mxu1 }
 0x4f0   : > { %v11562_v48 = vpop.f32.mrf.mxu1 }
 0x4f2   : > { %v11564_v14 = vpop.f32.mrf.mxu1 }
 0x4fa   : > { %v11566_v2 = vpop.f32.mrf.mxu1 }
 0x4fc   : > { %v11568_v17 = vpop.f32.mrf.mxu1 }
 0x503   : > { %v11570_v24 = vpop.f32.mrf.mxu1 }
 0x505   : > { %v11572_v44 = vpop.f32.mrf.mxu1 }
 0x50c   : > { %v11574_v38 = vpop.f32.mrf.mxu1 }
 0x50e   : > { %v11576_v26 = vpop.f32.mrf.mxu1 }
 0x517   : > { %v11578_v1 = vpop.f32.mrf.mxu1 }
 0x519   : > { %v11580_v41 = vpop.f32.mrf.mxu1 }
 0x523   : > { %v11582_v46 = vpop.f32.mrf.mxu1 }
 0x525   : > { %v11584_v58 = vpop.f32.mrf.mxu1 }
 0x52e   : > { %v11586_v37 = vpop.f32.mrf.mxu1 }
 0x530   : > { %v11588_v9 = vpop.f32.mrf.mxu1 }
 0x531   : > { %v7386_v28 = vpop.f32.mrf.mxu0 }
 0x532   : > { %v7444_v50 = vpop.f32.mrf.mxu1 }
 0x533   : > { %v4524_v11 = vadd.f32 %v7444_v50, %v7386_v28  ;;  %v4194_v30 = vpop.f32.mrf.mxu0 }
 0x534   : > { %v4518_v15 = vpop.f32.mrf.mxu1 }
 0x535   : > { %v4685_v36 = vadd.f32 %v11593_v10, %v4524_v11  ;;  %v4519_v20 = vadd.f32 %v4518_v15, %v4194_v30 }
 0x536   : > { %v7447_v32 = vpop.f32.mrf.mxu1 }
 0x537   : > { %v4717_v8 = vmax.f32 %v4685_v36, 0.0  ;;  %v4684_v29 = vadd.f32 %v11593_v10, %v4519_v20  ;;  %v7389_v25 = vpop.f32.mrf.mxu0 }
 0x538   : > { %v4534_v35 = vadd.f32 %v7447_v32, %v7389_v25  ;;  %v4528_v16 = vpop.f32.mrf.mxu1 }
 0x539   : > { %4750 = vst.msk [vmem:[#allocation4 + $0x30] sm:$0xff] %vm332_vm0, %v4717_v8  ;;  %4782 = vst.msk [vmem:[#allocation4 + $0x10] sm:$0xff] %vm332_vm0, %v4717_v8  ;;  %v4716_v49 = vmax.f32 %v4684_v29, 0.0  ;;  %v4204_v62 = vpop.f32.mrf.mxu0 }
 0x53a   : > { %v4687_v39 = vadd.f32 %v11593_v10, %v4534_v35  ;;  %v4529_v31 = vadd.f32 %v4528_v16, %v4204_v62  ;;  %v7450_v42 = vpop.f32.mrf.mxu1 }
 0x53b   : > { %4749 = vst.msk [vmem:[#allocation4 + $0x28] sm:$0xff] %vm332_vm0, %v4716_v49  ;;  %4781 = vst.msk [vmem:[#allocation4 + $0x8] sm:$0xff] %vm332_vm0, %v4716_v49 }
 0x53c   : > { %v4719_v18 = vmax.f32 %v4687_v39, 0.0  ;;  %v4686_v61 = vadd.f32 %v11593_v10, %v4529_v31  ;;  %v4538_v19 = vpop.f32.mrf.mxu1 }
 0x53e   : > { %4752 = vst.msk [vmem:[#allocation4 + $0x50] sm:$0xff] %vm332_vm0, %v4719_v18  ;;  %v4718_v60 = vmax.f32 %v4686_v61, 0.0 }
 0x540   : > { %v7453_v55 = vpop.f32.mrf.mxu1  ;;  %v7392_v7 = vpop.f32.mrf.mxu0  ;;  %4751 = vst.msk [vmem:[#allocation4 + $0x48] sm:$0xff] %vm332_vm0, %v4718_v60  ;;  %v5035_v59 = vld [vmem:[#allocation4 + $0x10] sm:$0xff] }
 0x541   : > { %v4544_v4 = vadd.f32 %v7450_v42, %v7392_v7  ;;  %v7206_v47 = vld [vmem:[#allocation4 + $0x17] ss:$0 sm:$0xff]  ;;  %5325 = vrot.lane.b32.xlu1 %v5035_v59, %s7658_s30 }
 0x542   : > { %v4548_v3 = vpop.f32.mrf.mxu1  ;;  %v4214_v0 = vpop.f32.mrf.mxu0  ;;  %4984 = vst.msk [vmem:[#allocation4 + $0x18] sm:$0xff] %vm332_vm0, %v7206_v47  ;;  %v7207_v63 = vld [vmem:[#allocation4 + $0x37] ss:$0 sm:$0xff]  ;;  %v5034_v13 = vld [vmem:[#allocation4 + $0x8] sm:$0xff] }
 0x543   : > { %v4689_v53 = vadd.f32 %v11593_v10, %v4544_v4  ;;  %v4539_v45 = vadd.f32 %v4538_v19, %v4214_v0  ;;  %4985 = vst.msk [vmem:[#allocation4 + $0x38] sm:$0xff] %vm332_vm0, %v7207_v63  ;;  %5323 = vrot.lane.b32.xlu0 %v5034_v13, %s7658_s30  ;;  %v7188_v5 = vld [vmem:[#allocation4 + $0x8] ss:$0 sm:$0xff]  ;;  %v11611_v22 = vld [vmem:[#allocation4 + $0x30] sm:$0xff] }
 0x544   : > { %v7456_v12 = vpop.f32.mrf.mxu1  ;;  %4876 = vst.msk [vmem:[#allocation4] sm:$0xff] %vm332_vm0, %v7188_v5  ;;  %v7189_v57 = vld [vmem:[#allocation4 + $0x28] ss:$0 sm:$0xff] }
 0x545   : > { %v4721_v43 = vmax.f32 %v4689_v53, 0.0  ;;  %v4688_v51 = vadd.f32 %v11593_v10, %v4539_v45  ;;  %5329 = vrot.lane.b32.xlu1 %v11611_v22, %s7658_s30  ;;  %v7208_v52 = vld [vmem:[#allocation4 + $0x57] ss:$0 sm:$0xff]  ;;  %4877 = vst.msk [vmem:[#allocation4 + $0x20] sm:$0xff] %vm332_vm0, %v7189_v57  ;;  %v11618_v21 = vld [vmem:[#allocation4 + $0x28] sm:$0xff] }
 0x546   : > { %v4558_v40 = vpop.f32.mrf.mxu1  ;;  %4986 = vst.msk [vmem:[#allocation4 + $0x58] sm:$0xff] %vm332_vm0, %v7208_v52  ;;  %v11626_v28 = vld [vmem:[#allocation4 + $0x50] sm:$0xff] }
 0x547   : > { %4754 = vst.msk [vmem:[#allocation4 + $0x70] sm:$0xff] %vm332_vm0, %v4721_v43  ;;  %v4720_v27 = vmax.f32 %v4688_v51, 0.0  ;;  %5327 = vrot.lane.b32.xlu0 %v11618_v21, %s7658_s30  ;;  %v7190_v50 = vld [vmem:[#allocation4 + $0x48] ss:$0 sm:$0xff] }
 0x548   : > { %v7459_v34 = vpop.f32.mrf.mxu1  ;;  %4878 = vst.msk [vmem:[#allocation4 + $0x40] sm:$0xff] %vm332_vm0, %v7190_v50  ;;  %v11634_v20 = vld [vmem:[#allocation4 + $0x48] sm:$0xff] }
 0x549   : > { %4753 = vst.msk [vmem:[#allocation4 + $0x68] sm:$0xff] %vm332_vm0, %v4720_v27  ;;  %5333 = vrot.lane.b32.xlu1 %v11626_v28, %s7658_s30 }
 0x54a   : > { %v7395_v33 = vpop.f32.mrf.mxu0  ;;  %v11624_v54 = vpop.f32.mrf.mxu1 }
 0x54b   : > { %v4554_v23 = vadd.f32 %v7453_v55, %v7395_v33  ;;  %5331 = vrot.lane.b32.xlu0 %v11634_v20, %s7658_s30 }
 0x54c   : > { %v4224_v11 = vpop.f32.mrf.mxu0  ;;  %v11632_v36 = vpop.f32.mrf.mxu1 }
 0x54d   : > { %v4691_v30 = vadd.f32 %v11593_v10, %v4554_v23  ;;  %v4549_v15 = vadd.f32 %v4548_v3, %v4224_v11 }
 0x54e   : > { %v11639_v29 = vpop.f32.mrf.mxu1  ;;  %v5041_v25 = vld [vmem:[#allocation4 + $0x70] sm:$0xff] }
 0x54f   : > { %v4723_v32 = vmax.f32 %v4691_v30, 0.0  ;;  %v4690_v8 = vadd.f32 %v11593_v10, %v4549_v15  ;;  %v7209_v35 = vld [vmem:[#allocation4 + $0x77] ss:$0 sm:$0xff]  ;;  %5337 = vrot.lane.b32.xlu1 %v5041_v25, %s7658_s30 }
 0x550   : > { %4987 = vst.msk [vmem:[#allocation4 + $0x78] sm:$0xff] %vm332_vm0, %v7209_v35  ;;  %v5040_v39 = vld [vmem:[#allocation4 + $0x68] sm:$0xff] }
 0x551   : > { %4756 = vst.msk [vmem:[#allocation4 + $0x90] sm:$0xff] %vm332_vm0, %v4723_v32  ;;  %v4722_v16 = vmax.f32 %v4690_v8, 0.0  ;;  %5335 = vrot.lane.b32.xlu0 %v5040_v39, %s7658_s30  ;;  %v7191_v18 = vld [vmem:[#allocation4 + $0x68] ss:$0 sm:$0xff] }
 0x552   : > { %v11643_v49 = vpop.f32.mrf.mxu1  ;;  %4879 = vst.msk [vmem:[#allocation4 + $0x60] sm:$0xff] %vm332_vm0, %v7191_v18 }
 0x553   : > { %v7398_v62 = vpop.f32.mrf.mxu0  ;;  %4755 = vst.msk [vmem:[#allocation4 + $0x88] sm:$0xff] %vm332_vm0, %v4722_v16 }
 0x554   : > { %v4564_v31 = vadd.f32 %v7456_v12, %v7398_v62  ;;  %v11647_v42 = vpop.f32.mrf.mxu1 }
 0x555   : > { %v4234_v61 = vpop.f32.mrf.mxu0 }
 0x556   : > { %v4693_v19 = vadd.f32 %v11593_v10, %v4564_v31  ;;  %v4559_v60 = vadd.f32 %v4558_v40, %v4234_v61  ;;  %v7468_v55 = vpop.f32.mrf.mxu1 }
 0x557   : > { %v4604_v7 = vadd.f32 %v7468_v55, %v11558_v56 }
 0x558   : > { %v4725_v4 = vmax.f32 %v4693_v19, 0.0  ;;  %v4692_v3 = vadd.f32 %v11593_v10, %v4559_v60  ;;  %v4598_v59 = vpop.f32.mrf.mxu1  ;;  %v5043_v63 = vld [vmem:[#allocation4 + $0x90] sm:$0xff] }
 0x559   : > { %v4701_v47 = vadd.f32 %v11593_v10, %v4604_v7  ;;  %v4599_v0 = vadd.f32 %v4598_v59, %v11560_v6  ;;  %v7210_v53 = vld [vmem:[#allocation4 + $0x97] ss:$0 sm:$0xff]  ;;  %5341 = vrot.lane.b32.xlu1 %v5043_v63, %s7658_s30 }
 0x55a   : > { %4758 = vst.msk [vmem:[#allocation4 + $0xb0] sm:$0xff] %vm332_vm0, %v4725_v4  ;;  %v4724_v45 = vmax.f32 %v4692_v3, 0.0  ;;  %4988 = vst.msk [vmem:[#allocation4 + $0x98] sm:$0xff] %vm332_vm0, %v7210_v53  ;;  %v5042_v51 = vld [vmem:[#allocation4 + $0x88] sm:$0xff] }
 0x55b   : > { %v7471_v12 = vpop.f32.mrf.mxu1  ;;  %v4733_v13 = vmax.f32 %v4701_v47, 0.0  ;;  %v4700_v56 = vadd.f32 %v11593_v10, %v4599_v0  ;;  %5339 = vrot.lane.b32.xlu0 %v5042_v51, %s7658_s30  ;;  %v7192_v57 = vld [vmem:[#allocation4 + $0x88] ss:$0 sm:$0xff] }
 0x55c   : > { %v4614_v5 = vadd.f32 %v7471_v12, %v11562_v48  ;;  %v7401_v43 = vpop.f32.mrf.mxu0  ;;  %4757 = vst.msk [vmem:[#allocation4 + $0xa8] sm:$0xff] %vm332_vm0, %v4724_v45  ;;  %4880 = vst.msk [vmem:[#allocation4 + $0x80] sm:$0xff] %vm332_vm0, %v7192_v57 }
 0x55d   : > { %v4574_v6 = vadd.f32 %v7459_v34, %v7401_v43  ;;  %v4608_v40 = vpop.f32.mrf.mxu1  ;;  %4766 = vst.msk [vmem:[#allocation4 + $0x130] sm:$0xff] %vm332_vm0, %v4733_v13  ;;  %v4732_v52 = vmax.f32 %v4700_v56, 0.0 }
 0x55e   : > { %v4703_v27 = vadd.f32 %v11593_v10, %v4614_v5  ;;  %v4609_v33 = vadd.f32 %v4608_v40, %v11564_v14  ;;  %v4244_v23 = vpop.f32.mrf.mxu0 }
 0x55f   : > { %v4695_v48 = vadd.f32 %v11593_v10, %v4574_v6  ;;  %v4569_v50 = vadd.f32 %v11624_v54, %v4244_v23  ;;  %v7474_v11 = vpop.f32.mrf.mxu1  ;;  %4765 = vst.msk [vmem:[#allocation4 + $0x128] sm:$0xff] %vm332_vm0, %v4732_v52 }
 0x560   : > { %v4735_v34 = vmax.f32 %v4703_v27, 0.0  ;;  %v4702_v30 = vadd.f32 %v11593_v10, %v4609_v33  ;;  %v4624_v15 = vadd.f32 %v7474_v11, %v11566_v2 }
 0x561   : > { %v4727_v32 = vmax.f32 %v4695_v48, 0.0  ;;  %v4694_v8 = vadd.f32 %v11593_v10, %v4569_v50  ;;  %v4618_v25 = vpop.f32.mrf.mxu1  ;;  %v5045_v54 = vld [vmem:[#allocation4 + $0xb0] sm:$0xff] }
 0x562   : > { %4768 = vst.msk [vmem:[#allocation4 + $0x150] sm:$0xff] %vm332_vm0, %v4735_v34  ;;  %v4734_v14 = vmax.f32 %v4702_v30, 0.0  ;;  %v4705_v35 = vadd.f32 %v11593_v10, %v4624_v15  ;;  %v4619_v16 = vadd.f32 %v4618_v25, %v11568_v17  ;;  %v7211_v62 = vld [vmem:[#allocation4 + $0xb7] ss:$0 sm:$0xff]  ;;  %5345 = vrot.lane.b32.xlu1 %v5045_v54, %s7658_s30 }
 0x563   : > { %4760 = vst.msk [vmem:[#allocation4 + $0xd0] sm:$0xff] %vm332_vm0, %v4727_v32  ;;  %v4726_v39 = vmax.f32 %v4694_v8, 0.0  ;;  %4989 = vst.msk [vmem:[#allocation4 + $0xb8] sm:$0xff] %vm332_vm0, %v7211_v62  ;;  %v5044_v60 = vld [vmem:[#allocation4 + $0xa8] sm:$0xff] }
 0x564   : > { %v7477_v31 = vpop.f32.mrf.mxu1  ;;  %4767 = vst.msk [vmem:[#allocation4 + $0x148] sm:$0xff] %vm332_vm0, %v4734_v14  ;;  %v4737_v2 = vmax.f32 %v4705_v35, 0.0  ;;  %v4704_v18 = vadd.f32 %v11593_v10, %v4619_v16  ;;  %5343 = vrot.lane.b32.xlu0 %v5044_v60, %s7658_s30  ;;  %v7215_v7 = vld [vmem:[#allocation4 + $0x137] ss:$0 sm:$0xff] }
 0x565   : > { %v4634_v61 = vadd.f32 %v7477_v31, %v11570_v24  ;;  %4759 = vst.msk [vmem:[#allocation4 + $0xc8] sm:$0xff] %vm332_vm0, %v4726_v39  ;;  %4993 = vst.msk [vmem:[#allocation4 + $0x138] sm:$0xff] %vm332_vm0, %v7215_v7  ;;  %v7193_v24 = vld [vmem:[#allocation4 + $0xa8] ss:$0 sm:$0xff] }
 0x566   : > { %v4628_v55 = vpop.f32.mrf.mxu1  ;;  %4770 = vst.msk [vmem:[#allocation4 + $0x170] sm:$0xff] %vm332_vm0, %v4737_v2  ;;  %v4736_v4 = vmax.f32 %v4704_v18, 0.0  ;;  %4881 = vst.msk [vmem:[#allocation4 + $0xa0] sm:$0xff] %vm332_vm0, %v7193_v24  ;;  %v7197_v13 = vld [vmem:[#allocation4 + $0x128] ss:$0 sm:$0xff] }
 0x567   : > { %v7404_v19 = vpop.f32.mrf.mxu0  ;;  %v4707_v3 = vadd.f32 %v11593_v10, %v4634_v61  ;;  %v4629_v59 = vadd.f32 %v4628_v55, %v11572_v44  ;;  %4885 = vst.msk [vmem:[#allocation4 + $0x120] sm:$0xff] %vm332_vm0, %v7197_v13 }
 0x568   : > { %v4584_v17 = vadd.f32 %v11632_v36, %v7404_v19  ;;  %4769 = vst.msk [vmem:[#allocation4 + $0x168] sm:$0xff] %vm332_vm0, %v4736_v4 }
 0x569   : > { %v4254_v47 = vpop.f32.mrf.mxu0  ;;  %v7480_v36 = vpop.f32.mrf.mxu1  ;;  %v4739_v53 = vmax.f32 %v4707_v3, 0.0  ;;  %v4706_v45 = vadd.f32 %v11593_v10, %v4629_v59  ;;  %v7216_v43 = vld [vmem:[#allocation4 + $0x157] ss:$0 sm:$0xff] }
 0x56a   : > { %v4697_v0 = vadd.f32 %v11593_v10, %v4584_v17  ;;  %v4579_v63 = vadd.f32 %v11639_v29, %v4254_v47  ;;  %v4644_v12 = vadd.f32 %v7480_v36, %v11574_v38  ;;  %v5047_v40 = vld [vmem:[#allocation4 + $0xd0] sm:$0xff]  ;;  %4994 = vst.msk [vmem:[#allocation4 + $0x158] sm:$0xff] %vm332_vm0, %v7216_v43 }
 0x56b   : > { %v4638_v5 = vpop.f32.mrf.mxu1  ;;  %4772 = vst.msk [vmem:[#allocation4 + $0x190] sm:$0xff] %vm332_vm0, %v4739_v53  ;;  %v4738_v29 = vmax.f32 %v4706_v45, 0.0  ;;  %v7212_v57 = vld [vmem:[#allocation4 + $0xd7] ss:$0 sm:$0xff]  ;;  %5349 = vrot.lane.b32.xlu1 %v5047_v40, %s7658_s30  ;;  %v7198_v25 = vld [vmem:[#allocation4 + $0x148] ss:$0 sm:$0xff] }
 0x56c   : > { %v4729_v44 = vmax.f32 %v4697_v0, 0.0  ;;  %v4696_v56 = vadd.f32 %v11593_v10, %v4579_v63  ;;  %v4709_v51 = vadd.f32 %v11593_v10, %v4644_v12  ;;  %v4639_v6 = vadd.f32 %v4638_v5, %v11576_v26  ;;  %4990 = vst.msk [vmem:[#allocation4 + $0xd8] sm:$0xff] %vm332_vm0, %v7212_v57  ;;  %v5046_v48 = vld [vmem:[#allocation4 + $0xc8] sm:$0xff]  ;;  %4886 = vst.msk [vmem:[#allocation4 + $0x140] sm:$0xff] %vm332_vm0, %v7198_v25  ;;  %v5053_v43 = vld [vmem:[#allocation4 + $0x130] sm:$0xff] }
 0x56d   : > { %4771 = vst.msk [vmem:[#allocation4 + $0x188] sm:$0xff] %vm332_vm0, %v4738_v29  ;;  %5347 = vrot.lane.b32.xlu0 %v5046_v48, %s7658_s30  ;;  %v7217_v34 = vld [vmem:[#allocation4 + $0x177] ss:$0 sm:$0xff] }
 0x56e   : > { %4762 = vst.msk [vmem:[#allocation4 + $0xf0] sm:$0xff] %vm332_vm0, %v4729_v44  ;;  %v4728_v38 = vmax.f32 %v4696_v56, 0.0  ;;  %v7483_v52 = vpop.f32.mrf.mxu1  ;;  %v4741_v27 = vmax.f32 %v4709_v51, 0.0  ;;  %v4708_v33 = vadd.f32 %v11593_v10, %v4639_v6  ;;  %v7407_v26 = vpop.f32.mrf.mxu0  ;;  %4995 = vst.msk [vmem:[#allocation4 + $0x178] sm:$0xff] %vm332_vm0, %v7217_v34  ;;  %v5052_v6 = vld [vmem:[#allocation4 + $0x128] sm:$0xff]  ;;  %v5055_v57 = vld [vmem:[#allocation4 + $0x150] sm:$0xff] }
 0x56f   : > { %v4654_v23 = vadd.f32 %v7483_v52, %v11578_v1  ;;  %v4594_v50 = vadd.f32 %v11643_v49, %v7407_v26  ;;  %v7194_v1 = vld [vmem:[#allocation4 + $0xc8] ss:$0 sm:$0xff]  ;;  %v5067_v25 = vld [vmem:[#allocation4 + $0x11] sm:$0xff] }
 0x570   : > { %4761 = vst.msk [vmem:[#allocation4 + $0xe8] sm:$0xff] %vm332_vm0, %v4728_v38  ;;  %v4648_v11 = vpop.f32.mrf.mxu1  ;;  %4774 = vst.msk [vmem:[#allocation4 + $0x1b0] sm:$0xff] %vm332_vm0, %v4741_v27  ;;  %v4740_v30 = vmax.f32 %v4708_v33, 0.0  ;;  %v4264_v8 = vpop.f32.mrf.mxu0  ;;  %v7199_v62 = vld [vmem:[#allocation4 + $0x168] ss:$0 sm:$0xff]  ;;  %v5057_v27 = vld [vmem:[#allocation4 + $0x170] sm:$0xff] }
 0x571   : > { %v4711_v15 = vadd.f32 %v11593_v10, %v4654_v23  ;;  %v4649_v32 = vadd.f32 %v4648_v11, %v11580_v41  ;;  %v4699_v14 = vadd.f32 %v11593_v10, %v4594_v50  ;;  %v4589_v49 = vadd.f32 %v11647_v42, %v4264_v8  ;;  %4882 = vst.msk [vmem:[#allocation4 + $0xc0] sm:$0xff] %vm332_vm0, %v7194_v1  ;;  %v5054_v52 = vld [vmem:[#allocation4 + $0x148] sm:$0xff] }
 0x572   : > { %v7486_v35 = vpop.f32.mrf.mxu1  ;;  %4773 = vst.msk [vmem:[#allocation4 + $0x1a8] sm:$0xff] %vm332_vm0, %v4740_v30  ;;  %v7218_v18 = vld [vmem:[#allocation4 + $0x197] ss:$0 sm:$0xff]  ;;  %4887 = vst.msk [vmem:[#allocation4 + $0x160] sm:$0xff] %vm332_vm0, %v7199_v62  ;;  %v5056_v33 = vld [vmem:[#allocation4 + $0x168] sm:$0xff] }
 0x573   : > { %v4743_v16 = vmax.f32 %v4711_v15, 0.0  ;;  %v4710_v54 = vadd.f32 %v11593_v10, %v4649_v32  ;;  %v4664_v41 = vadd.f32 %v7486_v35, %v11582_v46  ;;  %v4731_v39 = vmax.f32 %v4699_v14, 0.0  ;;  %4996 = vst.msk [vmem:[#allocation4 + $0x198] sm:$0xff] %vm332_vm0, %v7218_v18  ;;  %v5059_v23 = vld [vmem:[#allocation4 + $0x190] sm:$0xff] }
 0x574   : > { %v4698_v31 = vadd.f32 %v11593_v10, %v4589_v49  ;;  %v4658_v2 = vpop.f32.mrf.mxu1  ;;  %v5058_v26 = vld [vmem:[#allocation4 + $0x188] sm:$0xff]  ;;  %v11776_v49 = vld [vmem:[#allocation4 + $0x31] sm:$0xff] }
 0x575   : > { %4776 = vst.msk [vmem:[#allocation4 + $0x1d0] sm:$0xff] %vm332_vm0, %v4743_v16  ;;  %v4742_v42 = vmax.f32 %v4710_v54, 0.0  ;;  %v4713_v61 = vadd.f32 %v11593_v10, %v4664_v41  ;;  %v4659_v19 = vadd.f32 %v4658_v2, %v11584_v58  ;;  %v5049_v60 = vld [vmem:[#allocation4 + $0xf0] sm:$0xff]  ;;  %4764 = vst.msk [vmem:[#allocation4 + $0x110] sm:$0xff] %vm332_vm0, %v4731_v39 }
 0x576   : > { %v7213_v17 = vld [vmem:[#allocation4 + $0xf7] ss:$0 sm:$0xff]  ;;  %v4730_v46 = vmax.f32 %v4698_v31, 0.0  ;;  %5353 = vrot.lane.b32.xlu1 %v5049_v60, %s7658_s30  ;;  %v7489_v55 = vpop.f32.mrf.mxu1  ;;  %v5066_v14 = vld [vmem:[#allocation4 + $0x9] sm:$0xff] }
 0x577   : > { %4991 = vst.msk [vmem:[#allocation4 + $0xf8] sm:$0xff] %vm332_vm0, %v7213_v17  ;;  %4775 = vst.msk [vmem:[#allocation4 + $0x1c8] sm:$0xff] %vm332_vm0, %v4742_v42  ;;  %v4745_v7 = vmax.f32 %v4713_v61, 0.0  ;;  %v4712_v4 = vadd.f32 %v11593_v10, %v4659_v19  ;;  %v4674_v3 = vadd.f32 %v7489_v55, %v11586_v37  ;;  %v5048_v58 = vld [vmem:[#allocation4 + $0xe8] sm:$0xff]  ;;  %v7219_v47 = vld [vmem:[#allocation4 + $0x1b7] ss:$0 sm:$0xff] }
 0x578   : > { %4763 = vst.msk [vmem:[#allocation4 + $0x108] sm:$0xff] %vm332_vm0, %v4730_v46  ;;  %v4668_v59 = vpop.f32.mrf.mxu1  ;;  %5351 = vrot.lane.b32.xlu0 %v5048_v58, %s7658_s30  ;;  %4997 = vst.msk [vmem:[#allocation4 + $0x1b8] sm:$0xff] %vm332_vm0, %v7219_v47  ;;  %v7195_v36 = vld [vmem:[#allocation4 + $0xe8] ss:$0 sm:$0xff]  ;;  %v5061_v48 = vld [vmem:[#allocation4 + $0x1b0] sm:$0xff] }
 0x579   : > { %4778 = vst.msk [vmem:[#allocation4 + $0x1f0] sm:$0xff] %vm332_vm0, %v4745_v7  ;;  %v4744_v24 = vmax.f32 %v4712_v4, 0.0  ;;  %v4715_v0 = vadd.f32 %v11593_v10, %v4674_v3  ;;  %v4669_v63 = vadd.f32 %v4668_v59, %v11588_v9  ;;  %4883 = vst.msk [vmem:[#allocation4 + $0xe0] sm:$0xff] %vm332_vm0, %v7195_v36  ;;  %v7200_v37 = vld [vmem:[#allocation4 + $0x188] ss:$0 sm:$0xff]  ;;  %v11780_v35 = vld [vmem:[#allocation4 + $0x29] sm:$0xff] }
 0x57a   : > { %4888 = vst.msk [vmem:[#allocation4 + $0x180] sm:$0xff] %vm332_vm0, %v7200_v37  ;;  %v7201_v12 = vld [vmem:[#allocation4 + $0x1a8] ss:$0 sm:$0xff]  ;;  %v11784_v16 = vld [vmem:[#allocation4 + $0x51] sm:$0xff]  ;;  %v11788_v54 = vld [vmem:[#allocation4 + $0x49] sm:$0xff] }
 0x57b   : > { %4777 = vst.msk [vmem:[#allocation4 + $0x1e8] sm:$0xff] %vm332_vm0, %v4744_v24  ;;  %v4747_v53 = vmax.f32 %v4715_v0, 0.0  ;;  %v4714_v45 = vadd.f32 %v11593_v10, %v4669_v63  ;;  %4889 = vst.msk [vmem:[#allocation4 + $0x1a0] sm:$0xff] %vm332_vm0, %v7201_v12  ;;  %v5060_v50 = vld [vmem:[#allocation4 + $0x1a8] sm:$0xff]  ;;  %v11792_v41 = vld [vmem:[#allocation4 + $0x71] sm:$0xff] }
 0x57c   : > { %v7220_v13 = vld [vmem:[#allocation4 + $0x1d7] ss:$0 sm:$0xff]  ;;  %v11796_v62 = vld [vmem:[#allocation4 + $0x69] sm:$0xff] }
 0x57d   : > { %4780 = vst.msk [vmem:[#allocation4 + $0x210] sm:$0xff] %vm332_vm0, %v4747_v53  ;;  %4785 = vst.msk [vmem:[#allocation4 + $0x230] sm:$0xff] %vm332_vm0, %v4747_v53  ;;  %v4746_v9 = vmax.f32 %v4714_v45, 0.0  ;;  %v5051_v44 = vld [vmem:[#allocation4 + $0x110] sm:$0xff] }
 0x57e   : > { %v7214_v56 = vld [vmem:[#allocation4 + $0x117] ss:$0 sm:$0xff]  ;;  %4998 = vst.msk [vmem:[#allocation4 + $0x1d8] sm:$0xff] %vm332_vm0, %v7220_v13  ;;  %5357 = vrot.lane.b32.xlu1 %v5051_v44, %s7658_s30  ;;  %v7202_v51 = vld [vmem:[#allocation4 + $0x1c8] ss:$0 sm:$0xff]  ;;  %v11804_v31 = vld [vmem:[#allocation4 + $0x89] sm:$0xff] }
 0x57f   : > { %4992 = vst.msk [vmem:[#allocation4 + $0x118] sm:$0xff] %vm332_vm0, %v7214_v56  ;;  %4779 = vst.msk [vmem:[#allocation4 + $0x208] sm:$0xff] %vm332_vm0, %v4746_v9  ;;  %v5050_v10 = vld [vmem:[#allocation4 + $0x108] sm:$0xff]  ;;  %v5063_v11 = vld [vmem:[#allocation4 + $0x1d0] sm:$0xff] }
 0x580   : > { %4784 = vst.msk [vmem:[#allocation4 + $0x228] sm:$0xff] %vm332_vm0, %v4746_v9  ;;  %5355 = vrot.lane.b32.xlu0 %v5050_v10, %s7658_s30  ;;  %v7221_v5 = vld [vmem:[#allocation4 + $0x1f7] ss:$0 sm:$0xff]  ;;  %v7196_v29 = vld [vmem:[#allocation4 + $0x108] ss:$0 sm:$0xff]  ;;  %4890 = vst.msk [vmem:[#allocation4 + $0x1c0] sm:$0xff] %vm332_vm0, %v7202_v51 }
 0x581   : > { %4999 = vst.msk [vmem:[#allocation4 + $0x1f8] sm:$0xff] %vm332_vm0, %v7221_v5  ;;  %4884 = vst.msk [vmem:[#allocation4 + $0x100] sm:$0xff] %vm332_vm0, %v7196_v29  ;;  %v5062_v15 = vld [vmem:[#allocation4 + $0x1c8] sm:$0xff]  ;;  %v5065_v8 = vld [vmem:[#allocation4 + $0x1f0] sm:$0xff] }
 0x582   : > { %5361 = vrot.lane.b32.xlu1 %v5053_v43, %s7658_s30  ;;  %v7203_v40 = vld [vmem:[#allocation4 + $0x1e8] ss:$0 sm:$0xff]  ;;  %v11800_v39 = vld [vmem:[#allocation4 + $0x91] sm:$0xff]  ;;  %v11812_v18 = vld [vmem:[#allocation4 + $0xa9] sm:$0xff] }
 0x583   : > { %4891 = vst.msk [vmem:[#allocation4 + $0x1e0] sm:$0xff] %vm332_vm0, %v7203_v40  ;;  %v5064_v1 = vld [vmem:[#allocation4 + $0x1e8] sm:$0xff]  ;;  %v11808_v2 = vld [vmem:[#allocation4 + $0xb1] sm:$0xff] }
 0x584   : > { %5359 = vrot.lane.b32.xlu0 %v5052_v6, %s7658_s30  ;;  %v7222_v34 = vld [vmem:[#allocation4 + $0x217] ss:$0 sm:$0xff]  ;;  %v11820_v61 = vld [vmem:[#allocation4 + $0xc9] sm:$0xff] }
 0x585   : > { %5000 = vst.msk [vmem:[#allocation4 + $0x218] sm:$0xff] %vm332_vm0, %v7222_v34  ;;  %v7223_v32 = vld [vmem:[#allocation4 + $0x237] ss:$0 sm:$0xff]  ;;  %v11828_v60 = vld [vmem:[#allocation4 + $0xe9] sm:$0xff] }
 0x586   : > { %5365 = vrot.lane.b32.xlu1 %v5055_v57, %s7658_s30  ;;  %v7204_v38 = vld [vmem:[#allocation4 + $0x208] ss:$0 sm:$0xff]  ;;  %5001 = vst.msk [vmem:[#allocation4 + $0x238] sm:$0xff] %vm332_vm0, %v7223_v32  ;;  %v11816_v42 = vld [vmem:[#allocation4 + $0xd1] sm:$0xff]  ;;  %v5082_v46 = vld [vmem:[#allocation4 + $0x109] sm:$0xff] }
 0x587   : > { %4892 = vst.msk [vmem:[#allocation4 + $0x200] sm:$0xff] %vm332_vm0, %v7204_v38  ;;  %v7205_v30 = vld [vmem:[#allocation4 + $0x228] ss:$0 sm:$0xff]  ;;  %v11824_v19 = vld [vmem:[#allocation4 + $0xf1] sm:$0xff]  ;;  %v5084_v7 = vld [vmem:[#allocation4 + $0x129] sm:$0xff] }
 0x588   : > { %5363 = vrot.lane.b32.xlu0 %v5054_v52, %s7658_s30  ;;  %4893 = vst.msk [vmem:[#allocation4 + $0x220] sm:$0xff] %vm332_vm0, %v7205_v30  ;;  %v5083_v17 = vld [vmem:[#allocation4 + $0x111] sm:$0xff]  ;;  %v5086_v3 = vld [vmem:[#allocation4 + $0x149] sm:$0xff] }
 0x589   : > { %v5085_v55 = vld [vmem:[#allocation4 + $0x131] sm:$0xff]  ;;  %v5088_v47 = vld [vmem:[#allocation4 + $0x169] sm:$0xff] }
 0x58a   : > { %5369 = vrot.lane.b32.xlu1 %v5057_v27, %s7658_s30  ;;  %v5087_v4 = vld [vmem:[#allocation4 + $0x151] sm:$0xff]  ;;  %v5090_v63 = vld [vmem:[#allocation4 + $0x189] sm:$0xff] }
 0x58b   : > { %v5089_v58 = vld [vmem:[#allocation4 + $0x171] sm:$0xff]  ;;  %v5092_v45 = vld [vmem:[#allocation4 + $0x1a9] sm:$0xff] }
 0x58c   : > { %5367 = vrot.lane.b32.xlu0 %v5056_v33, %s7658_s30  ;;  %v5091_v0 = vld [vmem:[#allocation4 + $0x191] sm:$0xff]  ;;  %v5094_v9 = vld [vmem:[#allocation4 + $0x1c9] sm:$0xff] }
 0x58d   : > { %v5093_v37 = vld [vmem:[#allocation4 + $0x1b1] sm:$0xff]  ;;  %v5096_v10 = vld [vmem:[#allocation4 + $0x1e9] sm:$0xff] }
 0x58e   : > { %5373 = vrot.lane.b32.xlu1 %v5059_v23, %s7658_s30  ;;  %v5095_v12 = vld [vmem:[#allocation4 + $0x1d1] sm:$0xff]  ;;  %v11868_v51 = vld [vmem:[#allocation4 + $0x27] sm:$0xff] }
 0x58f   : > { %v5097_v56 = vld [vmem:[#allocation4 + $0x1f1] sm:$0xff]  ;;  %v11880_v38 = vld [vmem:[#allocation4 + $0x47] sm:$0xff] }
 0x590   : > { %5371 = vrot.lane.b32.xlu0 %v5058_v26, %s7658_s30  ;;  %v11862_v43 = vld [vmem:[#allocation4 + $0x2f] sm:$0xff]  ;;  %v11892_v23 = vld [vmem:[#allocation4 + $0x67] sm:$0xff] }
 0x591   : > { %v11874_v40 = vld [vmem:[#allocation4 + $0x4f] sm:$0xff]  ;;  %v11916_v32 = vld [vmem:[#allocation4 + $0xa7] sm:$0xff] }
 0x592   : > { %5377 = vrot.lane.b32.xlu1 %v5061_v48, %s7658_s30  ;;  %v11886_v27 = vld [vmem:[#allocation4 + $0x6f] sm:$0xff]  ;;  %13923 = vst [vmem:[#allocation29_spill] sm:$0xff] %v11916_v32 }
 0x593   : > { %v11898_v48 = vld [vmem:[#allocation4 + $0x8f] sm:$0xff] }
 0x594   : > { %5375 = vrot.lane.b32.xlu0 %v5060_v50, %s7658_s30  ;;  %v11910_v30 = vld [vmem:[#allocation4 + $0xaf] sm:$0xff] }
 0x595   : > { %13921 = vst [vmem:[#allocation25_spill] sm:$0xff] %v11910_v30 }
 0x596   : > { %5381 = vrot.lane.b32.xlu1 %v5063_v11, %s7658_s30  ;;  %v11904_v11 = vld [vmem:[#allocation4 + $0x87] sm:$0xff] }
 0x598   : > { %5379 = vrot.lane.b32.xlu0 %v5062_v15, %s7658_s30 }
 0x59a   : > { %5385 = vrot.lane.b32.xlu1 %v5065_v8, %s7658_s30 }
 0x59c   : > { %5383 = vrot.lane.b32.xlu0 %v5064_v1, %s7658_s30  ;;  %v11922_v1 = vld [vmem:[#allocation4 + $0xcf] sm:$0xff] }
 0x59d   : > { %13925 = vst [vmem:[#allocation33_spill] sm:$0xff] %v11922_v1 }
 0x59e   : > { %5453 = vrot.lane.b32.xlu1 %v5067_v25, %s7659_s8 }
 0x5a0   : > { %5451 = vrot.lane.b32.xlu0 %v5066_v14, %s7659_s8  ;;  %v11928_v14 = vld [vmem:[#allocation4 + $0xc7] sm:$0xff] }
 0x5a1   : > { %13927 = vst [vmem:[#allocation37_spill] sm:$0xff] %v11928_v14 }
 0x5a2   : > { %5457 = vrot.lane.b32.xlu1 %v11776_v49, %s7659_s8 }
 0x5a4   : > { %5455 = vrot.lane.b32.xlu0 %v11780_v35, %s7659_s8 }
 0x5a6   : > { %5461 = vrot.lane.b32.xlu1 %v11784_v16, %s7659_s8 }
 0x5a8   : > { %5459 = vrot.lane.b32.xlu0 %v11788_v54, %s7659_s8 }
 0x5aa   : > { %5465 = vrot.lane.b32.xlu1 %v11792_v41, %s7659_s8 }
 0x5ac   : > { %5463 = vrot.lane.b32.xlu0 %v11796_v62, %s7659_s8 }
 0x5ae   : > { %5469 = vrot.lane.b32.xlu1 %v11800_v39, %s7659_s8 }
 0x5b0   : > { %5467 = vrot.lane.b32.xlu0 %v11804_v31, %s7659_s8 }
 0x5b2   : > { %5473 = vrot.lane.b32.xlu1 %v11808_v2, %s7659_s8 }
 0x5b3   : > { %v11838_v59 = vpop.permute.xlu1 %5325 }
 0x5b4   : > { %5471 = vrot.lane.b32.xlu0 %v11812_v18, %s7659_s8 }
 0x5b5   : > { %v11841_v24 = vpop.permute.xlu0 %5323 }
 0x5b6   : > { %5477 = vrot.lane.b32.xlu1 %v11816_v42, %s7659_s8 }
 0x5b7   : > { %v11845_v36 = vpop.permute.xlu1 %5329 }
 0x5b8   : > { %5475 = vrot.lane.b32.xlu0 %v11820_v61, %s7659_s8 }
 0x5b9   : > { %v11848_v53 = vpop.permute.xlu0 %5327 }
 0x5ba   : > { %5481 = vrot.lane.b32.xlu1 %v11824_v19, %s7659_s8 }
 0x5bb   : > { %v11852_v13 = vpop.permute.xlu1 %5333 }
 0x5bc   : > { %5479 = vrot.lane.b32.xlu0 %v11828_v60, %s7659_s8 }
 0x5bd   : > { %v11855_v44 = vpop.permute.xlu0 %5331 }
 0x5be   : > { %5485 = vrot.lane.b32.xlu1 %v5083_v17, %s7659_s8 }
 0x5c0   : > { %5483 = vrot.lane.b32.xlu0 %v5082_v46, %s7659_s8  ;;  %v11934_v46 = vld [vmem:[#allocation4 + $0xef] sm:$0xff] }
 0x5c1   : > { %v11859_v5 = vpop.permute.xlu1 %5337 }
 0x5c2   : > { %5489 = vrot.lane.b32.xlu1 %v5085_v55, %s7659_s8 }
 0x5c3   : > { %v11864_v29 = vpop.permute.xlu0 %5335 }
 0x5c4   : > { %5487 = vrot.lane.b32.xlu0 %v5084_v7, %s7659_s8  ;;  %v11940_v7 = vld [vmem:[#allocation4 + $0xe7] sm:$0xff] }
 0x5c5   : > { %13930 = vst [vmem:[#allocation42_spill] sm:$0xff] %v11940_v7 }
 0x5c6   : > { %5493 = vrot.lane.b32.xlu1 %v5087_v4, %s7659_s8 }
 0x5c8   : > { %5491 = vrot.lane.b32.xlu0 %v5086_v3, %s7659_s8  ;;  %v11946_v3 = vld [vmem:[#allocation4 + $0x10f] sm:$0xff] }
 0x5ca   : > { %5497 = vrot.lane.b32.xlu1 %v5089_v58, %s7659_s8 }
 0x5cb   : > { %v11870_v6 = vpop.permute.xlu1 %5341 }
 0x5cc   : > { %5495 = vrot.lane.b32.xlu0 %v5088_v47, %s7659_s8  ;;  %v11952_v47 = vld [vmem:[#allocation4 + $0x107] sm:$0xff] }
 0x5cd   : > { %v11876_v57 = vpop.permute.xlu0 %5339 }
 0x5ce   : > { %5501 = vrot.lane.b32.xlu1 %v5091_v0, %s7659_s8 }
 0x5d0   : > { %5499 = vrot.lane.b32.xlu0 %v5090_v63, %s7659_s8  ;;  %v11958_v63 = vld [vmem:[#allocation4 + $0x12f] sm:$0xff] }
 0x5d2   : > { %5505 = vrot.lane.b32.xlu1 %v5093_v37, %s7659_s8 }
 0x5d4   : > { %5503 = vrot.lane.b32.xlu0 %v5092_v45, %s7659_s8  ;;  %v11882_v52 = vpop.permute.xlu1 %5345  ;;  %v11964_v45 = vld [vmem:[#allocation4 + $0x127] sm:$0xff] }
 0x5d5   : > { %13916 = vst [vmem:[#allocation16_spill] sm:$0xff] %v11882_v52 }
 0x5d6   : > { %5509 = vrot.lane.b32.xlu1 %v5095_v12, %s7659_s8  ;;  %v11888_v33 = vpop.permute.xlu0 %5343 }
 0x5d7   : > { %13917 = vst [vmem:[#allocation17_spill] sm:$0xff] %v11888_v33 }
 0x5d8   : > { %5507 = vrot.lane.b32.xlu0 %v5094_v9, %s7659_s8  ;;  %v11970_v9 = vld [vmem:[#allocation4 + $0x14f] sm:$0xff] }
 0x5da   : > { %5513 = vrot.lane.b32.xlu1 %v5097_v56, %s7659_s8 }
 0x5dc   : > { %5511 = vrot.lane.b32.xlu0 %v5096_v10, %s7659_s8  ;;  %v11976_v10 = vld [vmem:[#allocation4 + $0x147] sm:$0xff] }
 0x5dd   : > { %v11894_v26 = vpop.permute.xlu1 %5349 }
 0x5de   : > { %5581 = vrot.lane.b32.xlu1 %v11862_v43, %s7660_s9  ;;  %13918 = vst [vmem:[#allocation18_spill] sm:$0xff] %v11894_v26 }
 0x5df   : > { %v11900_v50 = vpop.permute.xlu0 %5347 }
 0x5e0   : > { %5579 = vrot.lane.b32.xlu0 %v11868_v51, %s7660_s9  ;;  %13919 = vst [vmem:[#allocation21_spill] sm:$0xff] %v11900_v50 }
 0x5e2   : > { %5585 = vrot.lane.b32.xlu1 %v11874_v40, %s7660_s9 }
 0x5e4   : > { %5583 = vrot.lane.b32.xlu0 %v11880_v38, %s7660_s9 }
 0x5e6   : > { %5589 = vrot.lane.b32.xlu1 %v11886_v27, %s7660_s9 }
 0x5e8   : > { %5587 = vrot.lane.b32.xlu0 %v11892_v23, %s7660_s9  ;;  %v11906_v34 = vpop.permute.xlu1 %5353 }
 0x5e9   : > { %13920 = vst [vmem:[#allocation22_spill] sm:$0xff] %v11906_v34  ;;  %v5030_v34 = vld [vmem:[#allocation4 + $0x1c7] sm:$0xff] }
 0x5ea   : > { %5593 = vrot.lane.b32.xlu1 %v11898_v48, %s7660_s9  ;;  %v11912_v15 = vpop.permute.xlu0 %5351 }
 0x5eb   : > { %13922 = vst [vmem:[#allocation26_spill] sm:$0xff] %v11912_v15  ;;  %v5033_v15 = vld [vmem:[#allocation4 + $0x1ef] sm:$0xff] }
 0x5ec   : > { %5591 = vrot.lane.b32.xlu0 %v11904_v11, %s7660_s9 }
 0x5ee   : > { %5597 = vrot.lane.b32.xlu1 %v11910_v30, %s7660_s9 }
 0x5f0   : > { %v11918_v8 = vpop.permute.xlu1 %5357  ;;  %5595 = vrot.lane.b32.xlu0 %v11916_v32, %s7660_s9 }
 0x5f1   : > { %13924 = vst [vmem:[#allocation30_spill] sm:$0xff] %v11918_v8 }
 0x5f2   : > { %5601 = vrot.lane.b32.xlu1 %v11922_v1, %s7660_s9  ;;  %v11926_v25 = vpop.permute.xlu0 %5355 }
 0x5f3   : > { %13926 = vst [vmem:[#allocation34_spill] sm:$0xff] %v11926_v25 }
 0x5f4   : > { %v11930_v17 = vpop.permute.xlu1 %5361  ;;  %5599 = vrot.lane.b32.xlu0 %v11928_v14, %s7660_s9 }
 0x5f5   : > { %13928 = vst [vmem:[#allocation38_spill] sm:$0xff] %v11930_v17  ;;  %v11997_v17 = vld [vmem:[#allocation4 + $0x187] sm:$0xff] }
 0x5f6   : > { %5605 = vrot.lane.b32.xlu1 %v11934_v46, %s7660_s9  ;;  %v11938_v55 = vpop.permute.xlu0 %5359 }
 0x5f7   : > { %13929 = vst [vmem:[#allocation41_spill] sm:$0xff] %v11938_v55 }
 0x5f8   : > { %v11942_v4 = vpop.permute.xlu1 %5365  ;;  %5603 = vrot.lane.b32.xlu0 %v11940_v7, %s7660_s9 }
 0x5f9   : > { %13931 = vst [vmem:[#allocation45_spill] sm:$0xff] %v11942_v4  ;;  %v11988_v4 = vld [vmem:[#allocation4 + $0x167] sm:$0xff] }
 0x5fa   : > { %5609 = vrot.lane.b32.xlu1 %v11946_v3, %s7660_s9  ;;  %v11950_v58 = vpop.permute.xlu0 %5363 }
 0x5fb   : > { %13932 = vst [vmem:[#allocation46_spill] sm:$0xff] %v11950_v58 }
 0x5fc   : > { %v11954_v0 = vpop.permute.xlu1 %5369  ;;  %5607 = vrot.lane.b32.xlu0 %v11952_v47, %s7660_s9 }
 0x5fd   : > { %13933 = vst [vmem:[#allocation49_spill] sm:$0xff] %v11954_v0 }
 0x5fe   : > { %5613 = vrot.lane.b32.xlu1 %v11958_v63, %s7660_s9  ;;  %v11962_v37 = vpop.permute.xlu0 %5367 }
 0x5ff   : > { %13934 = vst [vmem:[#allocation279_spill] sm:$0xff] %v11962_v37  ;;  %v11982_v37 = vld [vmem:[#allocation4 + $0x16f] sm:$0xff] }
 0x600   : > { %v11966_v12 = vpop.permute.xlu1 %5373  ;;  %5611 = vrot.lane.b32.xlu0 %v11964_v45, %s7660_s9 }
 0x601   : > { %13935 = vst [vmem:[#allocation50_spill] sm:$0xff] %v11966_v12 }
 0x602   : > { %5617 = vrot.lane.b32.xlu1 %v11970_v9, %s7660_s9  ;;  %v11974_v56 = vpop.permute.xlu0 %5371 }
 0x603   : > { %13936 = vst [vmem:[#allocation53_spill] sm:$0xff] %v11974_v56  ;;  %v5027_v56 = vld [vmem:[#allocation4 + $0x18f] sm:$0xff] }
 0x604   : > { %v11978_v0 = vpop.permute.xlu1 %5377  ;;  %5615 = vrot.lane.b32.xlu0 %v11976_v10, %s7660_s9 }
 0x605   : > { %13937 = vst [vmem:[#allocation54_spill] sm:$0xff] %v11978_v0 }
 0x606   : > { %5621 = vrot.lane.b32.xlu1 %v11982_v37, %s7660_s9  ;;  %v11986_v12 = vpop.permute.xlu0 %5375 }
 0x607   : > { %13938 = vst [vmem:[#allocation57_spill] sm:$0xff] %v11986_v12  ;;  %v5029_v12 = vld [vmem:[#allocation4 + $0x1af] sm:$0xff] }
 0x608   : > { %v11990_v58 = vpop.permute.xlu1 %5381  ;;  %5619 = vrot.lane.b32.xlu0 %v11988_v4, %s7660_s9 }
 0x609   : > { %13939 = vst [vmem:[#allocation58_spill] sm:$0xff] %v11990_v58  ;;  %v5028_v58 = vld [vmem:[#allocation4 + $0x1a7] sm:$0xff] }
 0x60a   : > { %5625 = vrot.lane.b32.xlu1 %v5027_v56, %s7660_s9  ;;  %v11995_v0 = vpop.permute.xlu0 %5379  ;;  %v5031_v56 = vld [vmem:[#allocation4 + $0x1cf] sm:$0xff] }
 0x60b   : > { %13940 = vst [vmem:[#allocation61_spill] sm:$0xff] %v11995_v0 }
 0x60c   : > { %v11999_v55 = vpop.permute.xlu1 %5385  ;;  %5623 = vrot.lane.b32.xlu0 %v11997_v17, %s7660_s9 }
 0x60d   : > { %13941 = vst [vmem:[#allocation62_spill] sm:$0xff] %v11999_v55 }
 0x60e   : > { %5629 = vrot.lane.b32.xlu1 %v5029_v12, %s7660_s9  ;;  %v12004_v8 = vpop.permute.xlu0 %5383 }
 0x60f   : > { %13942 = vst [vmem:[#allocation65_spill] sm:$0xff] %v12004_v8  ;;  %v5032_v8 = vld [vmem:[#allocation4 + $0x1e7] sm:$0xff] }
 0x610   : > { %v12006_v25 = vpop.permute.xlu1 %5453  ;;  %5627 = vrot.lane.b32.xlu0 %v5028_v58, %s7660_s9 }
 0x612   : > { %5633 = vrot.lane.b32.xlu1 %v5031_v56, %s7660_s9  ;;  %v12010_v0 = vpop.permute.xlu0 %5451  ;;  %v5128_v56 = vld [vmem:[#allocation4 + $0x207] sm:$0xff] }
 0x614   : > { %v12012_v55 = vpop.permute.xlu1 %5457  ;;  %5631 = vrot.lane.b32.xlu0 %v5030_v34, %s7660_s9  ;;  %v6575_v34 = vld [vmem:[%s12877_s5 + $0x20] sm:$0xf] }
 0x615   : > { %7490 = vmatprep.subr.msk.mxu0 %vm4124_vm1, %v6575_v34 }
 0x616   : > { %5637 = vrot.lane.b32.xlu1 %v5033_v15, %s7660_s9  ;;  %v12016_v12 = vpop.permute.xlu0 %5455  ;;  %7491 = vmatpush3.msk.msra.mxu0 %vm4124_vm1, %v6575_v34  ;;  %v6574_v15 = vld [vmem:[%s12877_s5 + $0x18] sm:$0xff]  ;;  %v6572_v34 = vld [vmem:[%s12877_s5 + $0x8] sm:$0xff] }
 0x617   : > { %7492 = vmatprep.subr.mxu0 %v6574_v15 }
 0x618   : > { %v12018_v26 = vpop.permute.xlu1 %5461  ;;  %5635 = vrot.lane.b32.xlu0 %v5032_v8, %s7660_s9  ;;  %7493 = vmatpush3.msra.mxu0 %v6574_v15  ;;  %v6573_v8 = vld [vmem:[%s12877_s5 + $0x10] sm:$0xff]  ;;  %v6571_v15 = vld [vmem:[%s12877_s5] sm:$0xff] }
 0x619   : > { %7494 = vmatprep.subr.mxu0 %v6573_v8 }
 0x61a   : > { %5707 = vrot.lane.b32.xlu1 %v11618_v21, %s7661_s10  ;;  %v12023_v58 = vpop.permute.xlu0 %5459  ;;  %7495 = vmatpush3.msra.mxu0 %v6573_v8 }
 0x61b   : > { %7496 = vmatprep.subr.mxu0 %v6572_v34 }
 0x61c   : > { %v12028_v50 = vpop.permute.xlu1 %5465  ;;  %5639 = vrot.lane.b32.xlu0 %v5128_v56, %s7660_s9  ;;  %7497 = vmatpush3.msra.mxu0 %v6572_v34 }
 0x61d   : > { %7498 = vmatprep.subr.mxu0 %v6571_v15 }
 0x61e   : > { %5835 = vrot.lane.b32.xlu1 %v11780_v35, %s7662_s11  ;;  %v12038_v21 = vpop.permute.xlu0 %5463  ;;  %7499 = vmatpush3.msra.mxu0 %v6571_v15 }
 0x620   : > { %v12043_v56 = vpop.permute.xlu1 %5469  ;;  %5709 = vrot.lane.b32.xlu0 %v11611_v22, %s7661_s10 }
 0x622   : > { %v12050_v35 = vpop.permute.xlu0 %5467  ;;  %5963 = vrot.lane.b32.xlu1 %v11880_v38, %s7663_s12 }
 0x624   : > { %v12057_v52 = vpop.permute.xlu1 %5473  ;;  %5837 = vrot.lane.b32.xlu0 %v11776_v49, %s7662_s11  ;;  %v5133_v49 = vld [vmem:[#allocation4 + $0x50] sm:$0xff] }
 0x625   : > { %13943 = vst [vmem:[#allocation278_spill] sm:$0xff] %v12057_v52  ;;  %v5132_v52 = vld [vmem:[#allocation4 + $0x48] sm:$0xff] }
 0x626   : > { %v12061_v22 = vpop.permute.xlu0 %5471  ;;  %6091 = vrot.lane.b32.xlu1 %v11634_v20, %s7664_s16 }
 0x627   : > { %13944 = vst [vmem:[#allocation66_spill] sm:$0xff] %v12061_v22 }
 0x628   : > { %v12065_v8 = vpop.permute.xlu1 %5477  ;;  %5965 = vrot.lane.b32.xlu0 %v11874_v40, %s7663_s12 }
 0x629   : > { %13945 = vst [vmem:[#allocation69_spill] sm:$0xff] %v12065_v8 }
 0x62a   : > { %v12069_v34 = vpop.permute.xlu0 %5475  ;;  %6093 = vrot.lane.b32.xlu1 %v11626_v28, %s7664_s16 }
 0x62b   : > { %13946 = vst [vmem:[#allocation70_spill] sm:$0xff] %v12069_v34 }
 0x62c   : > { %v12073_v33 = vpop.permute.xlu1 %5481  ;;  %5711 = vrot.lane.b32.xlu0 %v5132_v52, %s7661_s10 }
 0x62d   : > { %13947 = vst [vmem:[#allocation71_spill] sm:$0xff] %v12073_v33 }
 0x62e   : > { %v12076_v15 = vpop.permute.xlu0 %5479  ;;  %5713 = vrot.lane.b32.xlu1 %v5133_v49, %s7661_s10 }
 0x62f   : > { %13948 = vst [vmem:[#allocation283_spill] sm:$0xff] %v12076_v15 }
 0x630   : > { %v12079_v20 = vpop.permute.xlu1 %5485  ;;  %6219 = vrot.lane.b32.xlu0 %v11788_v54, %s7665_s17 }
 0x631   : > { %13949 = vst [vmem:[#allocation72_spill] sm:$0xff] %v12079_v20  ;;  %v5229_v20 = vld [vmem:[#allocation4 + $0x68] sm:$0xff] }
 0x632   : > { %v12083_v8 = vpop.permute.xlu0 %5483  ;;  %6221 = vrot.lane.b32.xlu1 %v11784_v16, %s7665_s17 }
 0x633   : > { %13950 = vst [vmem:[#allocation73_spill] sm:$0xff] %v12083_v8 }
 0x634   : > { %v12087_v28 = vpop.permute.xlu1 %5489  ;;  %5839 = vrot.lane.b32.xlu0 %v11788_v54, %s7662_s11  ;;  %v5230_v54 = vld [vmem:[#allocation4 + $0x70] sm:$0xff] }
 0x635   : > { %13951 = vst [vmem:[#allocation74_spill] sm:$0xff] %v12087_v28 }
 0x636   : > { %v12091_v52 = vpop.permute.xlu0 %5487  ;;  %5967 = vrot.lane.b32.xlu1 %v11892_v23, %s7663_s12 }
 0x637   : > { %13952 = vst [vmem:[#allocation75_spill] sm:$0xff] %v12091_v52 }
 0x638   : > { %v12095_v49 = vpop.permute.xlu1 %5493  ;;  %5841 = vrot.lane.b32.xlu0 %v11784_v16, %s7662_s11 }
 0x639   : > { %13953 = vst [vmem:[#allocation76_spill] sm:$0xff] %v12095_v49 }
 0x63a   : > { %v12099_v8 = vpop.permute.xlu0 %5491  ;;  %6095 = vrot.lane.b32.xlu1 %v5229_v20, %s7664_s16 }
 0x63b   : > { %13954 = vst [vmem:[#allocation77_spill] sm:$0xff] %v12099_v8  ;;  %v5233_v8 = vld [vmem:[#allocation4 + $0xa8] sm:$0xff] }
 0x63c   : > { %v12102_v33 = vpop.permute.xlu1 %5497  ;;  %5969 = vrot.lane.b32.xlu0 %v11886_v27, %s7663_s12 }
 0x63d   : > { %13955 = vst [vmem:[#allocation78_spill] sm:$0xff] %v12102_v33 }
 0x63e   : > { %v12106_v28 = vpop.permute.xlu0 %5495  ;;  %6097 = vrot.lane.b32.xlu1 %v5230_v54, %s7664_s16 }
 0x63f   : > { %13956 = vst [vmem:[#allocation79_spill] sm:$0xff] %v12106_v28 }
 0x640   : > { %v12109_v52 = vpop.permute.xlu1 %5501  ;;  %5715 = vrot.lane.b32.xlu0 %v5229_v20, %s7661_s10 }
 0x641   : > { %13957 = vst [vmem:[#allocation282_spill] sm:$0xff] %v12109_v52 }
 0x642   : > { %v12112_v16 = vpop.permute.xlu0 %5499  ;;  %5717 = vrot.lane.b32.xlu1 %v5230_v54, %s7661_s10 }
 0x643   : > { %13958 = vst [vmem:[#allocation80_spill] sm:$0xff] %v12112_v16 }
 0x644   : > { %v12115_v49 = vpop.permute.xlu1 %5505  ;;  %6223 = vrot.lane.b32.xlu0 %v11796_v62, %s7665_s17 }
 0x645   : > { %13959 = vst [vmem:[#allocation81_spill] sm:$0xff] %v12115_v49  ;;  %v5231_v49 = vld [vmem:[#allocation4 + $0x88] sm:$0xff] }
 0x646   : > { %v12119_v33 = vpop.permute.xlu0 %5503  ;;  %6225 = vrot.lane.b32.xlu1 %v11792_v41, %s7665_s17 }
 0x647   : > { %13960 = vst [vmem:[#allocation82_spill] sm:$0xff] %v12119_v33 }
 0x648   : > { %v12123_v28 = vpop.permute.xlu1 %5509  ;;  %5843 = vrot.lane.b32.xlu0 %v11796_v62, %s7662_s11  ;;  %v5232_v62 = vld [vmem:[#allocation4 + $0x90] sm:$0xff] }
 0x649   : > { %13961 = vst [vmem:[#allocation83_spill] sm:$0xff] %v12123_v28 }
 0x64a   : > { %v12127_v20 = vpop.permute.xlu0 %5507  ;;  %5971 = vrot.lane.b32.xlu1 %v11904_v11, %s7663_s12 }
 0x64b   : > { %13962 = vst [vmem:[#allocation84_spill] sm:$0xff] %v12127_v20 }
 0x64c   : > { %v12131_v54 = vpop.permute.xlu1 %5513  ;;  %5845 = vrot.lane.b32.xlu0 %v11792_v41, %s7662_s11 }
 0x64d   : > { %13963 = vst [vmem:[#allocation85_spill] sm:$0xff] %v12131_v54 }
 0x64e   : > { %v12135_v33 = vpop.permute.xlu0 %5511  ;;  %6099 = vrot.lane.b32.xlu1 %v5231_v49, %s7664_s16 }
 0x64f   : > { %13964 = vst [vmem:[#allocation86_spill] sm:$0xff] %v12135_v33 }
 0x650   : > { %v12138_v52 = vpop.permute.xlu1 %5581  ;;  %5973 = vrot.lane.b32.xlu0 %v11898_v48, %s7663_s12 }
 0x652   : > { %v12142_v28 = vpop.permute.xlu0 %5579  ;;  %6101 = vrot.lane.b32.xlu1 %v5232_v62, %s7664_s16 }
 0x654   : > { %v12145_v20 = vpop.permute.xlu1 %5585  ;;  %5719 = vrot.lane.b32.xlu0 %v5231_v49, %s7661_s10 }
 0x656   : > { %5721 = vrot.lane.b32.xlu1 %v5232_v62, %s7661_s10  ;;  %v12149_v41 = vpop.permute.xlu0 %5583 }
 0x658   : > { %v12151_v33 = vpop.permute.xlu1 %5589  ;;  %6227 = vrot.lane.b32.xlu0 %v11804_v31, %s7665_s17 }
 0x65a   : > { %6229 = vrot.lane.b32.xlu1 %v11800_v39, %s7665_s17  ;;  %v12157_v54 = vpop.permute.xlu0 %5587 }
 0x65c   : > { %v12159_v16 = vpop.permute.xlu1 %5593  ;;  %5847 = vrot.lane.b32.xlu0 %v11804_v31, %s7662_s11  ;;  %v5234_v31 = vld [vmem:[#allocation4 + $0xb0] sm:$0xff] }
 0x65e   : > { %5975 = vrot.lane.b32.xlu1 %v11916_v32, %s7663_s12  ;;  %v12165_v49 = vpop.permute.xlu0 %5591 }
 0x660   : > { %v12167_v62 = vpop.permute.xlu1 %5597  ;;  %5849 = vrot.lane.b32.xlu0 %v11800_v39, %s7662_s11 }
 0x661   : > { %13965 = vst [vmem:[#allocation287_spill] sm:$0xff] %v12167_v62 }
 0x662   : > { %6103 = vrot.lane.b32.xlu1 %v5233_v8, %s7664_s16  ;;  %v12172_v15 = vpop.permute.xlu0 %5595 }
 0x664   : > { %v12174_v34 = vpop.permute.xlu1 %5601  ;;  %5977 = vrot.lane.b32.xlu0 %v11910_v30, %s7663_s12 }
 0x665   : > { %13966 = vst [vmem:[#allocation87_spill] sm:$0xff] %v12174_v34 }
 0x666   : > { %6105 = vrot.lane.b32.xlu1 %v5234_v31, %s7664_s16  ;;  %v12179_v22 = vpop.permute.xlu0 %5599 }
 0x668   : > { %v12181_v32 = vpop.permute.xlu1 %5605  ;;  %5723 = vrot.lane.b32.xlu0 %v5233_v8, %s7661_s10 }
 0x669   : > { %13967 = vst [vmem:[#allocation88_spill] sm:$0xff] %v12181_v32 }
 0x66a   : > { %5725 = vrot.lane.b32.xlu1 %v5234_v31, %s7661_s10  ;;  %v12185_v39 = vpop.permute.xlu0 %5603 }
 0x66b   : > { %13968 = vst [vmem:[#allocation89_spill] sm:$0xff] %v12185_v39 }
 0x66c   : > { %v12187_v62 = vpop.permute.xlu1 %5609  ;;  %6231 = vrot.lane.b32.xlu0 %v11812_v18, %s7665_s17 }
 0x66d   : > { %13969 = vst [vmem:[#allocation90_spill] sm:$0xff] %v12187_v62  ;;  %v5235_v62 = vld [vmem:[#allocation4 + $0xc8] sm:$0xff] }
 0x66e   : > { %6233 = vrot.lane.b32.xlu1 %v11808_v2, %s7665_s17  ;;  %v12193_v34 = vpop.permute.xlu0 %5607 }
 0x66f   : > { %13970 = vst [vmem:[#allocation91_spill] sm:$0xff] %v12193_v34 }
 0x670   : > { %v12195_v30 = vpop.permute.xlu1 %5613  ;;  %5851 = vrot.lane.b32.xlu0 %v11812_v18, %s7662_s11  ;;  %v5236_v18 = vld [vmem:[#allocation4 + $0xd0] sm:$0xff] }
 0x671   : > { %13971 = vst [vmem:[#allocation92_spill] sm:$0xff] %v12195_v30 }
 0x672   : > { %5979 = vrot.lane.b32.xlu1 %v11928_v14, %s7663_s12  ;;  %v12201_v8 = vpop.permute.xlu0 %5611 }
 0x673   : > { %13972 = vst [vmem:[#allocation281_spill] sm:$0xff] %v12201_v8 }
 0x674   : > { %v12203_v31 = vpop.permute.xlu1 %5617  ;;  %5853 = vrot.lane.b32.xlu0 %v11808_v2, %s7662_s11 }
 0x675   : > { %13973 = vst [vmem:[#allocation93_spill] sm:$0xff] %v12203_v31 }
 0x676   : > { %6107 = vrot.lane.b32.xlu1 %v5235_v62, %s7664_s16  ;;  %v12208_v32 = vpop.permute.xlu0 %5615 }
 0x677   : > { %13974 = vst [vmem:[#allocation13_spill] sm:$0xff] %v12208_v32 }
 0x678   : > { %v12210_v34 = vpop.permute.xlu1 %5621  ;;  %5981 = vrot.lane.b32.xlu0 %v11922_v1, %s7663_s12 }
 0x679   : > { %13975 = vst [vmem:[#allocation286_spill] sm:$0xff] %v12210_v34 }
 0x67a   : > { %6109 = vrot.lane.b32.xlu1 %v5236_v18, %s7664_s16  ;;  %v12215_v30 = vpop.permute.xlu0 %5619 }
 0x67b   : > { %13976 = vst [vmem:[#allocation392_spill] sm:$0xff] %v12215_v30 }
 0x67c   : > { %v12217_v8 = vpop.permute.xlu1 %5625  ;;  %5727 = vrot.lane.b32.xlu0 %v5235_v62, %s7661_s10 }
 0x67d   : > { %13977 = vst [vmem:[#allocation94_spill] sm:$0xff] %v12217_v8 }
 0x67e   : > { %5729 = vrot.lane.b32.xlu1 %v5236_v18, %s7661_s10  ;;  %v12221_v2 = vpop.permute.xlu0 %5623 }
 0x67f   : > { %13978 = vst [vmem:[#allocation14_spill] sm:$0xff] %v12221_v2  ;;  %v5002_v2 = vld [vmem:[#allocation4 + $0x7] sm:$0xff] }
 0x680   : > { %v12223_v31 = vpop.permute.xlu1 %5629  ;;  %6235 = vrot.lane.b32.xlu0 %v11820_v61, %s7665_s17 }
 0x681   : > { %13979 = vst [vmem:[#allocation95_spill] sm:$0xff] %v12223_v31  ;;  %v5237_v31 = vld [vmem:[#allocation4 + $0xe8] sm:$0xff] }
 0x682   : > { %6237 = vrot.lane.b32.xlu1 %v11816_v42, %s7665_s17  ;;  %v12229_v34 = vpop.permute.xlu0 %5627 }
 0x683   : > { %13980 = vst [vmem:[#allocation335_spill] sm:$0xff] %v12229_v34 }
 0x684   : > { %v12231_v32 = vpop.permute.xlu1 %5633  ;;  %5855 = vrot.lane.b32.xlu0 %v11820_v61, %s7662_s11  ;;  %v5238_v61 = vld [vmem:[#allocation4 + $0xf0] sm:$0xff] }
 0x685   : > { %13981 = vst [vmem:[#allocation420_spill] sm:$0xff] %v12231_v32 }
 0x686   : > { %5983 = vrot.lane.b32.xlu1 %v11940_v7, %s7663_s12  ;;  %v12237_v62 = vpop.permute.xlu0 %5631  ;;  %v6315_v7 = vsel %vm332_vm0, %v5002_v2, %v11841_v24 }
 0x687   : > { %13982 = vst [vmem:[#allocation96_spill] sm:$0xff] %v12237_v62 }
 0x688   : > { %v12239_v18 = vpop.permute.xlu1 %5637  ;;  %5857 = vrot.lane.b32.xlu0 %v11816_v42, %s7662_s11 }
 0x689   : > { %13983 = vst [vmem:[#allocation97_spill] sm:$0xff] %v12239_v18 }
 0x68a   : > { %6111 = vrot.lane.b32.xlu1 %v5237_v31, %s7664_s16  ;;  %v12244_v8 = vpop.permute.xlu0 %5635 }
 0x68b   : > { %13984 = vst [vmem:[#allocation362_spill] sm:$0xff] %v12244_v8 }
 0x68c   : > { %v5708_v34 = vpop.permute.xlu1 %5707  ;;  %5985 = vrot.lane.b32.xlu0 %v11934_v46, %s7663_s12 }
 0x68e   : > { %6113 = vrot.lane.b32.xlu1 %v5238_v61, %s7664_s16  ;;  %v12249_v32 = vpop.permute.xlu0 %5639 }
 0x68f   : > { %13985 = vst [vmem:[#allocation99_spill] sm:$0xff] %v12249_v32 }
 0x690   : > { %v5836_v62 = vpop.permute.xlu1 %5835  ;;  %5731 = vrot.lane.b32.xlu0 %v5237_v31, %s7661_s10  ;;  %v5003_v31 = vld [vmem:[#allocation4 + $0xf] sm:$0xff] }
 0x691   : > { %v6316_v30 = vsel %vm332_vm0, %v5003_v31, %v11838_v59 }
 0x692   : > { %5733 = vrot.lane.b32.xlu1 %v5238_v61, %s7661_s10  ;;  %v5710_v42 = vpop.permute.xlu0 %5709  ;;  %v5175_v61 = vld [vmem:[#allocation4 + $0xf1] sm:$0xff] }
 0x694   : > { %v5964_v18 = vpop.permute.xlu1 %5963  ;;  %6239 = vrot.lane.b32.xlu0 %v11828_v60, %s7665_s17 }
 0x696   : > { %6241 = vrot.lane.b32.xlu1 %v11824_v19, %s7665_s17  ;;  %v5838_v8 = vpop.permute.xlu0 %5837  ;;  %v6348_v19 = vsel %vm2217_vm2, %v6316_v30, %v12006_v25 }
 0x697   : > { %v6380_v1 = vsel %vm2250_vm3, %v6348_v19, %v12138_v52 }
 0x698   : > { %v6092_v46 = vpop.permute.xlu1 %6091  ;;  %5859 = vrot.lane.b32.xlu0 %v11828_v60, %s7662_s11  ;;  %v6347_v60 = vsel %vm2217_vm2, %v6315_v7, %v12010_v0  ;;  %v6412_v2 = vsel %vm2283_vm4, %v6380_v1, %v5710_v42  ;;  %v5272_v42 = vld [vmem:[#allocation4 + $0x111] sm:$0xff] }
 0x699   : > { %v6379_v14 = vsel %vm2250_vm3, %v6347_v60, %v12142_v28  ;;  %v6444_v30 = vsel %vm2316_vm5, %v6412_v2, %v5838_v8  ;;  %v5240_v28 = vld [vmem:[#allocation4 + $0x110] sm:$0xff] }
 0x69a   : > { %5987 = vrot.lane.b32.xlu1 %v11952_v47, %s7663_s12  ;;  %v5966_v32 = vpop.permute.xlu0 %5965  ;;  %v5239_v47 = vld [vmem:[#allocation4 + $0x108] sm:$0xff]  ;;  %v6411_v24 = vsel %vm2283_vm4, %v6379_v14, %v5708_v34 }
 0x69b   : > { %v6443_v31 = vsel %vm2316_vm5, %v6411_v24, %v5836_v62  ;;  %v6476_v0 = vsel %vm2349_vm6, %v6444_v30, %v5966_v32  ;;  %v5271_v8 = vld [vmem:[#allocation4 + $0x109] sm:$0xff] }
 0x69c   : > { %v6094_v39 = vpop.permute.xlu1 %6093  ;;  %5861 = vrot.lane.b32.xlu0 %v5175_v61, %s7662_s11  ;;  %v6475_v7 = vsel %vm2349_vm6, %v6443_v31, %v5964_v18  ;;  %v6317_v61 = vsel %vm332_vm0, %v11868_v51, %v11848_v53 }
 0x69d   : > { %v6507_v52 = vsel %vm2382_vm7, %v6475_v7, %v6092_v46  ;;  %v6508_v34 = vsel %vm2382_vm7, %v6476_v0, %v6094_v39  ;;  %v6349_v60 = vsel %vm2217_vm2, %v6317_v61, %v12016_v12  ;;  %v5242_v7 = vld [vmem:[#allocation4 + $0x130] sm:$0xff] }
 0x69e   : > { %6115 = vrot.lane.b32.xlu1 %v5239_v47, %s7664_s16  ;;  %v5712_v59 = vpop.permute.xlu0 %5711  ;;  %v6381_v24 = vsel %vm2250_vm3, %v6349_v60, %v12149_v41 }
 0x69f   : > { %v6413_v51 = vsel %vm2283_vm4, %v6381_v24, %v5712_v59  ;;  %v5244_v24 = vld [vmem:[#allocation4 + $0x150] sm:$0xff] }
 0x6a0   : > { %v5714_v25 = vpop.permute.xlu1 %5713  ;;  %5989 = vrot.lane.b32.xlu0 %v11946_v3, %s7663_s12 }
 0x6a2   : > { %6117 = vrot.lane.b32.xlu1 %v5240_v28, %s7664_s16  ;;  %v6220_v14 = vpop.permute.xlu0 %6219 }
 0x6a3   : > { %v6539_v1 = vsel %vm2415_vm8, %v6507_v52, %v6220_v14 }
 0x6a4   : > { %v6222_v62 = vpop.permute.xlu1 %6221  ;;  %5735 = vrot.lane.b32.xlu0 %v5239_v47, %s7661_s10  ;;  %7500 = vmatprep.mubr.msk.f32.mxu0 %vm4027_vm9, %v6539_v1  ;;  %v6318_v47 = vsel %vm332_vm0, %v11862_v43, %v11845_v36  ;;  %v5273_v1 = vld [vmem:[#allocation4 + $0x129] sm:$0xff] }
 0x6a5   : > { %v6540_v3 = vsel %vm2415_vm8, %v6508_v34, %v6222_v62  ;;  %v6350_v53 = vsel %vm2217_vm2, %v6318_v47, %v12012_v55  ;;  %v5274_v62 = vld [vmem:[#allocation4 + $0x131] sm:$0xff] }
 0x6a6   : > { %5737 = vrot.lane.b32.xlu1 %v5240_v28, %s7661_s10  ;;  %7501 = vmatmul.mubr.msk.f32.vlgmr.msra.gmra.mxu0 %vm4027_vm9, %v6540_v3  ;;  %v5840_v32 = vpop.permute.xlu0 %5839  ;;  %v6382_v31 = vsel %vm2250_vm3, %v6350_v53, %v12145_v20 }
 0x6a7   : > { %v6445_v12 = vsel %vm2316_vm5, %v6413_v51, %v5840_v32  ;;  %v6414_v43 = vsel %vm2283_vm4, %v6382_v31, %v5714_v25 }
 0x6a8   : > { %v5968_v18 = vpop.permute.xlu1 %5967  ;;  %6243 = vrot.lane.b32.xlu0 %v5271_v8, %s7665_s17 }
 0x6a9   : > { %v6477_v55 = vsel %vm2349_vm6, %v6445_v12, %v5968_v18  ;;  %v5275_v12 = vld [vmem:[#allocation4 + $0x149] sm:$0xff] }
 0x6aa   : > { %6245 = vrot.lane.b32.xlu1 %v5272_v42, %s7665_s17  ;;  %v5842_v39 = vpop.permute.xlu0 %5841 }
 0x6ab   : > { %v6446_v41 = vsel %vm2316_vm5, %v6414_v43, %v5842_v39  ;;  %v6320_v39 = vsel %vm332_vm0, %v11874_v40, %v11852_v13  ;;  %v5276_v43 = vld [vmem:[#allocation4 + $0x151] sm:$0xff] }
 0x6ac   : > { %v6096_v46 = vpop.permute.xlu1 %6095  ;;  %5863 = vrot.lane.b32.xlu0 %v5271_v8, %s7662_s11  ;;  %v6319_v8 = vsel %vm332_vm0, %v11880_v38, %v11855_v44  ;;  %v6352_v44 = vsel %vm2217_vm2, %v6320_v39, %v12018_v26 }
 0x6ad   : > { %v6509_v20 = vsel %vm2382_vm7, %v6477_v55, %v6096_v46  ;;  %v6321_v55 = vsel %vm332_vm0, %v11892_v23, %v11864_v29 }
 0x6ae   : > { %5991 = vrot.lane.b32.xlu1 %v11964_v45, %s7663_s12  ;;  %v5970_v19 = vpop.permute.xlu0 %5969  ;;  %v5241_v45 = vld [vmem:[#allocation4 + $0x128] sm:$0xff] }
 0x6af   : > { %v6478_v59 = vsel %vm2349_vm6, %v6446_v41, %v5970_v19  ;;  %v6384_v19 = vsel %vm2250_vm3, %v6352_v44, %v12151_v33 }
 0x6b0   : > { %v6098_v2 = vpop.permute.xlu1 %6097  ;;  %5865 = vrot.lane.b32.xlu0 %v5272_v42, %s7662_s11  ;;  %v6351_v42 = vsel %vm2217_vm2, %v6319_v8, %v12023_v58  ;;  %v5277_v8 = vld [vmem:[#allocation4 + $0x169] sm:$0xff] }
 0x6b1   : > { %v6510_v25 = vsel %vm2382_vm7, %v6478_v59, %v6098_v2  ;;  %v6383_v46 = vsel %vm2250_vm3, %v6351_v42, %v12157_v54  ;;  %v5278_v42 = vld [vmem:[#allocation4 + $0x171] sm:$0xff] }
 0x6b2   : > { %6119 = vrot.lane.b32.xlu1 %v5241_v45, %s7664_s16  ;;  %v5716_v36 = vpop.permute.xlu0 %5715 }
 0x6b3   : > { %v6415_v38 = vsel %vm2283_vm4, %v6383_v46, %v5716_v36 }
 0x6b4   : > { %v5718_v30 = vpop.permute.xlu1 %5717  ;;  %5993 = vrot.lane.b32.xlu0 %v11958_v63, %s7663_s12 }
 0x6b5   : > { %v6416_v40 = vsel %vm2283_vm4, %v6384_v19, %v5718_v30 }
 0x6b6   : > { %6121 = vrot.lane.b32.xlu1 %v5242_v7, %s7664_s16  ;;  %v6224_v0 = vpop.permute.xlu0 %6223 }
 0x6b7   : > { %v6541_v28 = vsel %vm2415_vm8, %v6509_v20, %v6224_v0  ;;  %v6322_v20 = vsel %vm332_vm0, %v11886_v27, %v11859_v5 }
 0x6b8   : > { %v6226_v52 = vpop.permute.xlu1 %6225  ;;  %5739 = vrot.lane.b32.xlu0 %v5241_v45, %s7661_s10  ;;  %7503 = vmatprep.mubr.msk.f32.mxu0 %vm4027_vm9, %v6541_v28  ;;  %v6354_v29 = vsel %vm2217_vm2, %v6322_v20, %v12028_v50 }
 0x6b9   : > { %v6542_v63 = vsel %vm2415_vm8, %v6510_v25, %v6226_v52  ;;  %v6386_v25 = vsel %vm2250_vm3, %v6354_v29, %v12159_v16  ;;  %v13990_v29 = vld [vmem:[#allocation16_spill] sm:$0xff] }
 0x6ba   : > { %5741 = vrot.lane.b32.xlu1 %v5242_v7, %s7661_s10  ;;  %7504 = vmatmul.mubr.msk.f32.gmra.mxu0 %vm4027_vm9, %v6542_v63  ;;  %v5844_v14 = vpop.permute.xlu0 %5843  ;;  %v6353_v7 = vsel %vm2217_vm2, %v6321_v55, %v12038_v21  ;;  %v13987_v55 = vld [vmem:[#allocation17_spill] sm:$0xff] }
 0x6bb   : > { %v6447_v58 = vsel %vm2316_vm5, %v6415_v38, %v5844_v14  ;;  %v6385_v0 = vsel %vm2250_vm3, %v6353_v7, %v12165_v49  ;;  %v5246_v14 = vld [vmem:[#allocation4 + $0x170] sm:$0xff] }
 0x6bc   : > { %v5972_v34 = vpop.permute.xlu1 %5971  ;;  %6247 = vrot.lane.b32.xlu0 %v5273_v1, %s7665_s17 }
 0x6bd   : > { %v6479_v26 = vsel %vm2349_vm6, %v6447_v58, %v5972_v34 }
 0x6be   : > { %6249 = vrot.lane.b32.xlu1 %v5274_v62, %s7665_s17  ;;  %v5846_v3 = vpop.permute.xlu0 %5845 }
 0x6bf   : > { %v6448_v54 = vsel %vm2316_vm5, %v6416_v40, %v5846_v3 }
 0x6c0   : > { %v6100_v32 = vpop.permute.xlu1 %6099  ;;  %5867 = vrot.lane.b32.xlu0 %v5273_v1, %s7662_s11 }
 0x6c1   : > { %v6511_v33 = vsel %vm2382_vm7, %v6479_v26, %v6100_v32 }
 0x6c2   : > { %5995 = vrot.lane.b32.xlu1 %v11976_v10, %s7663_s12  ;;  %v5974_v18 = vpop.permute.xlu0 %5973  ;;  %v5243_v10 = vld [vmem:[#allocation4 + $0x148] sm:$0xff] }
 0x6c3   : > { %v6480_v47 = vsel %vm2349_vm6, %v6448_v54, %v5974_v18 }
 0x6c4   : > { %v6102_v61 = vpop.permute.xlu1 %6101  ;;  %5869 = vrot.lane.b32.xlu0 %v5274_v62, %s7662_s11 }
 0x6c5   : > { %v6512_v51 = vsel %vm2382_vm7, %v6480_v47, %v6102_v61  ;;  %v6323_v61 = vsel %vm332_vm0, %v11904_v11, %v11876_v57  ;;  %v5248_v47 = vld [vmem:[#allocation4 + $0x190] sm:$0xff] }
 0x6c6   : > { %6123 = vrot.lane.b32.xlu1 %v5243_v10, %s7664_s16  ;;  %v5720_v13 = vpop.permute.xlu0 %5719  ;;  %v6355_v38 = vsel %vm2217_vm2, %v6323_v61, %v12050_v35 }
 0x6c7   : > { %v6417_v23 = vsel %vm2283_vm4, %v6385_v0, %v5720_v13  ;;  %v6387_v19 = vsel %vm2250_vm3, %v6355_v38, %v12172_v15  ;;  %v13986_v13 = vld [vmem:[#allocation287_spill] sm:$0xff]  ;;  %v13989_v0 = vld [vmem:[#allocation66_spill] sm:$0xff] }
 0x6c8   : > { %v5722_v60 = vpop.permute.xlu1 %5721  ;;  %5997 = vrot.lane.b32.xlu0 %v11970_v9, %s7663_s12  ;;  %v5216_v15 = vld [vmem:[#allocation4 + $0x18f] sm:$0xff] }
 0x6c9   : > { %v6418_v27 = vsel %vm2283_vm4, %v6386_v25, %v5722_v60  ;;  %v5281_v38 = vld [vmem:[#allocation4 + $0x1a9] sm:$0xff] }
 0x6ca   : > { %6125 = vrot.lane.b32.xlu1 %v5244_v24, %s7664_s16  ;;  %v6228_v2 = vpop.permute.xlu0 %6227 }
 0x6cb   : > { %v6543_v53 = vsel %vm2415_vm8, %v6511_v33, %v6228_v2 }
 0x6cc   : > { %v6230_v45 = vpop.permute.xlu1 %6229  ;;  %5743 = vrot.lane.b32.xlu0 %v5243_v10, %s7661_s10  ;;  %7506 = vmatprep.mubr.msk.f32.mxu0 %vm4027_vm9, %v6543_v53  ;;  %v6324_v10 = vsel %vm332_vm0, %v11898_v48, %v11870_v6 }
 0x6cd   : > { %v6544_v9 = vsel %vm2415_vm8, %v6512_v51, %v6230_v45  ;;  %v6356_v57 = vsel %vm2217_vm2, %v6324_v10, %v12043_v56 }
 0x6ce   : > { %5745 = vrot.lane.b32.xlu1 %v5244_v24, %s7661_s10  ;;  %v5848_v31 = vpop.permute.xlu0 %5847  ;;  %7507 = vmatmul.mubr.msk.f32.gmra.mxu0 %vm4027_vm9, %v6544_v9  ;;  %v6388_v40 = vsel %vm2250_vm3, %v6356_v57, %v13986_v13  ;;  %v13995_v13 = vld [vmem:[#allocation37_spill] sm:$0xff] }
 0x6cf   : > { %v6449_v21 = vsel %vm2316_vm5, %v6417_v23, %v5848_v31  ;;  %v5279_v31 = vld [vmem:[#allocation4 + $0x189] sm:$0xff]  ;;  %v13991_v23 = vld [vmem:[#allocation25_spill] sm:$0xff] }
 0x6d0   : > { %v5976_v36 = vpop.permute.xlu1 %5975  ;;  %6251 = vrot.lane.b32.xlu0 %v5275_v12, %s7665_s17 }
 0x6d1   : > { %v6481_v50 = vsel %vm2349_vm6, %v6449_v21, %v5976_v36  ;;  %v5280_v36 = vld [vmem:[#allocation4 + $0x191] sm:$0xff] }
 0x6d2   : > { %6253 = vrot.lane.b32.xlu1 %v5276_v43, %s7665_s17  ;;  %v5850_v41 = vpop.permute.xlu0 %5849 }
 0x6d3   : > { %v6450_v49 = vsel %vm2316_vm5, %v6418_v27, %v5850_v41 }
 0x6d4   : > { %v6104_v30 = vpop.permute.xlu1 %6103  ;;  %5871 = vrot.lane.b32.xlu0 %v5275_v12, %s7662_s11 }
 0x6d5   : > { %v6513_v16 = vsel %vm2382_vm7, %v6481_v50, %v6104_v30  ;;  %v5217_v30 = vld [vmem:[#allocation4 + $0x1a7] sm:$0xff]  ;;  %v13993_v50 = vld [vmem:[#allocation87_spill] sm:$0xff] }
 0x6d6   : > { %5999 = vrot.lane.b32.xlu1 %v11988_v4, %s7663_s12  ;;  %v5978_v59 = vpop.permute.xlu0 %5977  ;;  %v5245_v4 = vld [vmem:[#allocation4 + $0x168] sm:$0xff] }
 0x6d7   : > { %v6482_v63 = vsel %vm2349_vm6, %v6450_v49, %v5978_v59  ;;  %v13988_v59 = vld [vmem:[#allocation29_spill] sm:$0xff] }
 0x6d8   : > { %v6106_v28 = vpop.permute.xlu1 %6105  ;;  %5873 = vrot.lane.b32.xlu0 %v5276_v43, %s7662_s11  ;;  %v6325_v7 = vsel %vm332_vm0, %v13988_v59, %v13987_v55  ;;  %v5252_v59 = vld [vmem:[#allocation4 + $0x1d0] sm:$0xff] }
 0x6d9   : > { %v6514_v62 = vsel %vm2382_vm7, %v6482_v63, %v6106_v28  ;;  %v6357_v28 = vsel %vm2217_vm2, %v6325_v7, %v13989_v0 }
 0x6da   : > { %6127 = vrot.lane.b32.xlu1 %v5245_v4, %s7664_s16  ;;  %v5724_v5 = vpop.permute.xlu0 %5723  ;;  %v6389_v25 = vsel %vm2250_vm3, %v6357_v28, %v12179_v22  ;;  %v5218_v22 = vld [vmem:[#allocation4 + $0x1af] sm:$0xff] }
 0x6db   : > { %v6419_v11 = vsel %vm2283_vm4, %v6387_v19, %v5724_v5  ;;  %v13992_v5 = vld [vmem:[#allocation278_spill] sm:$0xff]  ;;  %v5282_v19 = vld [vmem:[#allocation4 + $0x1b1] sm:$0xff] }
 0x6dc   : > { %v5726_v52 = vpop.permute.xlu1 %5725  ;;  %6001 = vrot.lane.b32.xlu0 %v11982_v37, %s7663_s12 }
 0x6dd   : > { %v6420_v48 = vsel %vm2283_vm4, %v6388_v40, %v5726_v52  ;;  %v5249_v52 = vld [vmem:[#allocation4 + $0x1a8] sm:$0xff] }
 0x6de   : > { %6129 = vrot.lane.b32.xlu1 %v5246_v14, %s7664_s16  ;;  %v6232_v1 = vpop.permute.xlu0 %6231 }
 0x6df   : > { %v6545_v34 = vsel %vm2415_vm8, %v6513_v16, %v6232_v1 }
 0x6e0   : > { %v6234_v3 = vpop.permute.xlu1 %6233  ;;  %5747 = vrot.lane.b32.xlu0 %v5245_v4, %s7661_s10  ;;  %7509 = vmatprep.mubr.msk.f32.mxu0 %vm4027_vm9, %v6545_v34  ;;  %v6326_v4 = vsel %vm332_vm0, %v13991_v23, %v13990_v29 }
 0x6e1   : > { %v6546_v37 = vsel %vm2415_vm8, %v6514_v62, %v6234_v3  ;;  %v6358_v27 = vsel %vm2217_vm2, %v6326_v4, %v13992_v5  ;;  %v5284_v5 = vld [vmem:[#allocation4 + $0x1d1] sm:$0xff] }
 0x6e2   : > { %5749 = vrot.lane.b32.xlu1 %v5246_v14, %s7661_s10  ;;  %v5852_v32 = vpop.permute.xlu0 %5851  ;;  %7510 = vmatmul.mubr.msk.f32.gmra.mxu0 %vm4027_vm9, %v6546_v37  ;;  %v6390_v63 = vsel %vm2250_vm3, %v6358_v27, %v13993_v50  ;;  %v14002_v50 = vld [vmem:[#allocation26_spill] sm:$0xff] }
 0x6e3   : > { %v6451_v35 = vsel %vm2316_vm5, %v6419_v11, %v5852_v32  ;;  %v5250_v32 = vld [vmem:[#allocation4 + $0x1b0] sm:$0xff]  ;;  %v5219_v11 = vld [vmem:[#allocation4 + $0x1c7] sm:$0xff] }
 0x6e4   : > { %v5980_v18 = vpop.permute.xlu1 %5979  ;;  %6255 = vrot.lane.b32.xlu0 %v5277_v8, %s7665_s17 }
 0x6e5   : > { %v6483_v56 = vsel %vm2349_vm6, %v6451_v35, %v5980_v18 }
 0x6e6   : > { %6257 = vrot.lane.b32.xlu1 %v5278_v42, %s7665_s17  ;;  %v5854_v39 = vpop.permute.xlu0 %5853 }
 0x6e7   : > { %v6452_v54 = vsel %vm2316_vm5, %v6420_v48, %v5854_v39 }
 0x6e8   : > { %v6108_v46 = vpop.permute.xlu1 %6107  ;;  %5875 = vrot.lane.b32.xlu0 %v5277_v8, %s7662_s11 }
 0x6e9   : > { %v6515_v24 = vsel %vm2382_vm7, %v6483_v56, %v6108_v46  ;;  %v13999_v56 = vld [vmem:[#allocation89_spill] sm:$0xff] }
 0x6ea   : > { %6003 = vrot.lane.b32.xlu1 %v11997_v17, %s7663_s12  ;;  %v5982_v44 = vpop.permute.xlu0 %5981  ;;  %v5247_v17 = vld [vmem:[#allocation4 + $0x188] sm:$0xff] }
 0x6eb   : > { %v6484_v26 = vsel %vm2349_vm6, %v6452_v54, %v5982_v44  ;;  %v13998_v54 = vld [vmem:[#allocation33_spill] sm:$0xff] }
 0x6ec   : > { %v6110_v58 = vpop.permute.xlu1 %6109  ;;  %5877 = vrot.lane.b32.xlu0 %v5278_v42, %s7662_s11 }
 0x6ed   : > { %v6516_v53 = vsel %vm2382_vm7, %v6484_v26, %v6110_v58 }
 0x6ee   : > { %6131 = vrot.lane.b32.xlu1 %v5247_v17, %s7664_s16  ;;  %v5728_v6 = vpop.permute.xlu0 %5727 }
 0x6ef   : > { %v6421_v49 = vsel %vm2283_vm4, %v6389_v25, %v5728_v6  ;;  %v13996_v6 = vld [vmem:[#allocation70_spill] sm:$0xff] }
 0x6f0   : > { %v5730_v60 = vpop.permute.xlu1 %5729  ;;  %6005 = vrot.lane.b32.xlu0 %v5216_v15, %s7663_s12  ;;  %v13997_v15 = vld [vmem:[#allocation18_spill] sm:$0xff] }
 0x6f1   : > { %v6422_v1 = vsel %vm2283_vm4, %v6390_v63, %v5730_v60  ;;  %v6328_v60 = vsel %vm332_vm0, %v13998_v54, %v13997_v15  ;;  %v5283_v25 = vld [vmem:[#allocation4 + $0x1c9] sm:$0xff] }
 0x6f2   : > { %6133 = vrot.lane.b32.xlu1 %v5248_v47, %s7664_s16  ;;  %v6236_v33 = vpop.permute.xlu0 %6235  ;;  %v14003_v63 = vld [vmem:[#allocation42_spill] sm:$0xff] }
 0x6f3   : > { %v6547_v2 = vsel %vm2415_vm8, %v6515_v24, %v6236_v33  ;;  %v14000_v24 = vld [vmem:[#allocation69_spill] sm:$0xff] }
 0x6f4   : > { %v6238_v51 = vpop.permute.xlu1 %6237  ;;  %5751 = vrot.lane.b32.xlu0 %v5247_v17, %s7661_s10  ;;  %7512 = vmatprep.mubr.msk.f32.mxu0 %vm4027_vm9, %v6547_v2  ;;  %v13994_v17 = vld [vmem:[#allocation21_spill] sm:$0xff]  ;;  %v6360_v33 = vsel %vm2217_vm2, %v6328_v60, %v14000_v24  ;;  %v5286_v24 = vld [vmem:[#allocation4 + $0x1f1] sm:$0xff] }
 0x6f5   : > { %v6548_v45 = vsel %vm2415_vm8, %v6516_v53, %v6238_v51  ;;  %v6327_v40 = vsel %vm332_vm0, %v13995_v13, %v13994_v17  ;;  %v5251_v53 = vld [vmem:[#allocation4 + $0x1c8] sm:$0xff]  ;;  %v14001_v51 = vld [vmem:[#allocation88_spill] sm:$0xff] }
 0x6f6   : > { %5753 = vrot.lane.b32.xlu1 %v5248_v47, %s7661_s10  ;;  %v5856_v9 = vpop.permute.xlu0 %5855  ;;  %7513 = vmatmul.mubr.msk.f32.gmra.mxu0 %vm4027_vm9, %v6548_v45  ;;  %v6359_v48 = vsel %vm2217_vm2, %v6327_v40, %v13996_v6  ;;  %v6392_v45 = vsel %vm2250_vm3, %v6360_v33, %v14001_v51  ;;  %v5254_v40 = vld [vmem:[#allocation4 + $0x1f0] sm:$0xff]  ;;  %v7634_v51 = vld [vmem:[#allocation4 + $0x107] sm:$0xff] }
 0x6f7   : > { %v6453_v14 = vsel %vm2316_vm5, %v6421_v49, %v5856_v9  ;;  %v6391_v26 = vsel %vm2250_vm3, %v6359_v48, %v13999_v56 }
 0x6f8   : > { %v5984_v12 = vpop.permute.xlu1 %5983  ;;  %6259 = vrot.lane.b32.xlu0 %v5279_v31, %s7665_s17 }
 0x6f9   : > { %v6485_v3 = vsel %vm2349_vm6, %v6453_v14, %v5984_v12  ;;  %v6329_v14 = vsel %vm332_vm0, %v14003_v63, %v14002_v50 }
 0x6fa   : > { %6261 = vrot.lane.b32.xlu1 %v5280_v36, %s7665_s17  ;;  %v5858_v43 = vpop.permute.xlu0 %5857 }
 0x6fb   : > { %v6454_v34 = vsel %vm2316_vm5, %v6422_v1, %v5858_v43  ;;  %v14004_v1 = vld [vmem:[#allocation283_spill] sm:$0xff] }
 0x6fc   : > { %v6112_v41 = vpop.permute.xlu1 %6111  ;;  %5879 = vrot.lane.b32.xlu0 %v5279_v31, %s7662_s11 }
 0x6fd   : > { %v6517_v8 = vsel %vm2382_vm7, %v6485_v3, %v6112_v41 }
 0x6fe   : > { %6007 = vrot.lane.b32.xlu1 %v5217_v30, %s7663_s12  ;;  %v5986_v20 = vpop.permute.xlu0 %5985 }
 0x6ff   : > { %v6486_v37 = vsel %vm2349_vm6, %v6454_v34, %v5986_v20  ;;  %v7633_v34 = vld [vmem:[#allocation4 + $0xef] sm:$0xff] }
 0x700   : > { %v6114_v21 = vpop.permute.xlu1 %6113  ;;  %5881 = vrot.lane.b32.xlu0 %v5280_v36, %s7662_s11  ;;  %v5220_v36 = vld [vmem:[#allocation4 + $0x1cf] sm:$0xff] }
 0x701   : > { %v6518_v39 = vsel %vm2382_vm7, %v6486_v37, %v6114_v21  ;;  %v14006_v37 = vld [vmem:[#allocation91_spill] sm:$0xff] }
 0x702   : > { %6135 = vrot.lane.b32.xlu1 %v5249_v52, %s7664_s16  ;;  %v5732_v16 = vpop.permute.xlu0 %5731 }
 0x703   : > { %v6423_v2 = vsel %vm2283_vm4, %v6391_v26, %v5732_v16  ;;  %v5285_v26 = vld [vmem:[#allocation4 + $0x1e9] sm:$0xff] }
 0x704   : > { %v5734_v62 = vpop.permute.xlu1 %5733  ;;  %6009 = vrot.lane.b32.xlu0 %v5218_v22, %s7663_s12  ;;  %v6361_v22 = vsel %vm2217_vm2, %v6329_v14, %v14004_v1 }
 0x705   : > { %v6424_v12 = vsel %vm2283_vm4, %v6392_v45, %v5734_v62  ;;  %v14005_v62 = vld [vmem:[#allocation22_spill] sm:$0xff] }
 0x706   : > { %6137 = vrot.lane.b32.xlu1 %v5250_v32, %s7664_s16  ;;  %v6240_v18 = vpop.permute.xlu0 %6239  ;;  %v6330_v3 = vsel %vm332_vm0, %v7633_v34, %v14005_v62  ;;  %v14009_v45 = vld [vmem:[#allocation34_spill] sm:$0xff] }
 0x707   : > { %v6549_v42 = vsel %vm2415_vm8, %v6517_v8, %v6240_v18  ;;  %v14007_v18 = vld [vmem:[#allocation71_spill] sm:$0xff] }
 0x708   : > { %v6242_v46 = vpop.permute.xlu1 %6241  ;;  %5755 = vrot.lane.b32.xlu0 %v5249_v52, %s7661_s10  ;;  %7515 = vmatprep.mubr.msk.f32.mxu0 %vm4027_vm9, %v6549_v42  ;;  %v5221_v52 = vld [vmem:[#allocation4 + $0x1e7] sm:$0xff]  ;;  %v6362_v42 = vsel %vm2217_vm2, %v6330_v3, %v14007_v18 }
 0x709   : > { %v6550_v61 = vsel %vm2415_vm8, %v6518_v39, %v6242_v46  ;;  %v5253_v46 = vld [vmem:[#allocation4 + $0x1e8] sm:$0xff] }
 0x70a   : > { %5757 = vrot.lane.b32.xlu1 %v5250_v32, %s7661_s10  ;;  %v5860_v44 = vpop.permute.xlu0 %5859  ;;  %7516 = vmatmul.mubr.msk.f32.gmra.mxu0 %vm4027_vm9, %v6550_v61  ;;  %v6393_v32 = vsel %vm2250_vm3, %v6361_v22, %v14006_v37  ;;  %v14008_v61 = vld [vmem:[#allocation90_spill] sm:$0xff] }
 0x70b   : > { %v6455_v9 = vsel %vm2316_vm5, %v6423_v2, %v5860_v44  ;;  %v6394_v44 = vsel %vm2250_vm3, %v6362_v42, %v14008_v61  ;;  %v5287_v3 = vld [vmem:[#allocation4 + $0x209] sm:$0xff]  ;;  %v14015_v61 = vld [vmem:[#allocation41_spill] sm:$0xff] }
 0x70c   : > { %v5988_v10 = vpop.permute.xlu1 %5987  ;;  %6263 = vrot.lane.b32.xlu0 %v5281_v38, %s7665_s17 }
 0x70d   : > { %v6487_v30 = vsel %vm2349_vm6, %v6455_v9, %v5988_v10  ;;  %v6331_v9 = vsel %vm332_vm0, %v7634_v51, %v14009_v45  ;;  %v5258_v45 = vld [vmem:[#allocation4 + $0x230] sm:$0xff] }
 0x70e   : > { %6265 = vrot.lane.b32.xlu1 %v5282_v19, %s7665_s17  ;;  %v5862_v58 = vpop.permute.xlu0 %5861 }
 0x70f   : > { %v6456_v43 = vsel %vm2316_vm5, %v6424_v12, %v5862_v58  ;;  %v5222_v58 = vld [vmem:[#allocation4 + $0x1ef] sm:$0xff]  ;;  %v14010_v12 = vld [vmem:[#allocation73_spill] sm:$0xff] }
 0x710   : > { %v6116_v57 = vpop.permute.xlu1 %6115  ;;  %5883 = vrot.lane.b32.xlu0 %v5281_v38, %s7662_s11 }
 0x711   : > { %v6519_v7 = vsel %vm2382_vm7, %v6487_v30, %v6116_v57 }
 0x712   : > { %6011 = vrot.lane.b32.xlu1 %v5219_v11, %s7663_s12  ;;  %v5990_v35 = vpop.permute.xlu0 %5989 }
 0x713   : > { %v6488_v55 = vsel %vm2349_vm6, %v6456_v43, %v5990_v35  ;;  %v7635_v43 = vld [vmem:[#allocation4 + $0x10f] sm:$0xff] }
 0x714   : > { %v6118_v47 = vpop.permute.xlu1 %6117  ;;  %5885 = vrot.lane.b32.xlu0 %v5282_v19, %s7662_s11 }
 0x715   : > { %v6520_v28 = vsel %vm2382_vm7, %v6488_v55, %v6118_v47  ;;  %v14012_v55 = vld [vmem:[#allocation281_spill] sm:$0xff] }
 0x716   : > { %6139 = vrot.lane.b32.xlu1 %v5251_v53, %s7664_s16  ;;  %v5736_v31 = vpop.permute.xlu0 %5735 }
 0x717   : > { %v6425_v39 = vsel %vm2283_vm4, %v6393_v32, %v5736_v31  ;;  %v5256_v32 = vld [vmem:[#allocation4 + $0x210] sm:$0xff] }
 0x718   : > { %v5738_v41 = vpop.permute.xlu1 %5737  ;;  %6013 = vrot.lane.b32.xlu0 %v5220_v36, %s7663_s12  ;;  %v6363_v36 = vsel %vm2217_vm2, %v6331_v9, %v14010_v12 }
 0x719   : > { %v6426_v19 = vsel %vm2283_vm4, %v6394_v44, %v5738_v41  ;;  %v14011_v41 = vld [vmem:[#allocation30_spill] sm:$0xff] }
 0x71a   : > { %6141 = vrot.lane.b32.xlu1 %v5252_v59, %s7664_s16  ;;  %v6244_v20 = vpop.permute.xlu0 %6243  ;;  %v6332_v30 = vsel %vm332_vm0, %v7635_v43, %v14011_v41 }
 0x71b   : > { %v6551_v0 = vsel %vm2415_vm8, %v6519_v7, %v6244_v20  ;;  %v14013_v20 = vld [vmem:[#allocation72_spill] sm:$0xff] }
 0x71c   : > { %v6246_v29 = vpop.permute.xlu1 %6245  ;;  %5759 = vrot.lane.b32.xlu0 %v5251_v53, %s7661_s10  ;;  %7518 = vmatprep.mubr.msk.f32.mxu0 %vm4027_vm9, %v6551_v0  ;;  %v5223_v53 = vld [vmem:[#allocation4 + $0x207] sm:$0xff]  ;;  %v6364_v0 = vsel %vm2217_vm2, %v6332_v30, %v14013_v20 }
 0x71d   : > { %v6552_v23 = vsel %vm2415_vm8, %v6520_v28, %v6246_v29  ;;  %v5255_v29 = vld [vmem:[#allocation4 + $0x208] sm:$0xff] }
 0x71e   : > { %5761 = vrot.lane.b32.xlu1 %v5252_v59, %s7661_s10  ;;  %v5864_v4 = vpop.permute.xlu0 %5863  ;;  %7519 = vmatmul.mubr.msk.f32.gmra.mxu0 %vm4027_vm9, %v6552_v23  ;;  %v6395_v59 = vsel %vm2250_vm3, %v6363_v36, %v14012_v55  ;;  %v14014_v23 = vld [vmem:[#allocation92_spill] sm:$0xff]  ;;  %v5257_v36 = vld [vmem:[#allocation4 + $0x228] sm:$0xff] }
 0x71f   : > { %v6457_v38 = vsel %vm2316_vm5, %v6425_v39, %v5864_v4  ;;  %v6396_v4 = vsel %vm2250_vm3, %v6364_v0, %v14014_v23  ;;  %v5193_v39 = vld [vmem:[#allocation4 + $0x211] sm:$0xff]  ;;  %v14021_v23 = vld [vmem:[#allocation46_spill] sm:$0xff] }
 0x720   : > { %v5992_v21 = vpop.permute.xlu1 %5991  ;;  %6267 = vrot.lane.b32.xlu0 %v5283_v25, %s7665_s17  ;;  %v5290_v55 = vld [vmem:[#allocation4 + $0x231] sm:$0xff] }
 0x721   : > { %v6489_v17 = vsel %vm2349_vm6, %v6457_v38, %v5992_v21 }
 0x722   : > { %6269 = vrot.lane.b32.xlu1 %v5284_v5, %s7665_s17  ;;  %v5866_v27 = vpop.permute.xlu0 %5865 }
 0x723   : > { %v6458_v57 = vsel %vm2316_vm5, %v6426_v19, %v5866_v27  ;;  %v5224_v27 = vld [vmem:[#allocation4 + $0x20f] sm:$0xff] }
 0x724   : > { %v6120_v49 = vpop.permute.xlu1 %6119  ;;  %5887 = vrot.lane.b32.xlu0 %v5283_v25, %s7662_s11 }
 0x725   : > { %v6521_v35 = vsel %vm2382_vm7, %v6489_v17, %v6120_v49  ;;  %v14018_v17 = vld [vmem:[#allocation13_spill] sm:$0xff] }
 0x726   : > { %6015 = vrot.lane.b32.xlu1 %v5221_v52, %s7663_s12  ;;  %v5994_v16 = vpop.permute.xlu0 %5993 }
 0x727   : > { %v6490_v13 = vsel %vm2349_vm6, %v6458_v57, %v5994_v16  ;;  %v14017_v57 = vld [vmem:[#allocation38_spill] sm:$0xff] }
 0x728   : > { %v6122_v8 = vpop.permute.xlu1 %6121  ;;  %5889 = vrot.lane.b32.xlu0 %v5284_v5, %s7662_s11 }
 0x729   : > { %v6522_v15 = vsel %vm2382_vm7, %v6490_v13, %v6122_v8 }
 0x72a   : > { %6143 = vrot.lane.b32.xlu1 %v5253_v46, %s7664_s16  ;;  %v5740_v10 = vpop.permute.xlu0 %5739 }
 0x72b   : > { %v6427_v28 = vsel %vm2283_vm4, %v6395_v59, %v5740_v10  ;;  %v14016_v10 = vld [vmem:[#allocation75_spill] sm:$0xff] }
 0x72c   : > { %v5742_v11 = vpop.permute.xlu1 %5741  ;;  %6017 = vrot.lane.b32.xlu0 %v5222_v58, %s7663_s12  ;;  %v7637_v58 = vld [vmem:[#allocation4 + $0x12f] sm:$0xff] }
 0x72d   : > { %v6428_v5 = vsel %vm2283_vm4, %v6396_v4, %v5742_v11  ;;  %v6334_v11 = vsel %vm332_vm0, %v7637_v58, %v14017_v57 }
 0x72e   : > { %6145 = vrot.lane.b32.xlu1 %v5254_v40, %s7664_s16  ;;  %v6248_v6 = vpop.permute.xlu0 %6247 }
 0x72f   : > { %v6553_v48 = vsel %vm2415_vm8, %v6521_v35, %v6248_v6  ;;  %v14019_v35 = vld [vmem:[#allocation74_spill] sm:$0xff] }
 0x730   : > { %v6250_v54 = vpop.permute.xlu1 %6249  ;;  %5763 = vrot.lane.b32.xlu0 %v5253_v46, %s7661_s10  ;;  %7521 = vmatprep.mubr.msk.f32.mxu0 %vm4027_vm9, %v6553_v48  ;;  %v7636_v46 = vld [vmem:[#allocation4 + $0x127] sm:$0xff]  ;;  %v6366_v6 = vsel %vm2217_vm2, %v6334_v11, %v14019_v35 }
 0x731   : > { %v6554_v60 = vsel %vm2415_vm8, %v6522_v15, %v6250_v54  ;;  %v6333_v44 = vsel %vm332_vm0, %v7636_v46, %v14015_v61  ;;  %v5226_v15 = vld [vmem:[#allocation4 + $0x22f] sm:$0xff]  ;;  %v14020_v54 = vld [vmem:[#allocation93_spill] sm:$0xff] }
 0x732   : > { %5765 = vrot.lane.b32.xlu1 %v5254_v40, %s7661_s10  ;;  %v5868_v56 = vpop.permute.xlu0 %5867  ;;  %7522 = vmatmul.mubr.msk.f32.gmra.mxu0 %vm4027_vm9, %v6554_v60  ;;  %v6365_v19 = vsel %vm2217_vm2, %v6333_v44, %v14016_v10  ;;  %v6398_v60 = vsel %vm2250_vm3, %v6366_v6, %v14020_v54 }
 0x733   : > { %v6459_v25 = vsel %vm2316_vm5, %v6427_v28, %v5868_v56  ;;  %v6397_v13 = vsel %vm2250_vm3, %v6365_v19, %v14018_v17 }
 0x734   : > { %v5996_v47 = vpop.permute.xlu1 %5995  ;;  %6271 = vrot.lane.b32.xlu0 %v5285_v26, %s7665_s17 }
 0x735   : > { %v6491_v50 = vsel %vm2349_vm6, %v6459_v25, %v5996_v47 }
 0x736   : > { %6273 = vrot.lane.b32.xlu1 %v5286_v24, %s7665_s17  ;;  %v5870_v33 = vpop.permute.xlu0 %5869 }
 0x737   : > { %v6460_v49 = vsel %vm2316_vm5, %v6428_v5, %v5870_v33 }
 0x738   : > { %v6124_v2 = vpop.permute.xlu1 %6123  ;;  %5891 = vrot.lane.b32.xlu0 %v5285_v26, %s7662_s11 }
 0x739   : > { %v6523_v14 = vsel %vm2382_vm7, %v6491_v50, %v6124_v2  ;;  %v14024_v50 = vld [vmem:[#allocation392_spill] sm:$0xff] }
 0x73a   : > { %6019 = vrot.lane.b32.xlu1 %v5223_v53, %s7663_s12  ;;  %v5998_v31 = vpop.permute.xlu0 %5997 }
 0x73b   : > { %v6492_v63 = vsel %vm2349_vm6, %v6460_v49, %v5998_v31  ;;  %v14023_v49 = vld [vmem:[#allocation45_spill] sm:$0xff] }
 0x73c   : > { %v6126_v7 = vpop.permute.xlu1 %6125  ;;  %5893 = vrot.lane.b32.xlu0 %v5286_v24, %s7662_s11  ;;  %v5225_v24 = vld [vmem:[#allocation4 + $0x227] sm:$0xff] }
 0x73d   : > { %v6524_v22 = vsel %vm2382_vm7, %v6492_v63, %v6126_v7  ;;  %v5289_v7 = vld [vmem:[#allocation4 + $0x229] sm:$0xff] }
 0x73e   : > { %6147 = vrot.lane.b32.xlu1 %v5255_v29, %s7664_s16  ;;  %v5744_v21 = vpop.permute.xlu0 %5743 }
 0x73f   : > { %v6429_v48 = vsel %vm2283_vm4, %v6397_v13, %v5744_v21  ;;  %v14022_v21 = vld [vmem:[#allocation77_spill] sm:$0xff] }
 0x740   : > { %v5746_v52 = vpop.permute.xlu1 %5745  ;;  %6021 = vrot.lane.b32.xlu0 %v5224_v27, %s7663_s12 }
 0x741   : > { %v6430_v47 = vsel %vm2283_vm4, %v6398_v60, %v5746_v52  ;;  %v7640_v60 = vld [vmem:[#allocation4 + $0x167] sm:$0xff] }
 0x742   : > { %5767 = vrot.lane.b32.xlu1 %v5255_v29, %s7661_s10  ;;  %v6252_v16 = vpop.permute.xlu0 %6251  ;;  %v7638_v29 = vld [vmem:[#allocation4 + $0x147] sm:$0xff] }
 0x743   : > { %v6555_v1 = vsel %vm2415_vm8, %v6523_v14, %v6252_v16  ;;  %v6335_v4 = vsel %vm332_vm0, %v7638_v29, %v14021_v23  ;;  %v12630_v16 = vld [vmem:[%s12878_s6] ss:$0 sm:$0xff] }
 0x744   : > { %v6254_v34 = vpop.permute.xlu1 %6253  ;;  %5641 = vrot.lane.b32.xlu0 %v5224_v27, %s7660_s9  ;;  %7524 = vmatprep.mubr.msk.f32.mxu0 %vm4027_vm9, %v6555_v1  ;;  %v6367_v5 = vsel %vm2217_vm2, %v6335_v4, %v14022_v21  ;;  %v7639_v27 = vld [vmem:[#allocation4 + $0x14f] sm:$0xff]  ;;  %v14025_v1 = vld [vmem:[#allocation76_spill] sm:$0xff] }
 0x745   : > { %v6556_v62 = vsel %vm2415_vm8, %v6524_v22, %v6254_v34  ;;  %v6336_v52 = vsel %vm332_vm0, %v7639_v27, %v14023_v49  ;;  %v6399_v63 = vsel %vm2250_vm3, %v6367_v5, %v14024_v50 }
 0x746   : > { %6275 = vrot.lane.b32.xlu1 %v5287_v3, %s7665_s17  ;;  %v5872_v37 = vpop.permute.xlu0 %5871  ;;  %7525 = vmatmul.mubr.msk.f32.gmra.mxu0 %vm4027_vm9, %v6556_v62  ;;  %v6368_v22 = vsel %vm2217_vm2, %v6336_v52, %v14025_v1  ;;  %v14026_v62 = vld [vmem:[#allocation286_spill] sm:$0xff] }
 0x747   : > { %v6461_v56 = vsel %vm2316_vm5, %v6429_v48, %v5872_v37 }
 0x748   : > { %v6000_v8 = vpop.permute.xlu1 %5999  ;;  %6149 = vrot.lane.b32.xlu0 %v5256_v32, %s7664_s16 }
 0x749   : > { %v6493_v53 = vsel %vm2349_vm6, %v6461_v56, %v6000_v8  ;;  %v14027_v56 = vld [vmem:[#allocation279_spill] sm:$0xff] }
 0x74a   : > { %5895 = vrot.lane.b32.xlu1 %v5287_v3, %s7662_s11  ;;  %v5874_v18 = vpop.permute.xlu0 %5873  ;;  %v6400_v3 = vsel %vm2250_vm3, %v6368_v22, %v14026_v62 }
 0x74b   : > { %v6462_v33 = vsel %vm2316_vm5, %v6430_v47, %v5874_v18 }
 0x74c   : > { %v6128_v42 = vpop.permute.xlu1 %6127  ;;  %5769 = vrot.lane.b32.xlu0 %v5256_v32, %s7661_s10 }
 0x74d   : > { %v6525_v9 = vsel %vm2382_vm7, %v6493_v53, %v6128_v42  ;;  %v14029_v53 = vld [vmem:[#allocation49_spill] sm:$0xff] }
 0x74e   : > { %5897 = vrot.lane.b32.xlu1 %v5193_v39, %s7662_s11  ;;  %v6002_v38 = vpop.permute.xlu0 %6001 }
 0x74f   : > { %v6494_v51 = vsel %vm2349_vm6, %v6462_v33, %v6002_v38 }
 0x750   : > { %v6130_v40 = vpop.permute.xlu1 %6129  ;;  %6277 = vrot.lane.b32.xlu0 %v5193_v39, %s7665_s17 }
 0x751   : > { %v6526_v43 = vsel %vm2382_vm7, %v6494_v51, %v6130_v40 }
 0x752   : > { %6025 = vrot.lane.b32.xlu1 %v5226_v15, %s7663_s12  ;;  %v5748_v26 = vpop.permute.xlu0 %5747 }
 0x753   : > { %v6431_v34 = vsel %vm2283_vm4, %v6399_v63, %v5748_v26  ;;  %v6337_v26 = vsel %vm332_vm0, %v7640_v60, %v14027_v56 }
 0x754   : > { %v5750_v2 = vpop.permute.xlu1 %5749  ;;  %6023 = vrot.lane.b32.xlu0 %v5225_v24, %s7663_s12  ;;  %v14028_v24 = vld [vmem:[#allocation79_spill] sm:$0xff] }
 0x755   : > { %v6432_v18 = vsel %vm2283_vm4, %v6400_v3, %v5750_v2  ;;  %v6369_v33 = vsel %vm2217_vm2, %v6337_v26, %v14028_v24  ;;  %v7641_v2 = vld [vmem:[#allocation4 + $0x16f] sm:$0xff] }
 0x756   : > { %6153 = vrot.lane.b32.xlu1 %v5258_v45, %s7664_s16  ;;  %v6256_v31 = vpop.permute.xlu0 %6255  ;;  %v6338_v51 = vsel %vm332_vm0, %v7641_v2, %v14029_v53  ;;  %v14030_v45 = vld [vmem:[#allocation14_spill] sm:$0xff] }
 0x757   : > { %v6557_v12 = vsel %vm2415_vm8, %v6525_v9, %v6256_v31  ;;  %v6401_v9 = vsel %vm2250_vm3, %v6369_v33, %v14030_v45 }
 0x758   : > { %v6258_v41 = vpop.permute.xlu1 %6257  ;;  %6151 = vrot.lane.b32.xlu0 %v5257_v36, %s7664_s16  ;;  %7527 = vmatprep.mubr.msk.f32.mxu0 %vm4027_vm9, %v6557_v12  ;;  %s12645_s16 = scalar_lea.vmem %s12879_s7, %s7714_s26  ;;  %v14031_v12 = vld [vmem:[#allocation78_spill] sm:$0xff] }
 0x759   : > { %v6558_v30 = vsel %vm2415_vm8, %v6526_v43, %v6258_v41  ;;  %v6370_v36 = vsel %vm2217_vm2, %v6338_v51, %v14031_v12  ;;  %v14032_v41 = vld [vmem:[#allocation94_spill] sm:$0xff] }
 0x75a   : > { %6281 = vrot.lane.b32.xlu1 %v5290_v55, %s7665_s17  ;;  %v5876_v59 = vpop.permute.xlu0 %5875  ;;  %7528 = vmatmul.mubr.msk.f32.gmra.mxu0 %vm4027_vm9, %v6558_v30  ;;  %v6402_v30 = vsel %vm2250_vm3, %v6370_v36, %v14032_v41 }
 0x75b   : > { %v6463_v37 = vsel %vm2316_vm5, %v6431_v34, %v5876_v59 }
 0x75c   : > { %v6004_v20 = vpop.permute.xlu1 %6003  ;;  %6279 = vrot.lane.b32.xlu0 %v5289_v7, %s7665_s17 }
 0x75d   : > { %v6495_v44 = vsel %vm2349_vm6, %v6463_v37, %v6004_v20  ;;  %v7642_v37 = vld [vmem:[#allocation4 + $0x187] sm:$0xff] }
 0x75e   : > { %v5878_v0 = vpop.permute.xlu0 %5877 }
 0x75f   : > { %v6464_v39 = vsel %vm2316_vm5, %v6432_v18, %v5878_v0 }
 0x760   : > { %v6132_v28 = vpop.permute.xlu1 %6131 }
 0x761   : > { %v6527_v58 = vsel %vm2382_vm7, %v6495_v44, %v6132_v28 }
 0x762   : > { %v6006_v25 = vpop.permute.xlu0 %6005 }
 0x763   : > { %v6496_v38 = vsel %vm2349_vm6, %v6464_v39, %v6006_v25 }
 0x764   : > { %v6134_v14 = vpop.permute.xlu1 %6133 }
 0x765   : > { %v6528_v13 = vsel %vm2382_vm7, %v6496_v38, %v6134_v14  ;;  %v14036_v38 = vld [vmem:[#allocation335_spill] sm:$0xff] }
 0x766   : > { %v7502_v32 = vpop.f32.mrf.mxu0  ;;  %v5752_v8 = vpop.permute.xlu0 %5751 }
 0x767   : > { %v6754_v42 = vadd.f32 %v7502_v32, %v12630_v16  ;;  %v6433_v43 = vsel %vm2283_vm4, %v6401_v9, %v5752_v8  ;;  %v14033_v32 = vld [vmem:[#allocation53_spill] sm:$0xff] }
 0x768   : > { %v5754_v46 = vpop.permute.xlu1 %5753  ;;  %v6748_v61 = vpop.f32.mrf.mxu0  ;;  %v6339_v8 = vsel %vm332_vm0, %v7642_v37, %v14033_v32 }
 0x769   : > { %v6908_v10 = vmax.f32 %v6754_v42, 0.0  ;;  %v6749_v19 = vadd.f32 %v12630_v16, %v6748_v61  ;;  %v6434_v20 = vsel %vm2283_vm4, %v6402_v30, %v5754_v46  ;;  %v14034_v42 = vld [vmem:[#allocation80_spill] sm:$0xff]  ;;  %v7643_v46 = vld [vmem:[#allocation4 + $0x18f] sm:$0xff] }
 0x76a   : > { %v6260_v57 = vpop.permute.xlu0 %6259  ;;  %v6371_v39 = vsel %vm2217_vm2, %v6339_v8, %v14034_v42  ;;  %v14035_v61 = vld [vmem:[#allocation50_spill] sm:$0xff] }
 0x76b   : > { %6940 = vst.msk [vmem:[%s12645_s16 + $0x8] sm:$0xff] %vm332_vm0, %v6908_v10  ;;  %v6907_v11 = vmax.f32 %v6749_v19, 0.0  ;;  %v6559_v17 = vsel %vm2415_vm8, %v6527_v58, %v6260_v57  ;;  %v6340_v44 = vsel %vm332_vm0, %v7643_v46, %v14035_v61  ;;  %v6403_v10 = vsel %vm2250_vm3, %v6371_v39, %v14036_v38  ;;  %v14037_v58 = vld [vmem:[#allocation282_spill] sm:$0xff] }
 0x76c   : > { %v6262_v40 = vpop.permute.xlu1 %6261  ;;  %7530 = vmatprep.mubr.msk.f32.mxu0 %vm4027_vm9, %v6559_v17  ;;  %v6372_v57 = vsel %vm2217_vm2, %v6340_v44, %v14037_v58  ;;  %v14038_v17 = vld [vmem:[#allocation95_spill] sm:$0xff] }
 0x76d   : > { %6939 = vst.msk [vmem:[%s12645_s16] sm:$0xff] %vm332_vm0, %v6907_v11  ;;  %v6560_v35 = vsel %vm2415_vm8, %v6528_v13, %v6262_v40  ;;  %v6404_v13 = vsel %vm2250_vm3, %v6372_v57, %v14038_v17 }
 0x76e   : > { %v5880_v6 = vpop.permute.xlu0 %5879  ;;  %7531 = vmatmul.mubr.msk.f32.gmra.mxu0 %vm4027_vm9, %v6560_v35 }
 0x76f   : > { %v6465_v55 = vsel %vm2316_vm5, %v6433_v43, %v5880_v6 }
 0x770   : > { %v6008_v48 = vpop.permute.xlu1 %6007 }
 0x771   : > { %v6497_v4 = vsel %vm2349_vm6, %v6465_v55, %v6008_v48  ;;  %v7644_v55 = vld [vmem:[#allocation4 + $0x1a7] sm:$0xff] }
 0x772   : > { %v5882_v15 = vpop.permute.xlu0 %5881 }
 0x773   : > { %v6466_v28 = vsel %vm2316_vm5, %v6434_v20, %v5882_v15 }
 0x774   : > { %v6136_v54 = vpop.permute.xlu1 %6135 }
 0x775   : > { %v6529_v27 = vsel %vm2382_vm7, %v6497_v4, %v6136_v54 }
 0x776   : > { %v6010_v47 = vpop.permute.xlu0 %6009 }
 0x777   : > { %v6498_v25 = vsel %vm2349_vm6, %v6466_v28, %v6010_v47 }
 0x778   : > { %v6138_v31 = vpop.permute.xlu1 %6137 }
 0x779   : > { %v6530_v63 = vsel %vm2382_vm7, %v6498_v25, %v6138_v31  ;;  %v14042_v25 = vld [vmem:[#allocation96_spill] sm:$0xff] }
 0x77a   : > { %v7505_v59 = vpop.f32.mrf.mxu0  ;;  %v5756_v7 = vpop.permute.xlu0 %5755 }
 0x77b   : > { %v6764_v0 = vadd.f32 %v7505_v59, %v12630_v16  ;;  %v6435_v11 = vsel %vm2283_vm4, %v6403_v10, %v5756_v7  ;;  %v14039_v59 = vld [vmem:[#allocation57_spill] sm:$0xff] }
 0x77c   : > { %v5758_v29 = vpop.permute.xlu1 %5757  ;;  %v6758_v23 = vpop.f32.mrf.mxu0  ;;  %v6341_v7 = vsel %vm332_vm0, %v7644_v55, %v14039_v59  ;;  %v7647_v55 = vld [vmem:[#allocation4 + $0x1cf] sm:$0xff] }
 0x77d   : > { %v6910_v21 = vmax.f32 %v6764_v0, 0.0  ;;  %v6759_v5 = vadd.f32 %v12630_v16, %v6758_v23  ;;  %v6436_v48 = vsel %vm2283_vm4, %v6404_v13, %v5758_v29  ;;  %v14040_v0 = vld [vmem:[#allocation82_spill] sm:$0xff] }
 0x77e   : > { %v6264_v49 = vpop.permute.xlu0 %6263  ;;  %v6373_v28 = vsel %vm2217_vm2, %v6341_v7, %v14040_v0  ;;  %v7645_v29 = vld [vmem:[#allocation4 + $0x1af] sm:$0xff]  ;;  %v7646_v13 = vld [vmem:[#allocation4 + $0x1c7] sm:$0xff] }
 0x77f   : > { %6942 = vst.msk [vmem:[%s12645_s16 + $0x18] sm:$0xff] %vm332_vm0, %v6910_v21  ;;  %v6909_v52 = vmax.f32 %v6759_v5, 0.0  ;;  %v6561_v50 = vsel %vm2415_vm8, %v6529_v27, %v6264_v49  ;;  %v14041_v23 = vld [vmem:[#allocation54_spill] sm:$0xff]  ;;  %v6405_v21 = vsel %vm2250_vm3, %v6373_v28, %v14042_v25  ;;  %v14043_v27 = vld [vmem:[#allocation81_spill] sm:$0xff]  ;;  %v14049_v0 = vld [vmem:[#allocation83_spill] sm:$0xff] }
 0x780   : > { %v6266_v14 = vpop.permute.xlu1 %6265  ;;  %7533 = vmatprep.mubr.msk.f32.mxu0 %vm4027_vm9, %v6561_v50  ;;  %v6342_v4 = vsel %vm332_vm0, %v7645_v29, %v14041_v23  ;;  %v14044_v50 = vld [vmem:[#allocation420_spill] sm:$0xff]  ;;  %v14048_v59 = vld [vmem:[#allocation58_spill] sm:$0xff]  ;;  %v14050_v29 = vld [vmem:[#allocation97_spill] sm:$0xff] }
 0x781   : > { %6941 = vst.msk [vmem:[%s12645_s16 + $0x10] sm:$0xff] %vm332_vm0, %v6909_v52  ;;  %v6562_v1 = vsel %vm2415_vm8, %v6530_v63, %v6266_v14  ;;  %v6374_v49 = vsel %vm2217_vm2, %v6342_v4, %v14043_v27  ;;  %v6344_v7 = vsel %vm332_vm0, %v7647_v55, %v14048_v59 }
 0x782   : > { %v5884_v22 = vpop.permute.xlu0 %5883  ;;  %7534 = vmatmul.mubr.msk.f32.gmra.mxu0 %vm4027_vm9, %v6562_v1  ;;  %v6406_v63 = vsel %vm2250_vm3, %v6374_v49, %v14044_v50  ;;  %v6376_v28 = vsel %vm2217_vm2, %v6344_v7, %v14049_v0 }
 0x783   : > { %v6467_v40 = vsel %vm2316_vm5, %v6435_v11, %v5884_v22  ;;  %v6408_v23 = vsel %vm2250_vm3, %v6376_v28, %v14050_v29 }
 0x784   : > { %v6012_v34 = vpop.permute.xlu1 %6011 }
 0x785   : > { %v6499_v26 = vsel %vm2349_vm6, %v6467_v40, %v6012_v34  ;;  %v14045_v40 = vld [vmem:[#allocation61_spill] sm:$0xff] }
 0x786   : > { %v5886_v62 = vpop.permute.xlu0 %5885 }
 0x787   : > { %v6468_v54 = vsel %vm2316_vm5, %v6436_v48, %v5886_v62  ;;  %v14046_v48 = vld [vmem:[#allocation84_spill] sm:$0xff] }
 0x788   : > { %v6140_v3 = vpop.permute.xlu1 %6139 }
 0x789   : > { %v6531_v2 = vsel %vm2382_vm7, %v6499_v26, %v6140_v3 }
 0x78a   : > { %v6014_v18 = vpop.permute.xlu0 %6013 }
 0x78b   : > { %v6500_v47 = vsel %vm2349_vm6, %v6468_v54, %v6014_v18  ;;  %v14047_v54 = vld [vmem:[#allocation362_spill] sm:$0xff] }
 0x78c   : > { %v6142_v19 = vpop.permute.xlu1 %6141 }
 0x78d   : > { %v6532_v9 = vsel %vm2382_vm7, %v6500_v47, %v6142_v19 }
 0x78e   : > { %v5760_v35 = vpop.permute.xlu0 %5759  ;;  %v7508_v6 = vpop.f32.mrf.mxu0 }
 0x78f   : > { %v6774_v15 = vadd.f32 %v7508_v6, %v12630_v16  ;;  %v6437_v52 = vsel %vm2283_vm4, %v6405_v21, %v5760_v35  ;;  %v6343_v35 = vsel %vm332_vm0, %v7646_v13, %v14045_v40 }
 0x790   : > { %v5762_v60 = vpop.permute.xlu1 %5761  ;;  %v6768_v56 = vpop.f32.mrf.mxu0 }
 0x791   : > { %v6912_v24 = vmax.f32 %v6774_v15, 0.0  ;;  %v6769_v33 = vadd.f32 %v12630_v16, %v6768_v56  ;;  %v6438_v34 = vsel %vm2283_vm4, %v6406_v63, %v5762_v60  ;;  %v6375_v15 = vsel %vm2217_vm2, %v6343_v35, %v14046_v48 }
 0x792   : > { %v6268_v53 = vpop.permute.xlu0 %6267  ;;  %v6407_v60 = vsel %vm2250_vm3, %v6375_v15, %v14047_v54 }
 0x793   : > { %6944 = vst.msk [vmem:[%s12645_s16 + $0x28] sm:$0xff] %vm332_vm0, %v6912_v24  ;;  %v6911_v51 = vmax.f32 %v6769_v33, 0.0  ;;  %v6563_v45 = vsel %vm2415_vm8, %v6531_v2, %v6268_v53 }
 0x794   : > { %v6270_v31 = vpop.permute.xlu1 %6269  ;;  %7536 = vmatprep.mubr.msk.f32.mxu0 %vm4027_vm9, %v6563_v45 }
 0x795   : > { %6943 = vst.msk [vmem:[%s12645_s16 + $0x20] sm:$0xff] %vm332_vm0, %v6911_v51  ;;  %v6564_v12 = vsel %vm2415_vm8, %v6532_v9, %v6270_v31 }
 0x796   : > { %v5888_v36 = vpop.permute.xlu0 %5887  ;;  %7537 = vmatmul.mubr.msk.f32.gmra.mxu0 %vm4027_vm9, %v6564_v12 }
 0x797   : > { %v6469_v14 = vsel %vm2316_vm5, %v6437_v52, %v5888_v36 }
 0x798   : > { %v6016_v43 = vpop.permute.xlu1 %6015 }
 0x799   : > { %v6501_v8 = vsel %vm2349_vm6, %v6469_v14, %v6016_v43 }
 0x79a   : > { %v5890_v41 = vpop.permute.xlu0 %5889 }
 0x79b   : > { %v6470_v3 = vsel %vm2316_vm5, %v6438_v34, %v5890_v41 }
 0x79c   : > { %v6144_v30 = vpop.permute.xlu1 %6143 }
 0x79d   : > { %v6533_v46 = vsel %vm2382_vm7, %v6501_v8, %v6144_v30 }
 0x79e   : > { %v6018_v20 = vpop.permute.xlu0 %6017 }
 0x79f   : > { %v6502_v18 = vsel %vm2349_vm6, %v6470_v3, %v6018_v20  ;;  %v14052_v3 = vld [vmem:[#allocation65_spill] sm:$0xff] }
 0x7a0   : > { %v6146_v5 = vpop.permute.xlu1 %6145 }
 0x7a1   : > { %v6534_v10 = vsel %vm2382_vm7, %v6502_v18, %v6146_v5 }
 0x7a2   : > { %v5764_v1 = vpop.permute.xlu0 %5763  ;;  %v7511_v22 = vpop.f32.mrf.mxu0 }
 0x7a3   : > { %v6784_v62 = vadd.f32 %v7511_v22, %v12630_v16  ;;  %v6439_v26 = vsel %vm2283_vm4, %v6407_v60, %v5764_v1  ;;  %v7648_v1 = vld [vmem:[#allocation4 + $0x1ef] sm:$0xff] }
 0x7a4   : > { %v5766_v37 = vpop.permute.xlu1 %5765  ;;  %v6778_v32 = vpop.f32.mrf.mxu0  ;;  %v14051_v22 = vld [vmem:[#allocation62_spill] sm:$0xff] }
 0x7a5   : > { %v6914_v42 = vmax.f32 %v6784_v62, 0.0  ;;  %v6779_v39 = vadd.f32 %v12630_v16, %v6778_v32  ;;  %v6440_v25 = vsel %vm2283_vm4, %v6408_v23, %v5766_v37  ;;  %v6346_v34 = vsel %vm332_vm0, %v7648_v1, %v14051_v22  ;;  %v7649_v62 = vld [vmem:[#allocation4 + $0x1e7] sm:$0xff] }
 0x7a6   : > { %v6272_v61 = vpop.permute.xlu0 %6271  ;;  %v6345_v37 = vsel %vm332_vm0, %v7649_v62, %v14052_v3  ;;  %v14053_v32 = vld [vmem:[#allocation85_spill] sm:$0xff] }
 0x7a7   : > { %6946 = vst.msk [vmem:[%s12645_s16 + $0x38] sm:$0xff] %vm332_vm0, %v6914_v42  ;;  %v6913_v44 = vmax.f32 %v6779_v39, 0.0  ;;  %v6565_v38 = vsel %vm2415_vm8, %v6533_v46, %v6272_v61  ;;  %v6378_v8 = vsel %vm2217_vm2, %v6346_v34, %v14053_v32  ;;  %v14054_v42 = vld [vmem:[#allocation86_spill] sm:$0xff]  ;;  %v14055_v61 = vld [vmem:[#allocation99_spill] sm:$0xff] }
 0x7a8   : > { %v6274_v19 = vpop.permute.xlu1 %6273  ;;  %7539 = vmatprep.mubr.msk.f32.mxu0 %vm4027_vm9, %v6565_v38  ;;  %v6377_v39 = vsel %vm2217_vm2, %v6345_v37, %v14054_v42 }
 0x7a9   : > { %6945 = vst.msk [vmem:[%s12645_s16 + $0x30] sm:$0xff] %vm332_vm0, %v6913_v44  ;;  %v6566_v58 = vsel %vm2415_vm8, %v6534_v10, %v6274_v19  ;;  %v6409_v44 = vsel %vm2250_vm3, %v6377_v39, %v14055_v61 }
 0x7aa   : > { %v5892_v57 = vpop.permute.xlu0 %5891  ;;  %7540 = vmatmul.mubr.msk.f32.gmra.mxu0 %vm4027_vm9, %v6566_v58 }
 0x7ab   : > { %v6471_v47 = vsel %vm2316_vm5, %v6439_v26, %v5892_v57 }
 0x7ac   : > { %v6020_v11 = vpop.permute.xlu1 %6019 }
 0x7ad   : > { %v6503_v53 = vsel %vm2349_vm6, %v6471_v47, %v6020_v11 }
 0x7ae   : > { %v5894_v17 = vpop.permute.xlu0 %5893 }
 0x7af   : > { %v6472_v21 = vsel %vm2316_vm5, %v6440_v25, %v5894_v17 }
 0x7b0   : > { %v6148_v6 = vpop.permute.xlu1 %6147 }
 0x7b1   : > { %v6535_v45 = vsel %vm2382_vm7, %v6503_v53, %v6148_v6 }
 0x7b2   : > { %v6022_v56 = vpop.permute.xlu0 %6021 }
 0x7b3   : > { %v6504_v27 = vsel %vm2349_vm6, %v6472_v21, %v6022_v56 }
 0x7b4   : > { %v5768_v24 = vpop.permute.xlu1 %5767 }
 0x7b5   : > { %v6441_v58 = vsel %vm2283_vm4, %v6409_v44, %v5768_v24 }
 0x7b6   : > { %v5642_v33 = vpop.permute.xlu0 %5641  ;;  %v7514_v2 = vpop.f32.mrf.mxu0 }
 0x7b7   : > { %v6794_v51 = vadd.f32 %v7514_v2, %v12630_v16  ;;  %v6410_v46 = vsel %vm2250_vm3, %v6378_v8, %v5642_v33 }
 0x7b8   : > { %v6276_v9 = vpop.permute.xlu1 %6275  ;;  %v6788_v31 = vpop.f32.mrf.mxu0 }
 0x7b9   : > { %v6916_v12 = vmax.f32 %v6794_v51, 0.0  ;;  %v6567_v36 = vsel %vm2415_vm8, %v6535_v45, %v6276_v9  ;;  %v6789_v43 = vadd.f32 %v12630_v16, %v6788_v31 }
 0x7ba   : > { %v6150_v41 = vpop.permute.xlu0 %6149  ;;  %7542 = vmatprep.mubr.msk.f32.mxu0 %vm4027_vm9, %v6567_v36 }
 0x7bb   : > { %6948 = vst.msk [vmem:[%s12645_s16 + $0x48] sm:$0xff] %vm332_vm0, %v6916_v12  ;;  %v6915_v30 = vmax.f32 %v6789_v43, 0.0  ;;  %v6536_v49 = vsel %vm2382_vm7, %v6504_v27, %v6150_v41 }
 0x7bc   : > { %v5896_v20 = vpop.permute.xlu1 %5895 }
 0x7bd   : > { %6947 = vst.msk [vmem:[%s12645_s16 + $0x40] sm:$0xff] %vm332_vm0, %v6915_v30  ;;  %v6473_v11 = vsel %vm2316_vm5, %v6441_v58, %v5896_v20 }
 0x7be   : > { %v5770_v4 = vpop.permute.xlu0 %5769 }
 0x7bf   : > { %v6442_v38 = vsel %vm2283_vm4, %v6410_v46, %v5770_v4 }
 0x7c0   : > { %v5898_v5 = vpop.permute.xlu1 %5897 }
 0x7c1   : > { %v6474_v13 = vsel %vm2316_vm5, %v6442_v38, %v5898_v5 }
 0x7c2   : > { %v6278_v52 = vpop.permute.xlu0 %6277 }
 0x7c3   : > { %v6568_v50 = vsel %vm2415_vm8, %v6536_v49, %v6278_v52 }
 0x7c4   : > { %v6026_v63 = vpop.permute.xlu1 %6025  ;;  %7543 = vmatmul.mubr.msk.f32.gmra.mxu0 %vm4027_vm9, %v6568_v50 }
 0x7c5   : > { %v6506_v15 = vsel %vm2349_vm6, %v6474_v13, %v6026_v63 }
 0x7c6   : > { %v6024_v14 = vpop.permute.xlu0 %6023 }
 0x7c7   : > { %v6505_v40 = vsel %vm2349_vm6, %v6473_v11, %v6024_v14 }
 0x7c8   : > { %v6154_v18 = vpop.permute.xlu1 %6153 }
 0x7c9   : > { %v6538_v56 = vsel %vm2382_vm7, %v6506_v15, %v6154_v18 }
 0x7ca   : > { %v6152_v10 = vpop.permute.xlu0 %6151  ;;  %v7517_v19 = vpop.f32.mrf.mxu0 }
 0x7cb   : > { %v6804_v57 = vadd.f32 %v7517_v19, %v12630_v16  ;;  %v6537_v54 = vsel %vm2382_vm7, %v6505_v40, %v6152_v10 }
 0x7cc   : > { %v6798_v17 = vpop.f32.mrf.mxu0  ;;  %v6282_v6 = vpop.permute.xlu1 %6281 }
 0x7cd   : > { %v6918_v35 = vmax.f32 %v6804_v57, 0.0  ;;  %v6799_v48 = vadd.f32 %v12630_v16, %v6798_v17  ;;  %v6570_v24 = vsel %vm2415_vm8, %v6538_v56, %v6282_v6 }
 0x7ce   : > { %v6280_v60 = vpop.permute.xlu0 %6279 }
 0x7cf   : > { %6950 = vst.msk [vmem:[%s12645_s16 + $0x58] sm:$0xff] %vm332_vm0, %v6918_v35  ;;  %v6917_v26 = vmax.f32 %v6799_v48, 0.0  ;;  %v6569_v47 = vsel %vm2415_vm8, %v6537_v54, %v6280_v60 }
 0x7d0   : > { %7545 = vmatprep.mubr.msk.f32.mxu0 %vm4027_vm9, %v6569_v47 }
 0x7d1   : > { %6949 = vst.msk [vmem:[%s12645_s16 + $0x50] sm:$0xff] %vm332_vm0, %v6917_v26  ;;  %7546 = vmatmul.mubr.msk.f32.gmra.mxu0 %vm4027_vm9, %v6570_v24 }
 0x7de   : > { %v7520_v33 = vpop.f32.mrf.mxu0 }
 0x7df   : > { %v6814_v2 = vadd.f32 %v7520_v33, %v12630_v16 }
 0x7e0   : > { %v6808_v53 = vpop.f32.mrf.mxu0 }
 0x7e1   : > { %v6920_v51 = vmax.f32 %v6814_v2, 0.0  ;;  %v6809_v45 = vadd.f32 %v12630_v16, %v6808_v53 }
 0x7e3   : > { %6952 = vst.msk [vmem:[%s12645_s16 + $0x68] sm:$0xff] %vm332_vm0, %v6920_v51  ;;  %v6919_v9 = vmax.f32 %v6809_v45, 0.0 }
 0x7e5   : > { %6951 = vst.msk [vmem:[%s12645_s16 + $0x60] sm:$0xff] %vm332_vm0, %v6919_v9 }
 0x7f2   : > { %v7523_v31 = vpop.f32.mrf.mxu0 }
 0x7f3   : > { %v6824_v12 = vadd.f32 %v7523_v31, %v12630_v16 }
 0x7f4   : > { %v6818_v36 = vpop.f32.mrf.mxu0 }
 0x7f5   : > { %v6922_v43 = vmax.f32 %v6824_v12, 0.0  ;;  %v6819_v41 = vadd.f32 %v12630_v16, %v6818_v36 }
 0x7f7   : > { %6954 = vst.msk [vmem:[%s12645_s16 + $0x78] sm:$0xff] %vm332_vm0, %v6922_v43  ;;  %v6921_v30 = vmax.f32 %v6819_v41, 0.0 }
 0x7f9   : > { %6953 = vst.msk [vmem:[%s12645_s16 + $0x70] sm:$0xff] %vm332_vm0, %v6921_v30 }
 0x806   : > { %v7526_v55 = vpop.f32.mrf.mxu0 }
 0x807   : > { %v6834_v59 = vadd.f32 %v7526_v55, %v12630_v16 }
 0x808   : > { %v6828_v7 = vpop.f32.mrf.mxu0 }
 0x809   : > { %v6924_v20 = vmax.f32 %v6834_v59, 0.0  ;;  %v6829_v0 = vadd.f32 %v12630_v16, %v6828_v7 }
 0x80b   : > { %6956 = vst.msk [vmem:[%s12645_s16 + $0x88] sm:$0xff] %vm332_vm0, %v6924_v20  ;;  %v6923_v28 = vmax.f32 %v6829_v0, 0.0 }
 0x80d   : > { %6955 = vst.msk [vmem:[%s12645_s16 + $0x80] sm:$0xff] %vm332_vm0, %v6923_v28 }
 0x81a   : > { %v7529_v29 = vpop.f32.mrf.mxu0 }
 0x81b   : > { %v6844_v23 = vadd.f32 %v7529_v29, %v12630_v16 }
 0x81c   : > { %v6838_v4 = vpop.f32.mrf.mxu0 }
 0x81d   : > { %v6926_v25 = vmax.f32 %v6844_v23, 0.0  ;;  %v6839_v21 = vadd.f32 %v12630_v16, %v6838_v4 }
 0x81f   : > { %6958 = vst.msk [vmem:[%s12645_s16 + $0x98] sm:$0xff] %vm332_vm0, %v6926_v25  ;;  %v6925_v5 = vmax.f32 %v6839_v21, 0.0 }
 0x821   : > { %6957 = vst.msk [vmem:[%s12645_s16 + $0x90] sm:$0xff] %vm332_vm0, %v6925_v5 }
 0x82e   : > { %v7532_v27 = vpop.f32.mrf.mxu0 }
 0x82f   : > { %v6854_v49 = vadd.f32 %v7532_v27, %v12630_v16 }
 0x830   : > { %v6848_v52 = vpop.f32.mrf.mxu0 }
 0x831   : > { %v6928_v50 = vmax.f32 %v6854_v49, 0.0  ;;  %v6849_v63 = vadd.f32 %v12630_v16, %v6848_v52 }
 0x833   : > { %6960 = vst.msk [vmem:[%s12645_s16 + $0xa8] sm:$0xff] %vm332_vm0, %v6928_v50  ;;  %v6927_v14 = vmax.f32 %v6849_v63, 0.0 }
 0x835   : > { %6959 = vst.msk [vmem:[%s12645_s16 + $0xa0] sm:$0xff] %vm332_vm0, %v6927_v14 }
 0x842   : > { %v7535_v1 = vpop.f32.mrf.mxu0 }
 0x843   : > { %v6864_v22 = vadd.f32 %v7535_v1, %v12630_v16 }
 0x844   : > { %v6858_v34 = vpop.f32.mrf.mxu0 }
 0x845   : > { %v6930_v62 = vmax.f32 %v6864_v22, 0.0  ;;  %v6859_v3 = vadd.f32 %v12630_v16, %v6858_v34 }
 0x847   : > { %6962 = vst.msk [vmem:[%s12645_s16 + $0xb8] sm:$0xff] %vm332_vm0, %v6930_v62  ;;  %v6929_v37 = vmax.f32 %v6859_v3, 0.0 }
 0x849   : > { %6961 = vst.msk [vmem:[%s12645_s16 + $0xb0] sm:$0xff] %vm332_vm0, %v6929_v37 }
 0x856   : > { %v7538_v32 = vpop.f32.mrf.mxu0 }
 0x857   : > { %v6874_v8 = vadd.f32 %v7538_v32, %v12630_v16 }
 0x858   : > { %v6868_v18 = vpop.f32.mrf.mxu0 }
 0x859   : > { %v6932_v42 = vmax.f32 %v6874_v8, 0.0  ;;  %v6869_v39 = vadd.f32 %v12630_v16, %v6868_v18 }
 0x85b   : > { %6964 = vst.msk [vmem:[%s12645_s16 + $0xc8] sm:$0xff] %vm332_vm0, %v6932_v42  ;;  %v6931_v46 = vmax.f32 %v6869_v39, 0.0 }
 0x85d   : > { %6963 = vst.msk [vmem:[%s12645_s16 + $0xc0] sm:$0xff] %vm332_vm0, %v6931_v46 }
 0x86a   : > { %v7541_v61 = vpop.f32.mrf.mxu0 }
 0x86b   : > { %v6884_v44 = vadd.f32 %v7541_v61, %v12630_v16 }
 0x86c   : > { %v6878_v38 = vpop.f32.mrf.mxu0 }
 0x86d   : > { %v6934_v10 = vmax.f32 %v6884_v44, 0.0  ;;  %v6879_v19 = vadd.f32 %v12630_v16, %v6878_v38 }
 0x86f   : > { %6966 = vst.msk [vmem:[%s12645_s16 + $0xd8] sm:$0xff] %vm332_vm0, %v6934_v10  ;;  %v6933_v58 = vmax.f32 %v6879_v19, 0.0 }
 0x871   : > { %6965 = vst.msk [vmem:[%s12645_s16 + $0xd0] sm:$0xff] %vm332_vm0, %v6933_v58 }
 0x884   : > { %v7544_v57 = vpop.f32.mrf.mxu0 }
 0x885   : > { %v6894_v11 = vadd.f32 %v7544_v57, %v12630_v16 }
 0x886   : > { %v6888_v17 = vpop.f32.mrf.mxu0 }
 0x887   : > { %v6936_v13 = vmax.f32 %v6894_v11, 0.0  ;;  %v6889_v40 = vadd.f32 %v12630_v16, %v6888_v17 }
 0x889   : > { %6968 = vst.msk [vmem:[%s12645_s16 + $0xe8] sm:$0xff] %vm332_vm0, %v6936_v13  ;;  %v6935_v35 = vmax.f32 %v6889_v40, 0.0 }
 0x88b   : > { %6967 = vst.msk [vmem:[%s12645_s16 + $0xe0] sm:$0xff] %vm332_vm0, %v6935_v35 }
 0x891   : > { %v7547_v6 = vpop.f32.mrf.mxu0 }
 0x892   : > { %v6904_v48 = vadd.f32 %v7547_v6, %v12630_v16 }
 0x893   : > { %v6898_v15 = vpop.f32.mrf.mxu0 }
 0x894   : > { %v6938_v54 = vmax.f32 %v6904_v48, 0.0  ;;  %v6899_v60 = vadd.f32 %v12630_v16, %v6898_v15 }
 0x896   : > { %6970 = vst.msk [vmem:[%s12645_s16 + $0xf8] sm:$0xff] %vm332_vm0, %v6938_v54  ;;  %v6937_v56 = vmax.f32 %v6899_v60, 0.0 }
 0x898   : > { %6969 = vst.msk [vmem:[%s12645_s16 + $0xf0] sm:$0xff] %vm332_vm0, %v6937_v56 }
 0x899 PF: > { %s17_s24 = sadd.s32 1, %s7656_s24  }
 0x89a   : > { %p14_p4 = scmp.ge.s32.totalorder %s17_s24, 4  }
 0x89c   :  { %16 = sbr.rel (!%p14_p4) target bundleno = 1 (0x1), region = 90 }

</bundles_post_ra>
